<compile_context>
chip_gen: v5e
topology: v5e:2x2
jax: 0.10.0
libtpu: 0.0.40
codegen_flags: <defaults>
</compile_context>

<pallas_src>
import functools

import numpy as np
import jax
import jax.numpy as jnp
from jax.experimental import pallas as pl
from jax.experimental.pallas import tpu as pltpu


# ----------------------------------------------------------------------------
# Pallas kernel 1: fused Linear + bias + ReLU
# ----------------------------------------------------------------------------
def _linear_relu_kernel(x_ref, w_ref, b_ref, o_ref):
    y = jnp.dot(x_ref[...], w_ref[...], preferred_element_type=jnp.float32)
    y = jnp.maximum(y + b_ref[...], 0.0)
    o_ref[...] = y.astype(o_ref.dtype)


def linear_relu(x, w, b_row, *, out_dtype):
    """y = relu(x @ w + b).  x:(B,F) bf16, w:(F,N) bf16, b:(1,N) f32 -> (B,N)."""
    B, F = x.shape
    N = w.shape[1]
    # Whole weight + full N in one block (a few MB at the real config, fits VMEM
    # easily); only tile the batch axis for large, 8-divisible batches.
    tb = 8 if (B > 8 and B % 8 == 0) else B
    return pl.pallas_call(
        _linear_relu_kernel,
        out_shape=jax.ShapeDtypeStruct((B, N), out_dtype),
        grid=(B // tb,),
        in_specs=[
            pl.BlockSpec((tb, F), lambda i: (i, 0)),
            pl.BlockSpec((F, N), lambda i: (0, 0)),
            pl.BlockSpec((1, N), lambda i: (0, 0)),
        ],
        out_specs=pl.BlockSpec((tb, N), lambda i: (i, 0)),
        compiler_params=pltpu.CompilerParams(dimension_semantics=("parallel",)),
    )(x, w, b_row)


# ----------------------------------------------------------------------------
# Pallas kernel 2: generic tap-accumulation ConvTranspose2d kernel.
#   One grid step = one image.  For each "phase" (1 phase for stride-1 layers,
#   4 polyphase outputs for the stride-2 final layer) accumulate
#       acc[co, l] += sum_taps  W_tap[co, :] @ x[:, l + lane_offset]
#   into a VMEM f32 scratch, add bias, optional ReLU, store one lane-dense slab.
# ----------------------------------------------------------------------------
def _conv_taps_kernel(x_ref, w_ref, b_ref, o_ref, acc_ref, *, phase_taps, L, relu):
    # x_ref  : (1, Cin, Np)   flattened zero-padded image (lanes = H*W, bf16)
    # w_ref  : (9, Cout, Cin) tap matrices  V[ky*3+kx][co, ci] = W[ci, co, ky, kx]
    # b_ref  : (Cout, 1) f32
    # o_ref  : (1, P, Cout, L)
    # acc_ref: (Cout, L) f32 scratch
    for p, taps in enumerate(phase_taps):
        acc_ref[...] = jnp.zeros_like(acc_ref)
        for off, t in taps:  # static Python unroll (<= 9 taps)
            acc_ref[...] += jnp.dot(
                w_ref[t],
                x_ref[0, :, pl.ds(off, L)],
                preferred_element_type=jnp.float32,
            )
        y = acc_ref[...] + b_ref[...]
        if relu:
            y = jnp.maximum(y, 0.0)
        o_ref[0, p] = y.astype(o_ref.dtype)


def _conv_taps_call(xf, w_taps, b_col, *, phase_taps, L, relu, out_dtype):
    B, Cin, Np = xf.shape
    T, Cout, _ = w_taps.shape
    P = len(phase_taps)
    kern = functools.partial(_conv_taps_kernel, phase_taps=phase_taps, L=L, relu=relu)
    return pl.pallas_call(
        kern,
        out_shape=jax.ShapeDtypeStruct((B, P, Cout, L), out_dtype),
        grid=(B,),
        in_specs=[
            pl.BlockSpec((1, Cin, Np), lambda b: (b, 0, 0)),
            pl.BlockSpec((T, Cout, Cin), lambda b: (0, 0, 0)),
            pl.BlockSpec((Cout, 1), lambda b: (0, 0)),
        ],
        out_specs=pl.BlockSpec((1, P, Cout, L), lambda b: (b, 0, 0, 0)),
        scratch_shapes=[pltpu.VMEM((Cout, L), jnp.float32)],
        compiler_params=pltpu.CompilerParams(dimension_semantics=("parallel",)),
    )(xf, w_taps, b_col)


# ----------------------------------------------------------------------------
# Thin XLA glue: trim wrap-junk columns + zero-pad + flatten (one fused copy per
# layer), then call the Pallas conv kernel.
# ----------------------------------------------------------------------------
def _pad_flatten(x4, Hv, Wv, pad):
    """x4:(B,C,Hc,Wc) container with valid region (Hv,Wv).  Returns the spatially
    zero-padded image flattened to (B, C, Hp*Wp) (+1 slack row at the bottom for
    the row-wrap trick) and the padded width Wp."""
    xv = x4[:, :, :Hv, :Wv]
    xp = jnp.pad(xv, ((0, 0), (0, 0), (pad, pad + 1), (pad, pad)))
    B, C, Hp, Wp = xp.shape
    return xp.reshape(B, C, Hp * Wp), Wp


def conv_transpose_s1(x4, Hv, Wv, w_taps, b_col, *, out_dtype):
    """ConvTranspose2d(k=3, s=1, pad=0) + ReLU (= correlation with flipped kernel
    on a 2-padded input)."""
    B = x4.shape[0]
    Cout = w_taps.shape[1]
    xf, Wp = _pad_flatten(x4, Hv, Wv, pad=2)
    Ho, Wo = Hv + 2, Wv + 2
    L = Ho * Wp
    taps = tuple((ey * Wp + ex, (2 - ey) * 3 + (2 - ex))
                 for ey in range(3) for ex in range(3))
    out = _conv_taps_call(xf, w_taps, b_col, phase_taps=(taps,), L=L,
                          relu=True, out_dtype=out_dtype)          # (B,1,Cout,L)
    # Container (B, Cout, Ho, Wp); columns [Wo, Wp) are wrap junk and are dropped
    # by the next layer's _pad_flatten (fused with its zero-pad).
    return out.reshape(B, Cout, Ho, Wp), Ho, Wo


def conv_transpose_s2_final(x4, Hv, Wv, w_taps, b_col):
    """ConvTranspose2d(k=3, s=2, pad=0, output_padding=1), no activation, as a
    4-phase polyphase correlation on the un-dilated input."""
    B = x4.shape[0]
    Cout = w_taps.shape[1]
    xf, Wq = _pad_flatten(x4, Hv, Wv, pad=1)
    A, Cc = Hv + 1, Wv + 1              # output image is (2A, 2Cc) = (84, 84)
    L = A * Wq
    idx = lambda ky, kx: ky * 3 + kx
    phase_taps = (
        ((0, idx(2, 2)), (1, idx(2, 0)), (Wq, idx(0, 2)), (Wq + 1, idx(0, 0))),  # (even,even)
        ((1, idx(2, 1)), (Wq + 1, idx(0, 1))),                                   # (even,odd)
        ((Wq, idx(1, 2)), (Wq + 1, idx(1, 0))),                                  # (odd,even)
        ((Wq + 1, idx(1, 1)),),                                                  # (odd,odd)
    )
    out = _conv_taps_call(xf, w_taps, b_col, phase_taps=phase_taps, L=L,
                          relu=False, out_dtype=jnp.float32)        # (B,4,Cout,L)
    out = out.reshape(B, 2, 2, Cout, A, Wq)[..., :Cc]
    out = out.transpose(0, 3, 4, 1, 5, 2).reshape(B, Cout, 2 * A, 2 * Cc)
    return out


# ----------------------------------------------------------------------------
# Full decoder forward
# ----------------------------------------------------------------------------
def pixel_decoder_forward(feat, packed, *, out_dim, channel_num, img_channels,
                          strides, act_dtype=jnp.bfloat16):
    # TODO(synk): only kernel_size=3 with strides (1,...,1,2) (the module
    # defaults) are implemented; other configs need different tap tables.
    assert all(int(s) == 1 for s in strides[:-1]) and int(strides[-1]) == 2
    B = feat.shape[0]
    C0 = channel_num[0]

    h = linear_relu(feat.astype(act_dtype), packed["lin_w"], packed["lin_b"],
                    out_dtype=act_dtype)                          # (B, C0*D*D)
    x4 = h.reshape(B, C0, out_dim, out_dim)                       # NCHW, free reshape
    Hv = Wv = out_dim

    for i in range(len(channel_num) - 1):
        x4, Hv, Wv = conv_transpose_s1(x4, Hv, Wv, packed[f"ct{i}_w"],
                                       packed[f"ct{i}_b"], out_dtype=act_dtype)

    return conv_transpose_s2_final(x4, Hv, Wv, packed["ct_last_w"],
                                   packed["ct_last_b"])           # (B,Cimg,84,84) f32


# ----------------------------------------------------------------------------
# One-time parameter packing (outside the per-forward path): PyTorch layouts ->
# kernel-friendly bf16 tap matrices / f32 column biases.
# ----------------------------------------------------------------------------
def pack_params(p, *, compute_dtype=jnp.bfloat16):
    def pack_ct(w_t):  # (Cin, Cout, KH, KW) -> (KH*KW, Cout, Cin)
        cin, cout, kh, kw = w_t.shape
        return jnp.transpose(w_t, (2, 3, 1, 0)).reshape(kh * kw, cout, cin).astype(compute_dtype)

    q = {
        "lin_w": p["lin_w"].astype(compute_dtype),
        "lin_b": p["lin_b"].reshape(1, -1).astype(jnp.float32),
        "ct_last_w": pack_ct(p["ct_last_w"]),
        "ct_last_b": p["ct_last_b"].reshape(-1, 1).astype(jnp.float32),
    }
    i = 0
    while f"ct{i}_w" in p:
        q[f"ct{i}_w"] = pack_ct(p[f"ct{i}_w"])
        q[f"ct{i}_b"] = p[f"ct{i}_b"].reshape(-1, 1).astype(jnp.float32)
        i += 1
    return q


# ----------------------------------------------------------------------------
# Deterministic parameter init (synthetic; shapes follow PixelDecoder.__init__)
# ----------------------------------------------------------------------------
def init_params(key, feature_dim, channel_num, out_dim, img_channels, k=3):
    keys = jax.random.split(key, 2 + 2 * len(channel_num))
    p = {}
    C0 = channel_num[0]
    p["lin_w"] = 0.05 * jax.random.normal(
        keys[0], (feature_dim, C0 * out_dim * out_dim), jnp.float32)
    p["lin_b"] = 0.05 * jax.random.normal(
        keys[1], (C0 * out_dim * out_dim,), jnp.float32)
    for i in range(len(channel_num) - 1):
        p[f"ct{i}_w"] = 0.05 * jax.random.normal(
            keys[2 + 2 * i], (channel_num[i], channel_num[i + 1], k, k), jnp.float32)
        p[f"ct{i}_b"] = 0.05 * jax.random.normal(
            keys[3 + 2 * i], (channel_num[i + 1],), jnp.float32)
    p["ct_last_w"] = 0.05 * jax.random.normal(
        keys[-2], (channel_num[-1], img_channels, k, k), jnp.float32)
    p["ct_last_b"] = 0.05 * jax.random.normal(
        keys[-1], (img_channels,), jnp.float32)
    return p


# ----------------------------------------------------------------------------
# NumPy reference (PyTorch ConvTranspose2d semantics) for correctness check
# ----------------------------------------------------------------------------
def _np_conv_transpose2d(x, w, b, s, op):
    # x: (N, Cin, H, W); w: (Cin, Cout, KH, KW)
    N, Cin, H, W = x.shape
    Cout, KH, KW = w.shape[1], w.shape[2], w.shape[3]
    Ho = (H - 1) * s + KH + op
    Wo = (W - 1) * s + KW + op
    out = np.zeros((N, Cout, Ho, Wo), np.float32)
    for ky in range(KH):
        for kx in range(KW):
            contrib = np.einsum("nchw,cd->ndhw", x, w[:, :, ky, kx])
            out[:, :, ky:ky + (H - 1) * s + 1:s, kx:kx + (W - 1) * s + 1:s] += contrib
    return out + b[None, :, None, None]


def np_reference(feat, p, *, out_dim, channel_num, strides):
    y = feat @ p["lin_w"] + p["lin_b"]
    y = np.maximum(y, 0.0)
    h = y.reshape(feat.shape[0], channel_num[0], out_dim, out_dim)
    for i in range(len(channel_num) - 1):
        h = _np_conv_transpose2d(h, p[f"ct{i}_w"], p[f"ct{i}_b"], strides[i], 0)
        h = np.maximum(h, 0.0)
    h = _np_conv_transpose2d(h, p["ct_last_w"], p["ct_last_b"], strides[-1], 1)
    return h


# ----------------------------------------------------------------------------
if __name__ == "__main__":
    key = jax.random.PRNGKey(0)
    kp, kx = jax.random.split(key)

    # small but architecture-consistent config
    B = 2
    feature_dim = 32            # module's feature_dim (default 50; small here)
    channel_num = (8, 8, 8, 8)  # module's channel_num (default (32,)*4; small here)
    img_channels = 4            # state_dim = (4, 84, 84) -- 84x84 is required
    strides = (1, 1, 1, 2)
    out_dim = 35                # OUT_DIM[layer_num=4]

    params = init_params(kp, feature_dim, channel_num, out_dim, img_channels)
    packed = pack_params(params)            # one-time weight packing (outside jit)
    feat = jax.random.normal(kx, (B, feature_dim), jnp.float32)

    fwd = jax.jit(functools.partial(
        pixel_decoder_forward,
        out_dim=out_dim, channel_num=channel_num,
        img_channels=img_channels, strides=strides))

    out = jax.block_until_ready(fwd(feat, packed))
    assert out.shape == (B, img_channels, 84, 84), out.shape

    ref = np_reference(
        np.asarray(feat), {k: np.asarray(v) for k, v in params.items()},
        out_dim=out_dim, channel_num=channel_num, strides=strides)

    out_np = np.asarray(out, np.float32)
    if not np.allclose(out_np, ref, rtol=1e-2, atol=1e-2):
        raise AssertionError(
            "mismatch vs reference: max abs diff %g"
            % float(np.max(np.abs(out_np - ref))))
    print("KERNEL_OK")
</pallas_src>

<mosaic_0001>
module attributes {stable_mosaic.version = 11 : i64} {
  func.func @_linear_relu_kernel(%arg0: i32, %arg1: memref<2x32xbf16, #tpu.memory_space<vmem>>, %arg2: memref<32x9800xbf16, #tpu.memory_space<vmem>>, %arg3: memref<1x9800xf32, #tpu.memory_space<vmem>>, %arg4: memref<2x9800xbf16, #tpu.memory_space<vmem>>) attributes {dimension_semantics = [#tpu.dimension_semantics<parallel>], iteration_bounds = array<i64: 1>, scalar_prefetch = 0 : i64, scratch_operands = 0 : i64, tpu.core_type = #tpu.core_type<tc>, window_params = [{transform_indices = @transform_0, window_bounds = array<i64: 2, 32>}, {pipeline_mode = #tpu.pipeline_mode<synchronous>, transform_indices = @transform_1, window_bounds = array<i64: 32, 9800>}, {pipeline_mode = #tpu.pipeline_mode<synchronous>, transform_indices = @transform_2, window_bounds = array<i64: 1, 9800>}, {transform_indices = @transform_3, window_bounds = array<i64: 2, 9800>}]} {
    %c0 = arith.constant 0 : index
    %c0_0 = arith.constant 0 : index
    %0 = vector.load %arg1[%c0, %c0_0] : memref<2x32xbf16, #tpu.memory_space<vmem>>, vector<2x32xbf16>
    %c0_1 = arith.constant 0 : index
    %c0_2 = arith.constant 0 : index
    %1 = vector.load %arg2[%c0_1, %c0_2] : memref<32x9800xbf16, #tpu.memory_space<vmem>>, vector<32x9800xbf16>
    %cst = arith.constant dense<0.000000e+00> : vector<2x9800xf32>
    %2 = tpu.matmul %0, %1, %cst {dimension_numbers = #tpu.dot_dimension_numbers<[1], [0], [0], [1], [0, 0, 1, 1], [], []>} : vector<2x32xbf16>, vector<32x9800xbf16>, vector<2x9800xf32> -> vector<2x9800xf32>
    %c0_3 = arith.constant 0 : index
    %c0_4 = arith.constant 0 : index
    %3 = vector.load %arg3[%c0_3, %c0_4] : memref<1x9800xf32, #tpu.memory_space<vmem>>, vector<1x9800xf32>
    %4 = vector.broadcast %3 : vector<1x9800xf32> to vector<2x9800xf32>
    %5 = arith.addf %2, %4 : vector<2x9800xf32>
    %cst_5 = arith.constant 0.000000e+00 : f32
    %6 = vector.broadcast %cst_5 : f32 to vector<2x9800xf32>
    %7 = arith.maximumf %5, %6 : vector<2x9800xf32>
    %8 = arith.truncf %7 : vector<2x9800xf32> to vector<2x9800xbf16>
    %c0_6 = arith.constant 0 : index
    %c0_7 = arith.constant 0 : index
    %9 = vector.load %arg4[%c0_6, %c0_7] : memref<2x9800xbf16, #tpu.memory_space<vmem>>, vector<2x9800xbf16>
    tpu.vector_store %arg4[%c0_6, %c0_7], %8 {strides = array<i32>} : memref<2x9800xbf16, #tpu.memory_space<vmem>>, vector<2x9800xbf16>,
    return
  }
  func.func @transform_0(%arg0: i32) -> (i32, i32) {
    %c0_i32 = arith.constant 0 : i32
    %c0_i32_0 = arith.constant 0 : i32
    return %arg0, %c0_i32 : i32, i32
  }
  func.func @transform_1(%arg0: i32) -> (i32, i32) {
    %c0_i32 = arith.constant 0 : i32
    %c0_i32_0 = arith.constant 0 : i32
    %c0_i32_1 = arith.constant 0 : i32
    return %c0_i32, %c0_i32_0 : i32, i32
  }
  func.func @transform_2(%arg0: i32) -> (i32, i32) {
    %c0_i32 = arith.constant 0 : i32
    %c0_i32_0 = arith.constant 0 : i32
    %c0_i32_1 = arith.constant 0 : i32
    return %c0_i32, %c0_i32_0 : i32, i32
  }
  func.func @transform_3(%arg0: i32) -> (i32, i32) {
    %c0_i32 = arith.constant 0 : i32
    %c0_i32_0 = arith.constant 0 : i32
    return %arg0, %c0_i32 : i32, i32
  }
}

module attributes {stable_mosaic.version = 11 : i64} {
  func.func @_conv_taps_kernel(%arg0: i32, %arg1: memref<1x8x1560xbf16, #tpu.memory_space<vmem>>, %arg2: memref<9x8x8xbf16, #tpu.memory_space<vmem>>, %arg3: memref<8x1xf32, #tpu.memory_space<vmem>>, %arg4: memref<1x1x8x1443xbf16, #tpu.memory_space<vmem>>, %arg5: memref<8x1443xf32, #tpu.memory_space<vmem>>) attributes {dimension_semantics = [#tpu.dimension_semantics<parallel>], iteration_bounds = array<i64: 2>, scalar_prefetch = 0 : i64, scratch_operands = 1 : i64, tpu.core_type = #tpu.core_type<tc>, window_params = [{transform_indices = @transform_0, window_bounds = array<i64: 1, 8, 1560>}, {pipeline_mode = #tpu.pipeline_mode<synchronous>, transform_indices = @transform_1, window_bounds = array<i64: 9, 8, 8>}, {pipeline_mode = #tpu.pipeline_mode<synchronous>, transform_indices = @transform_2, window_bounds = array<i64: 8, 1>}, {transform_indices = @transform_3, window_bounds = array<i64: 1, 1, 8, 1443>}]} {
    %cst = arith.constant 0.000000e+00 : f32
    %0 = vector.broadcast %cst : f32 to vector<8x1443xf32>
    %c0 = arith.constant 0 : index
    %c0_0 = arith.constant 0 : index
    %1 = vector.load %arg5[%c0, %c0_0] : memref<8x1443xf32, #tpu.memory_space<vmem>>, vector<8x1443xf32>
    tpu.vector_store %arg5[%c0, %c0_0], %0 {strides = array<i32>} : memref<8x1443xf32, #tpu.memory_space<vmem>>, vector<8x1443xf32>,
    %c0_1 = arith.constant 0 : index
    %c0_2 = arith.constant 0 : index
    %2 = vector.load %arg5[%c0_1, %c0_2] : memref<8x1443xf32, #tpu.memory_space<vmem>>, vector<8x1443xf32>
    %c8 = arith.constant 8 : index
    %c0_3 = arith.constant 0 : index
    %c0_4 = arith.constant 0 : index
    %3 = vector.load %arg2[%c8, %c0_3, %c0_4] : memref<9x8x8xbf16, #tpu.memory_space<vmem>>, vector<1x8x8xbf16>
    %4 = vector.shape_cast %3 : vector<1x8x8xbf16> to vector<8x8xbf16>
    %c0_5 = arith.constant 0 : index
    %c0_6 = arith.constant 0 : index
    %c0_7 = arith.constant 0 : index
    %5 = vector.load %arg1[%c0_5, %c0_6, %c0_7] : memref<1x8x1560xbf16, #tpu.memory_space<vmem>>, vector<1x8x1443xbf16>
    %6 = vector.shape_cast %5 : vector<1x8x1443xbf16> to vector<8x1443xbf16>
    %cst_8 = arith.constant dense<0.000000e+00> : vector<8x1443xf32>
    %7 = tpu.matmul %4, %6, %cst_8 {dimension_numbers = #tpu.dot_dimension_numbers<[1], [0], [0], [1], [0, 0, 1, 1], [], []>} : vector<8x8xbf16>, vector<8x1443xbf16>, vector<8x1443xf32> -> vector<8x1443xf32>
    %8 = arith.addf %2, %7 : vector<8x1443xf32>
    %c0_9 = arith.constant 0 : index
    %c0_10 = arith.constant 0 : index
    %9 = vector.load %arg5[%c0_9, %c0_10] : memref<8x1443xf32, #tpu.memory_space<vmem>>, vector<8x1443xf32>
    tpu.vector_store %arg5[%c0_9, %c0_10], %8 {strides = array<i32>} : memref<8x1443xf32, #tpu.memory_space<vmem>>, vector<8x1443xf32>,
    %c0_11 = arith.constant 0 : index
    %c0_12 = arith.constant 0 : index
    %10 = vector.load %arg5[%c0_11, %c0_12] : memref<8x1443xf32, #tpu.memory_space<vmem>>, vector<8x1443xf32>
    %c7 = arith.constant 7 : index
    %c0_13 = arith.constant 0 : index
    %c0_14 = arith.constant 0 : index
    %11 = vector.load %arg2[%c7, %c0_13, %c0_14] : memref<9x8x8xbf16, #tpu.memory_space<vmem>>, vector<1x8x8xbf16>
    %12 = vector.shape_cast %11 : vector<1x8x8xbf16> to vector<8x8xbf16>
    %c0_15 = arith.constant 0 : index
    %c0_16 = arith.constant 0 : index
    %c1 = arith.constant 1 : index
    %13 = vector.load %arg1[%c0_15, %c0_16, %c1] : memref<1x8x1560xbf16, #tpu.memory_space<vmem>>, vector<1x8x1443xbf16>
    %14 = vector.shape_cast %13 : vector<1x8x1443xbf16> to vector<8x1443xbf16>
    %cst_17 = arith.constant dense<0.000000e+00> : vector<8x1443xf32>
    %15 = tpu.matmul %12, %14, %cst_17 {dimension_numbers = #tpu.dot_dimension_numbers<[1], [0], [0], [1], [0, 0, 1, 1], [], []>} : vector<8x8xbf16>, vector<8x1443xbf16>, vector<8x1443xf32> -> vector<8x1443xf32>
    %16 = arith.addf %10, %15 : vector<8x1443xf32>
    %c0_18 = arith.constant 0 : index
    %c0_19 = arith.constant 0 : index
    %17 = vector.load %arg5[%c0_18, %c0_19] : memref<8x1443xf32, #tpu.memory_space<vmem>>, vector<8x1443xf32>
    tpu.vector_store %arg5[%c0_18, %c0_19], %16 {strides = array<i32>} : memref<8x1443xf32, #tpu.memory_space<vmem>>, vector<8x1443xf32>,
    %c0_20 = arith.constant 0 : index
    %c0_21 = arith.constant 0 : index
    %18 = vector.load %arg5[%c0_20, %c0_21] : memref<8x1443xf32, #tpu.memory_space<vmem>>, vector<8x1443xf32>
    %c6 = arith.constant 6 : index
    %c0_22 = arith.constant 0 : index
    %c0_23 = arith.constant 0 : index
    %19 = vector.load %arg2[%c6, %c0_22, %c0_23] : memref<9x8x8xbf16, #tpu.memory_space<vmem>>, vector<1x8x8xbf16>
    %20 = vector.shape_cast %19 : vector<1x8x8xbf16> to vector<8x8xbf16>
    %c0_24 = arith.constant 0 : index
    %c0_25 = arith.constant 0 : index
    %c2 = arith.constant 2 : index
    %21 = vector.load %arg1[%c0_24, %c0_25, %c2] : memref<1x8x1560xbf16, #tpu.memory_space<vmem>>, vector<1x8x1443xbf16>
    %22 = vector.shape_cast %21 : vector<1x8x1443xbf16> to vector<8x1443xbf16>
    %cst_26 = arith.constant dense<0.000000e+00> : vector<8x1443xf32>
    %23 = tpu.matmul %20, %22, %cst_26 {dimension_numbers = #tpu.dot_dimension_numbers<[1], [0], [0], [1], [0, 0, 1, 1], [], []>} : vector<8x8xbf16>, vector<8x1443xbf16>, vector<8x1443xf32> -> vector<8x1443xf32>
    %24 = arith.addf %18, %23 : vector<8x1443xf32>
    %c0_27 = arith.constant 0 : index
    %c0_28 = arith.constant 0 : index
    %25 = vector.load %arg5[%c0_27, %c0_28] : memref<8x1443xf32, #tpu.memory_space<vmem>>, vector<8x1443xf32>
    tpu.vector_store %arg5[%c0_27, %c0_28], %24 {strides = array<i32>} : memref<8x1443xf32, #tpu.memory_space<vmem>>, vector<8x1443xf32>,
    %c0_29 = arith.constant 0 : index
    %c0_30 = arith.constant 0 : index
    %26 = vector.load %arg5[%c0_29, %c0_30] : memref<8x1443xf32, #tpu.memory_space<vmem>>, vector<8x1443xf32>
    %c5 = arith.constant 5 : index
    %c0_31 = arith.constant 0 : index
    %c0_32 = arith.constant 0 : index
    %27 = vector.load %arg2[%c5, %c0_31, %c0_32] : memref<9x8x8xbf16, #tpu.memory_space<vmem>>, vector<1x8x8xbf16>
    %28 = vector.shape_cast %27 : vector<1x8x8xbf16> to vector<8x8xbf16>
    %c0_33 = arith.constant 0 : index
    %c0_34 = arith.constant 0 : index
    %c39 = arith.constant 39 : index
    %29 = vector.load %arg1[%c0_33, %c0_34, %c39] : memref<1x8x1560xbf16, #tpu.memory_space<vmem>>, vector<1x8x1443xbf16>
    %30 = vector.shape_cast %29 : vector<1x8x1443xbf16> to vector<8x1443xbf16>
    %cst_35 = arith.constant dense<0.000000e+00> : vector<8x1443xf32>
    %31 = tpu.matmul %28, %30, %cst_35 {dimension_numbers = #tpu.dot_dimension_numbers<[1], [0], [0], [1], [0, 0, 1, 1], [], []>} : vector<8x8xbf16>, vector<8x1443xbf16>, vector<8x1443xf32> -> vector<8x1443xf32>
    %32 = arith.addf %26, %31 : vector<8x1443xf32>
    %c0_36 = arith.constant 0 : index
    %c0_37 = arith.constant 0 : index
    %33 = vector.load %arg5[%c0_36, %c0_37] : memref<8x1443xf32, #tpu.memory_space<vmem>>, vector<8x1443xf32>
    tpu.vector_store %arg5[%c0_36, %c0_37], %32 {strides = array<i32>} : memref<8x1443xf32, #tpu.memory_space<vmem>>, vector<8x1443xf32>,
    %c0_38 = arith.constant 0 : index
    %c0_39 = arith.constant 0 : index
    %34 = vector.load %arg5[%c0_38, %c0_39] : memref<8x1443xf32, #tpu.memory_space<vmem>>, vector<8x1443xf32>
    %c4 = arith.constant 4 : index
    %c0_40 = arith.constant 0 : index
    %c0_41 = arith.constant 0 : index
    %35 = vector.load %arg2[%c4, %c0_40, %c0_41] : memref<9x8x8xbf16, #tpu.memory_space<vmem>>, vector<1x8x8xbf16>
    %36 = vector.shape_cast %35 : vector<1x8x8xbf16> to vector<8x8xbf16>
    %c0_42 = arith.constant 0 : index
    %c0_43 = arith.constant 0 : index
    %c40 = arith.constant 40 : index
    %37 = vector.load %arg1[%c0_42, %c0_43, %c40] : memref<1x8x1560xbf16, #tpu.memory_space<vmem>>, vector<1x8x1443xbf16>
    %38 = vector.shape_cast %37 : vector<1x8x1443xbf16> to vector<8x1443xbf16>
    %cst_44 = arith.constant dense<0.000000e+00> : vector<8x1443xf32>
    %39 = tpu.matmul %36, %38, %cst_44 {dimension_numbers = #tpu.dot_dimension_numbers<[1], [0], [0], [1], [0, 0, 1, 1], [], []>} : vector<8x8xbf16>, vector<8x1443xbf16>, vector<8x1443xf32> -> vector<8x1443xf32>
    %40 = arith.addf %34, %39 : vector<8x1443xf32>
    %c0_45 = arith.constant 0 : index
    %c0_46 = arith.constant 0 : index
    %41 = vector.load %arg5[%c0_45, %c0_46] : memref<8x1443xf32, #tpu.memory_space<vmem>>, vector<8x1443xf32>
    tpu.vector_store %arg5[%c0_45, %c0_46], %40 {strides = array<i32>} : memref<8x1443xf32, #tpu.memory_space<vmem>>, vector<8x1443xf32>,
    %c0_47 = arith.constant 0 : index
    %c0_48 = arith.constant 0 : index
    %42 = vector.load %arg5[%c0_47, %c0_48] : memref<8x1443xf32, #tpu.memory_space<vmem>>, vector<8x1443xf32>
    %c3 = arith.constant 3 : index
    %c0_49 = arith.constant 0 : index
    %c0_50 = arith.constant 0 : index
    %43 = vector.load %arg2[%c3, %c0_49, %c0_50] : memref<9x8x8xbf16, #tpu.memory_space<vmem>>, vector<1x8x8xbf16>
    %44 = vector.shape_cast %43 : vector<1x8x8xbf16> to vector<8x8xbf16>
    %c0_51 = arith.constant 0 : index
    %c0_52 = arith.constant 0 : index
    %c41 = arith.constant 41 : index
    %45 = vector.load %arg1[%c0_51, %c0_52, %c41] : memref<1x8x1560xbf16, #tpu.memory_space<vmem>>, vector<1x8x1443xbf16>
    %46 = vector.shape_cast %45 : vector<1x8x1443xbf16> to vector<8x1443xbf16>
    %cst_53 = arith.constant dense<0.000000e+00> : vector<8x1443xf32>
    %47 = tpu.matmul %44, %46, %cst_53 {dimension_numbers = #tpu.dot_dimension_numbers<[1], [0], [0], [1], [0, 0, 1, 1], [], []>} : vector<8x8xbf16>, vector<8x1443xbf16>, vector<8x1443xf32> -> vector<8x1443xf32>
    %48 = arith.addf %42, %47 : vector<8x1443xf32>
    %c0_54 = arith.constant 0 : index
    %c0_55 = arith.constant 0 : index
    %49 = vector.load %arg5[%c0_54, %c0_55] : memref<8x1443xf32, #tpu.memory_space<vmem>>, vector<8x1443xf32>
    tpu.vector_store %arg5[%c0_54, %c0_55], %48 {strides = array<i32>} : memref<8x1443xf32, #tpu.memory_space<vmem>>, vector<8x1443xf32>,
    %c0_56 = arith.constant 0 : index
    %c0_57 = arith.constant 0 : index
    %50 = vector.load %arg5[%c0_56, %c0_57] : memref<8x1443xf32, #tpu.memory_space<vmem>>, vector<8x1443xf32>
    %c2_58 = arith.constant 2 : index
    %c0_59 = arith.constant 0 : index
    %c0_60 = arith.constant 0 : index
    %51 = vector.load %arg2[%c2_58, %c0_59, %c0_60] : memref<9x8x8xbf16, #tpu.memory_space<vmem>>, vector<1x8x8xbf16>
    %52 = vector.shape_cast %51 : vector<1x8x8xbf16> to vector<8x8xbf16>
    %c0_61 = arith.constant 0 : index
    %c0_62 = arith.constant 0 : index
    %c78 = arith.constant 78 : index
    %53 = vector.load %arg1[%c0_61, %c0_62, %c78] : memref<1x8x1560xbf16, #tpu.memory_space<vmem>>, vector<1x8x1443xbf16>
    %54 = vector.shape_cast %53 : vector<1x8x1443xbf16> to vector<8x1443xbf16>
    %cst_63 = arith.constant dense<0.000000e+00> : vector<8x1443xf32>
    %55 = tpu.matmul %52, %54, %cst_63 {dimension_numbers = #tpu.dot_dimension_numbers<[1], [0], [0], [1], [0, 0, 1, 1], [], []>} : vector<8x8xbf16>, vector<8x1443xbf16>, vector<8x1443xf32> -> vector<8x1443xf32>
    %56 = arith.addf %50, %55 : vector<8x1443xf32>
    %c0_64 = arith.constant 0 : index
    %c0_65 = arith.constant 0 : index
    %57 = vector.load %arg5[%c0_64, %c0_65] : memref<8x1443xf32, #tpu.memory_space<vmem>>, vector<8x1443xf32>
    tpu.vector_store %arg5[%c0_64, %c0_65], %56 {strides = array<i32>} : memref<8x1443xf32, #tpu.memory_space<vmem>>, vector<8x1443xf32>,
    %c0_66 = arith.constant 0 : index
    %c0_67 = arith.constant 0 : index
    %58 = vector.load %arg5[%c0_66, %c0_67] : memref<8x1443xf32, #tpu.memory_space<vmem>>, vector<8x1443xf32>
    %c1_68 = arith.constant 1 : index
    %c0_69 = arith.constant 0 : index
    %c0_70 = arith.constant 0 : index
    %59 = vector.load %arg2[%c1_68, %c0_69, %c0_70] : memref<9x8x8xbf16, #tpu.memory_space<vmem>>, vector<1x8x8xbf16>
    %60 = vector.shape_cast %59 : vector<1x8x8xbf16> to vector<8x8xbf16>
    %c0_71 = arith.constant 0 : index
    %c0_72 = arith.constant 0 : index
    %c79 = arith.constant 79 : index
    %61 = vector.load %arg1[%c0_71, %c0_72, %c79] : memref<1x8x1560xbf16, #tpu.memory_space<vmem>>, vector<1x8x1443xbf16>
    %62 = vector.shape_cast %61 : vector<1x8x1443xbf16> to vector<8x1443xbf16>
    %cst_73 = arith.constant dense<0.000000e+00> : vector<8x1443xf32>
    %63 = tpu.matmul %60, %62, %cst_73 {dimension_numbers = #tpu.dot_dimension_numbers<[1], [0], [0], [1], [0, 0, 1, 1], [], []>} : vector<8x8xbf16>, vector<8x1443xbf16>, vector<8x1443xf32> -> vector<8x1443xf32>
    %64 = arith.addf %58, %63 : vector<8x1443xf32>
    %c0_74 = arith.constant 0 : index
    %c0_75 = arith.constant 0 : index
    %65 = vector.load %arg5[%c0_74, %c0_75] : memref<8x1443xf32, #tpu.memory_space<vmem>>, vector<8x1443xf32>
    tpu.vector_store %arg5[%c0_74, %c0_75], %64 {strides = array<i32>} : memref<8x1443xf32, #tpu.memory_space<vmem>>, vector<8x1443xf32>,
    %c0_76 = arith.constant 0 : index
    %c0_77 = arith.constant 0 : index
    %66 = vector.load %arg5[%c0_76, %c0_77] : memref<8x1443xf32, #tpu.memory_space<vmem>>, vector<8x1443xf32>
    %c0_78 = arith.constant 0 : index
    %c0_79 = arith.constant 0 : index
    %c0_80 = arith.constant 0 : index
    %67 = vector.load %arg2[%c0_78, %c0_79, %c0_80] : memref<9x8x8xbf16, #tpu.memory_space<vmem>>, vector<1x8x8xbf16>
    %68 = vector.shape_cast %67 : vector<1x8x8xbf16> to vector<8x8xbf16>
    %c0_81 = arith.constant 0 : index
    %c0_82 = arith.constant 0 : index
    %c80 = arith.constant 80 : index
    %69 = vector.load %arg1[%c0_81, %c0_82, %c80] : memref<1x8x1560xbf16, #tpu.memory_space<vmem>>, vector<1x8x1443xbf16>
    %70 = vector.shape_cast %69 : vector<1x8x1443xbf16> to vector<8x1443xbf16>
    %cst_83 = arith.constant dense<0.000000e+00> : vector<8x1443xf32>
    %71 = tpu.matmul %68, %70, %cst_83 {dimension_numbers = #tpu.dot_dimension_numbers<[1], [0], [0], [1], [0, 0, 1, 1], [], []>} : vector<8x8xbf16>, vector<8x1443xbf16>, vector<8x1443xf32> -> vector<8x1443xf32>
    %72 = arith.addf %66, %71 : vector<8x1443xf32>
    %c0_84 = arith.constant 0 : index
    %c0_85 = arith.constant 0 : index
    %73 = vector.load %arg5[%c0_84, %c0_85] : memref<8x1443xf32, #tpu.memory_space<vmem>>, vector<8x1443xf32>
    tpu.vector_store %arg5[%c0_84, %c0_85], %72 {strides = array<i32>} : memref<8x1443xf32, #tpu.memory_space<vmem>>, vector<8x1443xf32>,
    %c0_86 = arith.constant 0 : index
    %c0_87 = arith.constant 0 : index
    %74 = vector.load %arg5[%c0_86, %c0_87] : memref<8x1443xf32, #tpu.memory_space<vmem>>, vector<8x1443xf32>
    %c0_88 = arith.constant 0 : index
    %c0_89 = arith.constant 0 : index
    %75 = vector.load %arg3[%c0_88, %c0_89] : memref<8x1xf32, #tpu.memory_space<vmem>>, vector<8x1xf32>
    %76 = vector.broadcast %75 : vector<8x1xf32> to vector<8x1443xf32>
    %77 = arith.addf %74, %76 : vector<8x1443xf32>
    %cst_90 = arith.constant 0.000000e+00 : f32
    %78 = vector.broadcast %cst_90 : f32 to vector<8x1443xf32>
    %79 = arith.maximumf %77, %78 : vector<8x1443xf32>
    %80 = arith.truncf %79 : vector<8x1443xf32> to vector<8x1443xbf16>
    %c0_91 = arith.constant 0 : index
    %c0_92 = arith.constant 0 : index
    %c0_93 = arith.constant 0 : index
    %c0_94 = arith.constant 0 : index
    %81 = vector.load %arg4[%c0_91, %c0_92, %c0_93, %c0_94] : memref<1x1x8x1443xbf16, #tpu.memory_space<vmem>>, vector<1x1x8x1443xbf16>
    %82 = vector.shape_cast %81 : vector<1x1x8x1443xbf16> to vector<8x1443xbf16>
    %83 = vector.shape_cast %80 : vector<8x1443xbf16> to vector<1x1x8x1443xbf16>
    tpu.vector_store %arg4[%c0_91, %c0_92, %c0_93, %c0_94], %83 {strides = array<i32>} : memref<1x1x8x1443xbf16, #tpu.memory_space<vmem>>, vector<1x1x8x1443xbf16>,
    return
  }
  func.func @transform_0(%arg0: i32) -> (i32, i32, i32) {
    %c0_i32 = arith.constant 0 : i32
    %c0_i32_0 = arith.constant 0 : i32
    %c0_i32_1 = arith.constant 0 : i32
    return %arg0, %c0_i32, %c0_i32_0 : i32, i32, i32
  }
  func.func @transform_1(%arg0: i32) -> (i32, i32, i32) {
    %c0_i32 = arith.constant 0 : i32
    %c0_i32_0 = arith.constant 0 : i32
    %c0_i32_1 = arith.constant 0 : i32
    %c0_i32_2 = arith.constant 0 : i32
    return %c0_i32, %c0_i32_0, %c0_i32_1 : i32, i32, i32
  }
  func.func @transform_2(%arg0: i32) -> (i32, i32) {
    %c0_i32 = arith.constant 0 : i32
    %c0_i32_0 = arith.constant 0 : i32
    %c0_i32_1 = arith.constant 0 : i32
    return %c0_i32, %c0_i32_0 : i32, i32
  }
  func.func @transform_3(%arg0: i32) -> (i32, i32, i32, i32) {
    %c0_i32 = arith.constant 0 : i32
    %c0_i32_0 = arith.constant 0 : i32
    %c0_i32_1 = arith.constant 0 : i32
    %c0_i32_2 = arith.constant 0 : i32
    return %arg0, %c0_i32, %c0_i32_0, %c0_i32_1 : i32, i32, i32, i32
  }
}

module attributes {stable_mosaic.version = 11 : i64} {
  func.func @_conv_taps_kernel(%arg0: i32, %arg1: memref<1x8x1722xbf16, #tpu.memory_space<vmem>>, %arg2: memref<9x8x8xbf16, #tpu.memory_space<vmem>>, %arg3: memref<8x1xf32, #tpu.memory_space<vmem>>, %arg4: memref<1x1x8x1599xbf16, #tpu.memory_space<vmem>>, %arg5: memref<8x1599xf32, #tpu.memory_space<vmem>>) attributes {dimension_semantics = [#tpu.dimension_semantics<parallel>], iteration_bounds = array<i64: 2>, scalar_prefetch = 0 : i64, scratch_operands = 1 : i64, tpu.core_type = #tpu.core_type<tc>, window_params = [{transform_indices = @transform_0, window_bounds = array<i64: 1, 8, 1722>}, {pipeline_mode = #tpu.pipeline_mode<synchronous>, transform_indices = @transform_1, window_bounds = array<i64: 9, 8, 8>}, {pipeline_mode = #tpu.pipeline_mode<synchronous>, transform_indices = @transform_2, window_bounds = array<i64: 8, 1>}, {transform_indices = @transform_3, window_bounds = array<i64: 1, 1, 8, 1599>}]} {
    %cst = arith.constant 0.000000e+00 : f32
    %0 = vector.broadcast %cst : f32 to vector<8x1599xf32>
    %c0 = arith.constant 0 : index
    %c0_0 = arith.constant 0 : index
    %1 = vector.load %arg5[%c0, %c0_0] : memref<8x1599xf32, #tpu.memory_space<vmem>>, vector<8x1599xf32>
    tpu.vector_store %arg5[%c0, %c0_0], %0 {strides = array<i32>} : memref<8x1599xf32, #tpu.memory_space<vmem>>, vector<8x1599xf32>,
    %c0_1 = arith.constant 0 : index
    %c0_2 = arith.constant 0 : index
    %2 = vector.load %arg5[%c0_1, %c0_2] : memref<8x1599xf32, #tpu.memory_space<vmem>>, vector<8x1599xf32>
    %c8 = arith.constant 8 : index
    %c0_3 = arith.constant 0 : index
    %c0_4 = arith.constant 0 : index
    %3 = vector.load %arg2[%c8, %c0_3, %c0_4] : memref<9x8x8xbf16, #tpu.memory_space<vmem>>, vector<1x8x8xbf16>
    %4 = vector.shape_cast %3 : vector<1x8x8xbf16> to vector<8x8xbf16>
    %c0_5 = arith.constant 0 : index
    %c0_6 = arith.constant 0 : index
    %c0_7 = arith.constant 0 : index
    %5 = vector.load %arg1[%c0_5, %c0_6, %c0_7] : memref<1x8x1722xbf16, #tpu.memory_space<vmem>>, vector<1x8x1599xbf16>
    %6 = vector.shape_cast %5 : vector<1x8x1599xbf16> to vector<8x1599xbf16>
    %cst_8 = arith.constant dense<0.000000e+00> : vector<8x1599xf32>
    %7 = tpu.matmul %4, %6, %cst_8 {dimension_numbers = #tpu.dot_dimension_numbers<[1], [0], [0], [1], [0, 0, 1, 1], [], []>} : vector<8x8xbf16>, vector<8x1599xbf16>, vector<8x1599xf32> -> vector<8x1599xf32>
    %8 = arith.addf %2, %7 : vector<8x1599xf32>
    %c0_9 = arith.constant 0 : index
    %c0_10 = arith.constant 0 : index
    %9 = vector.load %arg5[%c0_9, %c0_10] : memref<8x1599xf32, #tpu.memory_space<vmem>>, vector<8x1599xf32>
    tpu.vector_store %arg5[%c0_9, %c0_10], %8 {strides = array<i32>} : memref<8x1599xf32, #tpu.memory_space<vmem>>, vector<8x1599xf32>,
    %c0_11 = arith.constant 0 : index
    %c0_12 = arith.constant 0 : index
    %10 = vector.load %arg5[%c0_11, %c0_12] : memref<8x1599xf32, #tpu.memory_space<vmem>>, vector<8x1599xf32>
    %c7 = arith.constant 7 : index
    %c0_13 = arith.constant 0 : index
    %c0_14 = arith.constant 0 : index
    %11 = vector.load %arg2[%c7, %c0_13, %c0_14] : memref<9x8x8xbf16, #tpu.memory_space<vmem>>, vector<1x8x8xbf16>
    %12 = vector.shape_cast %11 : vector<1x8x8xbf16> to vector<8x8xbf16>
    %c0_15 = arith.constant 0 : index
    %c0_16 = arith.constant 0 : index
    %c1 = arith.constant 1 : index
    %13 = vector.load %arg1[%c0_15, %c0_16, %c1] : memref<1x8x1722xbf16, #tpu.memory_space<vmem>>, vector<1x8x1599xbf16>
    %14 = vector.shape_cast %13 : vector<1x8x1599xbf16> to vector<8x1599xbf16>
    %cst_17 = arith.constant dense<0.000000e+00> : vector<8x1599xf32>
    %15 = tpu.matmul %12, %14, %cst_17 {dimension_numbers = #tpu.dot_dimension_numbers<[1], [0], [0], [1], [0, 0, 1, 1], [], []>} : vector<8x8xbf16>, vector<8x1599xbf16>, vector<8x1599xf32> -> vector<8x1599xf32>
    %16 = arith.addf %10, %15 : vector<8x1599xf32>
    %c0_18 = arith.constant 0 : index
    %c0_19 = arith.constant 0 : index
    %17 = vector.load %arg5[%c0_18, %c0_19] : memref<8x1599xf32, #tpu.memory_space<vmem>>, vector<8x1599xf32>
    tpu.vector_store %arg5[%c0_18, %c0_19], %16 {strides = array<i32>} : memref<8x1599xf32, #tpu.memory_space<vmem>>, vector<8x1599xf32>,
    %c0_20 = arith.constant 0 : index
    %c0_21 = arith.constant 0 : index
    %18 = vector.load %arg5[%c0_20, %c0_21] : memref<8x1599xf32, #tpu.memory_space<vmem>>, vector<8x1599xf32>
    %c6 = arith.constant 6 : index
    %c0_22 = arith.constant 0 : index
    %c0_23 = arith.constant 0 : index
    %19 = vector.load %arg2[%c6, %c0_22, %c0_23] : memref<9x8x8xbf16, #tpu.memory_space<vmem>>, vector<1x8x8xbf16>
    %20 = vector.shape_cast %19 : vector<1x8x8xbf16> to vector<8x8xbf16>
    %c0_24 = arith.constant 0 : index
    %c0_25 = arith.constant 0 : index
    %c2 = arith.constant 2 : index
    %21 = vector.load %arg1[%c0_24, %c0_25, %c2] : memref<1x8x1722xbf16, #tpu.memory_space<vmem>>, vector<1x8x1599xbf16>
    %22 = vector.shape_cast %21 : vector<1x8x1599xbf16> to vector<8x1599xbf16>
    %cst_26 = arith.constant dense<0.000000e+00> : vector<8x1599xf32>
    %23 = tpu.matmul %20, %22, %cst_26 {dimension_numbers = #tpu.dot_dimension_numbers<[1], [0], [0], [1], [0, 0, 1, 1], [], []>} : vector<8x8xbf16>, vector<8x1599xbf16>, vector<8x1599xf32> -> vector<8x1599xf32>
    %24 = arith.addf %18, %23 : vector<8x1599xf32>
    %c0_27 = arith.constant 0 : index
    %c0_28 = arith.constant 0 : index
    %25 = vector.load %arg5[%c0_27, %c0_28] : memref<8x1599xf32, #tpu.memory_space<vmem>>, vector<8x1599xf32>
    tpu.vector_store %arg5[%c0_27, %c0_28], %24 {strides = array<i32>} : memref<8x1599xf32, #tpu.memory_space<vmem>>, vector<8x1599xf32>,
    %c0_29 = arith.constant 0 : index
    %c0_30 = arith.constant 0 : index
    %26 = vector.load %arg5[%c0_29, %c0_30] : memref<8x1599xf32, #tpu.memory_space<vmem>>, vector<8x1599xf32>
    %c5 = arith.constant 5 : index
    %c0_31 = arith.constant 0 : index
    %c0_32 = arith.constant 0 : index
    %27 = vector.load %arg2[%c5, %c0_31, %c0_32] : memref<9x8x8xbf16, #tpu.memory_space<vmem>>, vector<1x8x8xbf16>
    %28 = vector.shape_cast %27 : vector<1x8x8xbf16> to vector<8x8xbf16>
    %c0_33 = arith.constant 0 : index
    %c0_34 = arith.constant 0 : index
    %c41 = arith.constant 41 : index
    %29 = vector.load %arg1[%c0_33, %c0_34, %c41] : memref<1x8x1722xbf16, #tpu.memory_space<vmem>>, vector<1x8x1599xbf16>
    %30 = vector.shape_cast %29 : vector<1x8x1599xbf16> to vector<8x1599xbf16>
    %cst_35 = arith.constant dense<0.000000e+00> : vector<8x1599xf32>
    %31 = tpu.matmul %28, %30, %cst_35 {dimension_numbers = #tpu.dot_dimension_numbers<[1], [0], [0], [1], [0, 0, 1, 1], [], []>} : vector<8x8xbf16>, vector<8x1599xbf16>, vector<8x1599xf32> -> vector<8x1599xf32>
    %32 = arith.addf %26, %31 : vector<8x1599xf32>
    %c0_36 = arith.constant 0 : index
    %c0_37 = arith.constant 0 : index
    %33 = vector.load %arg5[%c0_36, %c0_37] : memref<8x1599xf32, #tpu.memory_space<vmem>>, vector<8x1599xf32>
    tpu.vector_store %arg5[%c0_36, %c0_37], %32 {strides = array<i32>} : memref<8x1599xf32, #tpu.memory_space<vmem>>, vector<8x1599xf32>,
    %c0_38 = arith.constant 0 : index
    %c0_39 = arith.constant 0 : index
    %34 = vector.load %arg5[%c0_38, %c0_39] : memref<8x1599xf32, #tpu.memory_space<vmem>>, vector<8x1599xf32>
    %c4 = arith.constant 4 : index
    %c0_40 = arith.constant 0 : index
    %c0_41 = arith.constant 0 : index
    %35 = vector.load %arg2[%c4, %c0_40, %c0_41] : memref<9x8x8xbf16, #tpu.memory_space<vmem>>, vector<1x8x8xbf16>
    %36 = vector.shape_cast %35 : vector<1x8x8xbf16> to vector<8x8xbf16>
    %c0_42 = arith.constant 0 : index
    %c0_43 = arith.constant 0 : index
    %c42 = arith.constant 42 : index
    %37 = vector.load %arg1[%c0_42, %c0_43, %c42] : memref<1x8x1722xbf16, #tpu.memory_space<vmem>>, vector<1x8x1599xbf16>
    %38 = vector.shape_cast %37 : vector<1x8x1599xbf16> to vector<8x1599xbf16>
    %cst_44 = arith.constant dense<0.000000e+00> : vector<8x1599xf32>
    %39 = tpu.matmul %36, %38, %cst_44 {dimension_numbers = #tpu.dot_dimension_numbers<[1], [0], [0], [1], [0, 0, 1, 1], [], []>} : vector<8x8xbf16>, vector<8x1599xbf16>, vector<8x1599xf32> -> vector<8x1599xf32>
    %40 = arith.addf %34, %39 : vector<8x1599xf32>
    %c0_45 = arith.constant 0 : index
    %c0_46 = arith.constant 0 : index
    %41 = vector.load %arg5[%c0_45, %c0_46] : memref<8x1599xf32, #tpu.memory_space<vmem>>, vector<8x1599xf32>
    tpu.vector_store %arg5[%c0_45, %c0_46], %40 {strides = array<i32>} : memref<8x1599xf32, #tpu.memory_space<vmem>>, vector<8x1599xf32>,
    %c0_47 = arith.constant 0 : index
    %c0_48 = arith.constant 0 : index
    %42 = vector.load %arg5[%c0_47, %c0_48] : memref<8x1599xf32, #tpu.memory_space<vmem>>, vector<8x1599xf32>
    %c3 = arith.constant 3 : index
    %c0_49 = arith.constant 0 : index
    %c0_50 = arith.constant 0 : index
    %43 = vector.load %arg2[%c3, %c0_49, %c0_50] : memref<9x8x8xbf16, #tpu.memory_space<vmem>>, vector<1x8x8xbf16>
    %44 = vector.shape_cast %43 : vector<1x8x8xbf16> to vector<8x8xbf16>
    %c0_51 = arith.constant 0 : index
    %c0_52 = arith.constant 0 : index
    %c43 = arith.constant 43 : index
    %45 = vector.load %arg1[%c0_51, %c0_52, %c43] : memref<1x8x1722xbf16, #tpu.memory_space<vmem>>, vector<1x8x1599xbf16>
    %46 = vector.shape_cast %45 : vector<1x8x1599xbf16> to vector<8x1599xbf16>
    %cst_53 = arith.constant dense<0.000000e+00> : vector<8x1599xf32>
    %47 = tpu.matmul %44, %46, %cst_53 {dimension_numbers = #tpu.dot_dimension_numbers<[1], [0], [0], [1], [0, 0, 1, 1], [], []>} : vector<8x8xbf16>, vector<8x1599xbf16>, vector<8x1599xf32> -> vector<8x1599xf32>
    %48 = arith.addf %42, %47 : vector<8x1599xf32>
    %c0_54 = arith.constant 0 : index
    %c0_55 = arith.constant 0 : index
    %49 = vector.load %arg5[%c0_54, %c0_55] : memref<8x1599xf32, #tpu.memory_space<vmem>>, vector<8x1599xf32>
    tpu.vector_store %arg5[%c0_54, %c0_55], %48 {strides = array<i32>} : memref<8x1599xf32, #tpu.memory_space<vmem>>, vector<8x1599xf32>,
    %c0_56 = arith.constant 0 : index
    %c0_57 = arith.constant 0 : index
    %50 = vector.load %arg5[%c0_56, %c0_57] : memref<8x1599xf32, #tpu.memory_space<vmem>>, vector<8x1599xf32>
    %c2_58 = arith.constant 2 : index
    %c0_59 = arith.constant 0 : index
    %c0_60 = arith.constant 0 : index
    %51 = vector.load %arg2[%c2_58, %c0_59, %c0_60] : memref<9x8x8xbf16, #tpu.memory_space<vmem>>, vector<1x8x8xbf16>
    %52 = vector.shape_cast %51 : vector<1x8x8xbf16> to vector<8x8xbf16>
    %c0_61 = arith.constant 0 : index
    %c0_62 = arith.constant 0 : index
    %c82 = arith.constant 82 : index
    %53 = vector.load %arg1[%c0_61, %c0_62, %c82] : memref<1x8x1722xbf16, #tpu.memory_space<vmem>>, vector<1x8x1599xbf16>
    %54 = vector.shape_cast %53 : vector<1x8x1599xbf16> to vector<8x1599xbf16>
    %cst_63 = arith.constant dense<0.000000e+00> : vector<8x1599xf32>
    %55 = tpu.matmul %52, %54, %cst_63 {dimension_numbers = #tpu.dot_dimension_numbers<[1], [0], [0], [1], [0, 0, 1, 1], [], []>} : vector<8x8xbf16>, vector<8x1599xbf16>, vector<8x1599xf32> -> vector<8x1599xf32>
    %56 = arith.addf %50, %55 : vector<8x1599xf32>
    %c0_64 = arith.constant 0 : index
    %c0_65 = arith.constant 0 : index
    %57 = vector.load %arg5[%c0_64, %c0_65] : memref<8x1599xf32, #tpu.memory_space<vmem>>, vector<8x1599xf32>
    tpu.vector_store %arg5[%c0_64, %c0_65], %56 {strides = array<i32>} : memref<8x1599xf32, #tpu.memory_space<vmem>>, vector<8x1599xf32>,
    %c0_66 = arith.constant 0 : index
    %c0_67 = arith.constant 0 : index
    %58 = vector.load %arg5[%c0_66, %c0_67] : memref<8x1599xf32, #tpu.memory_space<vmem>>, vector<8x1599xf32>
    %c1_68 = arith.constant 1 : index
    %c0_69 = arith.constant 0 : index
    %c0_70 = arith.constant 0 : index
    %59 = vector.load %arg2[%c1_68, %c0_69, %c0_70] : memref<9x8x8xbf16, #tpu.memory_space<vmem>>, vector<1x8x8xbf16>
    %60 = vector.shape_cast %59 : vector<1x8x8xbf16> to vector<8x8xbf16>
    %c0_71 = arith.constant 0 : index
    %c0_72 = arith.constant 0 : index
    %c83 = arith.constant 83 : index
    %61 = vector.load %arg1[%c0_71, %c0_72, %c83] : memref<1x8x1722xbf16, #tpu.memory_space<vmem>>, vector<1x8x1599xbf16>
    %62 = vector.shape_cast %61 : vector<1x8x1599xbf16> to vector<8x1599xbf16>
    %cst_73 = arith.constant dense<0.000000e+00> : vector<8x1599xf32>
    %63 = tpu.matmul %60, %62, %cst_73 {dimension_numbers = #tpu.dot_dimension_numbers<[1], [0], [0], [1], [0, 0, 1, 1], [], []>} : vector<8x8xbf16>, vector<8x1599xbf16>, vector<8x1599xf32> -> vector<8x1599xf32>
    %64 = arith.addf %58, %63 : vector<8x1599xf32>
    %c0_74 = arith.constant 0 : index
    %c0_75 = arith.constant 0 : index
    %65 = vector.load %arg5[%c0_74, %c0_75] : memref<8x1599xf32, #tpu.memory_space<vmem>>, vector<8x1599xf32>
    tpu.vector_store %arg5[%c0_74, %c0_75], %64 {strides = array<i32>} : memref<8x1599xf32, #tpu.memory_space<vmem>>, vector<8x1599xf32>,
    %c0_76 = arith.constant 0 : index
    %c0_77 = arith.constant 0 : index
    %66 = vector.load %arg5[%c0_76, %c0_77] : memref<8x1599xf32, #tpu.memory_space<vmem>>, vector<8x1599xf32>
    %c0_78 = arith.constant 0 : index
    %c0_79 = arith.constant 0 : index
    %c0_80 = arith.constant 0 : index
    %67 = vector.load %arg2[%c0_78, %c0_79, %c0_80] : memref<9x8x8xbf16, #tpu.memory_space<vmem>>, vector<1x8x8xbf16>
    %68 = vector.shape_cast %67 : vector<1x8x8xbf16> to vector<8x8xbf16>
    %c0_81 = arith.constant 0 : index
    %c0_82 = arith.constant 0 : index
    %c84 = arith.constant 84 : index
    %69 = vector.load %arg1[%c0_81, %c0_82, %c84] : memref<1x8x1722xbf16, #tpu.memory_space<vmem>>, vector<1x8x1599xbf16>
    %70 = vector.shape_cast %69 : vector<1x8x1599xbf16> to vector<8x1599xbf16>
    %cst_83 = arith.constant dense<0.000000e+00> : vector<8x1599xf32>
    %71 = tpu.matmul %68, %70, %cst_83 {dimension_numbers = #tpu.dot_dimension_numbers<[1], [0], [0], [1], [0, 0, 1, 1], [], []>} : vector<8x8xbf16>, vector<8x1599xbf16>, vector<8x1599xf32> -> vector<8x1599xf32>
    %72 = arith.addf %66, %71 : vector<8x1599xf32>
    %c0_84 = arith.constant 0 : index
    %c0_85 = arith.constant 0 : index
    %73 = vector.load %arg5[%c0_84, %c0_85] : memref<8x1599xf32, #tpu.memory_space<vmem>>, vector<8x1599xf32>
    tpu.vector_store %arg5[%c0_84, %c0_85], %72 {strides = array<i32>} : memref<8x1599xf32, #tpu.memory_space<vmem>>, vector<8x1599xf32>,
    %c0_86 = arith.constant 0 : index
    %c0_87 = arith.constant 0 : index
    %74 = vector.load %arg5[%c0_86, %c0_87] : memref<8x1599xf32, #tpu.memory_space<vmem>>, vector<8x1599xf32>
    %c0_88 = arith.constant 0 : index
    %c0_89 = arith.constant 0 : index
    %75 = vector.load %arg3[%c0_88, %c0_89] : memref<8x1xf32, #tpu.memory_space<vmem>>, vector<8x1xf32>
    %76 = vector.broadcast %75 : vector<8x1xf32> to vector<8x1599xf32>
    %77 = arith.addf %74, %76 : vector<8x1599xf32>
    %cst_90 = arith.constant 0.000000e+00 : f32
    %78 = vector.broadcast %cst_90 : f32 to vector<8x1599xf32>
    %79 = arith.maximumf %77, %78 : vector<8x1599xf32>
    %80 = arith.truncf %79 : vector<8x1599xf32> to vector<8x1599xbf16>
    %c0_91 = arith.constant 0 : index
    %c0_92 = arith.constant 0 : index
    %c0_93 = arith.constant 0 : index
    %c0_94 = arith.constant 0 : index
    %81 = vector.load %arg4[%c0_91, %c0_92, %c0_93, %c0_94] : memref<1x1x8x1599xbf16, #tpu.memory_space<vmem>>, vector<1x1x8x1599xbf16>
    %82 = vector.shape_cast %81 : vector<1x1x8x1599xbf16> to vector<8x1599xbf16>
    %83 = vector.shape_cast %80 : vector<8x1599xbf16> to vector<1x1x8x1599xbf16>
    tpu.vector_store %arg4[%c0_91, %c0_92, %c0_93, %c0_94], %83 {strides = array<i32>} : memref<1x1x8x1599xbf16, #tpu.memory_space<vmem>>, vector<1x1x8x1599xbf16>,
    return
  }
  func.func @transform_0(%arg0: i32) -> (i32, i32, i32) {
    %c0_i32 = arith.constant 0 : i32
    %c0_i32_0 = arith.constant 0 : i32
    %c0_i32_1 = arith.constant 0 : i32
    return %arg0, %c0_i32, %c0_i32_0 : i32, i32, i32
  }
  func.func @transform_1(%arg0: i32) -> (i32, i32, i32) {
    %c0_i32 = arith.constant 0 : i32
    %c0_i32_0 = arith.constant 0 : i32
    %c0_i32_1 = arith.constant 0 : i32
    %c0_i32_2 = arith.constant 0 : i32
    return %c0_i32, %c0_i32_0, %c0_i32_1 : i32, i32, i32
  }
  func.func @transform_2(%arg0: i32) -> (i32, i32) {
    %c0_i32 = arith.constant 0 : i32
    %c0_i32_0 = arith.constant 0 : i32
    %c0_i32_1 = arith.constant 0 : i32
    return %c0_i32, %c0_i32_0 : i32, i32
  }
  func.func @transform_3(%arg0: i32) -> (i32, i32, i32, i32) {
    %c0_i32 = arith.constant 0 : i32
    %c0_i32_0 = arith.constant 0 : i32
    %c0_i32_1 = arith.constant 0 : i32
    %c0_i32_2 = arith.constant 0 : i32
    return %arg0, %c0_i32, %c0_i32_0, %c0_i32_1 : i32, i32, i32, i32
  }
}

module attributes {stable_mosaic.version = 11 : i64} {
  func.func @_conv_taps_kernel(%arg0: i32, %arg1: memref<1x8x1892xbf16, #tpu.memory_space<vmem>>, %arg2: memref<9x8x8xbf16, #tpu.memory_space<vmem>>, %arg3: memref<8x1xf32, #tpu.memory_space<vmem>>, %arg4: memref<1x1x8x1763xbf16, #tpu.memory_space<vmem>>, %arg5: memref<8x1763xf32, #tpu.memory_space<vmem>>) attributes {dimension_semantics = [#tpu.dimension_semantics<parallel>], iteration_bounds = array<i64: 2>, scalar_prefetch = 0 : i64, scratch_operands = 1 : i64, tpu.core_type = #tpu.core_type<tc>, window_params = [{transform_indices = @transform_0, window_bounds = array<i64: 1, 8, 1892>}, {pipeline_mode = #tpu.pipeline_mode<synchronous>, transform_indices = @transform_1, window_bounds = array<i64: 9, 8, 8>}, {pipeline_mode = #tpu.pipeline_mode<synchronous>, transform_indices = @transform_2, window_bounds = array<i64: 8, 1>}, {transform_indices = @transform_3, window_bounds = array<i64: 1, 1, 8, 1763>}]} {
    %cst = arith.constant 0.000000e+00 : f32
    %0 = vector.broadcast %cst : f32 to vector<8x1763xf32>
    %c0 = arith.constant 0 : index
    %c0_0 = arith.constant 0 : index
    %1 = vector.load %arg5[%c0, %c0_0] : memref<8x1763xf32, #tpu.memory_space<vmem>>, vector<8x1763xf32>
    tpu.vector_store %arg5[%c0, %c0_0], %0 {strides = array<i32>} : memref<8x1763xf32, #tpu.memory_space<vmem>>, vector<8x1763xf32>,
    %c0_1 = arith.constant 0 : index
    %c0_2 = arith.constant 0 : index
    %2 = vector.load %arg5[%c0_1, %c0_2] : memref<8x1763xf32, #tpu.memory_space<vmem>>, vector<8x1763xf32>
    %c8 = arith.constant 8 : index
    %c0_3 = arith.constant 0 : index
    %c0_4 = arith.constant 0 : index
    %3 = vector.load %arg2[%c8, %c0_3, %c0_4] : memref<9x8x8xbf16, #tpu.memory_space<vmem>>, vector<1x8x8xbf16>
    %4 = vector.shape_cast %3 : vector<1x8x8xbf16> to vector<8x8xbf16>
    %c0_5 = arith.constant 0 : index
    %c0_6 = arith.constant 0 : index
    %c0_7 = arith.constant 0 : index
    %5 = vector.load %arg1[%c0_5, %c0_6, %c0_7] : memref<1x8x1892xbf16, #tpu.memory_space<vmem>>, vector<1x8x1763xbf16>
    %6 = vector.shape_cast %5 : vector<1x8x1763xbf16> to vector<8x1763xbf16>
    %cst_8 = arith.constant dense<0.000000e+00> : vector<8x1763xf32>
    %7 = tpu.matmul %4, %6, %cst_8 {dimension_numbers = #tpu.dot_dimension_numbers<[1], [0], [0], [1], [0, 0, 1, 1], [], []>} : vector<8x8xbf16>, vector<8x1763xbf16>, vector<8x1763xf32> -> vector<8x1763xf32>
    %8 = arith.addf %2, %7 : vector<8x1763xf32>
    %c0_9 = arith.constant 0 : index
    %c0_10 = arith.constant 0 : index
    %9 = vector.load %arg5[%c0_9, %c0_10] : memref<8x1763xf32, #tpu.memory_space<vmem>>, vector<8x1763xf32>
    tpu.vector_store %arg5[%c0_9, %c0_10], %8 {strides = array<i32>} : memref<8x1763xf32, #tpu.memory_space<vmem>>, vector<8x1763xf32>,
    %c0_11 = arith.constant 0 : index
    %c0_12 = arith.constant 0 : index
    %10 = vector.load %arg5[%c0_11, %c0_12] : memref<8x1763xf32, #tpu.memory_space<vmem>>, vector<8x1763xf32>
    %c7 = arith.constant 7 : index
    %c0_13 = arith.constant 0 : index
    %c0_14 = arith.constant 0 : index
    %11 = vector.load %arg2[%c7, %c0_13, %c0_14] : memref<9x8x8xbf16, #tpu.memory_space<vmem>>, vector<1x8x8xbf16>
    %12 = vector.shape_cast %11 : vector<1x8x8xbf16> to vector<8x8xbf16>
    %c0_15 = arith.constant 0 : index
    %c0_16 = arith.constant 0 : index
    %c1 = arith.constant 1 : index
    %13 = vector.load %arg1[%c0_15, %c0_16, %c1] : memref<1x8x1892xbf16, #tpu.memory_space<vmem>>, vector<1x8x1763xbf16>
    %14 = vector.shape_cast %13 : vector<1x8x1763xbf16> to vector<8x1763xbf16>
    %cst_17 = arith.constant dense<0.000000e+00> : vector<8x1763xf32>
    %15 = tpu.matmul %12, %14, %cst_17 {dimension_numbers = #tpu.dot_dimension_numbers<[1], [0], [0], [1], [0, 0, 1, 1], [], []>} : vector<8x8xbf16>, vector<8x1763xbf16>, vector<8x1763xf32> -> vector<8x1763xf32>
    %16 = arith.addf %10, %15 : vector<8x1763xf32>
    %c0_18 = arith.constant 0 : index
    %c0_19 = arith.constant 0 : index
    %17 = vector.load %arg5[%c0_18, %c0_19] : memref<8x1763xf32, #tpu.memory_space<vmem>>, vector<8x1763xf32>
    tpu.vector_store %arg5[%c0_18, %c0_19], %16 {strides = array<i32>} : memref<8x1763xf32, #tpu.memory_space<vmem>>, vector<8x1763xf32>,
    %c0_20 = arith.constant 0 : index
    %c0_21 = arith.constant 0 : index
    %18 = vector.load %arg5[%c0_20, %c0_21] : memref<8x1763xf32, #tpu.memory_space<vmem>>, vector<8x1763xf32>
    %c6 = arith.constant 6 : index
    %c0_22 = arith.constant 0 : index
    %c0_23 = arith.constant 0 : index
    %19 = vector.load %arg2[%c6, %c0_22, %c0_23] : memref<9x8x8xbf16, #tpu.memory_space<vmem>>, vector<1x8x8xbf16>
    %20 = vector.shape_cast %19 : vector<1x8x8xbf16> to vector<8x8xbf16>
    %c0_24 = arith.constant 0 : index
    %c0_25 = arith.constant 0 : index
    %c2 = arith.constant 2 : index
    %21 = vector.load %arg1[%c0_24, %c0_25, %c2] : memref<1x8x1892xbf16, #tpu.memory_space<vmem>>, vector<1x8x1763xbf16>
    %22 = vector.shape_cast %21 : vector<1x8x1763xbf16> to vector<8x1763xbf16>
    %cst_26 = arith.constant dense<0.000000e+00> : vector<8x1763xf32>
    %23 = tpu.matmul %20, %22, %cst_26 {dimension_numbers = #tpu.dot_dimension_numbers<[1], [0], [0], [1], [0, 0, 1, 1], [], []>} : vector<8x8xbf16>, vector<8x1763xbf16>, vector<8x1763xf32> -> vector<8x1763xf32>
    %24 = arith.addf %18, %23 : vector<8x1763xf32>
    %c0_27 = arith.constant 0 : index
    %c0_28 = arith.constant 0 : index
    %25 = vector.load %arg5[%c0_27, %c0_28] : memref<8x1763xf32, #tpu.memory_space<vmem>>, vector<8x1763xf32>
    tpu.vector_store %arg5[%c0_27, %c0_28], %24 {strides = array<i32>} : memref<8x1763xf32, #tpu.memory_space<vmem>>, vector<8x1763xf32>,
    %c0_29 = arith.constant 0 : index
    %c0_30 = arith.constant 0 : index
    %26 = vector.load %arg5[%c0_29, %c0_30] : memref<8x1763xf32, #tpu.memory_space<vmem>>, vector<8x1763xf32>
    %c5 = arith.constant 5 : index
    %c0_31 = arith.constant 0 : index
    %c0_32 = arith.constant 0 : index
    %27 = vector.load %arg2[%c5, %c0_31, %c0_32] : memref<9x8x8xbf16, #tpu.memory_space<vmem>>, vector<1x8x8xbf16>
    %28 = vector.shape_cast %27 : vector<1x8x8xbf16> to vector<8x8xbf16>
    %c0_33 = arith.constant 0 : index
    %c0_34 = arith.constant 0 : index
    %c43 = arith.constant 43 : index
    %29 = vector.load %arg1[%c0_33, %c0_34, %c43] : memref<1x8x1892xbf16, #tpu.memory_space<vmem>>, vector<1x8x1763xbf16>
    %30 = vector.shape_cast %29 : vector<1x8x1763xbf16> to vector<8x1763xbf16>
    %cst_35 = arith.constant dense<0.000000e+00> : vector<8x1763xf32>
    %31 = tpu.matmul %28, %30, %cst_35 {dimension_numbers = #tpu.dot_dimension_numbers<[1], [0], [0], [1], [0, 0, 1, 1], [], []>} : vector<8x8xbf16>, vector<8x1763xbf16>, vector<8x1763xf32> -> vector<8x1763xf32>
    %32 = arith.addf %26, %31 : vector<8x1763xf32>
    %c0_36 = arith.constant 0 : index
    %c0_37 = arith.constant 0 : index
    %33 = vector.load %arg5[%c0_36, %c0_37] : memref<8x1763xf32, #tpu.memory_space<vmem>>, vector<8x1763xf32>
    tpu.vector_store %arg5[%c0_36, %c0_37], %32 {strides = array<i32>} : memref<8x1763xf32, #tpu.memory_space<vmem>>, vector<8x1763xf32>,
    %c0_38 = arith.constant 0 : index
    %c0_39 = arith.constant 0 : index
    %34 = vector.load %arg5[%c0_38, %c0_39] : memref<8x1763xf32, #tpu.memory_space<vmem>>, vector<8x1763xf32>
    %c4 = arith.constant 4 : index
    %c0_40 = arith.constant 0 : index
    %c0_41 = arith.constant 0 : index
    %35 = vector.load %arg2[%c4, %c0_40, %c0_41] : memref<9x8x8xbf16, #tpu.memory_space<vmem>>, vector<1x8x8xbf16>
    %36 = vector.shape_cast %35 : vector<1x8x8xbf16> to vector<8x8xbf16>
    %c0_42 = arith.constant 0 : index
    %c0_43 = arith.constant 0 : index
    %c44 = arith.constant 44 : index
    %37 = vector.load %arg1[%c0_42, %c0_43, %c44] : memref<1x8x1892xbf16, #tpu.memory_space<vmem>>, vector<1x8x1763xbf16>
    %38 = vector.shape_cast %37 : vector<1x8x1763xbf16> to vector<8x1763xbf16>
    %cst_44 = arith.constant dense<0.000000e+00> : vector<8x1763xf32>
    %39 = tpu.matmul %36, %38, %cst_44 {dimension_numbers = #tpu.dot_dimension_numbers<[1], [0], [0], [1], [0, 0, 1, 1], [], []>} : vector<8x8xbf16>, vector<8x1763xbf16>, vector<8x1763xf32> -> vector<8x1763xf32>
    %40 = arith.addf %34, %39 : vector<8x1763xf32>
    %c0_45 = arith.constant 0 : index
    %c0_46 = arith.constant 0 : index
    %41 = vector.load %arg5[%c0_45, %c0_46] : memref<8x1763xf32, #tpu.memory_space<vmem>>, vector<8x1763xf32>
    tpu.vector_store %arg5[%c0_45, %c0_46], %40 {strides = array<i32>} : memref<8x1763xf32, #tpu.memory_space<vmem>>, vector<8x1763xf32>,
    %c0_47 = arith.constant 0 : index
    %c0_48 = arith.constant 0 : index
    %42 = vector.load %arg5[%c0_47, %c0_48] : memref<8x1763xf32, #tpu.memory_space<vmem>>, vector<8x1763xf32>
    %c3 = arith.constant 3 : index
    %c0_49 = arith.constant 0 : index
    %c0_50 = arith.constant 0 : index
    %43 = vector.load %arg2[%c3, %c0_49, %c0_50] : memref<9x8x8xbf16, #tpu.memory_space<vmem>>, vector<1x8x8xbf16>
    %44 = vector.shape_cast %43 : vector<1x8x8xbf16> to vector<8x8xbf16>
    %c0_51 = arith.constant 0 : index
    %c0_52 = arith.constant 0 : index
    %c45 = arith.constant 45 : index
    %45 = vector.load %arg1[%c0_51, %c0_52, %c45] : memref<1x8x1892xbf16, #tpu.memory_space<vmem>>, vector<1x8x1763xbf16>
    %46 = vector.shape_cast %45 : vector<1x8x1763xbf16> to vector<8x1763xbf16>
    %cst_53 = arith.constant dense<0.000000e+00> : vector<8x1763xf32>
    %47 = tpu.matmul %44, %46, %cst_53 {dimension_numbers = #tpu.dot_dimension_numbers<[1], [0], [0], [1], [0, 0, 1, 1], [], []>} : vector<8x8xbf16>, vector<8x1763xbf16>, vector<8x1763xf32> -> vector<8x1763xf32>
    %48 = arith.addf %42, %47 : vector<8x1763xf32>
    %c0_54 = arith.constant 0 : index
    %c0_55 = arith.constant 0 : index
    %49 = vector.load %arg5[%c0_54, %c0_55] : memref<8x1763xf32, #tpu.memory_space<vmem>>, vector<8x1763xf32>
    tpu.vector_store %arg5[%c0_54, %c0_55], %48 {strides = array<i32>} : memref<8x1763xf32, #tpu.memory_space<vmem>>, vector<8x1763xf32>,
    %c0_56 = arith.constant 0 : index
    %c0_57 = arith.constant 0 : index
    %50 = vector.load %arg5[%c0_56, %c0_57] : memref<8x1763xf32, #tpu.memory_space<vmem>>, vector<8x1763xf32>
    %c2_58 = arith.constant 2 : index
    %c0_59 = arith.constant 0 : index
    %c0_60 = arith.constant 0 : index
    %51 = vector.load %arg2[%c2_58, %c0_59, %c0_60] : memref<9x8x8xbf16, #tpu.memory_space<vmem>>, vector<1x8x8xbf16>
    %52 = vector.shape_cast %51 : vector<1x8x8xbf16> to vector<8x8xbf16>
    %c0_61 = arith.constant 0 : index
    %c0_62 = arith.constant 0 : index
    %c86 = arith.constant 86 : index
    %53 = vector.load %arg1[%c0_61, %c0_62, %c86] : memref<1x8x1892xbf16, #tpu.memory_space<vmem>>, vector<1x8x1763xbf16>
    %54 = vector.shape_cast %53 : vector<1x8x1763xbf16> to vector<8x1763xbf16>
    %cst_63 = arith.constant dense<0.000000e+00> : vector<8x1763xf32>
    %55 = tpu.matmul %52, %54, %cst_63 {dimension_numbers = #tpu.dot_dimension_numbers<[1], [0], [0], [1], [0, 0, 1, 1], [], []>} : vector<8x8xbf16>, vector<8x1763xbf16>, vector<8x1763xf32> -> vector<8x1763xf32>
    %56 = arith.addf %50, %55 : vector<8x1763xf32>
    %c0_64 = arith.constant 0 : index
    %c0_65 = arith.constant 0 : index
    %57 = vector.load %arg5[%c0_64, %c0_65] : memref<8x1763xf32, #tpu.memory_space<vmem>>, vector<8x1763xf32>
    tpu.vector_store %arg5[%c0_64, %c0_65], %56 {strides = array<i32>} : memref<8x1763xf32, #tpu.memory_space<vmem>>, vector<8x1763xf32>,
    %c0_66 = arith.constant 0 : index
    %c0_67 = arith.constant 0 : index
    %58 = vector.load %arg5[%c0_66, %c0_67] : memref<8x1763xf32, #tpu.memory_space<vmem>>, vector<8x1763xf32>
    %c1_68 = arith.constant 1 : index
    %c0_69 = arith.constant 0 : index
    %c0_70 = arith.constant 0 : index
    %59 = vector.load %arg2[%c1_68, %c0_69, %c0_70] : memref<9x8x8xbf16, #tpu.memory_space<vmem>>, vector<1x8x8xbf16>
    %60 = vector.shape_cast %59 : vector<1x8x8xbf16> to vector<8x8xbf16>
    %c0_71 = arith.constant 0 : index
    %c0_72 = arith.constant 0 : index
    %c87 = arith.constant 87 : index
    %61 = vector.load %arg1[%c0_71, %c0_72, %c87] : memref<1x8x1892xbf16, #tpu.memory_space<vmem>>, vector<1x8x1763xbf16>
    %62 = vector.shape_cast %61 : vector<1x8x1763xbf16> to vector<8x1763xbf16>
    %cst_73 = arith.constant dense<0.000000e+00> : vector<8x1763xf32>
    %63 = tpu.matmul %60, %62, %cst_73 {dimension_numbers = #tpu.dot_dimension_numbers<[1], [0], [0], [1], [0, 0, 1, 1], [], []>} : vector<8x8xbf16>, vector<8x1763xbf16>, vector<8x1763xf32> -> vector<8x1763xf32>
    %64 = arith.addf %58, %63 : vector<8x1763xf32>
    %c0_74 = arith.constant 0 : index
    %c0_75 = arith.constant 0 : index
    %65 = vector.load %arg5[%c0_74, %c0_75] : memref<8x1763xf32, #tpu.memory_space<vmem>>, vector<8x1763xf32>
    tpu.vector_store %arg5[%c0_74, %c0_75], %64 {strides = array<i32>} : memref<8x1763xf32, #tpu.memory_space<vmem>>, vector<8x1763xf32>,
    %c0_76 = arith.constant 0 : index
    %c0_77 = arith.constant 0 : index
    %66 = vector.load %arg5[%c0_76, %c0_77] : memref<8x1763xf32, #tpu.memory_space<vmem>>, vector<8x1763xf32>
    %c0_78 = arith.constant 0 : index
    %c0_79 = arith.constant 0 : index
    %c0_80 = arith.constant 0 : index
    %67 = vector.load %arg2[%c0_78, %c0_79, %c0_80] : memref<9x8x8xbf16, #tpu.memory_space<vmem>>, vector<1x8x8xbf16>
    %68 = vector.shape_cast %67 : vector<1x8x8xbf16> to vector<8x8xbf16>
    %c0_81 = arith.constant 0 : index
    %c0_82 = arith.constant 0 : index
    %c88 = arith.constant 88 : index
    %69 = vector.load %arg1[%c0_81, %c0_82, %c88] : memref<1x8x1892xbf16, #tpu.memory_space<vmem>>, vector<1x8x1763xbf16>
    %70 = vector.shape_cast %69 : vector<1x8x1763xbf16> to vector<8x1763xbf16>
    %cst_83 = arith.constant dense<0.000000e+00> : vector<8x1763xf32>
    %71 = tpu.matmul %68, %70, %cst_83 {dimension_numbers = #tpu.dot_dimension_numbers<[1], [0], [0], [1], [0, 0, 1, 1], [], []>} : vector<8x8xbf16>, vector<8x1763xbf16>, vector<8x1763xf32> -> vector<8x1763xf32>
    %72 = arith.addf %66, %71 : vector<8x1763xf32>
    %c0_84 = arith.constant 0 : index
    %c0_85 = arith.constant 0 : index
    %73 = vector.load %arg5[%c0_84, %c0_85] : memref<8x1763xf32, #tpu.memory_space<vmem>>, vector<8x1763xf32>
    tpu.vector_store %arg5[%c0_84, %c0_85], %72 {strides = array<i32>} : memref<8x1763xf32, #tpu.memory_space<vmem>>, vector<8x1763xf32>,
    %c0_86 = arith.constant 0 : index
    %c0_87 = arith.constant 0 : index
    %74 = vector.load %arg5[%c0_86, %c0_87] : memref<8x1763xf32, #tpu.memory_space<vmem>>, vector<8x1763xf32>
    %c0_88 = arith.constant 0 : index
    %c0_89 = arith.constant 0 : index
    %75 = vector.load %arg3[%c0_88, %c0_89] : memref<8x1xf32, #tpu.memory_space<vmem>>, vector<8x1xf32>
    %76 = vector.broadcast %75 : vector<8x1xf32> to vector<8x1763xf32>
    %77 = arith.addf %74, %76 : vector<8x1763xf32>
    %cst_90 = arith.constant 0.000000e+00 : f32
    %78 = vector.broadcast %cst_90 : f32 to vector<8x1763xf32>
    %79 = arith.maximumf %77, %78 : vector<8x1763xf32>
    %80 = arith.truncf %79 : vector<8x1763xf32> to vector<8x1763xbf16>
    %c0_91 = arith.constant 0 : index
    %c0_92 = arith.constant 0 : index
    %c0_93 = arith.constant 0 : index
    %c0_94 = arith.constant 0 : index
    %81 = vector.load %arg4[%c0_91, %c0_92, %c0_93, %c0_94] : memref<1x1x8x1763xbf16, #tpu.memory_space<vmem>>, vector<1x1x8x1763xbf16>
    %82 = vector.shape_cast %81 : vector<1x1x8x1763xbf16> to vector<8x1763xbf16>
    %83 = vector.shape_cast %80 : vector<8x1763xbf16> to vector<1x1x8x1763xbf16>
    tpu.vector_store %arg4[%c0_91, %c0_92, %c0_93, %c0_94], %83 {strides = array<i32>} : memref<1x1x8x1763xbf16, #tpu.memory_space<vmem>>, vector<1x1x8x1763xbf16>,
    return
  }
  func.func @transform_0(%arg0: i32) -> (i32, i32, i32) {
    %c0_i32 = arith.constant 0 : i32
    %c0_i32_0 = arith.constant 0 : i32
    %c0_i32_1 = arith.constant 0 : i32
    return %arg0, %c0_i32, %c0_i32_0 : i32, i32, i32
  }
  func.func @transform_1(%arg0: i32) -> (i32, i32, i32) {
    %c0_i32 = arith.constant 0 : i32
    %c0_i32_0 = arith.constant 0 : i32
    %c0_i32_1 = arith.constant 0 : i32
    %c0_i32_2 = arith.constant 0 : i32
    return %c0_i32, %c0_i32_0, %c0_i32_1 : i32, i32, i32
  }
  func.func @transform_2(%arg0: i32) -> (i32, i32) {
    %c0_i32 = arith.constant 0 : i32
    %c0_i32_0 = arith.constant 0 : i32
    %c0_i32_1 = arith.constant 0 : i32
    return %c0_i32, %c0_i32_0 : i32, i32
  }
  func.func @transform_3(%arg0: i32) -> (i32, i32, i32, i32) {
    %c0_i32 = arith.constant 0 : i32
    %c0_i32_0 = arith.constant 0 : i32
    %c0_i32_1 = arith.constant 0 : i32
    %c0_i32_2 = arith.constant 0 : i32
    return %arg0, %c0_i32, %c0_i32_0, %c0_i32_1 : i32, i32, i32, i32
  }
}

module attributes {stable_mosaic.version = 11 : i64} {
  func.func @_conv_taps_kernel(%arg0: i32, %arg1: memref<1x8x1892xbf16, #tpu.memory_space<vmem>>, %arg2: memref<9x4x8xbf16, #tpu.memory_space<vmem>>, %arg3: memref<4x1xf32, #tpu.memory_space<vmem>>, %arg4: memref<1x4x4x1806xf32, #tpu.memory_space<vmem>>, %arg5: memref<4x1806xf32, #tpu.memory_space<vmem>>) attributes {dimension_semantics = [#tpu.dimension_semantics<parallel>], iteration_bounds = array<i64: 2>, scalar_prefetch = 0 : i64, scratch_operands = 1 : i64, tpu.core_type = #tpu.core_type<tc>, window_params = [{transform_indices = @transform_0, window_bounds = array<i64: 1, 8, 1892>}, {pipeline_mode = #tpu.pipeline_mode<synchronous>, transform_indices = @transform_1, window_bounds = array<i64: 9, 4, 8>}, {pipeline_mode = #tpu.pipeline_mode<synchronous>, transform_indices = @transform_2, window_bounds = array<i64: 4, 1>}, {transform_indices = @transform_3, window_bounds = array<i64: 1, 4, 4, 1806>}]} {
    %cst = arith.constant 0.000000e+00 : f32
    %0 = vector.broadcast %cst : f32 to vector<4x1806xf32>
    %c0 = arith.constant 0 : index
    %c0_0 = arith.constant 0 : index
    %1 = vector.load %arg5[%c0, %c0_0] : memref<4x1806xf32, #tpu.memory_space<vmem>>, vector<4x1806xf32>
    tpu.vector_store %arg5[%c0, %c0_0], %0 {strides = array<i32>} : memref<4x1806xf32, #tpu.memory_space<vmem>>, vector<4x1806xf32>,
    %c0_1 = arith.constant 0 : index
    %c0_2 = arith.constant 0 : index
    %2 = vector.load %arg5[%c0_1, %c0_2] : memref<4x1806xf32, #tpu.memory_space<vmem>>, vector<4x1806xf32>
    %c8 = arith.constant 8 : index
    %c0_3 = arith.constant 0 : index
    %c0_4 = arith.constant 0 : index
    %3 = vector.load %arg2[%c8, %c0_3, %c0_4] : memref<9x4x8xbf16, #tpu.memory_space<vmem>>, vector<1x4x8xbf16>
    %4 = vector.shape_cast %3 : vector<1x4x8xbf16> to vector<4x8xbf16>
    %c0_5 = arith.constant 0 : index
    %c0_6 = arith.constant 0 : index
    %c0_7 = arith.constant 0 : index
    %5 = vector.load %arg1[%c0_5, %c0_6, %c0_7] : memref<1x8x1892xbf16, #tpu.memory_space<vmem>>, vector<1x8x1806xbf16>
    %6 = vector.shape_cast %5 : vector<1x8x1806xbf16> to vector<8x1806xbf16>
    %cst_8 = arith.constant dense<0.000000e+00> : vector<4x1806xf32>
    %7 = tpu.matmul %4, %6, %cst_8 {dimension_numbers = #tpu.dot_dimension_numbers<[1], [0], [0], [1], [0, 0, 1, 1], [], []>} : vector<4x8xbf16>, vector<8x1806xbf16>, vector<4x1806xf32> -> vector<4x1806xf32>
    %8 = arith.addf %2, %7 : vector<4x1806xf32>
    %c0_9 = arith.constant 0 : index
    %c0_10 = arith.constant 0 : index
    %9 = vector.load %arg5[%c0_9, %c0_10] : memref<4x1806xf32, #tpu.memory_space<vmem>>, vector<4x1806xf32>
    tpu.vector_store %arg5[%c0_9, %c0_10], %8 {strides = array<i32>} : memref<4x1806xf32, #tpu.memory_space<vmem>>, vector<4x1806xf32>,
    %c0_11 = arith.constant 0 : index
    %c0_12 = arith.constant 0 : index
    %10 = vector.load %arg5[%c0_11, %c0_12] : memref<4x1806xf32, #tpu.memory_space<vmem>>, vector<4x1806xf32>
    %c6 = arith.constant 6 : index
    %c0_13 = arith.constant 0 : index
    %c0_14 = arith.constant 0 : index
    %11 = vector.load %arg2[%c6, %c0_13, %c0_14] : memref<9x4x8xbf16, #tpu.memory_space<vmem>>, vector<1x4x8xbf16>
    %12 = vector.shape_cast %11 : vector<1x4x8xbf16> to vector<4x8xbf16>
    %c0_15 = arith.constant 0 : index
    %c0_16 = arith.constant 0 : index
    %c1 = arith.constant 1 : index
    %13 = vector.load %arg1[%c0_15, %c0_16, %c1] : memref<1x8x1892xbf16, #tpu.memory_space<vmem>>, vector<1x8x1806xbf16>
    %14 = vector.shape_cast %13 : vector<1x8x1806xbf16> to vector<8x1806xbf16>
    %cst_17 = arith.constant dense<0.000000e+00> : vector<4x1806xf32>
    %15 = tpu.matmul %12, %14, %cst_17 {dimension_numbers = #tpu.dot_dimension_numbers<[1], [0], [0], [1], [0, 0, 1, 1], [], []>} : vector<4x8xbf16>, vector<8x1806xbf16>, vector<4x1806xf32> -> vector<4x1806xf32>
    %16 = arith.addf %10, %15 : vector<4x1806xf32>
    %c0_18 = arith.constant 0 : index
    %c0_19 = arith.constant 0 : index
    %17 = vector.load %arg5[%c0_18, %c0_19] : memref<4x1806xf32, #tpu.memory_space<vmem>>, vector<4x1806xf32>
    tpu.vector_store %arg5[%c0_18, %c0_19], %16 {strides = array<i32>} : memref<4x1806xf32, #tpu.memory_space<vmem>>, vector<4x1806xf32>,
    %c0_20 = arith.constant 0 : index
    %c0_21 = arith.constant 0 : index
    %18 = vector.load %arg5[%c0_20, %c0_21] : memref<4x1806xf32, #tpu.memory_space<vmem>>, vector<4x1806xf32>
    %c2 = arith.constant 2 : index
    %c0_22 = arith.constant 0 : index
    %c0_23 = arith.constant 0 : index
    %19 = vector.load %arg2[%c2, %c0_22, %c0_23] : memref<9x4x8xbf16, #tpu.memory_space<vmem>>, vector<1x4x8xbf16>
    %20 = vector.shape_cast %19 : vector<1x4x8xbf16> to vector<4x8xbf16>
    %c0_24 = arith.constant 0 : index
    %c0_25 = arith.constant 0 : index
    %c43 = arith.constant 43 : index
    %21 = vector.load %arg1[%c0_24, %c0_25, %c43] : memref<1x8x1892xbf16, #tpu.memory_space<vmem>>, vector<1x8x1806xbf16>
    %22 = vector.shape_cast %21 : vector<1x8x1806xbf16> to vector<8x1806xbf16>
    %cst_26 = arith.constant dense<0.000000e+00> : vector<4x1806xf32>
    %23 = tpu.matmul %20, %22, %cst_26 {dimension_numbers = #tpu.dot_dimension_numbers<[1], [0], [0], [1], [0, 0, 1, 1], [], []>} : vector<4x8xbf16>, vector<8x1806xbf16>, vector<4x1806xf32> -> vector<4x1806xf32>
    %24 = arith.addf %18, %23 : vector<4x1806xf32>
    %c0_27 = arith.constant 0 : index
    %c0_28 = arith.constant 0 : index
    %25 = vector.load %arg5[%c0_27, %c0_28] : memref<4x1806xf32, #tpu.memory_space<vmem>>, vector<4x1806xf32>
    tpu.vector_store %arg5[%c0_27, %c0_28], %24 {strides = array<i32>} : memref<4x1806xf32, #tpu.memory_space<vmem>>, vector<4x1806xf32>,
    %c0_29 = arith.constant 0 : index
    %c0_30 = arith.constant 0 : index
    %26 = vector.load %arg5[%c0_29, %c0_30] : memref<4x1806xf32, #tpu.memory_space<vmem>>, vector<4x1806xf32>
    %c0_31 = arith.constant 0 : index
    %c0_32 = arith.constant 0 : index
    %c0_33 = arith.constant 0 : index
    %27 = vector.load %arg2[%c0_31, %c0_32, %c0_33] : memref<9x4x8xbf16, #tpu.memory_space<vmem>>, vector<1x4x8xbf16>
    %28 = vector.shape_cast %27 : vector<1x4x8xbf16> to vector<4x8xbf16>
    %c0_34 = arith.constant 0 : index
    %c0_35 = arith.constant 0 : index
    %c44 = arith.constant 44 : index
    %29 = vector.load %arg1[%c0_34, %c0_35, %c44] : memref<1x8x1892xbf16, #tpu.memory_space<vmem>>, vector<1x8x1806xbf16>
    %30 = vector.shape_cast %29 : vector<1x8x1806xbf16> to vector<8x1806xbf16>
    %cst_36 = arith.constant dense<0.000000e+00> : vector<4x1806xf32>
    %31 = tpu.matmul %28, %30, %cst_36 {dimension_numbers = #tpu.dot_dimension_numbers<[1], [0], [0], [1], [0, 0, 1, 1], [], []>} : vector<4x8xbf16>, vector<8x1806xbf16>, vector<4x1806xf32> -> vector<4x1806xf32>
    %32 = arith.addf %26, %31 : vector<4x1806xf32>
    %c0_37 = arith.constant 0 : index
    %c0_38 = arith.constant 0 : index
    %33 = vector.load %arg5[%c0_37, %c0_38] : memref<4x1806xf32, #tpu.memory_space<vmem>>, vector<4x1806xf32>
    tpu.vector_store %arg5[%c0_37, %c0_38], %32 {strides = array<i32>} : memref<4x1806xf32, #tpu.memory_space<vmem>>, vector<4x1806xf32>,
    %c0_39 = arith.constant 0 : index
    %c0_40 = arith.constant 0 : index
    %34 = vector.load %arg5[%c0_39, %c0_40] : memref<4x1806xf32, #tpu.memory_space<vmem>>, vector<4x1806xf32>
    %c0_41 = arith.constant 0 : index
    %c0_42 = arith.constant 0 : index
    %35 = vector.load %arg3[%c0_41, %c0_42] : memref<4x1xf32, #tpu.memory_space<vmem>>, vector<4x1xf32>
    %36 = vector.broadcast %35 : vector<4x1xf32> to vector<4x1806xf32>
    %37 = arith.addf %34, %36 : vector<4x1806xf32>
    %c0_43 = arith.constant 0 : index
    %c0_44 = arith.constant 0 : index
    %c0_45 = arith.constant 0 : index
    %c0_46 = arith.constant 0 : index
    %38 = vector.load %arg4[%c0_43, %c0_44, %c0_45, %c0_46] : memref<1x4x4x1806xf32, #tpu.memory_space<vmem>>, vector<1x1x4x1806xf32>
    %39 = vector.shape_cast %38 : vector<1x1x4x1806xf32> to vector<4x1806xf32>
    %40 = vector.shape_cast %37 : vector<4x1806xf32> to vector<1x1x4x1806xf32>
    tpu.vector_store %arg4[%c0_43, %c0_44, %c0_45, %c0_46], %40 {strides = array<i32>} : memref<1x4x4x1806xf32, #tpu.memory_space<vmem>>, vector<1x1x4x1806xf32>,
    %cst_47 = arith.constant 0.000000e+00 : f32
    %41 = vector.broadcast %cst_47 : f32 to vector<4x1806xf32>
    %c0_48 = arith.constant 0 : index
    %c0_49 = arith.constant 0 : index
    %42 = vector.load %arg5[%c0_48, %c0_49] : memref<4x1806xf32, #tpu.memory_space<vmem>>, vector<4x1806xf32>
    tpu.vector_store %arg5[%c0_48, %c0_49], %41 {strides = array<i32>} : memref<4x1806xf32, #tpu.memory_space<vmem>>, vector<4x1806xf32>,
    %c0_50 = arith.constant 0 : index
    %c0_51 = arith.constant 0 : index
    %43 = vector.load %arg5[%c0_50, %c0_51] : memref<4x1806xf32, #tpu.memory_space<vmem>>, vector<4x1806xf32>
    %c7 = arith.constant 7 : index
    %c0_52 = arith.constant 0 : index
    %c0_53 = arith.constant 0 : index
    %44 = vector.load %arg2[%c7, %c0_52, %c0_53] : memref<9x4x8xbf16, #tpu.memory_space<vmem>>, vector<1x4x8xbf16>
    %45 = vector.shape_cast %44 : vector<1x4x8xbf16> to vector<4x8xbf16>
    %c0_54 = arith.constant 0 : index
    %c0_55 = arith.constant 0 : index
    %c1_56 = arith.constant 1 : index
    %46 = vector.load %arg1[%c0_54, %c0_55, %c1_56] : memref<1x8x1892xbf16, #tpu.memory_space<vmem>>, vector<1x8x1806xbf16>
    %47 = vector.shape_cast %46 : vector<1x8x1806xbf16> to vector<8x1806xbf16>
    %cst_57 = arith.constant dense<0.000000e+00> : vector<4x1806xf32>
    %48 = tpu.matmul %45, %47, %cst_57 {dimension_numbers = #tpu.dot_dimension_numbers<[1], [0], [0], [1], [0, 0, 1, 1], [], []>} : vector<4x8xbf16>, vector<8x1806xbf16>, vector<4x1806xf32> -> vector<4x1806xf32>
    %49 = arith.addf %43, %48 : vector<4x1806xf32>
    %c0_58 = arith.constant 0 : index
    %c0_59 = arith.constant 0 : index
    %50 = vector.load %arg5[%c0_58, %c0_59] : memref<4x1806xf32, #tpu.memory_space<vmem>>, vector<4x1806xf32>
    tpu.vector_store %arg5[%c0_58, %c0_59], %49 {strides = array<i32>} : memref<4x1806xf32, #tpu.memory_space<vmem>>, vector<4x1806xf32>,
    %c0_60 = arith.constant 0 : index
    %c0_61 = arith.constant 0 : index
    %51 = vector.load %arg5[%c0_60, %c0_61] : memref<4x1806xf32, #tpu.memory_space<vmem>>, vector<4x1806xf32>
    %c1_62 = arith.constant 1 : index
    %c0_63 = arith.constant 0 : index
    %c0_64 = arith.constant 0 : index
    %52 = vector.load %arg2[%c1_62, %c0_63, %c0_64] : memref<9x4x8xbf16, #tpu.memory_space<vmem>>, vector<1x4x8xbf16>
    %53 = vector.shape_cast %52 : vector<1x4x8xbf16> to vector<4x8xbf16>
    %c0_65 = arith.constant 0 : index
    %c0_66 = arith.constant 0 : index
    %c44_67 = arith.constant 44 : index
    %54 = vector.load %arg1[%c0_65, %c0_66, %c44_67] : memref<1x8x1892xbf16, #tpu.memory_space<vmem>>, vector<1x8x1806xbf16>
    %55 = vector.shape_cast %54 : vector<1x8x1806xbf16> to vector<8x1806xbf16>
    %cst_68 = arith.constant dense<0.000000e+00> : vector<4x1806xf32>
    %56 = tpu.matmul %53, %55, %cst_68 {dimension_numbers = #tpu.dot_dimension_numbers<[1], [0], [0], [1], [0, 0, 1, 1], [], []>} : vector<4x8xbf16>, vector<8x1806xbf16>, vector<4x1806xf32> -> vector<4x1806xf32>
    %57 = arith.addf %51, %56 : vector<4x1806xf32>
    %c0_69 = arith.constant 0 : index
    %c0_70 = arith.constant 0 : index
    %58 = vector.load %arg5[%c0_69, %c0_70] : memref<4x1806xf32, #tpu.memory_space<vmem>>, vector<4x1806xf32>
    tpu.vector_store %arg5[%c0_69, %c0_70], %57 {strides = array<i32>} : memref<4x1806xf32, #tpu.memory_space<vmem>>, vector<4x1806xf32>,
    %c0_71 = arith.constant 0 : index
    %c0_72 = arith.constant 0 : index
    %59 = vector.load %arg5[%c0_71, %c0_72] : memref<4x1806xf32, #tpu.memory_space<vmem>>, vector<4x1806xf32>
    %c0_73 = arith.constant 0 : index
    %c0_74 = arith.constant 0 : index
    %60 = vector.load %arg3[%c0_73, %c0_74] : memref<4x1xf32, #tpu.memory_space<vmem>>, vector<4x1xf32>
    %61 = vector.broadcast %60 : vector<4x1xf32> to vector<4x1806xf32>
    %62 = arith.addf %59, %61 : vector<4x1806xf32>
    %c0_75 = arith.constant 0 : index
    %c1_76 = arith.constant 1 : index
    %c0_77 = arith.constant 0 : index
    %c0_78 = arith.constant 0 : index
    %63 = vector.load %arg4[%c0_75, %c1_76, %c0_77, %c0_78] : memref<1x4x4x1806xf32, #tpu.memory_space<vmem>>, vector<1x1x4x1806xf32>
    %64 = vector.shape_cast %63 : vector<1x1x4x1806xf32> to vector<4x1806xf32>
    %65 = vector.shape_cast %62 : vector<4x1806xf32> to vector<1x1x4x1806xf32>
    tpu.vector_store %arg4[%c0_75, %c1_76, %c0_77, %c0_78], %65 {strides = array<i32>} : memref<1x4x4x1806xf32, #tpu.memory_space<vmem>>, vector<1x1x4x1806xf32>,
    %cst_79 = arith.constant 0.000000e+00 : f32
    %66 = vector.broadcast %cst_79 : f32 to vector<4x1806xf32>
    %c0_80 = arith.constant 0 : index
    %c0_81 = arith.constant 0 : index
    %67 = vector.load %arg5[%c0_80, %c0_81] : memref<4x1806xf32, #tpu.memory_space<vmem>>, vector<4x1806xf32>
    tpu.vector_store %arg5[%c0_80, %c0_81], %66 {strides = array<i32>} : memref<4x1806xf32, #tpu.memory_space<vmem>>, vector<4x1806xf32>,
    %c0_82 = arith.constant 0 : index
    %c0_83 = arith.constant 0 : index
    %68 = vector.load %arg5[%c0_82, %c0_83] : memref<4x1806xf32, #tpu.memory_space<vmem>>, vector<4x1806xf32>
    %c5 = arith.constant 5 : index
    %c0_84 = arith.constant 0 : index
    %c0_85 = arith.constant 0 : index
    %69 = vector.load %arg2[%c5, %c0_84, %c0_85] : memref<9x4x8xbf16, #tpu.memory_space<vmem>>, vector<1x4x8xbf16>
    %70 = vector.shape_cast %69 : vector<1x4x8xbf16> to vector<4x8xbf16>
    %c0_86 = arith.constant 0 : index
    %c0_87 = arith.constant 0 : index
    %c43_88 = arith.constant 43 : index
    %71 = vector.load %arg1[%c0_86, %c0_87, %c43_88] : memref<1x8x1892xbf16, #tpu.memory_space<vmem>>, vector<1x8x1806xbf16>
    %72 = vector.shape_cast %71 : vector<1x8x1806xbf16> to vector<8x1806xbf16>
    %cst_89 = arith.constant dense<0.000000e+00> : vector<4x1806xf32>
    %73 = tpu.matmul %70, %72, %cst_89 {dimension_numbers = #tpu.dot_dimension_numbers<[1], [0], [0], [1], [0, 0, 1, 1], [], []>} : vector<4x8xbf16>, vector<8x1806xbf16>, vector<4x1806xf32> -> vector<4x1806xf32>
    %74 = arith.addf %68, %73 : vector<4x1806xf32>
    %c0_90 = arith.constant 0 : index
    %c0_91 = arith.constant 0 : index
    %75 = vector.load %arg5[%c0_90, %c0_91] : memref<4x1806xf32, #tpu.memory_space<vmem>>, vector<4x1806xf32>
    tpu.vector_store %arg5[%c0_90, %c0_91], %74 {strides = array<i32>} : memref<4x1806xf32, #tpu.memory_space<vmem>>, vector<4x1806xf32>,
    %c0_92 = arith.constant 0 : index
    %c0_93 = arith.constant 0 : index
    %76 = vector.load %arg5[%c0_92, %c0_93] : memref<4x1806xf32, #tpu.memory_space<vmem>>, vector<4x1806xf32>
    %c3 = arith.constant 3 : index
    %c0_94 = arith.constant 0 : index
    %c0_95 = arith.constant 0 : index
    %77 = vector.load %arg2[%c3, %c0_94, %c0_95] : memref<9x4x8xbf16, #tpu.memory_space<vmem>>, vector<1x4x8xbf16>
    %78 = vector.shape_cast %77 : vector<1x4x8xbf16> to vector<4x8xbf16>
    %c0_96 = arith.constant 0 : index
    %c0_97 = arith.constant 0 : index
    %c44_98 = arith.constant 44 : index
    %79 = vector.load %arg1[%c0_96, %c0_97, %c44_98] : memref<1x8x1892xbf16, #tpu.memory_space<vmem>>, vector<1x8x1806xbf16>
    %80 = vector.shape_cast %79 : vector<1x8x1806xbf16> to vector<8x1806xbf16>
    %cst_99 = arith.constant dense<0.000000e+00> : vector<4x1806xf32>
    %81 = tpu.matmul %78, %80, %cst_99 {dimension_numbers = #tpu.dot_dimension_numbers<[1], [0], [0], [1], [0, 0, 1, 1], [], []>} : vector<4x8xbf16>, vector<8x1806xbf16>, vector<4x1806xf32> -> vector<4x1806xf32>
    %82 = arith.addf %76, %81 : vector<4x1806xf32>
    %c0_100 = arith.constant 0 : index
    %c0_101 = arith.constant 0 : index
    %83 = vector.load %arg5[%c0_100, %c0_101] : memref<4x1806xf32, #tpu.memory_space<vmem>>, vector<4x1806xf32>
    tpu.vector_store %arg5[%c0_100, %c0_101], %82 {strides = array<i32>} : memref<4x1806xf32, #tpu.memory_space<vmem>>, vector<4x1806xf32>,
    %c0_102 = arith.constant 0 : index
    %c0_103 = arith.constant 0 : index
    %84 = vector.load %arg5[%c0_102, %c0_103] : memref<4x1806xf32, #tpu.memory_space<vmem>>, vector<4x1806xf32>
    %c0_104 = arith.constant 0 : index
    %c0_105 = arith.constant 0 : index
    %85 = vector.load %arg3[%c0_104, %c0_105] : memref<4x1xf32, #tpu.memory_space<vmem>>, vector<4x1xf32>
    %86 = vector.broadcast %85 : vector<4x1xf32> to vector<4x1806xf32>
    %87 = arith.addf %84, %86 : vector<4x1806xf32>
    %c0_106 = arith.constant 0 : index
    %c2_107 = arith.constant 2 : index
    %c0_108 = arith.constant 0 : index
    %c0_109 = arith.constant 0 : index
    %88 = vector.load %arg4[%c0_106, %c2_107, %c0_108, %c0_109] : memref<1x4x4x1806xf32, #tpu.memory_space<vmem>>, vector<1x1x4x1806xf32>
    %89 = vector.shape_cast %88 : vector<1x1x4x1806xf32> to vector<4x1806xf32>
    %90 = vector.shape_cast %87 : vector<4x1806xf32> to vector<1x1x4x1806xf32>
    tpu.vector_store %arg4[%c0_106, %c2_107, %c0_108, %c0_109], %90 {strides = array<i32>} : memref<1x4x4x1806xf32, #tpu.memory_space<vmem>>, vector<1x1x4x1806xf32>,
    %cst_110 = arith.constant 0.000000e+00 : f32
    %91 = vector.broadcast %cst_110 : f32 to vector<4x1806xf32>
    %c0_111 = arith.constant 0 : index
    %c0_112 = arith.constant 0 : index
    %92 = vector.load %arg5[%c0_111, %c0_112] : memref<4x1806xf32, #tpu.memory_space<vmem>>, vector<4x1806xf32>
    tpu.vector_store %arg5[%c0_111, %c0_112], %91 {strides = array<i32>} : memref<4x1806xf32, #tpu.memory_space<vmem>>, vector<4x1806xf32>,
    %c0_113 = arith.constant 0 : index
    %c0_114 = arith.constant 0 : index
    %93 = vector.load %arg5[%c0_113, %c0_114] : memref<4x1806xf32, #tpu.memory_space<vmem>>, vector<4x1806xf32>
    %c4 = arith.constant 4 : index
    %c0_115 = arith.constant 0 : index
    %c0_116 = arith.constant 0 : index
    %94 = vector.load %arg2[%c4, %c0_115, %c0_116] : memref<9x4x8xbf16, #tpu.memory_space<vmem>>, vector<1x4x8xbf16>
    %95 = vector.shape_cast %94 : vector<1x4x8xbf16> to vector<4x8xbf16>
    %c0_117 = arith.constant 0 : index
    %c0_118 = arith.constant 0 : index
    %c44_119 = arith.constant 44 : index
    %96 = vector.load %arg1[%c0_117, %c0_118, %c44_119] : memref<1x8x1892xbf16, #tpu.memory_space<vmem>>, vector<1x8x1806xbf16>
    %97 = vector.shape_cast %96 : vector<1x8x1806xbf16> to vector<8x1806xbf16>
    %cst_120 = arith.constant dense<0.000000e+00> : vector<4x1806xf32>
    %98 = tpu.matmul %95, %97, %cst_120 {dimension_numbers = #tpu.dot_dimension_numbers<[1], [0], [0], [1], [0, 0, 1, 1], [], []>} : vector<4x8xbf16>, vector<8x1806xbf16>, vector<4x1806xf32> -> vector<4x1806xf32>
    %99 = arith.addf %93, %98 : vector<4x1806xf32>
    %c0_121 = arith.constant 0 : index
    %c0_122 = arith.constant 0 : index
    %100 = vector.load %arg5[%c0_121, %c0_122] : memref<4x1806xf32, #tpu.memory_space<vmem>>, vector<4x1806xf32>
    tpu.vector_store %arg5[%c0_121, %c0_122], %99 {strides = array<i32>} : memref<4x1806xf32, #tpu.memory_space<vmem>>, vector<4x1806xf32>,
    %c0_123 = arith.constant 0 : index
    %c0_124 = arith.constant 0 : index
    %101 = vector.load %arg5[%c0_123, %c0_124] : memref<4x1806xf32, #tpu.memory_space<vmem>>, vector<4x1806xf32>
    %c0_125 = arith.constant 0 : index
    %c0_126 = arith.constant 0 : index
    %102 = vector.load %arg3[%c0_125, %c0_126] : memref<4x1xf32, #tpu.memory_space<vmem>>, vector<4x1xf32>
    %103 = vector.broadcast %102 : vector<4x1xf32> to vector<4x1806xf32>
    %104 = arith.addf %101, %103 : vector<4x1806xf32>
    %c0_127 = arith.constant 0 : index
    %c3_128 = arith.constant 3 : index
    %c0_129 = arith.constant 0 : index
    %c0_130 = arith.constant 0 : index
    %105 = vector.load %arg4[%c0_127, %c3_128, %c0_129, %c0_130] : memref<1x4x4x1806xf32, #tpu.memory_space<vmem>>, vector<1x1x4x1806xf32>
    %106 = vector.shape_cast %105 : vector<1x1x4x1806xf32> to vector<4x1806xf32>
    %107 = vector.shape_cast %104 : vector<4x1806xf32> to vector<1x1x4x1806xf32>
    tpu.vector_store %arg4[%c0_127, %c3_128, %c0_129, %c0_130], %107 {strides = array<i32>} : memref<1x4x4x1806xf32, #tpu.memory_space<vmem>>, vector<1x1x4x1806xf32>,
    return
  }
  func.func @transform_0(%arg0: i32) -> (i32, i32, i32) {
    %c0_i32 = arith.constant 0 : i32
    %c0_i32_0 = arith.constant 0 : i32
    %c0_i32_1 = arith.constant 0 : i32
    return %arg0, %c0_i32, %c0_i32_0 : i32, i32, i32
  }
  func.func @transform_1(%arg0: i32) -> (i32, i32, i32) {
    %c0_i32 = arith.constant 0 : i32
    %c0_i32_0 = arith.constant 0 : i32
    %c0_i32_1 = arith.constant 0 : i32
    %c0_i32_2 = arith.constant 0 : i32
    return %c0_i32, %c0_i32_0, %c0_i32_1 : i32, i32, i32
  }
  func.func @transform_2(%arg0: i32) -> (i32, i32) {
    %c0_i32 = arith.constant 0 : i32
    %c0_i32_0 = arith.constant 0 : i32
    %c0_i32_1 = arith.constant 0 : i32
    return %c0_i32, %c0_i32_0 : i32, i32
  }
  func.func @transform_3(%arg0: i32) -> (i32, i32, i32, i32) {
    %c0_i32 = arith.constant 0 : i32
    %c0_i32_0 = arith.constant 0 : i32
    %c0_i32_1 = arith.constant 0 : i32
    %c0_i32_2 = arith.constant 0 : i32
    return %arg0, %c0_i32, %c0_i32_0, %c0_i32_1 : i32, i32, i32, i32
  }
}

</mosaic_0001>

<bundles_post_ra>
// kernel: pixel_decoder_forward.5
= control target key start
LH: loop header
LB: loop body
LE: loop exit
PB: predicated region body
PF: predicated region fallthrough
CT: control target
= control target key end

     0   :  { %8 = vsyncpa [#allocation3], 0  ;;  %s3799_s0 = inlined_call_operand.vmem [shape: bf16[2,32], index: 0, kind: input, shape index: {}]   ;;  %s3800_s1 = inlined_call_operand.hbm [shape: bf16[32,9800], index: 1, kind: input, shape index: {}]   ;;  %s3801_s2 = inlined_call_operand.hbm [shape: f32[1,9800], index: 2, kind: input, shape index: {}]   ;;  %s3802_s3 = inlined_call_operand.vmem [shape: bf16[2,9800], index: 3, kind: output, shape index: {}]  }
   0x1   :  { %s16_s14 = sshll.u32 %s3800_s1, 4  ;;  %s17_s14 = int_to_ptr.hbm [resolvable:$true] %s16_s14 }
   0x2   :  { %9 = vsyncpa [#allocation5], 0  ;;  %s3468_s15 = smov [#allocation2]   ;;  %s30_s19 = sshll.u32 %s3801_s2, 4  ;;  %s31_s19 = int_to_ptr.hbm [resolvable:$true] %s30_s19 }
   0x3   :  { %s18_s16 = sshll.u32 %s3468_s15, 4  ;;  %s3469_s20 = smov 4928   ;;  %s19_s16 = int_to_ptr.vmem [resolvable:$true] %s18_s16 }
   0x4   :  { %s3470_s21 = smov 308   ;;  %s3471_s22 = smov [#allocation4]  }
   0x5   :  { %24 = dma.hbm_to_vmem [thread:$0]  %s17_s14, 19712, %s19_s16, [#allocation3], %s3469_s20, %s3469_s20, %s3470_s21  }
   0x6   :  { %s32_s23 = sshll.u32 %s3471_s22, 4  ;;  %s33_s23 = int_to_ptr.vmem [resolvable:$true] %s32_s23 }
   0x7   :  { %35 = dma.hbm_to_vmem [thread:$0]  %s31_s19, 1232, %s33_s23, [#allocation5]  }
   0x8   :  { %3464 = dma.done.wait [#allocation3], 19712  }
   0x9   :  { %3465 = vsyncadd [#allocation3], 4294947584 }
   0xa   :  { %3466 = dma.done.wait [#allocation5], 1232  }
   0xb   :  { %3467 = vsyncadd [#allocation5], 4294966064  ;;  %vm1148_vm0 = vcmask 261120   ;;  %v2874_v0 = vld [vmem:[#allocation2 + $0x268] sm:$0xf]  ;;  %vm2376_vm1 = vcmask 1040384  }
   0xc   :  { %v3372_v1 = vld [vmem:[#allocation2 + $0x398] sm:$0xf0]  ;;  %v3334_v2 = vld [vmem:[#allocation2 + $0x26c] sm:$0xf]  ;;  %v2876_v4 = vld [vmem:[#allocation2 + $0x39c] sm:$0xf0] }
   0xd   :  { %v2875_v3 = vor.u32 %v3372_v1, %v2874_v0  ;;  %v2882_v5 = vld [vmem:[#allocation2 + $0x270] sm:$0xf]  ;;  %v3373_v6 = vld [vmem:[#allocation2 + $0x3a0] sm:$0xf0]  ;;  %v2879_v7 = vor.u32 %v3334_v2, %v2876_v4  ;;  %v3335_v9 = vld [vmem:[#allocation2 + $0x274] sm:$0xf] }
   0xe   :  { %v2883_v8 = vor.u32 %v3373_v6, %v2882_v5  ;;  %v2884_v10 = vld [vmem:[#allocation2 + $0x3a4] sm:$0xf0]  ;;  %v2566_v11 = vld [vmem:[#allocation2] sm:$0xf]  ;;  %v3295_v13 = vld [vmem:[#allocation2 + $0x130] sm:$0xf0] }
   0xf   :  { %1158 = vmatpush.bf16.msra.mxu0 %v2875_v3  ;;  %v2887_v12 = vor.u32 %v3335_v9, %v2884_v10  ;;  %v3257_v14 = vld [vmem:[#allocation2 + $0x4] sm:$0xf]  ;;  %v2568_v15 = vld [vmem:[#allocation2 + $0x134] sm:$0xf0]  ;;  %1171 = vmatpush.bf16.msra.mxu1 %v2879_v7  ;;  %v2567_v16 = vor.u32 %v3295_v13, %v2566_v11  ;;  %v2574_v18 = vld [vmem:[#allocation2 + $0x8] sm:$0xf] }
  0x10   :  { %1184 = vmatpush.bf16.msra.mxu2 %v2883_v8  ;;  %v2571_v17 = vor.u32 %v3257_v14, %v2568_v15  ;;  %v3296_v19 = vld [vmem:[#allocation2 + $0x138] sm:$0xf0]  ;;  %v3258_v20 = vld [vmem:[#allocation2 + $0xc] sm:$0xf]  ;;  %v2576_v22 = vld [vmem:[#allocation2 + $0x13c] sm:$0xf0] }
  0x11   :  { %1197 = vmatpush.bf16.msra.mxu3 %v2887_v12  ;;  %v2575_v21 = vor.u32 %v3296_v19, %v2574_v18  ;;  %v3501_v23 = vld [vmem:[%s3799_s0] sm:$0x1]  ;;  %v2890_v24 = vld [vmem:[#allocation2 + $0x278] sm:$0xf]  ;;  %v2579_v25 = vor.u32 %v3258_v20, %v2576_v22  ;;  %v3374_v26 = vld [vmem:[#allocation2 + $0x3a8] sm:$0xf0] }
  0x12   :  { %v2582_v27 = vld [vmem:[#allocation2 + $0x10] sm:$0xf]  ;;  %v3297_v28 = vld [vmem:[#allocation2 + $0x140] sm:$0xf0]  ;;  %v2891_v29 = vor.u32 %v3374_v26, %v2890_v24  ;;  %v3336_v30 = vld [vmem:[#allocation2 + $0x27c] sm:$0xf] }
  0x13   :  { %1159 = vmatpush.bf16.msra.mxu0 %v2567_v16  ;;  %v2892_v31 = vld [vmem:[#allocation2 + $0x3ac] sm:$0xf0]  ;;  %v2898_v32 = vld [vmem:[#allocation2 + $0x280] sm:$0xf]  ;;  %1172 = vmatpush.bf16.msra.mxu1 %v2571_v17  ;;  %v3375_v34 = vld [vmem:[#allocation2 + $0x3b0] sm:$0xf0]  ;;  %v2583_v37 = vor.u32 %v3297_v28, %v2582_v27 }
  0x14   :  { %1185 = vmatpush.bf16.msra.mxu2 %v2575_v21  ;;  %v2895_v33 = vor.u32 %v3336_v30, %v2892_v31  ;;  %v3337_v35 = vld [vmem:[#allocation2 + $0x284] sm:$0xf]  ;;  %v2900_v36 = vld [vmem:[#allocation2 + $0x3b4] sm:$0xf0]  ;;  %v2899_v38 = vor.u32 %v3375_v34, %v2898_v32  ;;  %v3259_v40 = vld [vmem:[#allocation2 + $0x14] sm:$0xf] }
  0x15   :  { %1198 = vmatpush.bf16.msra.mxu3 %v2579_v25  ;;  %v2903_v39 = vor.u32 %v3337_v35, %v2900_v36  ;;  %v2584_v41 = vld [vmem:[#allocation2 + $0x144] sm:$0xf0]  ;;  %v2590_v42 = vld [vmem:[#allocation2 + $0x18] sm:$0xf]  ;;  %v3298_v44 = vld [vmem:[#allocation2 + $0x148] sm:$0xf0] }
  0x16   :  { %3180 = vmatmul.msk.bf16.vlgmr.msra.gmra.mxu0 %vm1148_vm0, %v3501_v23  ;;  %v2587_v43 = vor.u32 %v3259_v40, %v2584_v41  ;;  %v3260_v45 = vld [vmem:[#allocation2 + $0x1c] sm:$0xf]  ;;  %v2592_v46 = vld [vmem:[#allocation2 + $0x14c] sm:$0xf0]  ;;  %3181 = vmatmul.msk.bf16.vlgmr.msra.gmra.mxu1 %vm1148_vm0, %v3501_v23  ;;  %v2906_v47 = vld [vmem:[#allocation2 + $0x288] sm:$0xf]  ;;  %v2591_v50 = vor.u32 %v3298_v44, %v2590_v42 }
  0x17   :  { %1210 = vmatpush.bf16.msrb.mxu0 %v2891_v29  ;;  %1223 = vmatpush.bf16.msrb.mxu1 %v2895_v33  ;;  %v3376_v48 = vld [vmem:[#allocation2 + $0x3b8] sm:$0xf0]  ;;  %v2598_v49 = vld [vmem:[#allocation2 + $0x20] sm:$0xf]  ;;  %v3299_v52 = vld [vmem:[#allocation2 + $0x150] sm:$0xf0]  ;;  %v2595_v55 = vor.u32 %v3260_v45, %v2592_v46 }
  0x18   :  { %3182 = vmatmul.msk.bf16.vlgmr.msra.gmra.mxu2 %vm1148_vm0, %v3501_v23  ;;  %3183 = vmatmul.msk.bf16.vlgmr.msra.gmra.mxu3 %vm1148_vm0, %v3501_v23  ;;  %v2907_v51 = vor.u32 %v3376_v48, %v2906_v47  ;;  %v3338_v53 = vld [vmem:[#allocation2 + $0x28c] sm:$0xf]  ;;  %v2908_v54 = vld [vmem:[#allocation2 + $0x3bc] sm:$0xf0]  ;;  %v2914_v57 = vld [vmem:[#allocation2 + $0x290] sm:$0xf]  ;;  %v2599_v60 = vor.u32 %v3299_v52, %v2598_v49 }
  0x19   :  { %1236 = vmatpush.bf16.msrb.mxu2 %v2899_v38  ;;  %1249 = vmatpush.bf16.msrb.mxu3 %v2903_v39  ;;  %v2911_v56 = vor.u32 %v3338_v53, %v2908_v54  ;;  %v3377_v58 = vld [vmem:[#allocation2 + $0x3c0] sm:$0xf0]  ;;  %v3339_v59 = vld [vmem:[#allocation2 + $0x294] sm:$0xf]  ;;  %v2916_v62 = vld [vmem:[#allocation2 + $0x3c4] sm:$0xf0] }
  0x1a   :  { %v2915_v61 = vor.u32 %v3377_v58, %v2914_v57  ;;  %v3261_v63 = vld [vmem:[#allocation2 + $0x24] sm:$0xf]  ;;  %v2600_v0 = vld [vmem:[#allocation2 + $0x154] sm:$0xf0]  ;;  %v2919_v1 = vor.u32 %v3339_v59, %v2916_v62  ;;  %v2606_v3 = vld [vmem:[#allocation2 + $0x28] sm:$0xf] }
  0x1b   :  { %1211 = vmatpush.bf16.msrb.mxu0 %v2583_v37  ;;  %1224 = vmatpush.bf16.msrb.mxu1 %v2587_v43  ;;  %v2603_v2 = vor.u32 %v3261_v63, %v2600_v0  ;;  %v3300_v4 = vld [vmem:[#allocation2 + $0x158] sm:$0xf0]  ;;  %v3262_v5 = vld [vmem:[#allocation2 + $0x2c] sm:$0xf]  ;;  %v2608_v6 = vld [vmem:[#allocation2 + $0x15c] sm:$0xf0] }
  0x1c   :  { %v2607_v7 = vor.u32 %v3300_v4, %v2606_v3  ;;  %v2611_v8 = vor.u32 %v3262_v5, %v2608_v6  ;;  %v2922_v9 = vld [vmem:[#allocation2 + $0x298] sm:$0xf]  ;;  %v3378_v10 = vld [vmem:[#allocation2 + $0x3c8] sm:$0xf0]  ;;  %v3340_v11 = vld [vmem:[#allocation2 + $0x29c] sm:$0xf] }
  0x1d   :  { %1237 = vmatpush.bf16.msrb.mxu2 %v2591_v50  ;;  %1250 = vmatpush.bf16.msrb.mxu3 %v2595_v55  ;;  %v2924_v12 = vld [vmem:[#allocation2 + $0x3cc] sm:$0xf0]  ;;  %v2930_v13 = vld [vmem:[#allocation2 + $0x2a0] sm:$0xf]  ;;  %v3379_v14 = vld [vmem:[#allocation2 + $0x3d0] sm:$0xf0]  ;;  %v2923_v17 = vor.u32 %v3378_v10, %v2922_v9 }
  0x1e   :  { %v3341_v15 = vld [vmem:[#allocation2 + $0x2a4] sm:$0xf]  ;;  %v2932_v16 = vld [vmem:[#allocation2 + $0x3d4] sm:$0xf0]  ;;  %v2614_v18 = vld [vmem:[#allocation2 + $0x30] sm:$0xf]  ;;  %v2927_v20 = vor.u32 %v3340_v11, %v2924_v12  ;;  %v2931_v21 = vor.u32 %v3379_v14, %v2930_v13 }
  0x1f   :  { %1262 = vmatpush.bf16.msra.mxu0 %v2907_v51  ;;  %1275 = vmatpush.bf16.msra.mxu1 %v2911_v56  ;;  %v3301_v19 = vld [vmem:[#allocation2 + $0x160] sm:$0xf0]  ;;  %v3263_v22 = vld [vmem:[#allocation2 + $0x34] sm:$0xf]  ;;  %v2935_v24 = vor.u32 %v3341_v15, %v2932_v16  ;;  %v2616_v25 = vld [vmem:[#allocation2 + $0x164] sm:$0xf0] }
  0x20   :  { %v2622_v26 = vld [vmem:[#allocation2 + $0x38] sm:$0xf]  ;;  %v3302_v27 = vld [vmem:[#allocation2 + $0x168] sm:$0xf0]  ;;  %v3264_v28 = vld [vmem:[#allocation2 + $0x3c] sm:$0xf]  ;;  %v2615_v30 = vor.u32 %v3301_v19, %v2614_v18  ;;  %v2619_v31 = vor.u32 %v3263_v22, %v2616_v25 }
  0x21   :  { %1288 = vmatpush.bf16.msra.mxu2 %v2915_v61  ;;  %1301 = vmatpush.bf16.msra.mxu3 %v2919_v1  ;;  %v2624_v29 = vld [vmem:[#allocation2 + $0x16c] sm:$0xf0]  ;;  %v2623_v32 = vor.u32 %v3302_v27, %v2622_v26  ;;  %v2938_v34 = vld [vmem:[#allocation2 + $0x2a8] sm:$0xf]  ;;  %v3380_v35 = vld [vmem:[#allocation2 + $0x3d8] sm:$0xf0] }
  0x22   :  { %v2627_v33 = vor.u32 %v3264_v28, %v2624_v29  ;;  %v3342_v36 = vld [vmem:[#allocation2 + $0x2ac] sm:$0xf]  ;;  %v2940_v37 = vld [vmem:[#allocation2 + $0x3dc] sm:$0xf0]  ;;  %v2946_v38 = vld [vmem:[#allocation2 + $0x2b0] sm:$0xf]  ;;  %v2939_v42 = vor.u32 %v3380_v35, %v2938_v34 }
  0x23   :  { %1263 = vmatpush.bf16.msra.mxu0 %v2599_v60  ;;  %1276 = vmatpush.bf16.msra.mxu1 %v2603_v2  ;;  %v3381_v39 = vld [vmem:[#allocation2 + $0x3e0] sm:$0xf0]  ;;  %v3343_v40 = vld [vmem:[#allocation2 + $0x2b4] sm:$0xf]  ;;  %v2948_v41 = vld [vmem:[#allocation2 + $0x3e4] sm:$0xf0]  ;;  %v2943_v45 = vor.u32 %v3342_v36, %v2940_v37 }
  0x24   :  { %v2630_v43 = vld [vmem:[#allocation2 + $0x40] sm:$0xf]  ;;  %v3303_v44 = vld [vmem:[#allocation2 + $0x170] sm:$0xf0]  ;;  %v2947_v46 = vor.u32 %v3381_v39, %v2946_v38  ;;  %v3265_v47 = vld [vmem:[#allocation2 + $0x44] sm:$0xf]  ;;  %v2951_v48 = vor.u32 %v3343_v40, %v2948_v41 }
  0x25   :  { %1289 = vmatpush.bf16.msra.mxu2 %v2607_v7  ;;  %1302 = vmatpush.bf16.msra.mxu3 %v2611_v8  ;;  %v2632_v49 = vld [vmem:[#allocation2 + $0x174] sm:$0xf0]  ;;  %v2638_v50 = vld [vmem:[#allocation2 + $0x48] sm:$0xf]  ;;  %v3304_v51 = vld [vmem:[#allocation2 + $0x178] sm:$0xf0]  ;;  %v2631_v54 = vor.u32 %v3303_v44, %v2630_v43 }
  0x26   :  { %3184 = vmatmul.msk.bf16.vlgmr.msrb.gmra.mxu0 %vm1148_vm0, %v3501_v23  ;;  %3185 = vmatmul.msk.bf16.vlgmr.msrb.gmra.mxu1 %vm1148_vm0, %v3501_v23  ;;  %v3266_v52 = vld [vmem:[#allocation2 + $0x4c] sm:$0xf]  ;;  %v2640_v53 = vld [vmem:[#allocation2 + $0x17c] sm:$0xf0]  ;;  %v2635_v55 = vor.u32 %v3265_v47, %v2632_v49  ;;  %v2639_v56 = vor.u32 %v3304_v51, %v2638_v50  ;;  %v2954_v58 = vld [vmem:[#allocation2 + $0x2b8] sm:$0xf] }
  0x27   :  { %1314 = vmatpush.bf16.msrb.mxu0 %v2923_v17  ;;  %1327 = vmatpush.bf16.msrb.mxu1 %v2927_v20  ;;  %v2643_v57 = vor.u32 %v3266_v52, %v2640_v53  ;;  %v3382_v59 = vld [vmem:[#allocation2 + $0x3e8] sm:$0xf0]  ;;  %v3344_v60 = vld [vmem:[#allocation2 + $0x2bc] sm:$0xf]  ;;  %v2956_v61 = vld [vmem:[#allocation2 + $0x3ec] sm:$0xf0] }
  0x28   :  { %3186 = vmatmul.msk.bf16.vlgmr.msrb.gmra.mxu2 %vm1148_vm0, %v3501_v23  ;;  %3187 = vmatmul.msk.bf16.vlgmr.msrb.gmra.mxu3 %vm1148_vm0, %v3501_v23  ;;  %v2962_v62 = vld [vmem:[#allocation2 + $0x2c0] sm:$0xf]  ;;  %v3383_v63 = vld [vmem:[#allocation2 + $0x3f0] sm:$0xf0]  ;;  %v3345_v0 = vld [vmem:[#allocation2 + $0x2c4] sm:$0xf]  ;;  %v2955_v2 = vor.u32 %v3382_v59, %v2954_v58  ;;  %v2959_v5 = vor.u32 %v3344_v60, %v2956_v61 }
  0x29   :  { %1340 = vmatpush.bf16.msrb.mxu2 %v2931_v21  ;;  %1353 = vmatpush.bf16.msrb.mxu3 %v2935_v24  ;;  %v2964_v1 = vld [vmem:[#allocation2 + $0x3f4] sm:$0xf0]  ;;  %v2646_v3 = vld [vmem:[#allocation2 + $0x50] sm:$0xf]  ;;  %v3305_v4 = vld [vmem:[#allocation2 + $0x180] sm:$0xf0]  ;;  %v2963_v6 = vor.u32 %v3383_v63, %v2962_v62 }
  0x2a   :  { %v3267_v7 = vld [vmem:[#allocation2 + $0x54] sm:$0xf]  ;;  %v2967_v8 = vor.u32 %v3345_v0, %v2964_v1  ;;  %v2648_v9 = vld [vmem:[#allocation2 + $0x184] sm:$0xf0]  ;;  %v2654_v10 = vld [vmem:[#allocation2 + $0x58] sm:$0xf]  ;;  %v2647_v14 = vor.u32 %v3305_v4, %v2646_v3 }
  0x2b   :  { %1315 = vmatpush.bf16.msrb.mxu0 %v2615_v30  ;;  %1328 = vmatpush.bf16.msrb.mxu1 %v2619_v31  ;;  %v3306_v11 = vld [vmem:[#allocation2 + $0x188] sm:$0xf0]  ;;  %v3268_v12 = vld [vmem:[#allocation2 + $0x5c] sm:$0xf]  ;;  %v2656_v13 = vld [vmem:[#allocation2 + $0x18c] sm:$0xf0]  ;;  %v2651_v15 = vor.u32 %v3267_v7, %v2648_v9 }
  0x2c   :  { %v2655_v16 = vor.u32 %v3306_v11, %v2654_v10  ;;  %v2659_v17 = vor.u32 %v3268_v12, %v2656_v13  ;;  %v2970_v18 = vld [vmem:[#allocation2 + $0x2c8] sm:$0xf]  ;;  %v3384_v19 = vld [vmem:[#allocation2 + $0x3f8] sm:$0xf0]  ;;  %v3346_v20 = vld [vmem:[#allocation2 + $0x2cc] sm:$0xf] }
  0x2d   :  { %1341 = vmatpush.bf16.msrb.mxu2 %v2623_v32  ;;  %1354 = vmatpush.bf16.msrb.mxu3 %v2627_v33  ;;  %v2972_v21 = vld [vmem:[#allocation2 + $0x3fc] sm:$0xf0]  ;;  %v2978_v22 = vld [vmem:[#allocation2 + $0x2d0] sm:$0xf]  ;;  %v3385_v24 = vld [vmem:[#allocation2 + $0x400] sm:$0xf0]  ;;  %v2971_v27 = vor.u32 %v3384_v19, %v2970_v18 }
  0x2e   :  { %v3347_v25 = vld [vmem:[#allocation2 + $0x2d4] sm:$0xf]  ;;  %v2980_v26 = vld [vmem:[#allocation2 + $0x404] sm:$0xf0]  ;;  %v2662_v28 = vld [vmem:[#allocation2 + $0x60] sm:$0xf]  ;;  %v2975_v30 = vor.u32 %v3346_v20, %v2972_v21  ;;  %v2979_v31 = vor.u32 %v3385_v24, %v2978_v22 }
  0x2f   :  { %v3307_v29 = vld [vmem:[#allocation2 + $0x190] sm:$0xf0]  ;;  %v3269_v32 = vld [vmem:[#allocation2 + $0x64] sm:$0xf]  ;;  %v2983_v33 = vor.u32 %v3347_v25, %v2980_v26  ;;  %v2664_v34 = vld [vmem:[#allocation2 + $0x194] sm:$0xf0] }
  0x30   :  { %v2670_v35 = vld [vmem:[#allocation2 + $0x68] sm:$0xf]  ;;  %v3308_v36 = vld [vmem:[#allocation2 + $0x198] sm:$0xf0]  ;;  %v3270_v37 = vld [vmem:[#allocation2 + $0x6c] sm:$0xf]  ;;  %v2663_v39 = vor.u32 %v3307_v29, %v2662_v28  ;;  %v2667_v40 = vor.u32 %v3269_v32, %v2664_v34 }
  0x31   :  { %v2672_v38 = vld [vmem:[#allocation2 + $0x19c] sm:$0xf0]  ;;  %v2671_v41 = vor.u32 %v3308_v36, %v2670_v35  ;;  %v2986_v43 = vld [vmem:[#allocation2 + $0x2d8] sm:$0xf]  ;;  %v3386_v44 = vld [vmem:[#allocation2 + $0x408] sm:$0xf0] }
  0x32   :  { %v2994_v47 = vld [vmem:[#allocation2 + $0x2e0] sm:$0xf]  ;;  %v3349_v49 = vld [vmem:[#allocation2 + $0x2e4] sm:$0xf]  ;;  %v2996_v50 = vld [vmem:[#allocation2 + $0x414] sm:$0xf0]  ;;  %v2987_v51 = vor.u32 %v3386_v44, %v2986_v43 }
  0x33   :  { %v2678_v52 = vld [vmem:[#allocation2 + $0x70] sm:$0xf]  ;;  %v3309_v53 = vld [vmem:[#allocation2 + $0x1a0] sm:$0xf0]  ;;  %v2680_v58 = vld [vmem:[#allocation2 + $0x1a4] sm:$0xf0] }
  0x34   :  { %v2686_v59 = vld [vmem:[#allocation2 + $0x78] sm:$0xf]  ;;  %v3310_v60 = vld [vmem:[#allocation2 + $0x1a8] sm:$0xf0]  ;;  %v3272_v61 = vld [vmem:[#allocation2 + $0x7c] sm:$0xf]  ;;  %v2679_v63 = vor.u32 %v3309_v53, %v2678_v52 }
  0x35   :  { %v2688_v62 = vld [vmem:[#allocation2 + $0x1ac] sm:$0xf0]  ;;  %v2687_v1 = vor.u32 %v3310_v60, %v2686_v59  ;;  %v3002_v3 = vld [vmem:[#allocation2 + $0x2e8] sm:$0xf]  ;;  %v3388_v4 = vld [vmem:[#allocation2 + $0x418] sm:$0xf0] }
  0x36   :  { %3188 = vmatmul.msk.bf16.vlgmr.msra.gmra.mxu0 %vm1148_vm0, %v3501_v23  ;;  %3189 = vmatmul.msk.bf16.vlgmr.msra.gmra.mxu1 %vm1148_vm0, %v3501_v23  ;;  %v3010_v7 = vld [vmem:[#allocation2 + $0x2f0] sm:$0xf]  ;;  %v3351_v9 = vld [vmem:[#allocation2 + $0x2f4] sm:$0xf]  ;;  %v3012_v10 = vld [vmem:[#allocation2 + $0x424] sm:$0xf0]  ;;  %v3003_v11 = vor.u32 %v3388_v4, %v3002_v3 }
  0x37   :  { %1366 = vmatpush.bf16.msra.mxu0 %v2939_v42  ;;  %1379 = vmatpush.bf16.msra.mxu1 %v2943_v45  ;;  %v2675_v42 = vor.u32 %v3270_v37, %v2672_v38  ;;  %v3348_v45 = vld [vmem:[#allocation2 + $0x2dc] sm:$0xf]  ;;  %v2694_v12 = vld [vmem:[#allocation2 + $0x80] sm:$0xf]  ;;  %v3311_v13 = vld [vmem:[#allocation2 + $0x1b0] sm:$0xf0] }
  0x38   :  { %3190 = vmatmul.msk.bf16.vlgmr.msra.gmra.mxu2 %vm1148_vm0, %v3501_v23  ;;  %3191 = vmatmul.msk.bf16.vlgmr.msra.gmra.mxu3 %vm1148_vm0, %v3501_v23  ;;  %v2696_v18 = vld [vmem:[#allocation2 + $0x1b4] sm:$0xf0]  ;;  %v2702_v19 = vld [vmem:[#allocation2 + $0x88] sm:$0xf]  ;;  %v3312_v20 = vld [vmem:[#allocation2 + $0x1b8] sm:$0xf0]  ;;  %v2695_v24 = vor.u32 %v3311_v13, %v2694_v12 }
  0x39   :  { %1392 = vmatpush.bf16.msra.mxu2 %v2947_v46  ;;  %1405 = vmatpush.bf16.msra.mxu3 %v2951_v48  ;;  %v2988_v46 = vld [vmem:[#allocation2 + $0x40c] sm:$0xf0]  ;;  %v3387_v48 = vld [vmem:[#allocation2 + $0x410] sm:$0xf0]  ;;  %v3274_v21 = vld [vmem:[#allocation2 + $0x8c] sm:$0xf]  ;;  %v2703_v26 = vor.u32 %v3312_v20, %v2702_v19 }
  0x3a   :  { %v2704_v22 = vld [vmem:[#allocation2 + $0x1bc] sm:$0xf0]  ;;  %v3018_v28 = vld [vmem:[#allocation2 + $0x2f8] sm:$0xf]  ;;  %v3390_v29 = vld [vmem:[#allocation2 + $0x428] sm:$0xf0] }
  0x3b   :  { %1367 = vmatpush.bf16.msra.mxu0 %v2631_v54  ;;  %1380 = vmatpush.bf16.msra.mxu1 %v2635_v55  ;;  %v2991_v54 = vor.u32 %v3348_v45, %v2988_v46  ;;  %v2995_v55 = vor.u32 %v3387_v48, %v2994_v47  ;;  %v3026_v32 = vld [vmem:[#allocation2 + $0x300] sm:$0xf]  ;;  %v3353_v34 = vld [vmem:[#allocation2 + $0x304] sm:$0xf]  ;;  %v3028_v35 = vld [vmem:[#allocation2 + $0x434] sm:$0xf0]  ;;  %v3019_v36 = vor.u32 %v3390_v29, %v3018_v28 }
  0x3c   :  { %v2710_v37 = vld [vmem:[#allocation2 + $0x90] sm:$0xf]  ;;  %v3313_v38 = vld [vmem:[#allocation2 + $0x1c0] sm:$0xf0]  ;;  %v2712_v43 = vld [vmem:[#allocation2 + $0x1c4] sm:$0xf0] }
  0x3d   :  { %1393 = vmatpush.bf16.msra.mxu2 %v2639_v56  ;;  %1406 = vmatpush.bf16.msra.mxu3 %v2643_v57  ;;  %v3271_v56 = vld [vmem:[#allocation2 + $0x74] sm:$0xf]  ;;  %v2999_v57 = vor.u32 %v3349_v49, %v2996_v50  ;;  %v2718_v44 = vld [vmem:[#allocation2 + $0x98] sm:$0xf]  ;;  %v3314_v45 = vld [vmem:[#allocation2 + $0x1c8] sm:$0xf0]  ;;  %v2711_v48 = vor.u32 %v3313_v38, %v2710_v37 }
  0x3e   :  { %v2683_v0 = vor.u32 %v3271_v56, %v2680_v58  ;;  %v3276_v46 = vld [vmem:[#allocation2 + $0x9c] sm:$0xf]  ;;  %v2720_v47 = vld [vmem:[#allocation2 + $0x1cc] sm:$0xf0]  ;;  %v2719_v50 = vor.u32 %v3314_v45, %v2718_v44  ;;  %v3034_v52 = vld [vmem:[#allocation2 + $0x308] sm:$0xf] }
  0x3f   :  { %v3392_v53 = vld [vmem:[#allocation2 + $0x438] sm:$0xf0]  ;;  %v3042_v56 = vld [vmem:[#allocation2 + $0x310] sm:$0xf]  ;;  %v3355_v59 = vld [vmem:[#allocation2 + $0x314] sm:$0xf] }
  0x40   :  { %v3044_v60 = vld [vmem:[#allocation2 + $0x444] sm:$0xf0]  ;;  %v3277_v3 = vld [vmem:[#allocation2 + $0xa4] sm:$0xf]  ;;  %v3050_v28 = vld [vmem:[#allocation2 + $0x318] sm:$0xf] }
  0x41   :  { %v3047_v4 = vor.u32 %v3355_v59, %v3044_v60  ;;  %v3394_v29 = vld [vmem:[#allocation2 + $0x448] sm:$0xf0]  ;;  %v3280_v59 = vld [vmem:[#allocation2 + $0xbc] sm:$0xf]  ;;  %v2752_v60 = vld [vmem:[#allocation2 + $0x1ec] sm:$0xf0] }
  0x42   :  { %vm2380_vm2 = vcmask 1042434   ;;  %vm2384_vm3 = vcmask 1041408   ;;  %vm2386_vm4 = vcmask 1044484   ;;  %vm2390_vm5 = vcmask 1046534  }
  0x43   :  { %vm2394_vm6 = vcmask 1045508   ;;  %vm2396_vm7 = vcmask 1043456   ;;  %vm2551_vm8 = vcmask 1041409   ;;  %vm2523_vm10 = vcmask 1043459  }
  0x44   :  { %vm2552_vm9 = vmor %vm2551_vm8, %vm2376_vm1  ;;  %vm2555_vm13 = vcmask 585732   ;;  %vm2527_vm14 = vcmask 1044483   ;;  %vm2530_vm15 = vcmask 1042432  }
  0x45   :  { %vm2553_vm11 = vmor %vm2380_vm2, %vm2552_vm9 }
  0x46   :  { %3192 = vmatmul.msk.bf16.vlgmr.msrb.gmra.mxu0 %vm1148_vm0, %v3501_v23  ;;  %3193 = vmatmul.msk.bf16.vlgmr.msrb.gmra.mxu1 %vm1148_vm0, %v3501_v23  ;;  %vm2554_vm12 = vmor %vm2523_vm10, %vm2553_vm11 }
  0x47   :  { %1418 = vmatpush.bf16.msrb.mxu0 %v2955_v2  ;;  %1431 = vmatpush.bf16.msrb.mxu1 %v2959_v5  ;;  %v2691_v2 = vor.u32 %v3272_v61, %v2688_v62  ;;  %v3350_v5 = vld [vmem:[#allocation2 + $0x2ec] sm:$0xf]  ;;  %v3035_v62 = vor.u32 %v3392_v53, %v3034_v52  ;;  %v3279_v52 = vld [vmem:[#allocation2 + $0xb4] sm:$0xf] }
  0x48   :  { %3194 = vmatmul.msk.bf16.vlgmr.msrb.gmra.mxu2 %vm1148_vm0, %v3501_v23  ;;  %3195 = vmatmul.msk.bf16.vlgmr.msrb.gmra.mxu3 %vm1148_vm0, %v3501_v23 }
  0x49   :  { %1444 = vmatpush.bf16.msrb.mxu2 %v2963_v6  ;;  %1457 = vmatpush.bf16.msrb.mxu3 %v2967_v8  ;;  %v3004_v6 = vld [vmem:[#allocation2 + $0x41c] sm:$0xf0]  ;;  %v3389_v8 = vld [vmem:[#allocation2 + $0x420] sm:$0xf0] }
  0x4b   :  { %1419 = vmatpush.bf16.msrb.mxu0 %v2647_v14  ;;  %1432 = vmatpush.bf16.msrb.mxu1 %v2651_v15  ;;  %v3007_v14 = vor.u32 %v3350_v5, %v3004_v6  ;;  %v3011_v15 = vor.u32 %v3389_v8, %v3010_v7  ;;  %v2728_v5 = vld [vmem:[#allocation2 + $0x1d4] sm:$0xf0]  ;;  %v2734_v6 = vld [vmem:[#allocation2 + $0xa8] sm:$0xf]  ;;  %v3316_v7 = vld [vmem:[#allocation2 + $0x1d8] sm:$0xf0] }
  0x4c   :  { %v3278_v8 = vld [vmem:[#allocation2 + $0xac] sm:$0xf]  ;;  %v2735_v12 = vor.u32 %v3316_v7, %v2734_v6 }
  0x4d   :  { %1445 = vmatpush.bf16.msrb.mxu2 %v2655_v16  ;;  %1458 = vmatpush.bf16.msrb.mxu3 %v2659_v17  ;;  %v3273_v16 = vld [vmem:[#allocation2 + $0x84] sm:$0xf]  ;;  %v3015_v17 = vor.u32 %v3351_v9, %v3012_v10  ;;  %v2736_v9 = vld [vmem:[#allocation2 + $0x1dc] sm:$0xf0] }
  0x4e   :  { %v2699_v25 = vor.u32 %v3273_v16, %v2696_v18 }
  0x56   :  { %3196 = vmatmul.msk.bf16.vlgmr.msra.gmra.mxu0 %vm1148_vm0, %v3501_v23  ;;  %3197 = vmatmul.msk.bf16.vlgmr.msra.gmra.mxu1 %vm1148_vm0, %v3501_v23 }
  0x57   :  { %1470 = vmatpush.bf16.msra.mxu0 %v2971_v27  ;;  %1483 = vmatpush.bf16.msra.mxu1 %v2975_v30  ;;  %v2707_v27 = vor.u32 %v3274_v21, %v2704_v22  ;;  %v3352_v30 = vld [vmem:[#allocation2 + $0x2fc] sm:$0xf] }
  0x58   :  { %3198 = vmatmul.msk.bf16.vlgmr.msra.gmra.mxu2 %vm1148_vm0, %v3501_v23  ;;  %3199 = vmatmul.msk.bf16.vlgmr.msra.gmra.mxu3 %vm1148_vm0, %v3501_v23 }
  0x59   :  { %1496 = vmatpush.bf16.msra.mxu2 %v2979_v31  ;;  %1509 = vmatpush.bf16.msra.mxu3 %v2983_v33  ;;  %v3020_v31 = vld [vmem:[#allocation2 + $0x42c] sm:$0xf0]  ;;  %v3391_v33 = vld [vmem:[#allocation2 + $0x430] sm:$0xf0] }
  0x5b   :  { %1471 = vmatpush.bf16.msra.mxu0 %v2663_v39  ;;  %1484 = vmatpush.bf16.msra.mxu1 %v2667_v40  ;;  %v3023_v39 = vor.u32 %v3352_v30, %v3020_v31  ;;  %v3027_v40 = vor.u32 %v3391_v33, %v3026_v32  ;;  %v3356_v30 = vld [vmem:[#allocation2 + $0x31c] sm:$0xf]  ;;  %v3052_v32 = vld [vmem:[#allocation2 + $0x44c] sm:$0xf0]  ;;  %v3058_v33 = vld [vmem:[#allocation2 + $0x320] sm:$0xf] }
  0x5d   :  { %1497 = vmatpush.bf16.msra.mxu2 %v2671_v41  ;;  %1510 = vmatpush.bf16.msra.mxu3 %v2675_v42  ;;  %v3275_v41 = vld [vmem:[#allocation2 + $0x94] sm:$0xf]  ;;  %v3031_v42 = vor.u32 %v3353_v34, %v3028_v35 }
  0x5e   :  { %v2715_v49 = vor.u32 %v3275_v41, %v2712_v43  ;;  %v3395_v34 = vld [vmem:[#allocation2 + $0x450] sm:$0xf0]  ;;  %v3060_v41 = vld [vmem:[#allocation2 + $0x454] sm:$0xf0] }
  0x66   :  { %3200 = vmatmul.msk.bf16.vlgmr.msrb.gmra.mxu0 %vm1148_vm0, %v3501_v23  ;;  %3201 = vmatmul.msk.bf16.vlgmr.msrb.gmra.mxu1 %vm1148_vm0, %v3501_v23 }
  0x67   :  { %1522 = vmatpush.bf16.msrb.mxu0 %v2987_v51  ;;  %1535 = vmatpush.bf16.msrb.mxu1 %v2991_v54  ;;  %v2723_v51 = vor.u32 %v3276_v46, %v2720_v47  ;;  %v3354_v54 = vld [vmem:[#allocation2 + $0x30c] sm:$0xf]  ;;  %v3051_v46 = vor.u32 %v3394_v29, %v3050_v28 }
  0x68   :  { %3202 = vmatmul.msk.bf16.vlgmr.msrb.gmra.mxu2 %vm1148_vm0, %v3501_v23  ;;  %3203 = vmatmul.msk.bf16.vlgmr.msrb.gmra.mxu3 %vm1148_vm0, %v3501_v23 }
  0x69   :  { %1548 = vmatpush.bf16.msrb.mxu2 %v2995_v55  ;;  %1561 = vmatpush.bf16.msrb.mxu3 %v2999_v57  ;;  %v3036_v55 = vld [vmem:[#allocation2 + $0x43c] sm:$0xf0]  ;;  %v3393_v57 = vld [vmem:[#allocation2 + $0x440] sm:$0xf0] }
  0x6b   :  { %1523 = vmatpush.bf16.msrb.mxu0 %v2679_v63  ;;  %1536 = vmatpush.bf16.msrb.mxu1 %v2683_v0  ;;  %v2726_v63 = vld [vmem:[#allocation2 + $0xa0] sm:$0xf]  ;;  %v3315_v0 = vld [vmem:[#allocation2 + $0x1d0] sm:$0xf0] }
  0x6c   :  { %v2727_v10 = vor.u32 %v3315_v0, %v2726_v63 }
  0x6d   :  { %1549 = vmatpush.bf16.msrb.mxu2 %v2687_v1  ;;  %1562 = vmatpush.bf16.msrb.mxu3 %v2691_v2  ;;  %v3039_v1 = vor.u32 %v3354_v54, %v3036_v55  ;;  %v3043_v2 = vor.u32 %v3393_v57, %v3042_v56  ;;  %v2744_v54 = vld [vmem:[#allocation2 + $0x1e4] sm:$0xf0]  ;;  %v2750_v55 = vld [vmem:[#allocation2 + $0xb8] sm:$0xf]  ;;  %v3318_v56 = vld [vmem:[#allocation2 + $0x1e8] sm:$0xf0] }
  0x76   :  { %3204 = vmatmul.msk.bf16.vlgmr.msra.gmra.mxu0 %vm1148_vm0, %v3501_v23  ;;  %3205 = vmatmul.msk.bf16.vlgmr.msra.gmra.mxu1 %vm1148_vm0, %v3501_v23 }
  0x77   :  { %1574 = vmatpush.bf16.msra.mxu0 %v3003_v11  ;;  %1587 = vmatpush.bf16.msra.mxu1 %v3007_v14  ;;  %v2731_v11 = vor.u32 %v3277_v3, %v2728_v5  ;;  %v2739_v14 = vor.u32 %v3278_v8, %v2736_v9  ;;  %v2755_v5 = vor.u32 %v3280_v59, %v2752_v60  ;;  %v3611_v60 = vld [vmem:[#allocation4 + $0x8] sm:$0xff] }
  0x78   :  { %3206 = vmatmul.msk.bf16.vlgmr.msra.gmra.mxu2 %vm1148_vm0, %v3501_v23  ;;  %3207 = vmatmul.msk.bf16.vlgmr.msra.gmra.mxu3 %vm1148_vm0, %v3501_v23 }
  0x79   :  { %1600 = vmatpush.bf16.msra.mxu2 %v3011_v15  ;;  %1613 = vmatpush.bf16.msra.mxu3 %v3015_v17  ;;  %v3575_v15 = vld [vmem:[#allocation4] sm:$0xff] }
  0x7a   :  { %v224_v18 = vperm.slane %v3575_v15, 2  ;;  %v225_v19 = vperm.slane %v3575_v15, 3  ;;  %v222_v21 = vperm.slane %v3575_v15, 0  ;;  %v223_v22 = vperm.slane %v3575_v15, 1 }
  0x7b   :  { %1575 = vmatpush.bf16.msra.mxu0 %v2695_v24  ;;  %1588 = vmatpush.bf16.msra.mxu1 %v2699_v25 }
  0x7d   :  { %1601 = vmatpush.bf16.msra.mxu2 %v2703_v26  ;;  %1614 = vmatpush.bf16.msra.mxu3 %v2707_v27  ;;  %v226_v26 = vperm.slane %v3575_v15, 4  ;;  %v227_v27 = vperm.slane %v3575_v15, 5 }
  0x86   :  { %3208 = vmatmul.msk.bf16.vlgmr.msrb.gmra.mxu0 %vm1148_vm0, %v3501_v23  ;;  %3209 = vmatmul.msk.bf16.vlgmr.msrb.gmra.mxu1 %vm1148_vm0, %v3501_v23 }
  0x87   :  { %1626 = vmatpush.bf16.msrb.mxu0 %v3019_v36  ;;  %1639 = vmatpush.bf16.msrb.mxu1 %v3023_v39  ;;  %v228_v39 = vperm.slane %v3575_v15, 6 }
  0x88   :  { %3210 = vmatmul.msk.bf16.vlgmr.msrb.gmra.mxu2 %vm1148_vm0, %v3501_v23  ;;  %3211 = vmatmul.msk.bf16.vlgmr.msrb.gmra.mxu3 %vm1148_vm0, %v3501_v23 }
  0x89   :  { %1652 = vmatpush.bf16.msrb.mxu2 %v3027_v40  ;;  %1665 = vmatpush.bf16.msrb.mxu3 %v3031_v42  ;;  %v3357_v40 = vld [vmem:[#allocation2 + $0x324] sm:$0xf] }
  0x8a   :  { %v3063_v53 = vor.u32 %v3357_v40, %v3060_v41 }
  0x8b   :  { %1627 = vmatpush.bf16.msrb.mxu0 %v2711_v48  ;;  %1640 = vmatpush.bf16.msrb.mxu1 %v2715_v49  ;;  %v2742_v48 = vld [vmem:[#allocation2 + $0xb0] sm:$0xf]  ;;  %v3317_v49 = vld [vmem:[#allocation2 + $0x1e0] sm:$0xf0] }
  0x8c   :  { %v2743_v0 = vor.u32 %v3317_v49, %v2742_v48 }
  0x8d   :  { %1653 = vmatpush.bf16.msrb.mxu2 %v2719_v50  ;;  %1666 = vmatpush.bf16.msrb.mxu3 %v2723_v51  ;;  %v3055_v50 = vor.u32 %v3356_v30, %v3052_v32  ;;  %v3059_v51 = vor.u32 %v3395_v34, %v3058_v33  ;;  %v3074_v30 = vld [vmem:[#allocation2 + $0x330] sm:$0xf]  ;;  %v3359_v34 = vld [vmem:[#allocation2 + $0x334] sm:$0xf] }
  0x93   :  { %v1161_v58 = vpop.f32.mrf.mxu0  ;;  %v1174_v61 = vpop.f32.mrf.mxu1 }
  0x94   :  { %v1162_v35 = vadd.f32 %v1161_v58, %v222_v21  ;;  %v1175_v36 = vadd.f32 %v1174_v61, %v223_v22  ;;  %v229_v58 = vperm.slane %v3575_v15, 7  ;;  %v3066_v21 = vld [vmem:[#allocation2 + $0x328] sm:$0xf]  ;;  %v3396_v22 = vld [vmem:[#allocation2 + $0x458] sm:$0xf0] }
  0x95   :  { %v3067_v40 = vor.u32 %v3396_v22, %v3066_v21 }
  0x96   :  { %3212 = vmatmul.msk.bf16.vlgmr.msra.gmra.mxu0 %vm1148_vm0, %v3501_v23  ;;  %3213 = vmatmul.msk.bf16.vlgmr.msra.gmra.mxu1 %vm1148_vm0, %v3501_v23  ;;  %v2153_v57 = vmax.f32 %v1162_v35, 0.0  ;;  %v2154_v61 = vmax.f32 %v1175_v36, 0.0  ;;  %v3076_v35 = vld [vmem:[#allocation2 + $0x464] sm:$0xf0] }
  0x97   :  { %1678 = vmatpush.bf16.msra.mxu0 %v3035_v62  ;;  %1691 = vmatpush.bf16.msra.mxu1 %v3039_v1  ;;  %v2747_v1 = vor.u32 %v3279_v52, %v2744_v54  ;;  %v3079_v49 = vor.u32 %v3359_v34, %v3076_v35  ;;  %v3320_v52 = vld [vmem:[#allocation2 + $0x1f8] sm:$0xf0]  ;;  %v2768_v54 = vld [vmem:[#allocation2 + $0x1fc] sm:$0xf0]  ;;  %v2776_v35 = vld [vmem:[#allocation2 + $0x204] sm:$0xf0] }
  0x98   :  { %3214 = vmatmul.msk.bf16.vlgmr.msra.gmra.mxu2 %vm1148_vm0, %v3501_v23  ;;  %3215 = vmatmul.msk.bf16.vlgmr.msra.gmra.mxu3 %vm1148_vm0, %v3501_v23  ;;  %v2230_v9 = vpack.c.bf16 %v2154_v61, %v2153_v57 }
  0x99   :  { %1704 = vmatpush.bf16.msra.mxu2 %v3043_v2  ;;  %1717 = vmatpush.bf16.msra.mxu3 %v3047_v4  ;;  %v2751_v2 = vor.u32 %v3318_v56, %v2750_v55 }
  0x9b   :  { %v1187_v13 = vpop.f32.mrf.mxu2  ;;  %v1200_v16 = vpop.f32.mrf.mxu3  ;;  %1679 = vmatpush.bf16.msra.mxu0 %v2727_v10  ;;  %1692 = vmatpush.bf16.msra.mxu1 %v2731_v11 }
  0x9c   :  { %v1163_v17 = vpop.f32.mrf.mxu0  ;;  %v1176_v20 = vpop.f32.mrf.mxu1  ;;  %v1188_v24 = vadd.f32 %v1187_v13, %v224_v18  ;;  %v1201_v25 = vadd.f32 %v1200_v16, %v225_v19 }
  0x9d   :  { %1705 = vmatpush.bf16.msra.mxu2 %v2735_v12  ;;  %1718 = vmatpush.bf16.msra.mxu3 %v2739_v14  ;;  %v2308_v17 = vrot.slane %v2230_v9, 3 }
  0x9e   :  { %v2155_v42 = vmax.f32 %v1188_v24, 0.0  ;;  %v2156_v43 = vmax.f32 %v1201_v25, 0.0  ;;  %v3358_v24 = vld [vmem:[#allocation2 + $0x32c] sm:$0xf]  ;;  %v3068_v25 = vld [vmem:[#allocation2 + $0x45c] sm:$0xf0] }
  0x9f   :  { %v2379_v36 = vsel %vm2376_vm1, %v2230_v9, %v2308_v17  ;;  %v3360_v9 = vld [vmem:[#allocation2 + $0x33c] sm:$0xf] }
  0xa0   :  { %v2231_v3 = vpack.c.bf16 %v2156_v43, %v2155_v42  ;;  %v2758_v43 = vld [vmem:[#allocation2 + $0xc0] sm:$0xf] }
  0xa2   :  { %v2309_v14 = vrot.slane %v2231_v3, 6  ;;  %v2310_v15 = vrot.slane %v2231_v3, 1 }
  0xa3   :  { %v1189_v31 = vpop.f32.mrf.mxu2  ;;  %v1202_v37 = vpop.f32.mrf.mxu3 }
  0xa4   :  { %v1213_v38 = vpop.f32.mrf.mxu0  ;;  %v1226_v45 = vpop.f32.mrf.mxu1  ;;  %v3397_v31 = vld [vmem:[#allocation2 + $0x460] sm:$0xf0] }
  0xa5   :  { %v1214_v44 = vadd.f32 %v1213_v38, %v226_v26  ;;  %v1227_v47 = vadd.f32 %v1226_v45, %v227_v27  ;;  %v2383_v26 = vsel %vm2380_vm2, %v2309_v14, %v2310_v15  ;;  %v3071_v45 = vor.u32 %v3358_v24, %v3068_v25 }
  0xa6   :  { %3216 = vmatmul.msk.bf16.vlgmr.msrb.gmra.mxu0 %vm1148_vm0, %v3501_v23  ;;  %3217 = vmatmul.msk.bf16.vlgmr.msrb.gmra.mxu1 %vm1148_vm0, %v3501_v23  ;;  %v2385_v41 = vsel %vm2384_vm3, %v2379_v36, %v2383_v26  ;;  %v2782_v36 = vld [vmem:[#allocation2 + $0xd8] sm:$0xf] }
  0xa7   :  { %v2157_v62 = vmax.f32 %v1214_v44, 0.0  ;;  %v2158_v63 = vmax.f32 %v1227_v47, 0.0  ;;  %1730 = vmatpush.bf16.msrb.mxu0 %v3051_v46  ;;  %1743 = vmatpush.bf16.msrb.mxu1 %v3055_v50  ;;  %v3319_v44 = vld [vmem:[#allocation2 + $0x1f0] sm:$0xf0]  ;;  %v3075_v46 = vor.u32 %v3397_v31, %v3074_v30  ;;  %v3281_v47 = vld [vmem:[#allocation2 + $0xc4] sm:$0xf] }
  0xa8   :  { %3218 = vmatmul.msk.bf16.vlgmr.msrb.gmra.mxu2 %vm1148_vm0, %v3501_v23  ;;  %3219 = vmatmul.msk.bf16.vlgmr.msrb.gmra.mxu3 %vm1148_vm0, %v3501_v23  ;;  %v2760_v50 = vld [vmem:[#allocation2 + $0x1f4] sm:$0xf0]  ;;  %v2759_v55 = vor.u32 %v3319_v44, %v2758_v43 }
  0xa9   :  { %1756 = vmatpush.bf16.msrb.mxu2 %v3059_v51  ;;  %1769 = vmatpush.bf16.msrb.mxu3 %v3063_v53  ;;  %v2232_v10 = vpack.c.bf16 %v2158_v63, %v2157_v62  ;;  %v2766_v51 = vld [vmem:[#allocation2 + $0xc8] sm:$0xf]  ;;  %v3282_v53 = vld [vmem:[#allocation2 + $0xcc] sm:$0xf]  ;;  %v2763_v56 = vor.u32 %v3281_v47, %v2760_v50  ;;  %v232_v63 = vperm.slane %v3611_v60, 2 }
  0xaa   :  { %v2767_v57 = vor.u32 %v3320_v52, %v2766_v51  ;;  %v2771_v59 = vor.u32 %v3282_v53, %v2768_v54 }
  0xab   :  { %v1239_v4 = vpop.f32.mrf.mxu2  ;;  %v1252_v7 = vpop.f32.mrf.mxu3  ;;  %1731 = vmatpush.bf16.msrb.mxu0 %v2743_v0  ;;  %1744 = vmatpush.bf16.msrb.mxu1 %v2747_v1  ;;  %v2311_v18 = vrot.slane %v2232_v10, 4  ;;  %v2312_v19 = vrot.slane %v2232_v10, 7  ;;  %v233_v0 = vperm.slane %v3611_v60, 3 }
  0xac   :  { %v1240_v6 = vadd.f32 %v1239_v4, %v228_v39  ;;  %v1215_v8 = vpop.f32.mrf.mxu0  ;;  %v1253_v11 = vadd.f32 %v1252_v7, %v229_v58  ;;  %v1228_v12 = vpop.f32.mrf.mxu1  ;;  %v3082_v7 = vld [vmem:[#allocation2 + $0x338] sm:$0xf] }
  0xad   :  { %1757 = vmatpush.bf16.msrb.mxu2 %v2751_v2  ;;  %1770 = vmatpush.bf16.msrb.mxu3 %v2755_v5  ;;  %v2389_v37 = vsel %vm2386_vm4, %v2311_v18, %v2312_v19  ;;  %v231_v2 = vperm.slane %v3611_v60, 1  ;;  %v234_v5 = vperm.slane %v3611_v60, 4  ;;  %v3398_v8 = vld [vmem:[#allocation2 + $0x468] sm:$0xf0]  ;;  %v3090_v12 = vld [vmem:[#allocation2 + $0x340] sm:$0xf] }
  0xae   :  { %v2159_v13 = vmax.f32 %v1240_v6, 0.0  ;;  %v2160_v16 = vmax.f32 %v1253_v11, 0.0  ;;  %v235_v6 = vperm.slane %v3611_v60, 5  ;;  %v3084_v11 = vld [vmem:[#allocation2 + $0x46c] sm:$0xf0]  ;;  %v236_v18 = vperm.slane %v3611_v60, 6 }
  0xaf   :  { %v3361_v19 = vld [vmem:[#allocation2 + $0x344] sm:$0xf]  ;;  %v3083_v26 = vor.u32 %v3398_v8, %v3082_v7  ;;  %v3087_v30 = vor.u32 %v3360_v9, %v3084_v11  ;;  %v3106_v9 = vld [vmem:[#allocation2 + $0x350] sm:$0xf] }
  0xb0   :  { %v2233_v20 = vpack.c.bf16 %v2160_v16, %v2159_v13  ;;  %v3399_v13 = vld [vmem:[#allocation2 + $0x470] sm:$0xf0] }
  0xb1   :  { %v3091_v31 = vor.u32 %v3399_v13, %v3090_v12  ;;  %v3363_v13 = vld [vmem:[#allocation2 + $0x354] sm:$0xf] }
  0xb2   :  { %v2313_v27 = vrot.slane %v2233_v20, 2  ;;  %v2314_v28 = vrot.slane %v2233_v20, 5  ;;  %v3092_v20 = vld [vmem:[#allocation2 + $0x474] sm:$0xf0] }
  0xb3   :  { %v1241_v29 = vpop.f32.mrf.mxu2  ;;  %v1254_v32 = vpop.f32.mrf.mxu3  ;;  %v3095_v34 = vor.u32 %v3361_v19, %v3092_v20 }
  0xb4   :  { %v1265_v33 = vpop.f32.mrf.mxu0  ;;  %v2393_v38 = vsel %vm2390_vm5, %v2313_v27, %v2314_v28  ;;  %v1278_v39 = vpop.f32.mrf.mxu1  ;;  %v2774_v28 = vld [vmem:[#allocation2 + $0xd0] sm:$0xf]  ;;  %v3321_v29 = vld [vmem:[#allocation2 + $0x200] sm:$0xf0]  ;;  %v3283_v32 = vld [vmem:[#allocation2 + $0xd4] sm:$0xf] }
  0xb5   :  { %v2395_v42 = vsel %vm2394_vm6, %v2389_v37, %v2393_v38  ;;  %v1279_v15 = vadd.f32 %v1278_v39, %v231_v2  ;;  %v3322_v37 = vld [vmem:[#allocation2 + $0x208] sm:$0xf0]  ;;  %v237_v39 = vperm.slane %v3611_v60, 7  ;;  %v3400_v2 = vld [vmem:[#allocation2 + $0x478] sm:$0xf0] }
  0xb6   :  { %v2397_v48 = vsel %vm2396_vm7, %v2385_v41, %v2395_v42  ;;  %3220 = vmatmul.msk.bf16.vlgmr.msra.gmra.mxu0 %vm1148_vm0, %v3501_v23  ;;  %3221 = vmatmul.msk.bf16.vlgmr.msra.gmra.mxu1 %vm1148_vm0, %v3501_v23  ;;  %v2784_v41 = vld [vmem:[#allocation2 + $0x20c] sm:$0xf0]  ;;  %v2783_v47 = vor.u32 %v3322_v37, %v2782_v36 }
  0xb7   :  { %2542 = vst [vmem:[%s3802_s3] sm:$0xff] %v2397_v48  ;;  %1782 = vmatpush.bf16.msra.mxu0 %v3067_v40  ;;  %1795 = vmatpush.bf16.msra.mxu1 %v3071_v45  ;;  %v3284_v40 = vld [vmem:[#allocation2 + $0xdc] sm:$0xf]  ;;  %v2162_v42 = vmax.f32 %v1279_v15, 0.0  ;;  %v2775_v45 = vor.u32 %v3321_v29, %v2774_v28 }
  0xb8   :  { %3222 = vmatmul.msk.bf16.vlgmr.msra.gmra.mxu2 %vm1148_vm0, %v3501_v23  ;;  %3223 = vmatmul.msk.bf16.vlgmr.msra.gmra.mxu3 %vm1148_vm0, %v3501_v23  ;;  %v230_v23 = vperm.slane %v3611_v60, 0  ;;  %v2787_v50 = vor.u32 %v3284_v40, %v2784_v41  ;;  %v3652_v41 = vld [vmem:[#allocation4 + $0x10] sm:$0xff] }
  0xb9   :  { %1808 = vmatpush.bf16.msra.mxu2 %v3075_v46  ;;  %1821 = vmatpush.bf16.msra.mxu3 %v3079_v49  ;;  %v2779_v46 = vor.u32 %v3283_v32, %v2776_v35  ;;  %v3324_v32 = vld [vmem:[#allocation2 + $0x218] sm:$0xf0]  ;;  %v2800_v35 = vld [vmem:[#allocation2 + $0x21c] sm:$0xf0] }
  0xba   :  { %v1266_v14 = vadd.f32 %v1265_v33, %v230_v23  ;;  %v3623_v33 = vld [vmem:[%s3799_s0] sm:$0x1]  ;;  %v3098_v23 = vld [vmem:[#allocation2 + $0x348] sm:$0xf] }
  0xbb   :  { %v1291_v58 = vpop.f32.mrf.mxu2  ;;  %v1304_v61 = vpop.f32.mrf.mxu3  ;;  %1783 = vmatpush.bf16.msra.mxu0 %v2759_v55  ;;  %1796 = vmatpush.bf16.msra.mxu1 %v2763_v56  ;;  %v3099_v19 = vor.u32 %v3400_v2, %v3098_v23  ;;  %v3124_v23 = vld [vmem:[#allocation2 + $0x494] sm:$0xf0] }
  0xbc   :  { %v1267_v62 = vpop.f32.mrf.mxu0  ;;  %v1280_v1 = vpop.f32.mrf.mxu1  ;;  %v1292_v3 = vadd.f32 %v1291_v58, %v232_v63  ;;  %v1305_v4 = vadd.f32 %v1304_v61, %v233_v0  ;;  %v2161_v38 = vmax.f32 %v1266_v14, 0.0  ;;  %v3108_v14 = vld [vmem:[#allocation2 + $0x484] sm:$0xf0] }
  0xbd   :  { %1809 = vmatpush.bf16.msra.mxu2 %v2767_v57  ;;  %1822 = vmatpush.bf16.msra.mxu3 %v2771_v59  ;;  %v3111_v29 = vor.u32 %v3363_v13, %v3108_v14  ;;  %v3287_v13 = vld [vmem:[#allocation2 + $0xf4] sm:$0xf]  ;;  %v2808_v14 = vld [vmem:[#allocation2 + $0x224] sm:$0xf0] }
  0xbe   :  { %v2163_v21 = vmax.f32 %v1292_v3, 0.0  ;;  %v2164_v22 = vmax.f32 %v1305_v4, 0.0  ;;  %v2234_v54 = vpack.c.bf16 %v2162_v42, %v2161_v38  ;;  %v3362_v3 = vld [vmem:[#allocation2 + $0x34c] sm:$0xf]  ;;  %v3100_v4 = vld [vmem:[#allocation2 + $0x47c] sm:$0xf0] }
  0xc0   :  { %v2235_v48 = vpack.c.bf16 %v2164_v22, %v2163_v21  ;;  %v2315_v62 = vrot.slane %v2234_v54, 3  ;;  %v2790_v22 = vld [vmem:[#allocation2 + $0xe0] sm:$0xf] }
  0xc2   :  { %v2316_v59 = vrot.slane %v2235_v48, 6  ;;  %v2317_v60 = vrot.slane %v2235_v48, 1  ;;  %v2400_v15 = vsel %vm2376_vm1, %v2234_v54, %v2315_v62  ;;  %v239_v48 = vperm.slane %v3652_v41, 1  ;;  %v3402_v54 = vld [vmem:[#allocation2 + $0x488] sm:$0xf0] }
  0xc3   :  { %v1293_v10 = vpop.f32.mrf.mxu2  ;;  %v1306_v16 = vpop.f32.mrf.mxu3 }
  0xc4   :  { %v1317_v17 = vpop.f32.mrf.mxu0  ;;  %v1330_v25 = vpop.f32.mrf.mxu1  ;;  %v3401_v10 = vld [vmem:[#allocation2 + $0x480] sm:$0xf0] }
  0xc5   :  { %v1318_v24 = vadd.f32 %v1317_v17, %v234_v5  ;;  %v1331_v27 = vadd.f32 %v1330_v25, %v235_v6  ;;  %v2403_v5 = vsel %vm2380_vm2, %v2316_v59, %v2317_v60  ;;  %v3103_v25 = vor.u32 %v3362_v3, %v3100_v4  ;;  %v3403_v59 = vld [vmem:[#allocation2 + $0x490] sm:$0xf0] }
  0xc6   :  { %3224 = vmatmul.msk.bf16.vlgmr.msrb.gmra.mxu0 %vm1148_vm0, %v3623_v33  ;;  %3225 = vmatmul.msk.bf16.vlgmr.msrb.gmra.mxu1 %vm1148_vm0, %v3623_v33  ;;  %v2404_v20 = vsel %vm2384_vm3, %v2400_v15, %v2403_v5  ;;  %v2814_v15 = vld [vmem:[#allocation2 + $0xf8] sm:$0xf] }
  0xc7   :  { %v2165_v43 = vmax.f32 %v1318_v24, 0.0  ;;  %v2166_v44 = vmax.f32 %v1331_v27, 0.0  ;;  %1834 = vmatpush.bf16.msrb.mxu0 %v3083_v26  ;;  %1847 = vmatpush.bf16.msrb.mxu1 %v3087_v30  ;;  %v3323_v24 = vld [vmem:[#allocation2 + $0x210] sm:$0xf0]  ;;  %v3107_v26 = vor.u32 %v3401_v10, %v3106_v9  ;;  %v3285_v27 = vld [vmem:[#allocation2 + $0xe4] sm:$0xf] }
  0xc8   :  { %3226 = vmatmul.msk.bf16.vlgmr.msrb.gmra.mxu2 %vm1148_vm0, %v3623_v33  ;;  %3227 = vmatmul.msk.bf16.vlgmr.msrb.gmra.mxu3 %vm1148_vm0, %v3623_v33  ;;  %v2792_v30 = vld [vmem:[#allocation2 + $0x214] sm:$0xf0]  ;;  %v2791_v36 = vor.u32 %v3323_v24, %v2790_v22  ;;  %v3325_v9 = vld [vmem:[#allocation2 + $0x220] sm:$0xf0] }
  0xc9   :  { %1860 = vmatpush.bf16.msrb.mxu2 %v3091_v31  ;;  %1873 = vmatpush.bf16.msrb.mxu3 %v3095_v34  ;;  %v2236_v55 = vpack.c.bf16 %v2166_v44, %v2165_v43  ;;  %v2798_v31 = vld [vmem:[#allocation2 + $0xe8] sm:$0xf]  ;;  %v3286_v34 = vld [vmem:[#allocation2 + $0xec] sm:$0xf]  ;;  %v2795_v37 = vor.u32 %v3285_v27, %v2792_v30  ;;  %v240_v44 = vperm.slane %v3652_v41, 2 }
  0xca   :  { %v2799_v38 = vor.u32 %v3324_v32, %v2798_v31  ;;  %v2803_v40 = vor.u32 %v3286_v34, %v2800_v35 }
  0xcb   :  { %v1343_v49 = vpop.f32.mrf.mxu2  ;;  %v1356_v52 = vpop.f32.mrf.mxu3  ;;  %1835 = vmatpush.bf16.msrb.mxu0 %v2775_v45  ;;  %1848 = vmatpush.bf16.msrb.mxu1 %v2779_v46  ;;  %v2318_v63 = vrot.slane %v2236_v55, 4  ;;  %v2319_v0 = vrot.slane %v2236_v55, 7  ;;  %v241_v45 = vperm.slane %v3652_v41, 3  ;;  %v3364_v55 = vld [vmem:[#allocation2 + $0x35c] sm:$0xf] }
  0xcc   :  { %v1344_v51 = vadd.f32 %v1343_v49, %v236_v18  ;;  %v1319_v53 = vpop.f32.mrf.mxu0  ;;  %v1357_v56 = vadd.f32 %v1356_v52, %v237_v39  ;;  %v1332_v57 = vpop.f32.mrf.mxu1  ;;  %v243_v52 = vperm.slane %v3652_v41, 5 }
  0xcd   :  { %1861 = vmatpush.bf16.msrb.mxu2 %v2783_v47  ;;  %1874 = vmatpush.bf16.msrb.mxu3 %v2787_v50  ;;  %v2407_v16 = vsel %vm2386_vm4, %v2318_v63, %v2319_v0  ;;  %v238_v47 = vperm.slane %v3652_v41, 0  ;;  %v3114_v53 = vld [vmem:[#allocation2 + $0x358] sm:$0xf]  ;;  %v3116_v57 = vld [vmem:[#allocation2 + $0x48c] sm:$0xf0]  ;;  %v244_v0 = vperm.slane %v3652_v41, 6 }
  0xce   :  { %v2167_v58 = vmax.f32 %v1344_v51, 0.0  ;;  %v2168_v61 = vmax.f32 %v1357_v56, 0.0  ;;  %v242_v51 = vperm.slane %v3652_v41, 4  ;;  %v3119_v10 = vor.u32 %v3364_v55, %v3116_v57  ;;  %v3138_v55 = vld [vmem:[#allocation2 + $0x370] sm:$0xf] }
  0xd0   :  { %v2237_v1 = vpack.c.bf16 %v2168_v61, %v2167_v58  ;;  %v3122_v58 = vld [vmem:[#allocation2 + $0x360] sm:$0xf] }
  0xd2   :  { %v2320_v6 = vrot.slane %v2237_v1, 2  ;;  %v2321_v7 = vrot.slane %v2237_v1, 5  ;;  %v3365_v1 = vld [vmem:[#allocation2 + $0x364] sm:$0xf] }
  0xd3   :  { %v1345_v8 = vpop.f32.mrf.mxu2  ;;  %v1358_v11 = vpop.f32.mrf.mxu3 }
  0xd4   :  { %v1369_v12 = vpop.f32.mrf.mxu0  ;;  %v2410_v17 = vsel %vm2390_vm5, %v2320_v6, %v2321_v7  ;;  %v1382_v18 = vpop.f32.mrf.mxu1  ;;  %v3115_v6 = vor.u32 %v3402_v54, %v3114_v53  ;;  %v2806_v8 = vld [vmem:[#allocation2 + $0xf0] sm:$0xf]  ;;  %v3123_v11 = vor.u32 %v3403_v59, %v3122_v58  ;;  %v3367_v59 = vld [vmem:[#allocation2 + $0x374] sm:$0xf] }
  0xd5   :  { %v2411_v21 = vsel %vm2394_vm6, %v2407_v16, %v2410_v17  ;;  %v1370_v60 = vadd.f32 %v1369_v12, %v238_v47  ;;  %v1383_v61 = vadd.f32 %v1382_v18, %v239_v48  ;;  %v3127_v12 = vor.u32 %v3365_v1, %v3124_v23  ;;  %v3326_v16 = vld [vmem:[#allocation2 + $0x228] sm:$0xf0]  ;;  %v3130_v47 = vld [vmem:[#allocation2 + $0x368] sm:$0xf]  ;;  %v3404_v48 = vld [vmem:[#allocation2 + $0x498] sm:$0xf0] }
  0xd6   :  { %v2412_v28 = vsel %vm2396_vm7, %v2404_v20, %v2411_v21  ;;  %3228 = vmatmul.msk.bf16.vlgmr.msra.gmra.mxu0 %vm1148_vm0, %v3623_v33  ;;  %3229 = vmatmul.msk.bf16.vlgmr.msra.gmra.mxu1 %vm1148_vm0, %v3623_v33  ;;  %v245_v18 = vperm.slane %v3652_v41, 7  ;;  %v2816_v20 = vld [vmem:[#allocation2 + $0x22c] sm:$0xf0]  ;;  %v2815_v27 = vor.u32 %v3326_v16, %v2814_v15  ;;  %v3131_v1 = vor.u32 %v3404_v48, %v3130_v47  ;;  %v3156_v47 = vld [vmem:[#allocation2 + $0x4b4] sm:$0xf0] }
  0xd7   :  { %2543 = vst [vmem:[%s3802_s3 + $0x8] sm:$0xff] %v2412_v28  ;;  %1886 = vmatpush.bf16.msra.mxu0 %v3099_v19  ;;  %1899 = vmatpush.bf16.msra.mxu1 %v3103_v25  ;;  %v2169_v17 = vmax.f32 %v1370_v60, 0.0  ;;  %v3288_v19 = vld [vmem:[#allocation2 + $0xfc] sm:$0xf]  ;;  %v2170_v21 = vmax.f32 %v1383_v61, 0.0  ;;  %v2807_v25 = vor.u32 %v3325_v9, %v2806_v8 }
  0xd8   :  { %3230 = vmatmul.msk.bf16.vlgmr.msra.gmra.mxu2 %vm1148_vm0, %v3623_v33  ;;  %3231 = vmatmul.msk.bf16.vlgmr.msra.gmra.mxu3 %vm1148_vm0, %v3623_v33  ;;  %v2819_v30 = vor.u32 %v3288_v19, %v2816_v20  ;;  %v3140_v60 = vld [vmem:[#allocation2 + $0x4a4] sm:$0xf0] }
  0xd9   :  { %1912 = vmatpush.bf16.msra.mxu2 %v3107_v26  ;;  %1925 = vmatpush.bf16.msra.mxu3 %v3111_v29  ;;  %v2811_v26 = vor.u32 %v3287_v13, %v2808_v14  ;;  %v2238_v35 = vpack.c.bf16 %v2170_v21, %v2169_v17  ;;  %v3143_v9 = vor.u32 %v3367_v59, %v3140_v60  ;;  %v3328_v13 = vld [vmem:[#allocation2 + $0x238] sm:$0xf0]  ;;  %v2832_v14 = vld [vmem:[#allocation2 + $0x23c] sm:$0xf0]  ;;  %v3688_v20 = vld [vmem:[#allocation4 + $0x18] sm:$0xff] }
  0xda   :  { %v3291_v59 = vld [vmem:[#allocation2 + $0x114] sm:$0xf]  ;;  %v2840_v60 = vld [vmem:[#allocation2 + $0x244] sm:$0xf0] }
  0xdb   :  { %v1395_v39 = vpop.f32.mrf.mxu2  ;;  %v1408_v42 = vpop.f32.mrf.mxu3  ;;  %1887 = vmatpush.bf16.msra.mxu0 %v2791_v36  ;;  %1900 = vmatpush.bf16.msra.mxu1 %v2795_v37 }
  0xdc   :  { %v1371_v43 = vpop.f32.mrf.mxu0  ;;  %v1384_v46 = vpop.f32.mrf.mxu1  ;;  %v1396_v49 = vadd.f32 %v1395_v39, %v240_v44  ;;  %v1409_v50 = vadd.f32 %v1408_v42, %v241_v45 }
  0xdd   :  { %1913 = vmatpush.bf16.msra.mxu2 %v2799_v38  ;;  %1926 = vmatpush.bf16.msra.mxu3 %v2803_v40  ;;  %v2322_v43 = vrot.slane %v2238_v35, 3 }
  0xde   :  { %v2171_v2 = vmax.f32 %v1396_v49, 0.0  ;;  %v2172_v3 = vmax.f32 %v1409_v50, 0.0  ;;  %v3366_v49 = vld [vmem:[#allocation2 + $0x36c] sm:$0xf]  ;;  %v3132_v50 = vld [vmem:[#allocation2 + $0x49c] sm:$0xf0] }
  0xdf   :  { %v2415_v61 = vsel %vm2376_vm1, %v2238_v35, %v2322_v43  ;;  %v3406_v35 = vld [vmem:[#allocation2 + $0x4a8] sm:$0xf0] }
  0xe0   :  { %v2239_v28 = vpack.c.bf16 %v2172_v3, %v2171_v2  ;;  %v2822_v3 = vld [vmem:[#allocation2 + $0x100] sm:$0xf] }
  0xe2   :  { %v2323_v40 = vrot.slane %v2239_v28, 6  ;;  %v2324_v41 = vrot.slane %v2239_v28, 1  ;;  %v247_v28 = vperm.slane %v3688_v20, 1 }
  0xe3   :  { %v1397_v56 = vpop.f32.mrf.mxu2  ;;  %v1410_v62 = vpop.f32.mrf.mxu3 }
  0xe4   :  { %v1421_v63 = vpop.f32.mrf.mxu0  ;;  %v1434_v5 = vpop.f32.mrf.mxu1  ;;  %v3405_v56 = vld [vmem:[#allocation2 + $0x4a0] sm:$0xf0] }
  0xe5   :  { %v1422_v4 = vadd.f32 %v1421_v63, %v242_v51  ;;  %v1435_v7 = vadd.f32 %v1434_v5, %v243_v52  ;;  %v2418_v51 = vsel %vm2380_vm2, %v2323_v40, %v2324_v41  ;;  %v3135_v5 = vor.u32 %v3366_v49, %v3132_v50  ;;  %v3407_v40 = vld [vmem:[#allocation2 + $0x4b0] sm:$0xf0] }
  0xe6   :  { %3232 = vmatmul.msk.bf16.vlgmr.msrb.gmra.mxu0 %vm1148_vm0, %v3623_v33  ;;  %3233 = vmatmul.msk.bf16.vlgmr.msrb.gmra.mxu1 %vm1148_vm0, %v3623_v33  ;;  %v2419_v23 = vsel %vm2384_vm3, %v2415_v61, %v2418_v51  ;;  %v2846_v61 = vld [vmem:[#allocation2 + $0x118] sm:$0xf] }
  0xe7   :  { %v2173_v22 = vmax.f32 %v1422_v4, 0.0  ;;  %v2174_v24 = vmax.f32 %v1435_v7, 0.0  ;;  %1938 = vmatpush.bf16.msrb.mxu0 %v3115_v6  ;;  %1951 = vmatpush.bf16.msrb.mxu1 %v3119_v10  ;;  %v3327_v4 = vld [vmem:[#allocation2 + $0x230] sm:$0xf0]  ;;  %v3139_v6 = vor.u32 %v3405_v56, %v3138_v55  ;;  %v3289_v7 = vld [vmem:[#allocation2 + $0x104] sm:$0xf] }
  0xe8   :  { %3234 = vmatmul.msk.bf16.vlgmr.msrb.gmra.mxu2 %vm1148_vm0, %v3623_v33  ;;  %3235 = vmatmul.msk.bf16.vlgmr.msrb.gmra.mxu3 %vm1148_vm0, %v3623_v33  ;;  %v2824_v10 = vld [vmem:[#allocation2 + $0x234] sm:$0xf0]  ;;  %v2823_v15 = vor.u32 %v3327_v4, %v2822_v3  ;;  %v3329_v55 = vld [vmem:[#allocation2 + $0x240] sm:$0xf0] }
  0xe9   :  { %1964 = vmatpush.bf16.msrb.mxu2 %v3123_v11  ;;  %1977 = vmatpush.bf16.msrb.mxu3 %v3127_v12  ;;  %v2240_v36 = vpack.c.bf16 %v2174_v24, %v2173_v22  ;;  %v2830_v11 = vld [vmem:[#allocation2 + $0x108] sm:$0xf]  ;;  %v3290_v12 = vld [vmem:[#allocation2 + $0x10c] sm:$0xf]  ;;  %v2827_v16 = vor.u32 %v3289_v7, %v2824_v10  ;;  %v248_v24 = vperm.slane %v3688_v20, 2 }
  0xea   :  { %v2831_v17 = vor.u32 %v3328_v13, %v2830_v11  ;;  %v2835_v19 = vor.u32 %v3290_v12, %v2832_v14 }
  0xeb   :  { %v1447_v29 = vpop.f32.mrf.mxu2  ;;  %v1460_v32 = vpop.f32.mrf.mxu3  ;;  %1939 = vmatpush.bf16.msrb.mxu0 %v2807_v25  ;;  %1952 = vmatpush.bf16.msrb.mxu1 %v2811_v26  ;;  %v2325_v44 = vrot.slane %v2240_v36, 4  ;;  %v2326_v45 = vrot.slane %v2240_v36, 7  ;;  %v249_v25 = vperm.slane %v3688_v20, 3  ;;  %v3368_v36 = vld [vmem:[#allocation2 + $0x37c] sm:$0xf] }
  0xec   :  { %v1448_v31 = vadd.f32 %v1447_v29, %v244_v0  ;;  %v1423_v34 = vpop.f32.mrf.mxu0  ;;  %v1461_v37 = vadd.f32 %v1460_v32, %v245_v18  ;;  %v1436_v38 = vpop.f32.mrf.mxu1  ;;  %v251_v32 = vperm.slane %v3688_v20, 5 }
  0xed   :  { %1965 = vmatpush.bf16.msrb.mxu2 %v2815_v27  ;;  %1978 = vmatpush.bf16.msrb.mxu3 %v2819_v30  ;;  %v2422_v62 = vsel %vm2386_vm4, %v2325_v44, %v2326_v45  ;;  %v246_v27 = vperm.slane %v3688_v20, 0  ;;  %v3146_v34 = vld [vmem:[#allocation2 + $0x378] sm:$0xf]  ;;  %v3148_v38 = vld [vmem:[#allocation2 + $0x4ac] sm:$0xf0]  ;;  %v252_v45 = vperm.slane %v3688_v20, 6 }
  0xee   :  { %v2175_v39 = vmax.f32 %v1448_v31, 0.0  ;;  %v2176_v42 = vmax.f32 %v1461_v37, 0.0  ;;  %v250_v31 = vperm.slane %v3688_v20, 4  ;;  %v3151_v56 = vor.u32 %v3368_v36, %v3148_v38  ;;  %v3170_v36 = vld [vmem:[#allocation2 + $0x390] sm:$0xf] }
  0xf0   :  { %v2241_v46 = vpack.c.bf16 %v2176_v42, %v2175_v39  ;;  %v3154_v39 = vld [vmem:[#allocation2 + $0x380] sm:$0xf] }
  0xf2   :  { %v2327_v52 = vrot.slane %v2241_v46, 2  ;;  %v2328_v53 = vrot.slane %v2241_v46, 5  ;;  %v3369_v46 = vld [vmem:[#allocation2 + $0x384] sm:$0xf] }
  0xf3   :  { %v1449_v54 = vpop.f32.mrf.mxu2  ;;  %v1462_v57 = vpop.f32.mrf.mxu3 }
  0xf4   :  { %v1473_v58 = vpop.f32.mrf.mxu0  ;;  %v2425_v63 = vsel %vm2390_vm5, %v2327_v52, %v2328_v53  ;;  %v1486_v0 = vpop.f32.mrf.mxu1  ;;  %v3147_v52 = vor.u32 %v3406_v35, %v3146_v34  ;;  %v2838_v54 = vld [vmem:[#allocation2 + $0x110] sm:$0xf]  ;;  %v3155_v57 = vor.u32 %v3407_v40, %v3154_v39  ;;  %v3371_v40 = vld [vmem:[#allocation2 + $0x394] sm:$0xf] }
  0xf5   :  { %v2426_v2 = vsel %vm2394_vm6, %v2422_v62, %v2425_v63  ;;  %v1474_v41 = vadd.f32 %v1473_v58, %v246_v27  ;;  %v1487_v42 = vadd.f32 %v1486_v0, %v247_v28  ;;  %v3159_v58 = vor.u32 %v3369_v46, %v3156_v47  ;;  %v3330_v62 = vld [vmem:[#allocation2 + $0x248] sm:$0xf0]  ;;  %v3162_v27 = vld [vmem:[#allocation2 + $0x388] sm:$0xf]  ;;  %v3408_v28 = vld [vmem:[#allocation2 + $0x4b8] sm:$0xf0] }
  0xf6   :  { %v2427_v8 = vsel %vm2396_vm7, %v2419_v23, %v2426_v2  ;;  %3236 = vmatmul.msk.bf16.vlgmr.msra.gmra.mxu0 %vm1148_vm0, %v3623_v33  ;;  %3237 = vmatmul.msk.bf16.vlgmr.msra.gmra.mxu1 %vm1148_vm0, %v3623_v33  ;;  %v253_v0 = vperm.slane %v3688_v20, 7  ;;  %v2848_v23 = vld [vmem:[#allocation2 + $0x24c] sm:$0xf0]  ;;  %v2847_v7 = vor.u32 %v3330_v62, %v2846_v61  ;;  %v3163_v46 = vor.u32 %v3408_v28, %v3162_v27 }
  0xf7   :  { %2544 = vst [vmem:[%s3802_s3 + $0x10] sm:$0xff] %v2427_v8  ;;  %1990 = vmatpush.bf16.msra.mxu0 %v3131_v1  ;;  %2003 = vmatpush.bf16.msra.mxu1 %v3135_v5  ;;  %v2177_v63 = vmax.f32 %v1474_v41, 0.0  ;;  %v3292_v1 = vld [vmem:[#allocation2 + $0x11c] sm:$0xf]  ;;  %v2178_v2 = vmax.f32 %v1487_v42, 0.0  ;;  %v2839_v5 = vor.u32 %v3329_v55, %v2838_v54 }
  0xf8   :  { %3238 = vmatmul.msk.bf16.vlgmr.msra.gmra.mxu2 %vm1148_vm0, %v3623_v33  ;;  %3239 = vmatmul.msk.bf16.vlgmr.msra.gmra.mxu3 %vm1148_vm0, %v3623_v33  ;;  %v2851_v10 = vor.u32 %v3292_v1, %v2848_v23  ;;  %v3172_v41 = vld [vmem:[#allocation2 + $0x4c4] sm:$0xf0] }
  0xf9   :  { %2016 = vmatpush.bf16.msra.mxu2 %v3139_v6  ;;  %2029 = vmatpush.bf16.msra.mxu3 %v3143_v9  ;;  %v2843_v6 = vor.u32 %v3291_v59, %v2840_v60  ;;  %v2242_v14 = vpack.c.bf16 %v2178_v2, %v2177_v63  ;;  %v3175_v55 = vor.u32 %v3371_v40, %v3172_v41  ;;  %v3332_v59 = vld [vmem:[#allocation2 + $0x258] sm:$0xf0]  ;;  %v2864_v60 = vld [vmem:[#allocation2 + $0x25c] sm:$0xf0] }
  0xfb   :  { %v1499_v18 = vpop.f32.mrf.mxu2  ;;  %v1512_v21 = vpop.f32.mrf.mxu3  ;;  %1991 = vmatpush.bf16.msra.mxu0 %v2823_v15  ;;  %2004 = vmatpush.bf16.msra.mxu1 %v2827_v16 }
  0xfc   :  { %v1475_v22 = vpop.f32.mrf.mxu0  ;;  %v1488_v26 = vpop.f32.mrf.mxu1  ;;  %v1500_v29 = vadd.f32 %v1499_v18, %v248_v24  ;;  %v1513_v30 = vadd.f32 %v1512_v21, %v249_v25 }
  0xfd   :  { %2017 = vmatpush.bf16.msra.mxu2 %v2831_v17  ;;  %2030 = vmatpush.bf16.msra.mxu3 %v2835_v19  ;;  %v2329_v22 = vrot.slane %v2242_v14, 3 }
  0xfe   :  { %v2179_v48 = vmax.f32 %v1500_v29, 0.0  ;;  %v2180_v49 = vmax.f32 %v1513_v30, 0.0  ;;  %v3370_v29 = vld [vmem:[#allocation2 + $0x38c] sm:$0xf]  ;;  %v3164_v30 = vld [vmem:[#allocation2 + $0x4bc] sm:$0xf0] }
  0xff   :  { %v2430_v42 = vsel %vm2376_vm1, %v2242_v14, %v2329_v22 }
 0x100   :  { %v2243_v8 = vpack.c.bf16 %v2180_v49, %v2179_v48  ;;  %v2854_v49 = vld [vmem:[#allocation2 + $0x120] sm:$0xf] }
 0x102   :  { %v2330_v19 = vrot.slane %v2243_v8, 6  ;;  %v2331_v20 = vrot.slane %v2243_v8, 1 }
 0x103   :  { %v1501_v37 = vpop.f32.mrf.mxu2  ;;  %v1514_v43 = vpop.f32.mrf.mxu3 }
 0x104   :  { %v1525_v44 = vpop.f32.mrf.mxu0  ;;  %v1538_v51 = vpop.f32.mrf.mxu1  ;;  %v3409_v37 = vld [vmem:[#allocation2 + $0x4c0] sm:$0xf0] }
 0x105   :  { %v1526_v50 = vadd.f32 %v1525_v44, %v250_v31  ;;  %v1539_v53 = vadd.f32 %v1538_v51, %v251_v32  ;;  %v2433_v31 = vsel %vm2380_vm2, %v2330_v19, %v2331_v20  ;;  %v3167_v51 = vor.u32 %v3370_v29, %v3164_v30 }
 0x106   :  { %3240 = vmatmul.msk.bf16.vlgmr.msrb.gmra.mxu0 %vm1148_vm0, %v3623_v33  ;;  %3241 = vmatmul.msk.bf16.vlgmr.msrb.gmra.mxu1 %vm1148_vm0, %v3623_v33  ;;  %v2434_v47 = vsel %vm2384_vm3, %v2430_v42, %v2433_v31 }
 0x107   :  { %v2181_v3 = vmax.f32 %v1526_v50, 0.0  ;;  %v2182_v4 = vmax.f32 %v1539_v53, 0.0  ;;  %2042 = vmatpush.bf16.msrb.mxu0 %v3147_v52  ;;  %2055 = vmatpush.bf16.msrb.mxu1 %v3151_v56  ;;  %v3331_v50 = vld [vmem:[#allocation2 + $0x250] sm:$0xf0]  ;;  %v3171_v52 = vor.u32 %v3409_v37, %v3170_v36  ;;  %v3293_v53 = vld [vmem:[#allocation2 + $0x124] sm:$0xf] }
 0x108   :  { %3242 = vmatmul.msk.bf16.vlgmr.msrb.gmra.mxu2 %vm1148_vm0, %v3623_v33  ;;  %3243 = vmatmul.msk.bf16.vlgmr.msrb.gmra.mxu3 %vm1148_vm0, %v3623_v33  ;;  %v2856_v56 = vld [vmem:[#allocation2 + $0x254] sm:$0xf0]  ;;  %v2855_v61 = vor.u32 %v3331_v50, %v2854_v49 }
 0x109   :  { %2068 = vmatpush.bf16.msrb.mxu2 %v3155_v57  ;;  %2081 = vmatpush.bf16.msrb.mxu3 %v3159_v58  ;;  %v2244_v15 = vpack.c.bf16 %v2182_v4, %v2181_v3  ;;  %v2862_v57 = vld [vmem:[#allocation2 + $0x128] sm:$0xf]  ;;  %v3294_v58 = vld [vmem:[#allocation2 + $0x12c] sm:$0xf]  ;;  %v2859_v62 = vor.u32 %v3293_v53, %v2856_v56  ;;  %v206_v3 = vld [vmem:[#allocation4 + $0x20] sm:$0xff] }
 0x10a   :  { %v2863_v63 = vor.u32 %v3332_v59, %v2862_v57  ;;  %v2867_v1 = vor.u32 %v3294_v58, %v2864_v60  ;;  %v255_v8 = vperm.slane %v206_v3, 1  ;;  %v260_v30 = vperm.slane %v206_v3, 6 }
 0x10b   :  { %v1551_v9 = vpop.f32.mrf.mxu2  ;;  %v1564_v13 = vpop.f32.mrf.mxu3  ;;  %2043 = vmatpush.bf16.msrb.mxu0 %v2839_v5  ;;  %2056 = vmatpush.bf16.msrb.mxu1 %v2843_v6  ;;  %v2332_v24 = vrot.slane %v2244_v15, 4  ;;  %v2333_v25 = vrot.slane %v2244_v15, 7  ;;  %v256_v5 = vperm.slane %v206_v3, 2  ;;  %v257_v6 = vperm.slane %v206_v3, 3 }
 0x10c   :  { %v1552_v11 = vadd.f32 %v1551_v9, %v252_v45  ;;  %v1527_v12 = vpop.f32.mrf.mxu0  ;;  %v1565_v16 = vadd.f32 %v1564_v13, %v253_v0  ;;  %v1540_v17 = vpop.f32.mrf.mxu1  ;;  %v258_v9 = vperm.slane %v206_v3, 4  ;;  %v3410_v13 = vld [vmem:[#allocation2 + $0x4c8] sm:$0xf0]  ;;  %v261_v31 = vperm.slane %v206_v3, 7 }
 0x10d   :  { %2069 = vmatpush.bf16.msrb.mxu2 %v2847_v7  ;;  %2082 = vmatpush.bf16.msrb.mxu3 %v2851_v10  ;;  %v2437_v43 = vsel %vm2386_vm4, %v2332_v24, %v2333_v25  ;;  %v254_v7 = vperm.slane %v206_v3, 0  ;;  %v259_v10 = vperm.slane %v206_v3, 5  ;;  %v2870_v25 = vld [vmem:[#allocation2 + $0x130] sm:$0xf] }
 0x10e   :  { %v2183_v18 = vmax.f32 %v1552_v11, 0.0  ;;  %v2184_v21 = vmax.f32 %v1565_v16, 0.0  ;;  %v3178_v11 = vld [vmem:[#allocation2 + $0x398] sm:$0xf] }
 0x10f   :  { %v3179_v22 = vor.u32 %v3410_v13, %v3178_v11 }
 0x110   :  { %v2245_v26 = vpack.c.bf16 %v2184_v21, %v2183_v18 }
 0x112   :  { %v2334_v32 = vrot.slane %v2245_v26, 2  ;;  %v2335_v34 = vrot.slane %v2245_v26, 5  ;;  %v3333_v26 = vld [vmem:[#allocation2 + $0x260] sm:$0xf0] }
 0x113   :  { %v1553_v35 = vpop.f32.mrf.mxu2  ;;  %v1566_v38 = vpop.f32.mrf.mxu3  ;;  %v2871_v36 = vor.u32 %v3333_v26, %v2870_v25 }
 0x114   :  { %v1577_v39 = vpop.f32.mrf.mxu0  ;;  %v2440_v44 = vsel %vm2390_vm5, %v2334_v32, %v2335_v34  ;;  %v1590_v45 = vpop.f32.mrf.mxu1 }
 0x115   :  { %v2441_v48 = vsel %vm2394_vm6, %v2437_v43, %v2440_v44  ;;  %v1578_v16 = vadd.f32 %v1577_v39, %v254_v7  ;;  %v1591_v19 = vadd.f32 %v1590_v45, %v255_v8 }
 0x116   :  { %v2442_v54 = vsel %vm2396_vm7, %v2434_v47, %v2441_v48  ;;  %3244 = vmatmul.msk.bf16.vlgmr.msra.gmra.mxu0 %vm1148_vm0, %v3623_v33  ;;  %3245 = vmatmul.msk.bf16.vlgmr.msra.gmra.mxu1 %vm1148_vm0, %v3623_v33 }
 0x117   :  { %2545 = vst [vmem:[%s3802_s3 + $0x18] sm:$0xff] %v2442_v54  ;;  %2094 = vmatpush.bf16.msra.mxu0 %v3163_v46  ;;  %2107 = vmatpush.bf16.msra.mxu1 %v3167_v51  ;;  %v2185_v29 = vmax.f32 %v1578_v16, 0.0  ;;  %v2186_v32 = vmax.f32 %v1591_v19, 0.0 }
 0x118   :  { %3246 = vmatmul.msk.bf16.vlgmr.msra.gmra.mxu2 %vm1148_vm0, %v3623_v33  ;;  %3247 = vmatmul.msk.bf16.vlgmr.msra.gmra.mxu3 %vm1148_vm0, %v3623_v33 }
 0x119   :  { %2120 = vmatpush.bf16.msra.mxu2 %v3171_v52  ;;  %2133 = vmatpush.bf16.msra.mxu3 %v3175_v55  ;;  %v2246_v42 = vpack.c.bf16 %v2186_v32, %v2185_v29 }
 0x11b   :  { %v1603_v0 = vpop.f32.mrf.mxu2  ;;  %v1616_v23 = vpop.f32.mrf.mxu3  ;;  %2095 = vmatpush.bf16.msra.mxu0 %v2855_v61  ;;  %2108 = vmatpush.bf16.msra.mxu1 %v2859_v62  ;;  %v2336_v50 = vrot.slane %v2246_v42, 3 }
 0x11c   :  { %v1579_v2 = vpop.f32.mrf.mxu0  ;;  %v1592_v4 = vpop.f32.mrf.mxu1  ;;  %v1604_v12 = vadd.f32 %v1603_v0, %v256_v5  ;;  %v1617_v14 = vadd.f32 %v1616_v23, %v257_v6  ;;  %v207_v6 = vld [vmem:[#allocation4 + $0x28] sm:$0xff] }
 0x11d   :  { %2121 = vmatpush.bf16.msra.mxu2 %v2863_v63  ;;  %2134 = vmatpush.bf16.msra.mxu3 %v2867_v1  ;;  %v2445_v60 = vsel %vm2376_vm1, %v2246_v42, %v2336_v50  ;;  %v264_v7 = vperm.slane %v207_v6, 2  ;;  %v265_v8 = vperm.slane %v207_v6, 3  ;;  %v266_v11 = vperm.slane %v207_v6, 4 }
 0x11e   :  { %v2187_v27 = vmax.f32 %v1604_v12, 0.0  ;;  %v2188_v28 = vmax.f32 %v1617_v14, 0.0  ;;  %v267_v13 = vperm.slane %v207_v6, 5  ;;  %v268_v26 = vperm.slane %v207_v6, 6 }
 0x120   :  { %v2247_v37 = vpack.c.bf16 %v2188_v28, %v2187_v27  ;;  %v269_v27 = vperm.slane %v207_v6, 7 }
 0x122   :  { %v2337_v47 = vrot.slane %v2247_v37, 6  ;;  %v2338_v48 = vrot.slane %v2247_v37, 1 }
 0x123   :  { %v1605_v15 = vpop.f32.mrf.mxu2  ;;  %v1618_v17 = vpop.f32.mrf.mxu3 }
 0x124   :  { %v1629_v18 = vpop.f32.mrf.mxu0  ;;  %v1642_v21 = vpop.f32.mrf.mxu1  ;;  %v2448_v54 = vsel %vm2380_vm2, %v2337_v47, %v2338_v48 }
 0x125   :  { %v1630_v20 = vadd.f32 %v1629_v18, %v258_v9  ;;  %v1643_v24 = vadd.f32 %v1642_v21, %v259_v10  ;;  %v2449_v0 = vsel %vm2384_vm3, %v2445_v60, %v2448_v54  ;;  %v262_v9 = vperm.slane %v207_v6, 0 }
 0x126   :  { %3248 = vmatmul.msk.bf16.vlgmr.msrb.gmra.mxu0 %vm1148_vm0, %v3623_v33  ;;  %3249 = vmatmul.msk.bf16.vlgmr.msrb.gmra.mxu1 %vm1148_vm0, %v3623_v33  ;;  %v263_v10 = vperm.slane %v207_v6, 1 }
 0x127   :  { %v2189_v34 = vmax.f32 %v1630_v20, 0.0  ;;  %v2190_v35 = vmax.f32 %v1643_v24, 0.0  ;;  %2146 = vmatpush.bf16.msrb.mxu0 %v3179_v22 }
 0x128   :  { %3250 = vmatmul.msk.bf16.vlgmr.msrb.gmra.mxu2 %vm1148_vm0, %v3623_v33  ;;  %3251 = vmatmul.msk.bf16.vlgmr.msrb.gmra.mxu3 %vm1148_vm0, %v3623_v33 }
 0x129   :  { %v2248_v43 = vpack.c.bf16 %v2190_v35, %v2189_v34 }
 0x12b   :  { %v1655_v38 = vpop.f32.mrf.mxu2  ;;  %v1668_v40 = vpop.f32.mrf.mxu3  ;;  %2147 = vmatpush.bf16.msrb.mxu0 %v2871_v36  ;;  %v2339_v51 = vrot.slane %v2248_v43, 4  ;;  %v2340_v52 = vrot.slane %v2248_v43, 7 }
 0x12c   :  { %v1656_v39 = vadd.f32 %v1655_v38, %v260_v30  ;;  %v1631_v41 = vpop.f32.mrf.mxu0  ;;  %v1669_v44 = vadd.f32 %v1668_v40, %v261_v31  ;;  %v1644_v45 = vpop.f32.mrf.mxu1 }
 0x12d   :  { %v2452_v61 = vsel %vm2386_vm4, %v2339_v51, %v2340_v52 }
 0x12e   :  { %v2191_v46 = vmax.f32 %v1656_v39, 0.0  ;;  %v2192_v49 = vmax.f32 %v1669_v44, 0.0 }
 0x130   :  { %v2249_v53 = vpack.c.bf16 %v2192_v49, %v2191_v46 }
 0x132   :  { %v2341_v55 = vrot.slane %v2249_v53, 2  ;;  %v2342_v56 = vrot.slane %v2249_v53, 5 }
 0x133   :  { %v1657_v57 = vpop.f32.mrf.mxu2  ;;  %v1670_v59 = vpop.f32.mrf.mxu3 }
 0x134   :  { %v1681_v58 = vpop.f32.mrf.mxu0  ;;  %v2455_v62 = vsel %vm2390_vm5, %v2341_v55, %v2342_v56  ;;  %v1694_v63 = vpop.f32.mrf.mxu1 }
 0x135   :  { %v2456_v1 = vsel %vm2394_vm6, %v2452_v61, %v2455_v62  ;;  %v1682_v18 = vadd.f32 %v1681_v58, %v262_v9  ;;  %v1695_v19 = vadd.f32 %v1694_v63, %v263_v10 }
 0x136   :  { %v2457_v23 = vsel %vm2396_vm7, %v2449_v0, %v2456_v1  ;;  %3252 = vmatmul.msk.bf16.vlgmr.msra.gmra.mxu0 %vm1148_vm0, %v3623_v33  ;;  %3253 = vmatmul.msk.bf16.vlgmr.msra.gmra.mxu1 %vm1148_vm0, %v3623_v33 }
 0x137   :  { %2546 = vst [vmem:[%s3802_s3 + $0x20] sm:$0xff] %v2457_v23  ;;  %v2193_v28 = vmax.f32 %v1682_v18, 0.0  ;;  %v2194_v29 = vmax.f32 %v1695_v19, 0.0  ;;  %v208_v23 = vld [vmem:[#allocation4 + $0x30] sm:$0xff] }
 0x138   :  { %3254 = vmatmul.msk.bf16.vlgmr.msra.gmra.mxu2 %vm1148_vm0, %v3623_v33  ;;  %3255 = vmatmul.msk.bf16.vlgmr.msra.gmra.mxu3 %vm1148_vm0, %v3623_v33  ;;  %v274_v6 = vperm.slane %v208_v23, 4 }
 0x139   :  { %v2250_v38 = vpack.c.bf16 %v2194_v29, %v2193_v28 }
 0x13b   :  { %v1707_v2 = vpop.f32.mrf.mxu2  ;;  %v1720_v3 = vpop.f32.mrf.mxu3 }
 0x13c   :  { %v1683_v4 = vpop.f32.mrf.mxu0  ;;  %v1696_v5 = vpop.f32.mrf.mxu1  ;;  %v1708_v12 = vadd.f32 %v1707_v2, %v264_v7  ;;  %v1721_v14 = vadd.f32 %v1720_v3, %v265_v8  ;;  %v272_v2 = vperm.slane %v208_v23, 2  ;;  %v273_v3 = vperm.slane %v208_v23, 3 }
 0x13d   :  { %v270_v4 = vperm.slane %v208_v23, 0  ;;  %v271_v5 = vperm.slane %v208_v23, 1  ;;  %v275_v7 = vperm.slane %v208_v23, 5 }
 0x13e   :  { %v2195_v24 = vmax.f32 %v1708_v12, 0.0  ;;  %v2196_v25 = vmax.f32 %v1721_v14, 0.0 }
 0x140   :  { %v2251_v32 = vpack.c.bf16 %v2196_v25, %v2195_v24 }
 0x142   :  { %v2344_v43 = vrot.slane %v2251_v32, 6  ;;  %v2345_v44 = vrot.slane %v2251_v32, 1 }
 0x143   :  { %v1709_v15 = vpop.f32.mrf.mxu2  ;;  %v1722_v16 = vpop.f32.mrf.mxu3 }
 0x144   :  { %v1733_v17 = vpop.f32.mrf.mxu0  ;;  %v1746_v21 = vpop.f32.mrf.mxu1  ;;  %v2463_v49 = vsel %vm2380_vm2, %v2344_v43, %v2345_v44 }
 0x145   :  { %v1734_v20 = vadd.f32 %v1733_v17, %v266_v11  ;;  %v1747_v22 = vadd.f32 %v1746_v21, %v267_v13  ;;  %v277_v21 = vperm.slane %v208_v23, 7 }
 0x146   :  { %3256 = vmatmul.msk.bf16.vlgmr.msrb.gmra.mxu0 %vm1148_vm0, %v3623_v33  ;;  %v2343_v33 = vrot.slane %v2250_v38, 3  ;;  %vm2556_vm0 = vmor %vm2555_vm13, %vm2554_vm12 }
 0x147   :  { %v2197_v30 = vmax.f32 %v1734_v20, 0.0  ;;  %v2198_v31 = vmax.f32 %v1747_v22, 0.0  ;;  %v276_v20 = vperm.slane %v208_v23, 6 }
 0x148   :  { %v2460_v55 = vsel %vm2376_vm1, %v2250_v38, %v2343_v33 }
 0x149   :  { %v2252_v39 = vpack.c.bf16 %v2198_v31, %v2197_v30  ;;  %v2464_v58 = vsel %vm2384_vm3, %v2460_v55, %v2463_v49 }
 0x14b   :  { %v1759_v34 = vpop.f32.mrf.mxu2  ;;  %v1772_v36 = vpop.f32.mrf.mxu3  ;;  %v2346_v46 = vrot.slane %v2252_v39, 4  ;;  %v2347_v47 = vrot.slane %v2252_v39, 7 }
 0x14c   :  { %v1760_v35 = vadd.f32 %v1759_v34, %v268_v26  ;;  %v1735_v37 = vpop.f32.mrf.mxu0  ;;  %v1773_v40 = vadd.f32 %v1772_v36, %v269_v27  ;;  %v1748_v41 = vpop.f32.mrf.mxu1 }
 0x14d   :  { %v2467_v56 = vsel %vm2386_vm4, %v2346_v46, %v2347_v47 }
 0x14e   :  { %v2199_v42 = vmax.f32 %v1760_v35, 0.0  ;;  %v2200_v45 = vmax.f32 %v1773_v40, 0.0 }
 0x150   :  { %v2253_v48 = vpack.c.bf16 %v2200_v45, %v2199_v42 }
 0x152   :  { %v2348_v50 = vrot.slane %v2253_v48, 2  ;;  %v2349_v51 = vrot.slane %v2253_v48, 5 }
 0x153   :  { %v1761_v52 = vpop.f32.mrf.mxu2  ;;  %v1774_v53 = vpop.f32.mrf.mxu3 }
 0x154   :  { %v1785_v54 = vpop.f32.mrf.mxu0  ;;  %v2470_v57 = vsel %vm2390_vm5, %v2348_v50, %v2349_v51  ;;  %v1798_v59 = vpop.f32.mrf.mxu1 }
 0x155   :  { %v2471_v60 = vsel %vm2394_vm6, %v2467_v56, %v2470_v57  ;;  %v1786_v12 = vadd.f32 %v1785_v54, %v270_v4  ;;  %v1799_v14 = vadd.f32 %v1798_v59, %v271_v5 }
 0x156   :  { %v2472_v61 = vsel %vm2396_vm7, %v2464_v58, %v2471_v60 }
 0x157   :  { %2547 = vst [vmem:[%s3802_s3 + $0x28] sm:$0xff] %v2472_v61  ;;  %v2201_v22 = vmax.f32 %v1786_v12, 0.0  ;;  %v2202_v24 = vmax.f32 %v1799_v14, 0.0  ;;  %v209_v61 = vld [vmem:[#allocation4 + $0x38] sm:$0xff] }
 0x158   :  { %v282_v23 = vperm.slane %v209_v61, 4 }
 0x159   :  { %v2254_v32 = vpack.c.bf16 %v2202_v24, %v2201_v22 }
 0x15b   :  { %v1811_v62 = vpop.f32.mrf.mxu2  ;;  %v1824_v63 = vpop.f32.mrf.mxu3  ;;  %v2350_v41 = vrot.slane %v2254_v32, 3 }
 0x15c   :  { %v1787_v0 = vpop.f32.mrf.mxu0  ;;  %v1800_v1 = vpop.f32.mrf.mxu1  ;;  %v1812_v8 = vadd.f32 %v1811_v62, %v272_v2  ;;  %v1825_v9 = vadd.f32 %v1824_v63, %v273_v3  ;;  %v280_v62 = vperm.slane %v209_v61, 2  ;;  %v281_v63 = vperm.slane %v209_v61, 3 }
 0x15d   :  { %v2475_v50 = vsel %vm2376_vm1, %v2254_v32, %v2350_v41  ;;  %v278_v0 = vperm.slane %v209_v61, 0  ;;  %v279_v1 = vperm.slane %v209_v61, 1  ;;  %v283_v2 = vperm.slane %v209_v61, 5 }
 0x15e   :  { %v2203_v18 = vmax.f32 %v1812_v8, 0.0  ;;  %v2204_v19 = vmax.f32 %v1825_v9, 0.0 }
 0x160   :  { %v2255_v27 = vpack.c.bf16 %v2204_v19, %v2203_v18 }
 0x162   :  { %v2351_v38 = vrot.slane %v2255_v27, 6  ;;  %v2352_v39 = vrot.slane %v2255_v27, 1 }
 0x163   :  { %v1813_v10 = vpop.f32.mrf.mxu2  ;;  %v1826_v11 = vpop.f32.mrf.mxu3 }
 0x164   :  { %v1837_v13 = vpop.f32.mrf.mxu0  ;;  %v1850_v16 = vpop.f32.mrf.mxu1  ;;  %v2478_v45 = vsel %vm2380_vm2, %v2351_v38, %v2352_v39 }
 0x165   :  { %v1838_v15 = vadd.f32 %v1837_v13, %v274_v6  ;;  %v1851_v17 = vadd.f32 %v1850_v16, %v275_v7  ;;  %v2479_v54 = vsel %vm2384_vm3, %v2475_v50, %v2478_v45  ;;  %v285_v16 = vperm.slane %v209_v61, 7 }
 0x167   :  { %v2205_v25 = vmax.f32 %v1838_v15, 0.0  ;;  %v2206_v26 = vmax.f32 %v1851_v17, 0.0  ;;  %v284_v15 = vperm.slane %v209_v61, 6 }
 0x169   :  { %v2256_v34 = vpack.c.bf16 %v2206_v26, %v2205_v25 }
 0x16b   :  { %v1863_v28 = vpop.f32.mrf.mxu2  ;;  %v1876_v30 = vpop.f32.mrf.mxu3  ;;  %v2353_v42 = vrot.slane %v2256_v34, 4  ;;  %v2354_v43 = vrot.slane %v2256_v34, 7 }
 0x16c   :  { %v1864_v29 = vadd.f32 %v1863_v28, %v276_v20  ;;  %v1839_v31 = vpop.f32.mrf.mxu0  ;;  %v1877_v35 = vadd.f32 %v1876_v30, %v277_v21  ;;  %v1852_v36 = vpop.f32.mrf.mxu1 }
 0x16d   :  { %v2482_v51 = vsel %vm2386_vm4, %v2353_v42, %v2354_v43 }
 0x16e   :  { %v2207_v37 = vmax.f32 %v1864_v29, 0.0  ;;  %v2208_v40 = vmax.f32 %v1877_v35, 0.0 }
 0x170   :  { %v2257_v44 = vpack.c.bf16 %v2208_v40, %v2207_v37 }
 0x172   :  { %v2355_v33 = vrot.slane %v2257_v44, 2  ;;  %v2356_v46 = vrot.slane %v2257_v44, 5 }
 0x173   :  { %v1865_v47 = vpop.f32.mrf.mxu2  ;;  %v1878_v48 = vpop.f32.mrf.mxu3 }
 0x174   :  { %v1889_v49 = vpop.f32.mrf.mxu0  ;;  %v2485_v52 = vsel %vm2390_vm5, %v2355_v33, %v2356_v46  ;;  %v1902_v53 = vpop.f32.mrf.mxu1 }
 0x175   :  { %v2486_v55 = vsel %vm2394_vm6, %v2482_v51, %v2485_v52  ;;  %v1890_v8 = vadd.f32 %v1889_v49, %v278_v0  ;;  %v1903_v9 = vadd.f32 %v1902_v53, %v279_v1 }
 0x176   :  { %v2487_v56 = vsel %vm2396_vm7, %v2479_v54, %v2486_v55 }
 0x177   :  { %2548 = vst [vmem:[%s3802_s3 + $0x30] sm:$0xff] %v2487_v56  ;;  %v2209_v17 = vmax.f32 %v1890_v8, 0.0  ;;  %v2210_v18 = vmax.f32 %v1903_v9, 0.0  ;;  %v210_v56 = vld [vmem:[#allocation4 + $0x40] sm:$0xff] }
 0x178   :  { %v290_v61 = vperm.slane %v210_v56, 4 }
 0x179   :  { %v2258_v27 = vpack.c.bf16 %v2210_v18, %v2209_v17 }
 0x17b   :  { %v1915_v57 = vpop.f32.mrf.mxu2  ;;  %v1928_v59 = vpop.f32.mrf.mxu3  ;;  %v2357_v36 = vrot.slane %v2258_v27, 3 }
 0x17c   :  { %v1891_v58 = vpop.f32.mrf.mxu0  ;;  %v1904_v60 = vpop.f32.mrf.mxu1  ;;  %v1916_v3 = vadd.f32 %v1915_v57, %v280_v62  ;;  %v1929_v4 = vadd.f32 %v1928_v59, %v281_v63  ;;  %v288_v57 = vperm.slane %v210_v56, 2  ;;  %v289_v59 = vperm.slane %v210_v56, 3 }
 0x17d   :  { %v2490_v33 = vsel %vm2376_vm1, %v2258_v27, %v2357_v36  ;;  %v286_v58 = vperm.slane %v210_v56, 0  ;;  %v287_v60 = vperm.slane %v210_v56, 1  ;;  %v291_v62 = vperm.slane %v210_v56, 5 }
 0x17e   :  { %v2211_v12 = vmax.f32 %v1916_v3, 0.0  ;;  %v2212_v14 = vmax.f32 %v1929_v4, 0.0 }
 0x180   :  { %v2259_v21 = vpack.c.bf16 %v2212_v14, %v2211_v12 }
 0x182   :  { %v2358_v32 = vrot.slane %v2259_v21, 6  ;;  %v2359_v34 = vrot.slane %v2259_v21, 1 }
 0x183   :  { %v1917_v5 = vpop.f32.mrf.mxu2  ;;  %v1930_v6 = vpop.f32.mrf.mxu3 }
 0x184   :  { %v1941_v7 = vpop.f32.mrf.mxu0  ;;  %v1954_v11 = vpop.f32.mrf.mxu1  ;;  %v2493_v40 = vsel %vm2380_vm2, %v2358_v32, %v2359_v34 }
 0x185   :  { %v1942_v10 = vadd.f32 %v1941_v7, %v282_v23  ;;  %v1955_v13 = vadd.f32 %v1954_v11, %v283_v2  ;;  %v2494_v49 = vsel %vm2384_vm3, %v2490_v33, %v2493_v40  ;;  %v293_v11 = vperm.slane %v210_v56, 7 }
 0x187   :  { %v2213_v19 = vmax.f32 %v1942_v10, 0.0  ;;  %v2214_v20 = vmax.f32 %v1955_v13, 0.0  ;;  %v292_v10 = vperm.slane %v210_v56, 6 }
 0x189   :  { %v2260_v28 = vpack.c.bf16 %v2214_v20, %v2213_v19 }
 0x18b   :  { %v1967_v22 = vpop.f32.mrf.mxu2  ;;  %v1980_v25 = vpop.f32.mrf.mxu3  ;;  %v2360_v37 = vrot.slane %v2260_v28, 4  ;;  %v2361_v38 = vrot.slane %v2260_v28, 7 }
 0x18c   :  { %v1968_v24 = vadd.f32 %v1967_v22, %v284_v15  ;;  %v1943_v26 = vpop.f32.mrf.mxu0  ;;  %v1981_v29 = vadd.f32 %v1980_v25, %v285_v16  ;;  %v1956_v30 = vpop.f32.mrf.mxu1 }
 0x18d   :  { %v2497_v46 = vsel %vm2386_vm4, %v2360_v37, %v2361_v38 }
 0x18e   :  { %v2215_v31 = vmax.f32 %v1968_v24, 0.0  ;;  %v2216_v35 = vmax.f32 %v1981_v29, 0.0 }
 0x190   :  { %v2261_v39 = vpack.c.bf16 %v2216_v35, %v2215_v31 }
 0x192   :  { %v2362_v41 = vrot.slane %v2261_v39, 2  ;;  %v2363_v42 = vrot.slane %v2261_v39, 5 }
 0x193   :  { %v1969_v43 = vpop.f32.mrf.mxu2  ;;  %v1982_v44 = vpop.f32.mrf.mxu3 }
 0x194   :  { %v1993_v45 = vpop.f32.mrf.mxu0  ;;  %v2500_v47 = vsel %vm2390_vm5, %v2362_v41, %v2363_v42  ;;  %v2006_v48 = vpop.f32.mrf.mxu1 }
 0x195   :  { %v2501_v50 = vsel %vm2394_vm6, %v2497_v46, %v2500_v47  ;;  %v1994_v3 = vadd.f32 %v1993_v45, %v286_v58  ;;  %v2007_v4 = vadd.f32 %v2006_v48, %v287_v60  ;;  %v211_v46 = vld [vmem:[#allocation4 + $0x48] sm:$0x1f] }
 0x196   :  { %v2502_v51 = vsel %vm2396_vm7, %v2494_v49, %v2501_v50  ;;  %v294_v48 = vperm.slane %v211_v46, 0  ;;  %v295_v49 = vperm.slane %v211_v46, 1  ;;  %v296_v50 = vperm.slane %v211_v46, 2 }
 0x197   :  { %2549 = vst [vmem:[%s3802_s3 + $0x38] sm:$0xff] %v2502_v51  ;;  %v2217_v13 = vmax.f32 %v1994_v3, 0.0  ;;  %v2218_v12 = vmax.f32 %v2007_v4, 0.0  ;;  %v297_v51 = vperm.slane %v211_v46, 3 }
 0x199   :  { %v2262_v21 = vpack.c.bf16 %v2218_v12, %v2217_v13 }
 0x19b   :  { %v2019_v52 = vpop.f32.mrf.mxu2  ;;  %v2032_v53 = vpop.f32.mrf.mxu3  ;;  %v2364_v30 = vrot.slane %v2262_v21, 3 }
 0x19c   :  { %v1995_v54 = vpop.f32.mrf.mxu0  ;;  %v2008_v55 = vpop.f32.mrf.mxu1  ;;  %v2020_v63 = vadd.f32 %v2019_v52, %v288_v57  ;;  %v2033_v0 = vadd.f32 %v2032_v53, %v289_v59 }
 0x19d   :  { %v2505_v41 = vsel %vm2376_vm1, %v2262_v21, %v2364_v30 }
 0x19e   :  { %v2219_v8 = vmax.f32 %v2020_v63, 0.0  ;;  %v2220_v9 = vmax.f32 %v2033_v0, 0.0 }
 0x1a0   :  { %v2263_v16 = vpack.c.bf16 %v2220_v9, %v2219_v8 }
 0x1a2   :  { %v2365_v27 = vrot.slane %v2263_v16, 6  ;;  %v2366_v28 = vrot.slane %v2263_v16, 1 }
 0x1a3   :  { %v2021_v1 = vpop.f32.mrf.mxu2  ;;  %v2034_v23 = vpop.f32.mrf.mxu3 }
 0x1a4   :  { %v2045_v2 = vpop.f32.mrf.mxu0  ;;  %v2058_v6 = vpop.f32.mrf.mxu1  ;;  %v2508_v35 = vsel %vm2380_vm2, %v2365_v27, %v2366_v28 }
 0x1a5   :  { %v2046_v5 = vadd.f32 %v2045_v2, %v290_v61  ;;  %v2059_v7 = vadd.f32 %v2058_v6, %v291_v62  ;;  %v2509_v45 = vsel %vm2384_vm3, %v2505_v41, %v2508_v35  ;;  %v298_v62 = vperm.slane %v211_v46, 4 }
 0x1a7   :  { %v2221_v14 = vmax.f32 %v2046_v5, 0.0  ;;  %v2222_v15 = vmax.f32 %v2059_v7, 0.0 }
 0x1a9   :  { %v2264_v22 = vpack.c.bf16 %v2222_v15, %v2221_v14 }
 0x1ab   :  { %v2071_v17 = vpop.f32.mrf.mxu2  ;;  %v2084_v19 = vpop.f32.mrf.mxu3  ;;  %v2367_v31 = vrot.slane %v2264_v22, 4  ;;  %v2368_v32 = vrot.slane %v2264_v22, 7 }
 0x1ac   :  { %v2072_v18 = vadd.f32 %v2071_v17, %v292_v10  ;;  %v2047_v20 = vpop.f32.mrf.mxu0  ;;  %v2085_v24 = vadd.f32 %v2084_v19, %v293_v11  ;;  %v2060_v25 = vpop.f32.mrf.mxu1 }
 0x1ad   :  { %v2512_v42 = vsel %vm2386_vm4, %v2367_v31, %v2368_v32 }
 0x1ae   :  { %v2223_v26 = vmax.f32 %v2072_v18, 0.0  ;;  %v2224_v29 = vmax.f32 %v2085_v24, 0.0 }
 0x1b0   :  { %v2265_v34 = vpack.c.bf16 %v2224_v29, %v2223_v26 }
 0x1b2   :  { %v2369_v36 = vrot.slane %v2265_v34, 2  ;;  %v2370_v37 = vrot.slane %v2265_v34, 5 }
 0x1b3   :  { %v2073_v38 = vpop.f32.mrf.mxu2  ;;  %v2086_v39 = vpop.f32.mrf.mxu3 }
 0x1b4   :  { %v2097_v40 = vpop.f32.mrf.mxu0  ;;  %v2515_v43 = vsel %vm2390_vm5, %v2369_v36, %v2370_v37  ;;  %v2110_v44 = vpop.f32.mrf.mxu1 }
 0x1b5   :  { %v2516_v33 = vsel %vm2394_vm6, %v2512_v42, %v2515_v43  ;;  %v2098_v55 = vadd.f32 %v2097_v40, %v294_v48  ;;  %v2111_v56 = vadd.f32 %v2110_v44, %v295_v49 }
 0x1b6   :  { %v2517_v47 = vsel %vm2396_vm7, %v2509_v45, %v2516_v33 }
 0x1b7   :  { %2550 = vst [vmem:[%s3802_s3 + $0x40] sm:$0xff] %v2517_v47  ;;  %v2225_v60 = vmax.f32 %v2098_v55, 0.0  ;;  %v2226_v61 = vmax.f32 %v2111_v56, 0.0 }
 0x1b9   :  { %v2266_v3 = vpack.c.bf16 %v2226_v61, %v2225_v60 }
 0x1bb   :  { %v2123_v52 = vpop.f32.mrf.mxu2  ;;  %v2136_v53 = vpop.f32.mrf.mxu3  ;;  %v2371_v7 = vrot.slane %v2266_v3, 3 }
 0x1bc   :  { %v2099_v54 = vpop.f32.mrf.mxu0  ;;  %v2112_v57 = vpop.f32.mrf.mxu1  ;;  %v2124_v59 = vadd.f32 %v2123_v52, %v296_v50  ;;  %v2137_v58 = vadd.f32 %v2136_v53, %v297_v51 }
 0x1bd   :  { %v2520_v14 = vsel %vm2376_vm1, %v2266_v3, %v2371_v7 }
 0x1be   :  { %v2227_v63 = vmax.f32 %v2124_v59, 0.0  ;;  %v2228_v0 = vmax.f32 %v2137_v58, 0.0 }
 0x1c0   :  { %v2267_v5 = vpack.c.bf16 %v2228_v0, %v2227_v63 }
 0x1c2   :  { %v2373_v8 = vrot.slane %v2267_v5, 1  ;;  %v2372_v10 = vrot.slane %v2267_v5, 6 }
 0x1c3   :  { %v2125_v1 = vpop.f32.mrf.mxu2  ;;  %v2138_v23 = vpop.f32.mrf.mxu3 }
 0x1c4   :  { %v2149_v2 = vpop.f32.mrf.mxu0  ;;  %v2522_v16 = vsel %vm2384_vm3, %v2520_v14, %v2372_v10 }
 0x1c5   :  { %v2150_v4 = vadd.f32 %v2149_v2, %v298_v62 }
 0x1c7   :  { %v2229_v6 = vmax.f32 %v2150_v4, 0.0 }
 0x1c9   :  { %v2268_v9 = vpack.c.bf16 %v2229_v6, %v2229_v6 }
 0x1cb   :  { %v2374_v11 = vrot.slane %v2268_v9, 4  ;;  %v2375_v13 = vrot.slane %v2268_v9, 7 }
 0x1cc   :  { %v2151_v12 = vpop.f32.mrf.mxu0 }
 0x1cd   :  { %v2526_v15 = vsel %vm2523_vm10, %v2373_v8, %v2374_v11 }
 0x1ce   :  { %v2529_v17 = vsel %vm2527_vm14, %v2526_v15, %v2375_v13 }
 0x1cf   :  { %v2531_v18 = vsel %vm2530_vm15, %v2522_v16, %v2529_v17 }
 0x1d0   :  { %2557 = vst.msk [vmem:[%s3802_s3 + $0x48] sm:$0x1f] %vm2556_vm0, %v2531_v18 }
 0x1d1   :  { %2562 = vsyncpa [#allocation3], 1 }
 0x1d2   :  { %2563 = vsyncpa [#allocation5], 1 }

// kernel: pixel_decoder_forward.6
= control target key start
LH: loop header
LB: loop body
LE: loop exit
PB: predicated region body
PF: predicated region fallthrough
CT: control target
= control target key end

     0   :  { %s3190_s12 = smov 0   ;;  %s4132_s0 = inlined_call_operand.vmem [shape: bf16[2,8,1560], index: 0, kind: input, shape index: {}]   ;;  %s4133_s1 = inlined_call_operand.vmem [shape: bf16[9,8,8], index: 1, kind: input, shape index: {}]   ;;  %s4134_s2 = inlined_call_operand.vmem [shape: f32[8,1], index: 2, kind: input, shape index: {}]   ;;  %s4135_s3 = inlined_call_operand.vmem [shape: bf16[2,1,8,1443], index: 3, kind: output, shape index: {}]  }
   0x1 LB: > { %s3006_s13 = sadd.s32 4294967295, %s3158_s12   ;;  %p3010_p0 = scmp.ge.s32.totalorder %s3158_s12, 1  ;;  %s3158_s12 = sphi %s3190_s12, %s13_s12  }
   0x2   : > { %p137_p1 = scmp.lt.s32.totalorder %s3158_s12, 3 }
   0x4   : > { %p138_p2 = pnand %p3010_p0, %p137_p1 }
   0x5   : > { %p161_p3 = scmp.lt.s32.totalorder (!%p138_p2), %s3006_s13, 1  ;;  %s3160_s18 = smov (!%p138_p2), 127  }
   0x6   : > { %141 = sbr.rel (%p138_p2) target bundleno = 666 (0x29a), region = 32  ;;  %s3161_s21 = smov (!%p138_p2), 126  }
   0x7   : > { %s3162_s22 = smov (!%p138_p2), 89   ;;  %s3163_s23 = smov (!%p138_p2), 88  }
   0x8   : > { %s3164_s26 = smov (!%p138_p2), 87   ;;  %s3165_s27 = smov (!%p138_p2), 50  }
   0x9   : > { %s3167_s5 = smov (!%p138_p2), 49   ;;  %s3168_s8 = smov (!%p138_p2), 48  }
   0xb   : > { %s4137_s13 = smov (!%p161_p3, %s3006_s13), 1  ;;  %vm239_vm0 = vcmask 1043456   ;;  %v3013_v27 = vld [vmem:[%s4133_s1 + $0x20] sm:$0xf]  ;;  %vm235_vm1 = vcmask 64512   ;;  %vm530_vm2 = vcmask 1039360  }
   0xc   : > { %s3131_s14 = smul.u32 52, %s4137_s13  ;;  %v3339_v52 = vld [vmem:[%s4133_s1 + $0x1c] sm:$0xf]  ;;  %vm835_vm3 = vcmask 1031168   ;;  %vm1140_vm4 = vcmask 728064   ;;  %vm183_vm5 = vcmask 285696  }
   0xd   : > { %vm1445_vm6 = vcmask 719872   ;;  %vm1750_vm7 = vcmask 711680   ;;  %vm2055_vm8 = vcmask 408576   ;;  %vm2360_vm9 = vcmask 400384  }
   0xe   : > { %s3204_s17 = scalar_lea.vmem %s4132_s0, %s3131_s14  ;;  %vm2664_vm10 = vcmask 392192   ;;  %vm2948_vm11 = vcmask 285700  }
   0xf   : > { %v472_v0 = vld [vmem:[%s3204_s17 + $0x10] sm:$0xff]  ;;  %v471_v1 = vld [vmem:[%s3204_s17 + $0x8] sm:$0xff]  ;;  %v470_v4 = vld [vmem:[%s3204_s17] sm:$0xff] }
  0x10   : > { %v486_v2 = vunpack.c.l.b16 %v472_v0  ;;  %v484_v3 = vunpack.c.l.b16 %v471_v1  ;;  %v483_v5 = vunpack.c.h.b16 %v470_v4  ;;  %v473_v8 = vld [vmem:[%s3204_s17 + $0x18] sm:$0xff]  ;;  %v485_v10 = vunpack.c.h.b16 %v471_v1  ;;  %v474_v16 = vld [vmem:[%s3204_s17 + $0x20] sm:$0xff]  ;;  %v475_v23 = vld [vmem:[%s3204_s17 + $0x28] sm:$0xff] }
  0x11   : > { %v482_v11 = vunpack.c.l.b16 %v470_v4  ;;  %v488_v12 = vunpack.c.l.b16 %v473_v8  ;;  %v489_v17 = vunpack.c.h.b16 %v473_v8  ;;  %v490_v18 = vunpack.c.l.b16 %v474_v16  ;;  %vm2949_vm12 = vmor %vm2948_vm11, %vm239_vm0 }
  0x12   : > { %v3209_v6 = vpack.c.b16 %v486_v2, %v486_v2  ;;  %v3211_v7 = vpack.c.b16 %v484_v3, %v484_v3  ;;  %v3214_v9 = vpack.c.b16 %v483_v5, %v483_v5  ;;  %v3222_v13 = vpack.c.b16 %v485_v10, %v485_v10 }
  0x13   : > { %v3224_v14 = vpack.c.b16 %v482_v11, %v482_v11  ;;  %v3226_v15 = vpack.c.b16 %v488_v12, %v488_v12  ;;  %v487_v19 = vunpack.c.h.b16 %v472_v0  ;;  %v3237_v21 = vpack.c.b16 %v489_v17, %v489_v17 }
  0x14   : > { %514 = vrot.lane.b32.xlu1 %v3209_v6, %s3160_s18  ;;  %510 = vrot.lane.b32.xlu0 %v3211_v7, %s3160_s18  ;;  %v244_v20 = vsel %vm239_vm0, %v3214_v9, 0  ;;  %v3239_v22 = vpack.c.b16 %v490_v18, %v490_v18  ;;  %v492_v25 = vunpack.c.l.b16 %v475_v23  ;;  %v493_v26 = vunpack.c.h.b16 %v475_v23 }
  0x15   : > { %508 = vrot.lane.b32.xlu2 %v3214_v9, %s3160_s18  ;;  %296 = vmatpush.bf16.msra.mxu1 %v244_v20  ;;  %v3242_v24 = vpack.c.b16 %v487_v19, %v487_v19  ;;  %v241_v28 = vsel %vm239_vm0, %v3224_v14, 0  ;;  %v247_v29 = vsel %vm239_vm0, %v3211_v7, 0  ;;  %v250_v30 = vsel %vm239_vm0, %v3222_v13, 0 }
  0x16   : > { %v491_v31 = vunpack.c.h.b16 %v474_v16  ;;  %283 = vmatpush.bf16.msra.mxu0 %v241_v28  ;;  %309 = vmatpush.bf16.msra.mxu2 %v247_v29  ;;  %v3260_v32 = vpack.c.b16 %v492_v25, %v492_v25  ;;  %v3262_v33 = vpack.c.b16 %v493_v26, %v493_v26  ;;  %v253_v36 = vsel %vm239_vm0, %v3209_v6, 0 }
  0x17   : > { %322 = vmatpush.bf16.msra.mxu3 %v250_v30  ;;  %v256_v35 = vsel %vm239_vm0, %v3242_v24, 0  ;;  %v259_v37 = vsel %vm239_vm0, %v3226_v15, 0  ;;  %v262_v38 = vsel %vm239_vm0, %v3237_v21, 0  ;;  %v265_v40 = vsel %vm239_vm0, %v3239_v22, 0 }
  0x18   : > { %3015 = vmatmul.msk.bf16.vlgmr.msra.gmra.mxu1 %vm235_vm1, %v3013_v27  ;;  %v3264_v34 = vpack.c.b16 %v491_v31, %v491_v31  ;;  %v271_v41 = vsel %vm239_vm0, %v3260_v32, 0  ;;  %v274_v42 = vsel %vm239_vm0, %v3262_v33, 0 }
  0x19   : > { %3014 = vmatmul.msk.bf16.vlgmr.msra.gmra.mxu0 %vm235_vm1, %v3013_v27  ;;  %3016 = vmatmul.msk.bf16.vlgmr.msra.gmra.mxu2 %vm235_vm1, %v3013_v27 }
  0x1a   : > { %3017 = vmatmul.msk.bf16.vlgmr.msra.gmra.mxu3 %vm235_vm1, %v3013_v27  ;;  %348 = vmatpush.bf16.msrb.mxu1 %v256_v35  ;;  %v268_v39 = vsel %vm239_vm0, %v3264_v34, 0 }
  0x1b   : > { %335 = vmatpush.bf16.msrb.mxu0 %v253_v36  ;;  %361 = vmatpush.bf16.msrb.mxu2 %v259_v37 }
  0x1c   : > { %512 = vrot.lane.b32.xlu0 %v3222_v13, %s3160_s18  ;;  %506 = vrot.lane.b32.xlu1 %v3224_v14, %s3160_s18 }
  0x1d   : > { %518 = vrot.lane.b32.xlu2 %v3226_v15, %s3160_s18  ;;  %374 = vmatpush.bf16.msrb.mxu3 %v262_v38 }
  0x1e   : > { %400 = vmatpush.bf16.msra.mxu1 %v268_v39 }
  0x1f   : > { %387 = vmatpush.bf16.msra.mxu0 %v265_v40  ;;  %413 = vmatpush.bf16.msra.mxu2 %v271_v41 }
  0x21   : > { %426 = vmatpush.bf16.msra.mxu3 %v274_v42 }
  0x24   : > { %520 = vrot.lane.b32.xlu0 %v3237_v21, %s3160_s18  ;;  %522 = vrot.lane.b32.xlu1 %v3239_v22, %s3160_s18 }
  0x25   : > { %516 = vrot.lane.b32.xlu2 %v3242_v24, %s3160_s18 }
  0x28   : > { %3019 = vmatmul.msk.bf16.vlgmr.msrb.gmra.mxu1 %vm235_vm1, %v3013_v27 }
  0x29   : > { %3018 = vmatmul.msk.bf16.vlgmr.msrb.gmra.mxu0 %vm235_vm1, %v3013_v27  ;;  %3020 = vmatmul.msk.bf16.vlgmr.msrb.gmra.mxu2 %vm235_vm1, %v3013_v27 }
  0x2a   : > { %3021 = vmatmul.msk.bf16.vlgmr.msrb.gmra.mxu3 %vm235_vm1, %v3013_v27 }
  0x2c   : > { %526 = vrot.lane.b32.xlu0 %v3260_v32, %s3160_s18  ;;  %528 = vrot.lane.b32.xlu1 %v3262_v33, %s3160_s18 }
  0x2d   : > { %524 = vrot.lane.b32.xlu2 %v3264_v34, %s3160_s18 }
  0x34   : > { %817 = vrot.lane.b32.xlu1 %v3222_v13, %s3161_s21  ;;  %815 = vrot.lane.b32.xlu0 %v3211_v7, %s3161_s21 }
  0x35   : > { %819 = vrot.lane.b32.xlu2 %v3209_v6, %s3161_s21 }
  0x38   : > { %3023 = vmatmul.msk.bf16.vlgmr.msra.gmra.mxu1 %vm235_vm1, %v3013_v27 }
  0x39   : > { %3022 = vmatmul.msk.bf16.vlgmr.msra.gmra.mxu0 %vm235_vm1, %v3013_v27  ;;  %3024 = vmatmul.msk.bf16.vlgmr.msra.gmra.mxu2 %vm235_vm1, %v3013_v27 }
  0x3a   : > { %3025 = vmatmul.msk.bf16.vlgmr.msra.gmra.mxu3 %vm235_vm1, %v3013_v27 }
  0x3c   : > { %813 = vrot.lane.b32.xlu1 %v3214_v9, %s3161_s21  ;;  %811 = vrot.lane.b32.xlu0 %v3224_v14, %s3161_s21 }
  0x3d   : > { %823 = vrot.lane.b32.xlu2 %v3226_v15, %s3161_s21 }
  0x44   : > { %825 = vrot.lane.b32.xlu0 %v3237_v21, %s3161_s21  ;;  %827 = vrot.lane.b32.xlu1 %v3239_v22, %s3161_s21 }
  0x45   : > { %821 = vrot.lane.b32.xlu2 %v3242_v24, %s3161_s21 }
  0x4c   : > { %831 = vrot.lane.b32.xlu0 %v3260_v32, %s3161_s21  ;;  %833 = vrot.lane.b32.xlu1 %v3262_v33, %s3161_s21 }
  0x4d   : > { %829 = vrot.lane.b32.xlu2 %v3264_v34, %s3161_s21  ;;  %s3132_s21 = smul.u32 48, %s4137_s13 }
  0x4f   : > { %s4100_s24 = scalar_lea.vmem %s4135_s3, %s3132_s21 }
  0x54   : > { %1122 = vrot.lane.b32.xlu1 %v3222_v13, %s3162_s22  ;;  %1120 = vrot.lane.b32.xlu0 %v3211_v7, %s3162_s22 }
  0x55   : > { %1124 = vrot.lane.b32.xlu2 %v3209_v6, %s3162_s22 }
  0x5c   : > { %1118 = vrot.lane.b32.xlu1 %v3214_v9, %s3162_s22  ;;  %1116 = vrot.lane.b32.xlu0 %v3224_v14, %s3162_s22 }
  0x5d   : > { %1128 = vrot.lane.b32.xlu2 %v3226_v15, %s3162_s22 }
  0x64   : > { %1130 = vrot.lane.b32.xlu0 %v3237_v21, %s3162_s22  ;;  %1132 = vrot.lane.b32.xlu1 %v3239_v22, %s3162_s22 }
  0x65   : > { %1126 = vrot.lane.b32.xlu2 %v3242_v24, %s3162_s22 }
  0x6c   : > { %1136 = vrot.lane.b32.xlu0 %v3260_v32, %s3162_s22  ;;  %1138 = vrot.lane.b32.xlu1 %v3262_v33, %s3162_s22 }
  0x6d   : > { %1134 = vrot.lane.b32.xlu2 %v3264_v34, %s3162_s22 }
  0x6f   : > { %v509_v43 = vpop.permute.xlu2 %508 }
  0x74   : > { %1427 = vrot.lane.b32.xlu1 %v3222_v13, %s3163_s23  ;;  %1425 = vrot.lane.b32.xlu0 %v3211_v7, %s3163_s23 }
  0x75   : > { %1429 = vrot.lane.b32.xlu2 %v3209_v6, %s3163_s23 }
  0x77   : > { %v519_v44 = vpop.permute.xlu2 %518 }
  0x7c   : > { %1423 = vrot.lane.b32.xlu1 %v3214_v9, %s3163_s23  ;;  %1421 = vrot.lane.b32.xlu0 %v3224_v14, %s3163_s23 }
  0x7d   : > { %1433 = vrot.lane.b32.xlu2 %v3226_v15, %s3163_s23 }
  0x7f   : > { %v517_v45 = vpop.permute.xlu2 %516 }
  0x80   : > { %v536_v46 = vsel %vm530_vm2, %v517_v45, %v519_v44 }
  0x81   : > { %v561_v50 = vsel %vm239_vm0, %v536_v46, 0 }
  0x84   : > { %1435 = vrot.lane.b32.xlu0 %v3237_v21, %s3163_s23  ;;  %1437 = vrot.lane.b32.xlu1 %v3239_v22, %s3163_s23 }
  0x85   : > { %1431 = vrot.lane.b32.xlu2 %v3242_v24, %s3163_s23 }
  0x86   : > { %v515_v47 = vpop.permute.xlu1 %514  ;;  %v511_v48 = vpop.permute.xlu0 %510 }
  0x87   : > { %v532_v49 = vsel %vm530_vm2, %v509_v43, %v511_v48  ;;  %v535_v53 = vsel %vm530_vm2, %v515_v47, %v517_v45  ;;  %v525_v60 = vpop.permute.xlu2 %524  ;;  %v3436_v45 = vld [vmem:[%s4133_s1 + $0x18] sm:$0xf] }
  0x88   : > { %v549_v51 = vsel %vm239_vm0, %v532_v49, 0  ;;  %v558_v56 = vsel %vm239_vm0, %v535_v53, 0 }
  0x89   : > { %601 = vmatpush.bf16.msrb.mxu1 %v549_v51 }
  0x8c   : > { %3028 = vmatmul.msk.bf16.vlgmr.msrb.gmra.mxu1 %vm235_vm1, %v3339_v52  ;;  %1441 = vrot.lane.b32.xlu0 %v3260_v32, %s3163_s23 }
  0x8d   : > { %653 = vmatpush.bf16.msra.mxu1 %v561_v50  ;;  %1443 = vrot.lane.b32.xlu1 %v3262_v33, %s3163_s23 }
  0x8e   : > { %1439 = vrot.lane.b32.xlu2 %v3264_v34, %s3163_s23  ;;  %v513_v54 = vpop.permute.xlu0 %512  ;;  %v507_v55 = vpop.permute.xlu1 %506 }
  0x8f   : > { %v533_v57 = vsel %vm530_vm2, %v511_v48, %v513_v54  ;;  %v534_v58 = vsel %vm530_vm2, %v513_v54, %v515_v47  ;;  %v531_v59 = vsel %vm530_vm2, %v507_v55, %v509_v43  ;;  %v820_v5 = vpop.permute.xlu2 %819 }
  0x90   : > { %v552_v61 = vsel %vm239_vm0, %v533_v57, 0  ;;  %v555_v62 = vsel %vm239_vm0, %v534_v58, 0  ;;  %v546_v63 = vsel %vm239_vm0, %v531_v59, 0 }
  0x91   : > { %588 = vmatpush.bf16.msrb.mxu0 %v546_v63  ;;  %614 = vmatpush.bf16.msrb.mxu2 %v552_v61 }
  0x92   : > { %627 = vmatpush.bf16.msrb.mxu3 %v555_v62 }
  0x94   : > { %3027 = vmatmul.msk.bf16.vlgmr.msrb.gmra.mxu0 %vm235_vm1, %v3339_v52  ;;  %3029 = vmatmul.msk.bf16.vlgmr.msrb.gmra.mxu2 %vm235_vm1, %v3339_v52 }
  0x95   : > { %640 = vmatpush.bf16.msra.mxu0 %v558_v56  ;;  %3030 = vmatmul.msk.bf16.vlgmr.msrb.gmra.mxu3 %vm235_vm1, %v3339_v52 }
  0x96   : > { %1732 = vrot.lane.b32.xlu1 %v3222_v13, %s3164_s26  ;;  %v521_v0 = vpop.permute.xlu0 %520  ;;  %v523_v1 = vpop.permute.xlu1 %522  ;;  %1730 = vrot.lane.b32.xlu0 %v3211_v7, %s3164_s26 }
  0x97   : > { %1734 = vrot.lane.b32.xlu2 %v3209_v6, %s3164_s26  ;;  %v537_v2 = vsel %vm530_vm2, %v519_v44, %v521_v0  ;;  %v538_v3 = vsel %vm530_vm2, %v521_v0, %v523_v1  ;;  %v539_v4 = vsel %vm530_vm2, %v523_v1, %v525_v60  ;;  %v824_v23 = vpop.permute.xlu2 %823 }
  0x98   : > { %v564_v8 = vsel %vm239_vm0, %v537_v2, 0  ;;  %v567_v10 = vsel %vm239_vm0, %v538_v3, 0  ;;  %v570_v11 = vsel %vm239_vm0, %v539_v4, 0 }
  0x99   : > { %666 = vmatpush.bf16.msra.mxu2 %v564_v8  ;;  %679 = vmatpush.bf16.msra.mxu3 %v567_v10 }
  0x9a   : > { %692 = vmatpush.bf16.msrb.mxu0 %v570_v11 }
  0x9c   : > { %3032 = vmatmul.msk.bf16.vlgmr.msra.gmra.mxu1 %vm235_vm1, %v3339_v52  ;;  %v3459_v58 = vpop.f32.mrf.mxu2 }
  0x9d   : > { %v3448_v53 = vpop.f32.mrf.mxu3 }
  0x9e   : > { %1728 = vrot.lane.b32.xlu1 %v3214_v9, %s3164_s26  ;;  %v527_v6 = vpop.permute.xlu0 %526  ;;  %v529_v12 = vpop.permute.xlu1 %528  ;;  %1726 = vrot.lane.b32.xlu0 %v3224_v14, %s3164_s26 }
  0x9f   : > { %1738 = vrot.lane.b32.xlu2 %v3226_v15, %s3164_s26  ;;  %v540_v16 = vsel %vm530_vm2, %v525_v60, %v527_v6  ;;  %v541_v17 = vsel %vm530_vm2, %v527_v6, %v529_v12  ;;  %v579_v18 = vsel %vm239_vm0, %v529_v12, 0 }
  0xa0   : > { %v573_v19 = vsel %vm239_vm0, %v540_v16, 0  ;;  %v576_v20 = vsel %vm239_vm0, %v541_v17, 0  ;;  %731 = vmatpush.bf16.msrb.mxu3 %v579_v18 }
  0xa1   : > { %705 = vmatpush.bf16.msrb.mxu1 %v573_v19  ;;  %718 = vmatpush.bf16.msrb.mxu2 %v576_v20 }
  0xa4   : > { %3031 = vmatmul.msk.bf16.vlgmr.msra.gmra.mxu0 %vm235_vm1, %v3339_v52  ;;  %3033 = vmatmul.msk.bf16.vlgmr.msra.gmra.mxu2 %vm235_vm1, %v3339_v52  ;;  %v313_v1 = vpop.f32.mrf.mxu2 }
  0xa5   : > { %3034 = vmatmul.msk.bf16.vlgmr.msra.gmra.mxu3 %vm235_vm1, %v3339_v52  ;;  %v326_v62 = vpop.f32.mrf.mxu3  ;;  %v1998_v1 = vld [vmem:[%s3204_s17 + $0x18] sm:$0xff] }
  0xa6   : > { %1742 = vrot.lane.b32.xlu1 %v3239_v22, %s3164_s26  ;;  %v818_v15 = vpop.permute.xlu1 %817  ;;  %v816_v25 = vpop.permute.xlu0 %815  ;;  %1740 = vrot.lane.b32.xlu0 %v3237_v21, %s3164_s26 }
  0xa7   : > { %1736 = vrot.lane.b32.xlu2 %v3242_v24, %s3164_s26  ;;  %v839_v26 = vsel %vm835_vm3, %v818_v15, %v820_v5  ;;  %v838_v27 = vsel %vm835_vm3, %v816_v25, %v818_v15  ;;  %v822_v22 = vpop.permute.xlu2 %821 }
  0xa8   : > { %v860_v28 = vsel %vm239_vm0, %v839_v26, 0  ;;  %v857_v29 = vsel %vm239_vm0, %v838_v27, 0  ;;  %v841_v30 = vsel %vm835_vm3, %v822_v22, %v824_v23  ;;  %v840_v36 = vsel %vm835_vm3, %v820_v5, %v822_v22 }
  0xa9   : > { %919 = vmatpush.bf16.msra.mxu2 %v857_v29  ;;  %932 = vmatpush.bf16.msra.mxu3 %v860_v28  ;;  %v866_v37 = vsel %vm239_vm0, %v841_v30, 0  ;;  %v863_v39 = vsel %vm239_vm0, %v840_v36, 0 }
  0xac   : > { %3036 = vmatmul.msk.bf16.vlgmr.msrb.gmra.mxu1 %vm235_vm1, %v3339_v52  ;;  %v3483_v20 = vpop.f32.mrf.mxu2 }
  0xad   : > { %v3472_v12 = vpop.f32.mrf.mxu3 }
  0xae   : > { %1748 = vrot.lane.b32.xlu1 %v3262_v33, %s3164_s26  ;;  %v814_v21 = vpop.permute.xlu1 %813  ;;  %v812_v24 = vpop.permute.xlu0 %811  ;;  %1746 = vrot.lane.b32.xlu0 %v3260_v32, %s3164_s26 }
  0xaf   : > { %1744 = vrot.lane.b32.xlu2 %v3264_v34, %s3164_s26  ;;  %v837_v31 = vsel %vm835_vm3, %v814_v21, %v816_v25  ;;  %v836_v35 = vsel %vm835_vm3, %v812_v24, %v814_v21  ;;  %v3423_v32 = vpop.f32.mrf.mxu1  ;;  %v830_v46 = vpop.permute.xlu2 %829 }
  0xb0   : > { %v854_v38 = vsel %vm239_vm0, %v837_v31, 0  ;;  %v851_v33 = vsel %vm239_vm0, %v836_v35, 0 }
  0xb1   : > { %906 = vmatpush.bf16.msra.mxu1 %v854_v38  ;;  %893 = vmatpush.bf16.msra.mxu0 %v851_v33 }
  0xb4   : > { %3035 = vmatmul.msk.bf16.vlgmr.msrb.gmra.mxu0 %vm235_vm1, %v3339_v52  ;;  %3037 = vmatmul.msk.bf16.vlgmr.msrb.gmra.mxu2 %vm235_vm1, %v3339_v52  ;;  %v365_v22 = vpop.f32.mrf.mxu2 }
  0xb5   : > { %958 = vmatpush.bf16.msrb.mxu1 %v866_v37  ;;  %3038 = vmatmul.msk.bf16.vlgmr.msrb.gmra.mxu3 %vm235_vm1, %v3339_v52  ;;  %v378_v26 = vpop.f32.mrf.mxu3  ;;  %v3166_v37 = vmov 0.0  }
  0xb6   : > { %945 = vmatpush.bf16.msrb.mxu0 %v863_v39  ;;  %v826_v34 = vpop.permute.xlu0 %825  ;;  %v828_v40 = vpop.permute.xlu1 %827  ;;  %2037 = vrot.lane.b32.xlu1 %v3222_v13, %s3165_s27  ;;  %184 = vst.msk [vmem:[#allocation2 + $0x58] sm:$0xff] %vm183_vm5, %v3166_v37 }
  0xb7   : > { %2035 = vrot.lane.b32.xlu0 %v3211_v7, %s3165_s27  ;;  %v842_v41 = vsel %vm835_vm3, %v824_v23, %v826_v34  ;;  %v843_v42 = vsel %vm835_vm3, %v826_v34, %v828_v40  ;;  %v3440_v7 = vpop.f32.mrf.mxu0  ;;  %v300_v13 = vpop.f32.mrf.mxu1  ;;  %v844_v49 = vsel %vm835_vm3, %v828_v40, %v830_v46 }
  0xb8   : > { %v869_v43 = vsel %vm239_vm0, %v842_v41, 0  ;;  %v872_v44 = vsel %vm239_vm0, %v843_v42, 0  ;;  %v875_v54 = vsel %vm239_vm0, %v844_v49, 0  ;;  %v1125_v55 = vpop.permute.xlu2 %1124 }
  0xb9   : > { %971 = vmatpush.bf16.msrb.mxu2 %v869_v43  ;;  %984 = vmatpush.bf16.msrb.mxu3 %v872_v44 }
  0xbc   : > { %3041 = vmatmul.msk.bf16.vlgmr.msra.gmra.mxu1 %vm235_vm1, %v3436_v45  ;;  %v3506_v42 = vpop.f32.mrf.mxu2 }
  0xbd   : > { %v428_v36 = vpop.f32.mrf.mxu3 }
  0xbe   : > { %v832_v47 = vpop.permute.xlu0 %831  ;;  %v834_v48 = vpop.permute.xlu1 %833  ;;  %2033 = vrot.lane.b32.xlu1 %v3214_v9, %s3165_s27 }
  0xbf   : > { %v845_v50 = vsel %vm835_vm3, %v830_v46, %v832_v47  ;;  %v846_v52 = vsel %vm835_vm3, %v832_v47, %v834_v48  ;;  %v884_v57 = vsel %vm239_vm0, %v834_v48, 0  ;;  %v287_v9 = vpop.f32.mrf.mxu0  ;;  %v3461_v61 = vpop.f32.mrf.mxu1  ;;  %v196_v46 = vld [vmem:[#allocation2 + $0x58] sm:$0xff]  ;;  %v3512_v47 = vld [vmem:[%s4133_s1 + $0x14] sm:$0xf]  ;;  %2031 = vrot.lane.b32.xlu0 %v3224_v14, %s3165_s27 }
  0xc0   : > { %v878_v51 = vsel %vm239_vm0, %v845_v50, 0  ;;  %v881_v56 = vsel %vm239_vm0, %v846_v52, 0  ;;  %v1129_v63 = vpop.permute.xlu2 %1128  ;;  %v443_v48 = vadd.f32 %v428_v36, %v196_v46 }
  0xc1   : > { %1010 = vmatpush.bf16.msra.mxu1 %v878_v51 }
  0xc2   : > { %455 = vst.msk [vmem:[#allocation2 + $0x58] sm:$0xff] %vm183_vm5, %v443_v48 }
  0xc4   : > { %3040 = vmatmul.msk.bf16.vlgmr.msra.gmra.mxu0 %vm235_vm1, %v3436_v45  ;;  %3042 = vmatmul.msk.bf16.vlgmr.msra.gmra.mxu2 %vm235_vm1, %v3436_v45  ;;  %v417_v50 = vpop.f32.mrf.mxu2 }
  0xc5   : > { %3043 = vmatmul.msk.bf16.vlgmr.msra.gmra.mxu3 %vm235_vm1, %v3436_v45  ;;  %997 = vmatpush.bf16.msra.mxu0 %v875_v54  ;;  %v430_v13 = vpop.f32.mrf.mxu3  ;;  %v1997_v54 = vld [vmem:[%s3204_s17 + $0x10] sm:$0xff] }
  0xc6   : > { %v1123_v59 = vpop.permute.xlu1 %1122  ;;  %1036 = vmatpush.bf16.msra.mxu3 %v884_v57  ;;  %1023 = vmatpush.bf16.msra.mxu2 %v881_v56  ;;  %v1121_v60 = vpop.permute.xlu0 %1120 }
  0xc7   : > { %v3465_v0 = vpop.f32.mrf.mxu0  ;;  %v1143_v4 = vsel %vm1140_vm4, %v1121_v60, %v1123_v59  ;;  %v352_v8 = vpop.f32.mrf.mxu1  ;;  %v1144_v10 = vsel %vm1140_vm4, %v1123_v59, %v1125_v55 }
  0xc8   : > { %v1162_v16 = vsel %vm239_vm0, %v1143_v4, 0  ;;  %v1165_v17 = vsel %vm239_vm0, %v1144_v10, 0  ;;  %v1127_v23 = vpop.permute.xlu2 %1126  ;;  %v2013_v4 = vunpack.c.l.b16 %v1998_v1 }
  0xc9   : > { %v1146_v15 = vsel %vm1140_vm4, %v1127_v23, %v1129_v63  ;;  %v1145_v21 = vsel %vm1140_vm4, %v1125_v55, %v1127_v23  ;;  %v2011_v55 = vunpack.c.l.b16 %v1997_v54 }
  0xca   : > { %v1171_v27 = vsel %vm239_vm0, %v1146_v15, 0  ;;  %v1168_v38 = vsel %vm239_vm0, %v1145_v21, 0  ;;  %v2000_v15 = vld [vmem:[%s3204_s17 + $0x28] sm:$0xff] }
  0xcb   : > { %v3528_v14 = vpack.c.b16 %v2011_v55, %v2011_v55  ;;  %v2017_v26 = vunpack.c.l.b16 %v2000_v15 }
  0xcc   : > { %3045 = vmatmul.msk.bf16.vlgmr.msrb.gmra.mxu1 %vm235_vm1, %v3436_v45 }
  0xcd   : > { %2039 = vrot.lane.b32.xlu2 %v3528_v14, %s3165_s27 }
  0xce   : > { %v1119_v2 = vpop.permute.xlu1 %1118  ;;  %v1117_v3 = vpop.permute.xlu0 %1116 }
  0xcf   : > { %v1142_v5 = vsel %vm1140_vm4, %v1119_v2, %v1121_v60  ;;  %v1141_v6 = vsel %vm1140_vm4, %v1117_v3, %v1119_v2  ;;  %v339_v19 = vpop.f32.mrf.mxu0  ;;  %v3486_v25 = vpop.f32.mrf.mxu1  ;;  %v3541_v2 = vld [vmem:[%s3204_s17 + $0x20] sm:$0xff]  ;;  %v2014_v3 = vunpack.c.h.b16 %v1998_v1 }
  0xd0   : > { %v1159_v11 = vsel %vm239_vm0, %v1142_v5, 0  ;;  %v1156_v18 = vsel %vm239_vm0, %v1141_v6, 0  ;;  %v1135_v34 = vpop.permute.xlu2 %1134  ;;  %v2015_v5 = vunpack.c.l.b16 %v3541_v2 }
  0xd1   : > { %1211 = vmatpush.bf16.msrb.mxu1 %v1159_v11  ;;  %v3545_v10 = vpack.c.b16 %v2014_v3, %v2014_v3  ;;  %v3547_v11 = vpack.c.b16 %v2013_v4, %v2013_v4 }
  0xd2   : > { %v3549_v6 = vpack.c.b16 %v2015_v5, %v2015_v5 }
  0xd3   : > { %2045 = vrot.lane.b32.xlu0 %v3545_v10, %s3165_s27 }
  0xd4   : > { %3044 = vmatmul.msk.bf16.vlgmr.msrb.gmra.mxu0 %vm235_vm1, %v3436_v45  ;;  %3046 = vmatmul.msk.bf16.vlgmr.msrb.gmra.mxu2 %vm235_vm1, %v3436_v45 }
  0xd5   : > { %3047 = vmatmul.msk.bf16.vlgmr.msrb.gmra.mxu3 %vm235_vm1, %v3436_v45  ;;  %1224 = vmatpush.bf16.msrb.mxu2 %v1162_v16 }
  0xd6   : > { %1237 = vmatpush.bf16.msrb.mxu3 %v1165_v17  ;;  %1198 = vmatpush.bf16.msrb.mxu0 %v1156_v18  ;;  %v1131_v28 = vpop.permute.xlu0 %1130  ;;  %v1133_v29 = vpop.permute.xlu1 %1132 }
  0xd7   : > { %v3491_v30 = vpop.f32.mrf.mxu0  ;;  %v404_v24 = vpop.f32.mrf.mxu1  ;;  %v1147_v31 = vsel %vm1140_vm4, %v1129_v63, %v1131_v28  ;;  %v1148_v35 = vsel %vm1140_vm4, %v1131_v28, %v1133_v29  ;;  %v1149_v51 = vsel %vm1140_vm4, %v1133_v29, %v1135_v34  ;;  %2047 = vrot.lane.b32.xlu1 %v3549_v6, %s3165_s27  ;;  %2043 = vrot.lane.b32.xlu2 %v3547_v11, %s3165_s27  ;;  %v2018_v28 = vunpack.c.h.b16 %v2000_v15 }
  0xd8   : > { %v1174_v33 = vsel %vm239_vm0, %v1147_v31, 0  ;;  %v1177_v39 = vsel %vm239_vm0, %v1148_v35, 0  ;;  %v1180_v56 = vsel %vm239_vm0, %v1149_v51, 0  ;;  %v3524_v57 = vpop.permute.xlu2 %1429  ;;  %v3567_v24 = vpack.c.b16 %v2017_v26, %v2017_v26 }
  0xd9   : > { %v3575_v35 = vpack.c.b16 %v2018_v28, %v2018_v28  ;;  %v2016_v51 = vunpack.c.h.b16 %v3541_v2 }
  0xdb   : > { %2051 = vrot.lane.b32.xlu0 %v3567_v24, %s3165_s27 }
  0xdc   : > { %3049 = vmatmul.msk.bf16.vlgmr.msra.gmra.mxu1 %vm235_vm1, %v3436_v45 }
  0xdd   : > { %1263 = vmatpush.bf16.msra.mxu1 %v1171_v27  ;;  %v2012_v27 = vunpack.c.h.b16 %v1997_v54 }
  0xde   : > { %v1137_v40 = vpop.permute.xlu0 %1136  ;;  %v1139_v41 = vpop.permute.xlu1 %1138 }
  0xdf   : > { %v391_v43 = vpop.f32.mrf.mxu0  ;;  %v1150_v44 = vsel %vm1140_vm4, %v1135_v34, %v1137_v40  ;;  %v1151_v52 = vsel %vm1140_vm4, %v1137_v40, %v1139_v41  ;;  %v1189_v59 = vsel %vm239_vm0, %v1139_v41, 0  ;;  %v3569_v31 = vpack.c.b16 %v2012_v27, %v2012_v27  ;;  %2053 = vrot.lane.b32.xlu1 %v3575_v35, %s3165_s27 }
  0xe0   : > { %v1186_v9 = vsel %vm239_vm0, %v1151_v52, 0  ;;  %v1434_v16 = vpop.permute.xlu2 %1433 }
  0xe1   : > { %2041 = vrot.lane.b32.xlu2 %v3569_v31, %s3165_s27 }
  0xe4   : > { %3048 = vmatmul.msk.bf16.vlgmr.msra.gmra.mxu0 %vm235_vm1, %v3436_v45  ;;  %3050 = vmatmul.msk.bf16.vlgmr.msra.gmra.mxu2 %vm235_vm1, %v3436_v45 }
  0xe5   : > { %3051 = vmatmul.msk.bf16.vlgmr.msra.gmra.mxu3 %vm235_vm1, %v3436_v45  ;;  %1250 = vmatpush.bf16.msra.mxu0 %v1168_v38  ;;  %v1183_v45 = vsel %vm239_vm0, %v1150_v44, 0  ;;  %v2301_v38 = vld [vmem:[%s3204_s17 + $0x8] sm:$0xff] }
  0xe6   : > { %1276 = vmatpush.bf16.msra.mxu2 %v1174_v33  ;;  %1289 = vmatpush.bf16.msra.mxu3 %v1177_v39  ;;  %v1428_v49 = vpop.permute.xlu1 %1427  ;;  %v1426_v60 = vpop.permute.xlu0 %1425  ;;  %v2315_v39 = vunpack.c.h.b16 %v2301_v38  ;;  %v2314_v48 = vunpack.c.l.b16 %v2301_v38 }
  0xe7   : > { %v1448_v18 = vsel %vm1445_vm6, %v1426_v60, %v1428_v49  ;;  %v1449_v19 = vsel %vm1445_vm6, %v1428_v49, %v3524_v57 }
  0xe8   : > { %v1467_v29 = vsel %vm239_vm0, %v1448_v18, 0  ;;  %v1470_v22 = vsel %vm239_vm0, %v1449_v19, 0  ;;  %v1432_v36 = vpop.permute.xlu2 %1431  ;;  %v3593_v43 = vpack.c.b16 %v2315_v39, %v2315_v39 }
  0xe9   : > { %v1451_v37 = vsel %vm1445_vm6, %v1432_v36, %v1434_v16  ;;  %v1450_v46 = vsel %vm1445_vm6, %v3524_v57, %v1432_v36 }
  0xea   : > { %v1476_v40 = vsel %vm239_vm0, %v1451_v37, 0  ;;  %2342 = vrot.lane.b32.xlu1 %v3593_v43, %s3167_s5  ;;  %v1473_v55 = vsel %vm239_vm0, %v1450_v46, 0 }
  0xec   : > { %3054 = vmatmul.msk.bf16.vlgmr.msrb.gmra.mxu1 %vm235_vm1, %v3512_v47 }
  0xed   : > { %1315 = vmatpush.bf16.msrb.mxu1 %v1183_v45  ;;  %v2300_v45 = vld [vmem:[%s3204_s17] sm:$0xff] }
  0xee   : > { %v1424_v62 = vpop.permute.xlu1 %1423  ;;  %v1422_v17 = vpop.permute.xlu0 %1421  ;;  %v2313_v52 = vunpack.c.h.b16 %v2300_v45 }
  0xef   : > { %v1447_v63 = vsel %vm1445_vm6, %v1424_v62, %v1426_v60  ;;  %v1446_v23 = vsel %vm1445_vm6, %v1422_v17, %v1424_v62  ;;  %v3637_v17 = vld [vmem:[%s4133_s1 + $0x10] sm:$0xf] }
  0xf0   : > { %v1464_v8 = vsel %vm239_vm0, %v1447_v63, 0  ;;  %v1461_v21 = vsel %vm239_vm0, %v1446_v23, 0  ;;  %v3617_v60 = vpack.c.b16 %v2313_v52, %v2313_v52  ;;  %v1440_v63 = vpop.permute.xlu2 %1439 }
  0xf2   : > { %2338 = vrot.lane.b32.xlu1 %v3617_v60, %s3167_s5 }
  0xf4   : > { %3053 = vmatmul.msk.bf16.vlgmr.msrb.gmra.mxu0 %vm235_vm1, %v3512_v47  ;;  %3055 = vmatmul.msk.bf16.vlgmr.msrb.gmra.mxu2 %vm235_vm1, %v3512_v47 }
  0xf5   : > { %3056 = vmatmul.msk.bf16.vlgmr.msrb.gmra.mxu3 %vm235_vm1, %v3512_v47  ;;  %1302 = vmatpush.bf16.msrb.mxu0 %v1180_v56 }
  0xf6   : > { %1341 = vmatpush.bf16.msrb.mxu3 %v1189_v59  ;;  %1328 = vmatpush.bf16.msrb.mxu2 %v1186_v9  ;;  %v1436_v41 = vpop.permute.xlu0 %1435  ;;  %v1438_v44 = vpop.permute.xlu1 %1437  ;;  %v3609_v9 = vpack.c.b16 %v2314_v48, %v2314_v48  ;;  %v3611_v59 = vpack.c.b16 %v2016_v51, %v2016_v51 }
  0xf7   : > { %v1452_v13 = vsel %vm1445_vm6, %v1434_v16, %v1436_v41  ;;  %v1454_v15 = vsel %vm1445_vm6, %v1438_v44, %v1440_v63 }
  0xf8   : > { %v1479_v56 = vsel %vm239_vm0, %v1452_v13, 0  ;;  %2340 = vrot.lane.b32.xlu0 %v3609_v9, %s3167_s5  ;;  %2049 = vrot.lane.b32.xlu2 %v3611_v59, %s3165_s27 }
  0xfa   : > { %2352 = vrot.lane.b32.xlu1 %v3549_v6, %s3167_s5 }
  0xfc   : > { %3058 = vmatmul.msk.bf16.vlgmr.msra.gmra.mxu1 %vm235_vm1, %v3512_v47 }
  0xfd   : > { %1516 = vmatpush.bf16.msra.mxu1 %v1464_v8 }
  0xff   : > { %v1444_v62 = vpop.permute.xlu1 %1443 }
 0x100   : > { %2344 = vrot.lane.b32.xlu2 %v3528_v14, %s3167_s5  ;;  %v1494_v37 = vsel %vm239_vm0, %v1444_v62, 0 }
 0x102   : > { %2358 = vrot.lane.b32.xlu1 %v3575_v35, %s3167_s5 }
 0x104   : > { %3057 = vmatmul.msk.bf16.vlgmr.msra.gmra.mxu0 %vm235_vm1, %v3512_v47  ;;  %3059 = vmatmul.msk.bf16.vlgmr.msra.gmra.mxu2 %vm235_vm1, %v3512_v47 }
 0x105   : > { %3060 = vmatmul.msk.bf16.vlgmr.msra.gmra.mxu3 %vm235_vm1, %v3512_v47  ;;  %1529 = vmatpush.bf16.msra.mxu2 %v1467_v29 }
 0x106   : > { %1542 = vmatpush.bf16.msra.mxu3 %v1470_v22  ;;  %1503 = vmatpush.bf16.msra.mxu0 %v1461_v21  ;;  %v1485_v22 = vsel %vm239_vm0, %v1454_v15, 0  ;;  %v3659_v21 = vpop.permute.xlu2 %1734 }
 0x108   : > { %2348 = vrot.lane.b32.xlu2 %v3547_v11, %s3167_s5 }
 0x109   : > { %v603_v33 = vpop.f32.mrf.mxu1 }
 0x10a   : > { %v3588_v34 = vadd.f32 %v603_v33, %v3423_v32  ;;  %v1453_v32 = vsel %vm1445_vm6, %v1436_v41, %v1438_v44  ;;  %2646 = vrot.lane.b32.xlu1 %v3593_v43, %s3168_s8 }
 0x10b   : > { %v1482_v57 = vsel %vm239_vm0, %v1453_v32, 0 }
 0x10c   : > { %3062 = vmatmul.msk.bf16.vlgmr.msrb.gmra.mxu1 %vm235_vm1, %v3512_v47 }
 0x10d   : > { %1568 = vmatpush.bf16.msrb.mxu1 %v1476_v40 }
 0x110   : > { %2346 = vrot.lane.b32.xlu2 %v3569_v31, %s3167_s5 }
 0x111   : > { %v590_v49 = vpop.f32.mrf.mxu0  ;;  %v605_v50 = vpop.f32.mrf.mxu1 }
 0x112   : > { %v3604_v54 = vadd.f32 %v590_v49, %v3440_v7  ;;  %v1442_v7 = vpop.permute.xlu0 %1441  ;;  %2642 = vrot.lane.b32.xlu1 %v3617_v60, %s3168_s8 }
 0x113   : > { %v1455_v2 = vsel %vm1445_vm6, %v1440_v63, %v1442_v7  ;;  %v1456_v26 = vsel %vm1445_vm6, %v1442_v7, %v1444_v62 }
 0x114   : > { %3061 = vmatmul.msk.bf16.vlgmr.msrb.gmra.mxu0 %vm235_vm1, %v3512_v47  ;;  %3063 = vmatmul.msk.bf16.vlgmr.msrb.gmra.mxu2 %vm235_vm1, %v3512_v47  ;;  %v1491_v36 = vsel %vm239_vm0, %v1456_v26, 0 }
 0x115   : > { %3064 = vmatmul.msk.bf16.vlgmr.msrb.gmra.mxu3 %vm235_vm1, %v3512_v47  ;;  %1555 = vmatpush.bf16.msrb.mxu0 %v1473_v55  ;;  %v2312_v47 = vunpack.c.l.b16 %v2300_v45  ;;  %v1739_v45 = vpop.permute.xlu2 %1738 }
 0x116   : > { %1581 = vmatpush.bf16.msrb.mxu2 %v1479_v56  ;;  %1594 = vmatpush.bf16.msrb.mxu3 %v1482_v57 }
 0x117   : > { %v616_v1 = vpop.f32.mrf.mxu2  ;;  %v3643_v19 = vpack.c.b16 %v2312_v47, %v2312_v47 }
 0x118   : > { %v3627_v3 = vadd.f32 %v616_v1, %v3459_v58  ;;  %v629_v4 = vpop.f32.mrf.mxu3  ;;  %v1488_v58 = vsel %vm239_vm0, %v1455_v2, 0  ;;  %2354 = vrot.lane.b32.xlu2 %v3611_v59, %s3167_s5  ;;  %v467_v2 = vld [vmem:[#allocation2 + $0x58] sm:$0xff] }
 0x119   : > { %v3632_v5 = vadd.f32 %v629_v4, %v3448_v53  ;;  %v592_v8 = vpop.f32.mrf.mxu0  ;;  %v655_v16 = vpop.f32.mrf.mxu1  ;;  %2336 = vrot.lane.b32.xlu0 %v3643_v19, %s3167_s5 }
 0x11a   : > { %v3640_v18 = vadd.f32 %v655_v16, %v3461_v61  ;;  %v1733_v53 = vpop.permute.xlu1 %1732  ;;  %2656 = vrot.lane.b32.xlu1 %v3549_v6, %s3168_s8 }
 0x11c   : > { %3067 = vmatmul.msk.bf16.vlgmr.msra.gmra.mxu1 %vm235_vm1, %v3637_v17 }
 0x11d   : > { %1620 = vmatpush.bf16.msra.mxu1 %v1488_v58  ;;  %v1737_v43 = vpop.permute.xlu2 %1736 }
 0x11e   : > { %v1756_v63 = vsel %vm1750_vm7, %v1737_v43, %v1739_v45  ;;  %v1755_v60 = vsel %vm1750_vm7, %v3659_v21, %v1737_v43 }
 0x11f   : > { %v618_v23 = vpop.f32.mrf.mxu2 }
 0x120   : > { %v631_v61 = vpop.f32.mrf.mxu3  ;;  %2648 = vrot.lane.b32.xlu2 %v3528_v14, %s3168_s8 }
 0x121   : > { %v642_v27 = vpop.f32.mrf.mxu0  ;;  %v657_v28 = vpop.f32.mrf.mxu1  ;;  %2350 = vrot.lane.b32.xlu0 %v3545_v10, %s3167_s5 }
 0x122   : > { %v3656_v29 = vadd.f32 %v642_v27, %v3465_v0  ;;  %v1731_v0 = vpop.permute.xlu0 %1730  ;;  %v1729_v38 = vpop.permute.xlu1 %1728  ;;  %2662 = vrot.lane.b32.xlu1 %v3575_v35, %s3168_s8 }
 0x123   : > { %v1752_v39 = vsel %vm1750_vm7, %v1729_v38, %v1731_v0  ;;  %v1753_v50 = vsel %vm1750_vm7, %v1731_v0, %v1733_v53 }
 0x124   : > { %3066 = vmatmul.msk.bf16.vlgmr.msra.gmra.mxu0 %vm235_vm1, %v3637_v17  ;;  %3068 = vmatmul.msk.bf16.vlgmr.msra.gmra.mxu2 %vm235_vm1, %v3637_v17  ;;  %v1769_v48 = vsel %vm239_vm0, %v1752_v39, 0  ;;  %v1772_v57 = vsel %vm239_vm0, %v1753_v50, 0 }
 0x125   : > { %3069 = vmatmul.msk.bf16.vlgmr.msra.gmra.mxu3 %vm235_vm1, %v3637_v17  ;;  %1607 = vmatpush.bf16.msra.mxu0 %v1485_v22  ;;  %v1778_v22 = vsel %vm239_vm0, %v1755_v60, 0 }
 0x126   : > { %1646 = vmatpush.bf16.msra.mxu3 %v1494_v37  ;;  %1633 = vmatpush.bf16.msra.mxu2 %v1491_v36 }
 0x127   : > { %v668_v33 = vpop.f32.mrf.mxu2 }
 0x128   : > { %v3675_v40 = vadd.f32 %v668_v33, %v3483_v20  ;;  %v681_v41 = vpop.f32.mrf.mxu3  ;;  %2652 = vrot.lane.b32.xlu2 %v3547_v11, %s3168_s8 }
 0x129   : > { %v3680_v44 = vadd.f32 %v681_v41, %v3472_v12  ;;  %v644_v46 = vpop.f32.mrf.mxu0  ;;  %v707_v13 = vpop.f32.mrf.mxu1  ;;  %2356 = vrot.lane.b32.xlu0 %v3567_v24, %s3167_s5  ;;  %v3765_v41 = vld [vmem:[%s4133_s1 + $0xc] sm:$0xf] }
 0x12a   : > { %v3683_v32 = vadd.f32 %v707_v13, %v3486_v25  ;;  %v1727_v20 = vpop.permute.xlu0 %1726  ;;  %v1754_v25 = vsel %vm1750_vm7, %v1733_v53, %v3659_v21  ;;  %v1781_v53 = vsel %vm239_vm0, %v1756_v63, 0 }
 0x12b   : > { %v1751_v51 = vsel %vm1750_vm7, %v1727_v20, %v1729_v38  ;;  %v1775_v7 = vsel %vm239_vm0, %v1754_v25, 0 }
 0x12c   : > { %3071 = vmatmul.msk.bf16.vlgmr.msrb.gmra.mxu1 %vm235_vm1, %v3637_v17  ;;  %v1766_v62 = vsel %vm239_vm0, %v1751_v51, 0 }
 0x12d   : > { %1821 = vmatpush.bf16.msrb.mxu1 %v1769_v48 }
 0x12f   : > { %v670_v49 = vpop.f32.mrf.mxu2 }
 0x130   : > { %v683_v12 = vpop.f32.mrf.mxu3  ;;  %2650 = vrot.lane.b32.xlu2 %v3569_v31, %s3168_s8 }
 0x131   : > { %v694_v52 = vpop.f32.mrf.mxu0  ;;  %v709_v55 = vpop.f32.mrf.mxu1  ;;  %2644 = vrot.lane.b32.xlu0 %v3609_v9, %s3168_s8 }
 0x132   : > { %v3699_v56 = vadd.f32 %v694_v52, %v3491_v30  ;;  %v1741_v9 = vpop.permute.xlu0 %1740 }
 0x133   : > { %v1757_v15 = vsel %vm1750_vm7, %v1739_v45, %v1741_v9 }
 0x134   : > { %3070 = vmatmul.msk.bf16.vlgmr.msrb.gmra.mxu0 %vm235_vm1, %v3637_v17  ;;  %3072 = vmatmul.msk.bf16.vlgmr.msrb.gmra.mxu2 %vm235_vm1, %v3637_v17 }
 0x135   : > { %3073 = vmatmul.msk.bf16.vlgmr.msrb.gmra.mxu3 %vm235_vm1, %v3637_v17  ;;  %1834 = vmatpush.bf16.msrb.mxu2 %v1772_v57 }
 0x136   : > { %1847 = vmatpush.bf16.msrb.mxu3 %v1775_v7  ;;  %1808 = vmatpush.bf16.msrb.mxu0 %v1766_v62 }
 0x137   : > { %v720_v30 = vpop.f32.mrf.mxu2 }
 0x138   : > { %v3716_v1 = vadd.f32 %v720_v30, %v3506_v42  ;;  %v733_v4 = vpop.f32.mrf.mxu3  ;;  %v1743_v42 = vpop.permute.xlu1 %1742  ;;  %2658 = vrot.lane.b32.xlu2 %v3611_v59, %s3168_s8 }
 0x139   : > { %v748_v47 = vadd.f32 %v733_v4, %v467_v2  ;;  %v696_v8 = vpop.f32.mrf.mxu0  ;;  %v908_v16 = vpop.f32.mrf.mxu1  ;;  %2640 = vrot.lane.b32.xlu0 %v3643_v19, %s3168_s8  ;;  %v1758_v61 = vsel %vm1750_vm7, %v1741_v9, %v1743_v42  ;;  %v1784_v19 = vsel %vm239_vm0, %v1757_v15, 0 }
 0x13a   : > { %v3721_v58 = vadd.f32 %v908_v16, %v3588_v34  ;;  %v1787_v21 = vsel %vm239_vm0, %v1758_v61, 0  ;;  %v1747_v14 = vpop.permute.xlu0 %1746 }
 0x13b   : > { %760 = vst.msk [vmem:[#allocation2 + $0x58] sm:$0xff] %vm183_vm5, %v748_v47 }
 0x13c   : > { %3075 = vmatmul.msk.bf16.vlgmr.msra.gmra.mxu1 %vm235_vm1, %v3637_v17 }
 0x13d   : > { %1873 = vmatpush.bf16.msra.mxu1 %v1781_v53 }
 0x13f   : > { %v722_v23 = vpop.f32.mrf.mxu2 }
 0x140   : > { %v735_v34 = vpop.f32.mrf.mxu3  ;;  %v1749_v6 = vpop.permute.xlu1 %1748 }
 0x141   : > { %v895_v26 = vpop.f32.mrf.mxu0  ;;  %v910_v27 = vpop.f32.mrf.mxu1  ;;  %2654 = vrot.lane.b32.xlu0 %v3545_v10, %s3168_s8  ;;  %v1799_v12 = vsel %vm239_vm0, %v1749_v6, 0 }
 0x142   : > { %v3738_v28 = vadd.f32 %v895_v26, %v3604_v54  ;;  %v1745_v54 = vpop.permute.xlu2 %1744  ;;  %v772_v34 = vld [vmem:[#allocation2 + $0x58] sm:$0xff] }
 0x143   : > { %v1760_v37 = vsel %vm1750_vm7, %v1745_v54, %v1747_v14 }
 0x144   : > { %3074 = vmatmul.msk.bf16.vlgmr.msra.gmra.mxu0 %vm235_vm1, %v3637_v17  ;;  %3076 = vmatmul.msk.bf16.vlgmr.msra.gmra.mxu2 %vm235_vm1, %v3637_v17  ;;  %v1793_v11 = vsel %vm239_vm0, %v1760_v37, 0 }
 0x145   : > { %3077 = vmatmul.msk.bf16.vlgmr.msra.gmra.mxu3 %vm235_vm1, %v3637_v17  ;;  %1860 = vmatpush.bf16.msra.mxu0 %v1778_v22 }
 0x146   : > { %1886 = vmatpush.bf16.msra.mxu2 %v1784_v19  ;;  %1899 = vmatpush.bf16.msra.mxu3 %v1787_v21 }
 0x147   : > { %v921_v36 = vpop.f32.mrf.mxu2 }
 0x148   : > { %v3755_v0 = vadd.f32 %v921_v36, %v3627_v3  ;;  %v934_v38 = vpop.f32.mrf.mxu3  ;;  %v2038_v35 = vpop.permute.xlu1 %2037 }
 0x149   : > { %v3760_v17 = vadd.f32 %v934_v38, %v3632_v5  ;;  %v897_v33 = vpop.f32.mrf.mxu0  ;;  %v960_v39 = vpop.f32.mrf.mxu1  ;;  %v1759_v5 = vsel %vm1750_vm7, %v1743_v42, %v1745_v54  ;;  %2660 = vrot.lane.b32.xlu0 %v3567_v24, %s3168_s8 }
 0x14a   : > { %v3768_v10 = vadd.f32 %v960_v39, %v3640_v18  ;;  %v1761_v18 = vsel %vm1750_vm7, %v1747_v14, %v1749_v6  ;;  %v1790_v20 = vsel %vm239_vm0, %v1759_v5, 0  ;;  %v2040_v49 = vpop.permute.xlu2 %2039  ;;  %v2036_v24 = vpop.permute.xlu0 %2035 }
 0x14b   : > { %v1796_v50 = vsel %vm239_vm0, %v1761_v18, 0 }
 0x14c   : > { %3080 = vmatmul.msk.bf16.vlgmr.msrb.gmra.mxu1 %vm235_vm1, %v3765_v41 }
 0x14d   : > { %1925 = vmatpush.bf16.msrb.mxu1 %v1793_v11 }
 0x14f   : > { %v923_v3 = vpop.f32.mrf.mxu2 }
 0x150   : > { %v936_v46 = vpop.f32.mrf.mxu3  ;;  %v2034_v31 = vpop.permute.xlu1 %2033 }
 0x151   : > { %v947_v13 = vpop.f32.mrf.mxu0  ;;  %v962_v48 = vpop.f32.mrf.mxu1  ;;  %v2057_v25 = vsel %vm2055_vm8, %v2034_v31, %v2036_v24 }
 0x152   : > { %v3780_v45 = vadd.f32 %v947_v13, %v3656_v29  ;;  %v2074_v43 = vsel %vm239_vm0, %v2057_v25, 0  ;;  %v2044_v30 = vpop.permute.xlu2 %2043  ;;  %v2032_v59 = vpop.permute.xlu0 %2031 }
 0x153   : > { %v2056_v4 = vsel %vm2055_vm8, %v2032_v59, %v2034_v31 }
 0x154   : > { %3079 = vmatmul.msk.bf16.vlgmr.msrb.gmra.mxu0 %vm235_vm1, %v3765_v41  ;;  %3081 = vmatmul.msk.bf16.vlgmr.msrb.gmra.mxu2 %vm235_vm1, %v3765_v41  ;;  %v2071_v9 = vsel %vm239_vm0, %v2056_v4, 0 }
 0x155   : > { %3082 = vmatmul.msk.bf16.vlgmr.msrb.gmra.mxu3 %vm235_vm1, %v3765_v41  ;;  %1912 = vmatpush.bf16.msrb.mxu0 %v1790_v20  ;;  %v3856_v20 = vld [vmem:[%s4133_s1 + $0x8] sm:$0xf] }
 0x156   : > { %1951 = vmatpush.bf16.msrb.mxu3 %v1799_v12  ;;  %1938 = vmatpush.bf16.msrb.mxu2 %v1796_v50 }
 0x157   : > { %v973_v29 = vpop.f32.mrf.mxu2 }
 0x158   : > { %v3795_v51 = vadd.f32 %v973_v29, %v3675_v40  ;;  %v986_v52 = vpop.f32.mrf.mxu3  ;;  %v2058_v40 = vsel %vm2055_vm8, %v2036_v24, %v2038_v35  ;;  %v2048_v36 = vpop.permute.xlu1 %2047 }
 0x159   : > { %v3798_v55 = vadd.f32 %v986_v52, %v3680_v44  ;;  %v949_v57 = vpop.f32.mrf.mxu0  ;;  %v1012_v7 = vpop.f32.mrf.mxu1  ;;  %v2059_v44 = vsel %vm2055_vm8, %v2038_v35, %v2040_v49  ;;  %v2077_v16 = vsel %vm239_vm0, %v2058_v40, 0 }
 0x15a   : > { %v3801_v62 = vadd.f32 %v1012_v7, %v3683_v32  ;;  %v2080_v53 = vsel %vm239_vm0, %v2059_v44, 0  ;;  %v2042_v42 = vpop.permute.xlu2 %2041  ;;  %v2046_v14 = vpop.permute.xlu0 %2045 }
 0x15b   : > { %v2061_v23 = vsel %vm2055_vm8, %v2042_v42, %v2044_v30  ;;  %v2062_v54 = vsel %vm2055_vm8, %v2044_v30, %v2046_v14 }
 0x15c   : > { %3084 = vmatmul.msk.bf16.vlgmr.msra.gmra.mxu1 %vm235_vm1, %v3765_v41  ;;  %v2086_v19 = vsel %vm239_vm0, %v2061_v23, 0  ;;  %v2089_v11 = vsel %vm239_vm0, %v2062_v54, 0 }
 0x15d   : > { %2126 = vmatpush.bf16.msra.mxu1 %v2074_v43 }
 0x15f   : > { %v975_v63 = vpop.f32.mrf.mxu2 }
 0x160   : > { %v988_v2 = vpop.f32.mrf.mxu3  ;;  %v2054_v50 = vpop.permute.xlu1 %2053 }
 0x161   : > { %v999_v47 = vpop.f32.mrf.mxu0  ;;  %v1014_v8 = vpop.f32.mrf.mxu1  ;;  %v2104_v59 = vsel %vm239_vm0, %v2054_v50, 0 }
 0x162   : > { %v3810_v32 = vadd.f32 %v999_v47, %v3699_v56  ;;  %v2050_v46 = vpop.permute.xlu2 %2049 }
 0x163   : > { %v2064_v24 = vsel %vm2055_vm8, %v2048_v36, %v2050_v46 }
 0x164   : > { %3083 = vmatmul.msk.bf16.vlgmr.msra.gmra.mxu0 %vm235_vm1, %v3765_v41  ;;  %3085 = vmatmul.msk.bf16.vlgmr.msra.gmra.mxu2 %vm235_vm1, %v3765_v41  ;;  %v2095_v57 = vsel %vm239_vm0, %v2064_v24, 0 }
 0x165   : > { %3086 = vmatmul.msk.bf16.vlgmr.msra.gmra.mxu3 %vm235_vm1, %v3765_v41  ;;  %2139 = vmatpush.bf16.msra.mxu2 %v2077_v16 }
 0x166   : > { %2152 = vmatpush.bf16.msra.mxu3 %v2080_v53  ;;  %2113 = vmatpush.bf16.msra.mxu0 %v2071_v9 }
 0x167   : > { %v1025_v56 = vpop.f32.mrf.mxu2 }
 0x168   : > { %v3823_v60 = vadd.f32 %v1025_v56, %v3716_v1  ;;  %v1038_v15 = vpop.f32.mrf.mxu3  ;;  %v2060_v1 = vsel %vm2055_vm8, %v2040_v49, %v2042_v42  ;;  %v2052_v49 = vpop.permute.xlu0 %2051 }
 0x169   : > { %v1053_v61 = vadd.f32 %v1038_v15, %v772_v34  ;;  %v1001_v26 = vpop.f32.mrf.mxu0  ;;  %v1213_v27 = vpop.f32.mrf.mxu1  ;;  %v2083_v39 = vsel %vm239_vm0, %v2060_v1, 0  ;;  %v2066_v29 = vsel %vm2055_vm8, %v2052_v49, %v2054_v50 }
 0x16a   : > { %v3826_v22 = vadd.f32 %v1213_v27, %v3721_v58  ;;  %v2063_v58 = vsel %vm2055_vm8, %v2046_v14, %v2048_v36  ;;  %v2345_v7 = vpop.permute.xlu2 %2344  ;;  %v2343_v43 = vpop.permute.xlu1 %2342  ;;  %v2101_v30 = vsel %vm239_vm0, %v2066_v29, 0 }
 0x16b   : > { %1065 = vst.msk [vmem:[#allocation2 + $0x58] sm:$0xff] %vm183_vm5, %v1053_v61  ;;  %v2092_v35 = vsel %vm239_vm0, %v2063_v58, 0  ;;  %v2364_v23 = vsel %vm2360_vm9, %v2343_v43, %v2345_v7 }
 0x16c   : > { %3088 = vmatmul.msk.bf16.vlgmr.msrb.gmra.mxu1 %vm235_vm1, %v3765_v41  ;;  %v2385_v27 = vsel %vm239_vm0, %v2364_v23, 0 }
 0x16d   : > { %2178 = vmatpush.bf16.msrb.mxu1 %v2086_v19 }
 0x16f   : > { %v1027_v21 = vpop.f32.mrf.mxu2 }
 0x170   : > { %v1040_v6 = vpop.f32.mrf.mxu3  ;;  %v2341_v8 = vpop.permute.xlu0 %2340 }
 0x171   : > { %v1200_v37 = vpop.f32.mrf.mxu0  ;;  %v1215_v38 = vpop.f32.mrf.mxu1 }
 0x172   : > { %v3836_v33 = vadd.f32 %v1200_v37, %v3738_v28  ;;  %v2339_v16 = vpop.permute.xlu1 %2338  ;;  %v2349_v9 = vpop.permute.xlu2 %2348  ;;  %v1077_v54 = vld [vmem:[#allocation2 + $0x58] sm:$0xff] }
 0x173   : > { %v2362_v53 = vsel %vm2360_vm9, %v2339_v16, %v2341_v8 }
 0x174   : > { %3087 = vmatmul.msk.bf16.vlgmr.msrb.gmra.mxu0 %vm235_vm1, %v3765_v41  ;;  %3089 = vmatmul.msk.bf16.vlgmr.msrb.gmra.mxu2 %vm235_vm1, %v3765_v41 }
 0x175   : > { %3090 = vmatmul.msk.bf16.vlgmr.msrb.gmra.mxu3 %vm235_vm1, %v3765_v41  ;;  %2165 = vmatpush.bf16.msrb.mxu0 %v2083_v39 }
 0x176   : > { %2191 = vmatpush.bf16.msrb.mxu2 %v2089_v11  ;;  %2204 = vmatpush.bf16.msrb.mxu3 %v2092_v35 }
 0x177   : > { %v1226_v28 = vpop.f32.mrf.mxu2 }
 0x178   : > { %v3848_v3 = vadd.f32 %v1226_v28, %v3755_v0  ;;  %v1239_v5 = vpop.f32.mrf.mxu3  ;;  %v2065_v0 = vsel %vm2055_vm8, %v2050_v46, %v2052_v49 }
 0x179   : > { %v3851_v18 = vadd.f32 %v1239_v5, %v3760_v17  ;;  %v1202_v13 = vpop.f32.mrf.mxu0  ;;  %v1265_v48 = vpop.f32.mrf.mxu1  ;;  %v2098_v17 = vsel %vm239_vm0, %v2065_v0, 0 }
 0x17a   : > { %v3859_v41 = vadd.f32 %v1265_v48, %v3768_v10  ;;  %v2353_v28 = vpop.permute.xlu1 %2352 }
 0x17c   : > { %3093 = vmatmul.msk.bf16.vlgmr.msra.gmra.mxu1 %vm235_vm1, %v3856_v20 }
 0x17d   : > { %2230 = vmatpush.bf16.msra.mxu1 %v2098_v17 }
 0x17f   : > { %v1228_v12 = vpop.f32.mrf.mxu2 }
 0x180   : > { %v1241_v31 = vpop.f32.mrf.mxu3 }
 0x181   : > { %v1252_v25 = vpop.f32.mrf.mxu0  ;;  %v1267_v52 = vpop.f32.mrf.mxu1 }
 0x182   : > { %v3868_v10 = vadd.f32 %v1252_v25, %v3780_v45  ;;  %v2359_v31 = vpop.permute.xlu1 %2358 }
 0x184   : > { %3092 = vmatmul.msk.bf16.vlgmr.msra.gmra.mxu0 %vm235_vm1, %v3856_v20  ;;  %3094 = vmatmul.msk.bf16.vlgmr.msra.gmra.mxu2 %vm235_vm1, %v3856_v20 }
 0x185   : > { %3095 = vmatmul.msk.bf16.vlgmr.msra.gmra.mxu3 %vm235_vm1, %v3856_v20  ;;  %2217 = vmatpush.bf16.msra.mxu0 %v2095_v57 }
 0x186   : > { %2256 = vmatpush.bf16.msra.mxu3 %v2104_v59  ;;  %2243 = vmatpush.bf16.msra.mxu2 %v2101_v30 }
 0x187   : > { %v1278_v45 = vpop.f32.mrf.mxu2 }
 0x188   : > { %v3880_v63 = vadd.f32 %v1278_v45, %v3795_v51  ;;  %v1291_v40 = vpop.f32.mrf.mxu3  ;;  %v2379_v51 = vsel %vm239_vm0, %v2362_v53, 0 }
 0x189   : > { %v3883_v2 = vadd.f32 %v1291_v40, %v3798_v55  ;;  %v1254_v44 = vpop.f32.mrf.mxu0  ;;  %v1317_v4 = vpop.f32.mrf.mxu1  ;;  %v2363_v55 = vsel %vm2360_vm9, %v2341_v8, %v2343_v43 }
 0x18a   : > { %v3886_v47 = vadd.f32 %v1317_v4, %v3801_v62  ;;  %v2382_v61 = vsel %vm239_vm0, %v2363_v55, 0 }
 0x18b   : > { %v2337_v26 = vpop.permute.xlu0 %2336 }
 0x18c   : > { %3097 = vmatmul.msk.bf16.vlgmr.msrb.gmra.mxu1 %vm235_vm1, %v3856_v20  ;;  %v2361_v19 = vsel %vm2360_vm9, %v2337_v26, %v2339_v16 }
 0x18d   : > { %2431 = vmatpush.bf16.msrb.mxu1 %v2379_v51  ;;  %v2376_v21 = vsel %vm239_vm0, %v2361_v19, 0 }
 0x18f   : > { %v1280_v42 = vpop.f32.mrf.mxu2 }
 0x190   : > { %v1293_v56 = vpop.f32.mrf.mxu3  ;;  %v2409_v42 = vsel %vm239_vm0, %v2359_v31, 0 }
 0x191   : > { %v1304_v34 = vpop.f32.mrf.mxu0  ;;  %v1319_v62 = vpop.f32.mrf.mxu1 }
 0x192   : > { %v3895_v15 = vadd.f32 %v1304_v34, %v3810_v32  ;;  %v2347_v32 = vpop.permute.xlu2 %2346 }
 0x193   : > { %v2366_v14 = vsel %vm2360_vm9, %v2347_v32, %v2349_v9  ;;  %v2351_v35 = vpop.permute.xlu0 %2350  ;;  %v2365_v5 = vsel %vm2360_vm9, %v2345_v7, %v2347_v32 }
 0x194   : > { %3096 = vmatmul.msk.bf16.vlgmr.msrb.gmra.mxu0 %vm235_vm1, %v3856_v20  ;;  %3098 = vmatmul.msk.bf16.vlgmr.msrb.gmra.mxu2 %vm235_vm1, %v3856_v20  ;;  %v2391_v11 = vsel %vm239_vm0, %v2366_v14, 0  ;;  %v2367_v13 = vsel %vm2360_vm9, %v2349_v9, %v2351_v35  ;;  %v2368_v48 = vsel %vm2360_vm9, %v2351_v35, %v2353_v28  ;;  %v2388_v0 = vsel %vm239_vm0, %v2365_v5, 0 }
 0x195   : > { %3099 = vmatmul.msk.bf16.vlgmr.msrb.gmra.mxu3 %vm235_vm1, %v3856_v20  ;;  %2444 = vmatpush.bf16.msrb.mxu2 %v2382_v61  ;;  %v2394_v17 = vsel %vm239_vm0, %v2367_v13, 0  ;;  %v2397_v12 = vsel %vm239_vm0, %v2368_v48, 0 }
 0x196   : > { %2457 = vmatpush.bf16.msrb.mxu3 %v2385_v27  ;;  %2418 = vmatpush.bf16.msrb.mxu0 %v2376_v21 }
 0x197   : > { %v1330_v1 = vpop.f32.mrf.mxu2 }
 0x198   : > { %v3909_v6 = vadd.f32 %v1330_v1, %v3823_v60  ;;  %v1343_v36 = vpop.f32.mrf.mxu3 }
 0x199   : > { %v1358_v37 = vadd.f32 %v1343_v36, %v1077_v54  ;;  %v1306_v38 = vpop.f32.mrf.mxu0  ;;  %v1518_v58 = vpop.f32.mrf.mxu1 }
 0x19a   : > { %v3912_v39 = vadd.f32 %v1518_v58, %v3826_v22 }
 0x19b   : > { %1370 = vst.msk [vmem:[#allocation2 + $0x58] sm:$0xff] %vm183_vm5, %v1358_v37  ;;  %v2357_v24 = vpop.permute.xlu0 %2356 }
 0x19c   : > { %3101 = vmatmul.msk.bf16.vlgmr.msra.gmra.mxu1 %vm235_vm1, %v3856_v20  ;;  %v2371_v4 = vsel %vm2360_vm9, %v2357_v24, %v2359_v31 }
 0x19d   : > { %2483 = vmatpush.bf16.msra.mxu1 %v2391_v11  ;;  %v2406_v51 = vsel %vm239_vm0, %v2371_v4, 0 }
 0x19f   : > { %v1332_v60 = vpop.f32.mrf.mxu2 }
 0x1a0   : > { %v1345_v46 = vpop.f32.mrf.mxu3 }
 0x1a1   : > { %v1505_v22 = vpop.f32.mrf.mxu0  ;;  %v1520_v49 = vpop.f32.mrf.mxu1 }
 0x1a2   : > { %v3922_v50 = vadd.f32 %v1505_v22, %v3836_v33  ;;  %v2355_v33 = vpop.permute.xlu2 %2354  ;;  %v1382_v46 = vld [vmem:[#allocation2 + $0x58] sm:$0xff] }
 0x1a3   : > { %v2370_v25 = vsel %vm2360_vm9, %v2355_v33, %v2357_v24 }
 0x1a4   : > { %3100 = vmatmul.msk.bf16.vlgmr.msra.gmra.mxu0 %vm235_vm1, %v3856_v20  ;;  %3102 = vmatmul.msk.bf16.vlgmr.msra.gmra.mxu2 %vm235_vm1, %v3856_v20  ;;  %v2403_v45 = vsel %vm239_vm0, %v2370_v25, 0 }
 0x1a5   : > { %3103 = vmatmul.msk.bf16.vlgmr.msra.gmra.mxu3 %vm235_vm1, %v3856_v20  ;;  %2470 = vmatpush.bf16.msra.mxu0 %v2388_v0  ;;  %v3943_v20 = vld [vmem:[%s4133_s1 + $0x4] sm:$0xf]  ;;  %v3169_v0 = vmov 0  }
 0x1a6   : > { %2496 = vmatpush.bf16.msra.mxu2 %v2394_v17  ;;  %2509 = vmatpush.bf16.msra.mxu3 %v2397_v12  ;;  %v2907_v17 = vld [vmem:[%s4134_s2] sm:$0xff] }
 0x1a7   : > { %v1531_v29 = vpop.f32.mrf.mxu2  ;;  %3151 = vset.pattern.permute.xlu0 %v3169_v0 }
 0x1a8   : > { %v3935_v52 = vadd.f32 %v1531_v29, %v3848_v3  ;;  %v1544_v57 = vpop.f32.mrf.mxu3  ;;  %v2647_v3 = vpop.permute.xlu1 %2646  ;;  %2910 = vperm.xlu0 %3151, %v2907_v17  }
 0x1a9   : > { %v3938_v7 = vadd.f32 %v1544_v57, %v3851_v18  ;;  %v1507_v43 = vpop.f32.mrf.mxu0  ;;  %v1570_v30 = vpop.f32.mrf.mxu1  ;;  %v2369_v18 = vsel %vm2360_vm9, %v2353_v28, %v2355_v33 }
 0x1aa   : > { %v3946_v59 = vadd.f32 %v1570_v30, %v3859_v41  ;;  %v2400_v41 = vsel %vm239_vm0, %v2369_v18, 0  ;;  %v3957_v9 = vpop.permute.xlu2 %2648 }
 0x1ac   : > { %3106 = vmatmul.msk.bf16.vlgmr.msrb.gmra.mxu1 %vm235_vm1, %v3943_v20 }
 0x1ad   : > { %2535 = vmatpush.bf16.msrb.mxu1 %v2403_v45 }
 0x1af   : > { %v1533_v40 = vpop.f32.mrf.mxu2 }
 0x1b0   : > { %v1546_v44 = vpop.f32.mrf.mxu3  ;;  %v2643_v55 = vpop.permute.xlu1 %2642 }
 0x1b1   : > { %v1557_v8 = vpop.f32.mrf.mxu0  ;;  %v1572_v16 = vpop.f32.mrf.mxu1 }
 0x1b2   : > { %v3954_v53 = vadd.f32 %v1557_v8, %v3868_v10  ;;  %v2645_v10 = vpop.permute.xlu0 %2644  ;;  %v2653_v32 = vpop.permute.xlu2 %2652 }
 0x1b3   : > { %v2666_v23 = vsel %vm2664_vm10, %v2643_v55, %v2645_v10 }
 0x1b4   : > { %3105 = vmatmul.msk.bf16.vlgmr.msrb.gmra.mxu0 %vm235_vm1, %v3943_v20  ;;  %3107 = vmatmul.msk.bf16.vlgmr.msrb.gmra.mxu2 %vm235_vm1, %v3943_v20  ;;  %v2683_v21 = vsel %vm239_vm0, %v2666_v23, 0 }
 0x1b5   : > { %3108 = vmatmul.msk.bf16.vlgmr.msrb.gmra.mxu3 %vm235_vm1, %v3943_v20  ;;  %2522 = vmatpush.bf16.msrb.mxu0 %v2400_v41 }
 0x1b6   : > { %2561 = vmatpush.bf16.msrb.mxu3 %v2409_v42  ;;  %2548 = vmatpush.bf16.msrb.mxu2 %v2406_v51 }
 0x1b7   : > { %v1583_v56 = vpop.f32.mrf.mxu2 }
 0x1b8   : > { %v3969_v34 = vadd.f32 %v1583_v56, %v3880_v63  ;;  %v1596_v62 = vpop.f32.mrf.mxu3  ;;  %v2667_v63 = vsel %vm2664_vm10, %v2645_v10, %v2647_v3  ;;  %v2657_v31 = vpop.permute.xlu1 %2656  ;;  %v2603_v10 = vld [vmem:[%s4133_s1] sm:$0xf] }
 0x1b9   : > { %v3972_v61 = vadd.f32 %v1596_v62, %v3883_v2  ;;  %v1559_v26 = vpop.f32.mrf.mxu0  ;;  %v1622_v27 = vpop.f32.mrf.mxu1  ;;  %v2668_v2 = vsel %vm2664_vm10, %v2647_v3, %v3957_v9  ;;  %v2686_v58 = vsel %vm239_vm0, %v2667_v63, 0 }
 0x1ba   : > { %v3975_v19 = vadd.f32 %v1622_v27, %v3886_v47  ;;  %v2641_v1 = vpop.permute.xlu0 %2640  ;;  %v2689_v11 = vsel %vm239_vm0, %v2668_v2, 0  ;;  %v2651_v28 = vpop.permute.xlu2 %2650 }
 0x1bb   : > { %v2665_v36 = vsel %vm2664_vm10, %v2641_v1, %v2643_v55  ;;  %v2670_v60 = vsel %vm2664_vm10, %v2651_v28, %v2653_v32  ;;  %v2669_v29 = vsel %vm2664_vm10, %v3957_v9, %v2651_v28 }
 0x1bc   : > { %3110 = vmatmul.msk.bf16.vlgmr.msra.gmra.mxu1 %vm235_vm1, %v3943_v20  ;;  %v2680_v35 = vsel %vm239_vm0, %v2665_v36, 0  ;;  %v2695_v24 = vsel %vm239_vm0, %v2670_v60, 0  ;;  %v2692_v3 = vsel %vm239_vm0, %v2669_v29, 0 }
 0x1bd   : > { %2735 = vmatpush.bf16.msra.mxu1 %v2683_v21 }
 0x1bf   : > { %v1585_v14 = vpop.f32.mrf.mxu2 }
 0x1c0   : > { %v1598_v54 = vpop.f32.mrf.mxu3  ;;  %v2663_v56 = vpop.permute.xlu1 %2662 }
 0x1c1   : > { %v1609_v37 = vpop.f32.mrf.mxu0  ;;  %v1624_v47 = vpop.f32.mrf.mxu1  ;;  %v2713_v1 = vsel %vm239_vm0, %v2663_v56, 0 }
 0x1c2   : > { %v3985_v38 = vadd.f32 %v1609_v37, %v3895_v15  ;;  %v2659_v4 = vpop.permute.xlu2 %2658 }
 0x1c4   : > { %3109 = vmatmul.msk.bf16.vlgmr.msra.gmra.mxu0 %vm235_vm1, %v3943_v20  ;;  %3111 = vmatmul.msk.bf16.vlgmr.msra.gmra.mxu2 %vm235_vm1, %v3943_v20 }
 0x1c5   : > { %3112 = vmatmul.msk.bf16.vlgmr.msra.gmra.mxu3 %vm235_vm1, %v3943_v20  ;;  %2748 = vmatpush.bf16.msra.mxu2 %v2686_v58 }
 0x1c6   : > { %2761 = vmatpush.bf16.msra.mxu3 %v2689_v11  ;;  %2722 = vmatpush.bf16.msra.mxu0 %v2680_v35 }
 0x1c7   : > { %v1635_v15 = vpop.f32.mrf.mxu2 }
 0x1c8   : > { %v3998_v5 = vadd.f32 %v1635_v15, %v3909_v6  ;;  %v1648_v13 = vpop.f32.mrf.mxu3  ;;  %v2655_v6 = vpop.permute.xlu0 %2654 }
 0x1c9   : > { %v1663_v48 = vadd.f32 %v1648_v13, %v1382_v46  ;;  %v1611_v22 = vpop.f32.mrf.mxu0  ;;  %v1823_v49 = vpop.f32.mrf.mxu1  ;;  %v2671_v57 = vsel %vm2664_vm10, %v2653_v32, %v2655_v6 }
 0x1ca   : > { %v4004_v12 = vadd.f32 %v1823_v49, %v3912_v39  ;;  %v2672_v39 = vsel %vm2664_vm10, %v2655_v6, %v2657_v31  ;;  %v2698_v40 = vsel %vm239_vm0, %v2671_v57, 0 }
 0x1cb   : > { %1675 = vst.msk [vmem:[#allocation2 + $0x58] sm:$0xff] %vm183_vm5, %v1663_v48  ;;  %v2701_v18 = vsel %vm239_vm0, %v2672_v39, 0 }
 0x1cc   : > { %3114 = vmatmul.msk.bf16.vlgmr.msrb.gmra.mxu1 %vm235_vm1, %v3943_v20 }
 0x1cd   : > { %2787 = vmatpush.bf16.msrb.mxu1 %v2695_v24 }
 0x1cf   : > { %v1637_v33 = vpop.f32.mrf.mxu2 }
 0x1d0   : > { %v1650_v25 = vpop.f32.mrf.mxu3  ;;  %v2661_v44 = vpop.permute.xlu0 %2660 }
 0x1d1   : > { %v1810_v43 = vpop.f32.mrf.mxu0  ;;  %v1825_v30 = vpop.f32.mrf.mxu1  ;;  %v2674_v8 = vsel %vm2664_vm10, %v2659_v4, %v2661_v44 }
 0x1d2   : > { %v4015_v45 = vadd.f32 %v1810_v43, %v3922_v50  ;;  %v2707_v55 = vsel %vm239_vm0, %v2674_v8, 0  ;;  %v1687_v15 = vld [vmem:[#allocation2 + $0x58] sm:$0xff] }
 0x1d4   : > { %3113 = vmatmul.msk.bf16.vlgmr.msrb.gmra.mxu0 %vm235_vm1, %v3943_v20  ;;  %3115 = vmatmul.msk.bf16.vlgmr.msrb.gmra.mxu2 %vm235_vm1, %v3943_v20 }
 0x1d5   : > { %3116 = vmatmul.msk.bf16.vlgmr.msrb.gmra.mxu3 %vm235_vm1, %v3943_v20  ;;  %2774 = vmatpush.bf16.msrb.mxu0 %v2692_v3 }
 0x1d6   : > { %2800 = vmatpush.bf16.msrb.mxu2 %v2698_v40  ;;  %2813 = vmatpush.bf16.msrb.mxu3 %v2701_v18 }
 0x1d7   : > { %v1836_v50 = vpop.f32.mrf.mxu2 }
 0x1d8   : > { %v1959_v16 = vadd.f32 %v1836_v50, %v3935_v52  ;;  %v1849_v41 = vpop.f32.mrf.mxu3  ;;  %v2673_v52 = vsel %vm2664_vm10, %v2657_v31, %v2659_v4 }
 0x1d9   : > { %v1960_v9 = vadd.f32 %v1849_v41, %v3938_v7  ;;  %v1812_v51 = vpop.f32.mrf.mxu0  ;;  %v1875_v42 = vpop.f32.mrf.mxu1  ;;  %v2675_v7 = vsel %vm2664_vm10, %v2661_v44, %v2663_v56  ;;  %v2704_v32 = vsel %vm239_vm0, %v2673_v52, 0 }
 0x1da   : > { %v1962_v20 = vadd.f32 %v1875_v42, %v3946_v59  ;;  %v2710_v59 = vsel %vm239_vm0, %v2675_v7, 0 }
 0x1dc   : > { %3118 = vmatmul.msk.bf16.vlgmr.msra.gmra.mxu1 %vm235_vm1, %v2603_v10 }
 0x1dd   : > { %2839 = vmatpush.bf16.msra.mxu1 %v2707_v55 }
 0x1df   : > { %v1838_v23 = vpop.f32.mrf.mxu2 }
 0x1e0   : > { %v1851_v62 = vpop.f32.mrf.mxu3 }
 0x1e1   : > { %v1862_v26 = vpop.f32.mrf.mxu0  ;;  %v1877_v27 = vpop.f32.mrf.mxu1 }
 0x1e2   : > { %v1961_v21 = vadd.f32 %v1862_v26, %v3954_v53 }
 0x1e4   : > { %3117 = vmatmul.msk.bf16.vlgmr.msra.gmra.mxu0 %vm235_vm1, %v2603_v10  ;;  %3119 = vmatmul.msk.bf16.vlgmr.msra.gmra.mxu2 %vm235_vm1, %v2603_v10 }
 0x1e5   : > { %3120 = vmatmul.msk.bf16.vlgmr.msra.gmra.mxu3 %vm235_vm1, %v2603_v10  ;;  %2826 = vmatpush.bf16.msra.mxu0 %v2704_v32 }
 0x1e6   : > { %2865 = vmatpush.bf16.msra.mxu3 %v2713_v1  ;;  %2852 = vmatpush.bf16.msra.mxu2 %v2710_v59 }
 0x1e7   : > { %v1888_v14 = vpop.f32.mrf.mxu2 }
 0x1e8   : > { %v1963_v63 = vadd.f32 %v1888_v14, %v3969_v34  ;;  %v1901_v54 = vpop.f32.mrf.mxu3 }
 0x1e9   : > { %v1964_v53 = vadd.f32 %v1901_v54, %v3972_v61  ;;  %v1864_v2 = vpop.f32.mrf.mxu0  ;;  %v1927_v36 = vpop.f32.mrf.mxu1 }
 0x1ea   : > { %v1966_v37 = vadd.f32 %v1927_v36, %v3975_v19 }
 0x1ec   : > { %3122 = vmatmul.msk.bf16.vlgmr.msrb.gmra.mxu1 %vm235_vm1, %v2603_v10 }
 0x1ef   : > { %v1890_v47 = vpop.f32.mrf.mxu2 }
 0x1f0   : > { %v1903_v58 = vpop.f32.mrf.mxu3 }
 0x1f1   : > { %v1914_v11 = vpop.f32.mrf.mxu0  ;;  %v1929_v35 = vpop.f32.mrf.mxu1 }
 0x1f2   : > { %v1965_v28 = vadd.f32 %v1914_v11, %v3985_v38 }
 0x1f4   : > { %3121 = vmatmul.msk.bf16.vlgmr.msrb.gmra.mxu0 %vm235_vm1, %v2603_v10  ;;  %3123 = vmatmul.msk.bf16.vlgmr.msrb.gmra.mxu2 %vm235_vm1, %v2603_v10 }
 0x1f5   : > { %3124 = vmatmul.msk.bf16.vlgmr.msrb.gmra.mxu3 %vm235_vm1, %v2603_v10 }
 0x1f7   : > { %v1940_v34 = vpop.f32.mrf.mxu2 }
 0x1f8   : > { %v1967_v61 = vadd.f32 %v1940_v34, %v3998_v5  ;;  %v1953_v60 = vpop.f32.mrf.mxu3 }
 0x1f9   : > { %v1968_v19 = vadd.f32 %v1953_v60, %v1687_v15  ;;  %v1916_v46 = vpop.f32.mrf.mxu0  ;;  %v2128_v13 = vpop.f32.mrf.mxu1 }
 0x1fa   : > { %v4054_v48 = vadd.f32 %v2128_v13, %v4004_v12 }
 0x1fb   : > { %1980 = vst.msk [vmem:[#allocation2 + $0x58] sm:$0xff] %vm183_vm5, %v1968_v19 }
 0x1fc   : > { %3126 = vmatmul.msk.bf16.vlgmr.msra.gmra.mxu1 %vm235_vm1, %v2603_v10 }
 0x1ff   : > { %v1942_v38 = vpop.f32.mrf.mxu2 }
 0x200   : > { %v1955_v22 = vpop.f32.mrf.mxu3 }
 0x201   : > { %v2115_v49 = vpop.f32.mrf.mxu0  ;;  %v2130_v0 = vpop.f32.mrf.mxu1 }
 0x202   : > { %v4059_v17 = vadd.f32 %v2115_v49, %v4015_v45 }
 0x204   : > { %3125 = vmatmul.msk.bf16.vlgmr.msra.gmra.mxu0 %vm235_vm1, %v2603_v10  ;;  %3127 = vmatmul.msk.bf16.vlgmr.msra.gmra.mxu2 %vm235_vm1, %v2603_v10 }
 0x205   : > { %3128 = vmatmul.msk.bf16.vlgmr.msra.gmra.mxu3 %vm235_vm1, %v2603_v10 }
 0x207   : > { %v2141_v5 = vpop.f32.mrf.mxu2 }
 0x208   : > { %v4064_v12 = vadd.f32 %v2141_v5, %v1959_v16  ;;  %v2154_v24 = vpop.f32.mrf.mxu3 }
 0x209   : > { %v4066_v6 = vadd.f32 %v2154_v24, %v1960_v9  ;;  %v2117_v31 = vpop.f32.mrf.mxu0  ;;  %v2180_v33 = vpop.f32.mrf.mxu1 }
 0x20a   : > { %v4068_v29 = vadd.f32 %v2180_v33, %v1962_v20  ;;  %v1992_v20 = vld [vmem:[#allocation2 + $0x58] sm:$0xff] }
 0x20f   : > { %v2143_v25 = vpop.f32.mrf.mxu2 }
 0x210   : > { %v2156_v57 = vpop.f32.mrf.mxu3 }
 0x211   : > { %v2167_v39 = vpop.f32.mrf.mxu0  ;;  %v2182_v43 = vpop.f32.mrf.mxu1 }
 0x212   : > { %v4070_v30 = vadd.f32 %v2167_v39, %v1961_v21 }
 0x217   : > { %v2193_v45 = vpop.f32.mrf.mxu2 }
 0x218   : > { %v4072_v3 = vadd.f32 %v2193_v45, %v1963_v63  ;;  %v2206_v40 = vpop.f32.mrf.mxu3 }
 0x219   : > { %v4074_v18 = vadd.f32 %v2206_v40, %v1964_v53  ;;  %v2169_v44 = vpop.f32.mrf.mxu0  ;;  %v2232_v4 = vpop.f32.mrf.mxu1 }
 0x21a   : > { %v4076_v50 = vadd.f32 %v2232_v4, %v1966_v37  ;;  %v4089_v49 = vpop.permute.xlu0 %2910 }
 0x21f   : > { %v2195_v8 = vpop.f32.mrf.mxu2 }
 0x220   : > { %v2208_v16 = vpop.f32.mrf.mxu3 }
 0x221   : > { %v2219_v41 = vpop.f32.mrf.mxu0  ;;  %v2234_v9 = vpop.f32.mrf.mxu1 }
 0x222   : > { %v4078_v51 = vadd.f32 %v2219_v41, %v1965_v28 }
 0x227   : > { %v2245_v42 = vpop.f32.mrf.mxu2 }
 0x228   : > { %v4080_v10 = vadd.f32 %v2245_v42, %v1967_v61  ;;  %v2258_v55 = vpop.f32.mrf.mxu3 }
 0x229   : > { %v2273_v56 = vadd.f32 %v2258_v55, %v1992_v20  ;;  %v2221_v23 = vpop.f32.mrf.mxu0  ;;  %v2433_v52 = vpop.f32.mrf.mxu1 }
 0x22a   : > { %v2568_v61 = vadd.f32 %v2433_v52, %v4054_v48 }
 0x22b   : > { %2285 = vst.msk [vmem:[#allocation2 + $0x58] sm:$0xff] %vm183_vm5, %v2273_v56 }
 0x22f   : > { %v2247_v62 = vpop.f32.mrf.mxu2 }
 0x230   : > { %v2260_v7 = vpop.f32.mrf.mxu3 }
 0x231   : > { %v2420_v26 = vpop.f32.mrf.mxu0  ;;  %v2435_v27 = vpop.f32.mrf.mxu1 }
 0x232   : > { %v2297_v15 = vld [vmem:[#allocation2 + $0x58] sm:$0xff]  ;;  %v2567_v0 = vadd.f32 %v2420_v26, %v4059_v17 }
 0x237   : > { %v2446_v21 = vpop.f32.mrf.mxu2 }
 0x238   : > { %v2459_v32 = vpop.f32.mrf.mxu3  ;;  %v2569_v57 = vadd.f32 %v2446_v21, %v4064_v12 }
 0x239   : > { %v2422_v59 = vpop.f32.mrf.mxu0  ;;  %v2485_v1 = vpop.f32.mrf.mxu1  ;;  %v2570_v45 = vadd.f32 %v2459_v32, %v4066_v6 }
 0x23a   : > { %v2572_v40 = vadd.f32 %v2485_v1, %v4068_v29 }
 0x23f   : > { %v2448_v14 = vpop.f32.mrf.mxu2 }
 0x240   : > { %v2461_v63 = vpop.f32.mrf.mxu3 }
 0x241   : > { %v2472_v54 = vpop.f32.mrf.mxu0  ;;  %v2487_v53 = vpop.f32.mrf.mxu1 }
 0x242   : > { %v2571_v52 = vadd.f32 %v2472_v54, %v4070_v30 }
 0x247   : > { %v2498_v2 = vpop.f32.mrf.mxu2 }
 0x248   : > { %v2511_v36 = vpop.f32.mrf.mxu3  ;;  %v2573_v32 = vadd.f32 %v2498_v2, %v4072_v3 }
 0x249   : > { %v2474_v37 = vpop.f32.mrf.mxu0  ;;  %v2537_v47 = vpop.f32.mrf.mxu1  ;;  %v2574_v14 = vadd.f32 %v2511_v36, %v4074_v18 }
 0x24a   : > { %v2576_v53 = vadd.f32 %v2537_v47, %v4076_v50 }
 0x24f   : > { %v2500_v58 = vpop.f32.mrf.mxu2 }
 0x250   : > { %v2513_v11 = vpop.f32.mrf.mxu3 }
 0x251   : > { %v4083_v35 = vpop.f32.mrf.mxu0  ;;  %v2539_v28 = vpop.f32.mrf.mxu1 }
 0x252   : > { %v2575_v50 = vadd.f32 %v4083_v35, %v4078_v51 }
 0x257   : > { %v4085_v34 = vpop.f32.mrf.mxu2 }
 0x258   : > { %v2563_v60 = vpop.f32.mrf.mxu3 }
 0x259   : > { %v2578_v19 = vadd.f32 %v2563_v60, %v2297_v15  ;;  %v2526_v46 = vpop.f32.mrf.mxu0  ;;  %v2737_v13 = vpop.f32.mrf.mxu1 }
 0x25a   : > { %v2872_v38 = vadd.f32 %v2737_v13, %v2568_v61 }
 0x25b   : > { %2590 = vst.msk [vmem:[#allocation2 + $0x58] sm:$0xff] %vm183_vm5, %v2578_v19 }
 0x25c   : > { %v2914_v48 = vadd.f32 %v4089_v49, %v2872_v38 }
 0x25e   : > { %v2926_v43 = vmax.f32 %v2914_v48, 0.0 }
 0x25f   : > { %v2552_v22 = vpop.f32.mrf.mxu2 }
 0x260   : > { %v2565_v5 = vpop.f32.mrf.mxu3 }
 0x261   : > { %v2724_v24 = vpop.f32.mrf.mxu0  ;;  %v2739_v31 = vpop.f32.mrf.mxu1 }
 0x262   : > { %v2871_v33 = vadd.f32 %v2724_v24, %v2567_v0  ;;  %v2577_v0 = vadd.f32 %v4085_v34, %v4080_v10 }
 0x264   : > { %v2913_v25 = vadd.f32 %v4089_v49, %v2871_v33 }
 0x266   : > { %v2925_v39 = vmax.f32 %v2913_v25, 0.0  ;;  %v2602_v25 = vld [vmem:[#allocation2 + $0x58] sm:$0xff] }
 0x267   : > { %v2750_v17 = vpop.f32.mrf.mxu2 }
 0x268   : > { %v2937_v44 = vpack.c.bf16 %v2926_v43, %v2925_v39  ;;  %v2873_v4 = vadd.f32 %v2750_v17, %v2569_v57  ;;  %v2763_v8 = vpop.f32.mrf.mxu3 }
 0x269   : > { %v2874_v16 = vadd.f32 %v2763_v8, %v2570_v45  ;;  %v2726_v41 = vpop.f32.mrf.mxu0  ;;  %v2789_v12 = vpop.f32.mrf.mxu1 }
 0x26a   : > { %2943 = vst [vmem:[%s4100_s24] sm:$0xff] %v2937_v44  ;;  %v2915_v9 = vadd.f32 %v4089_v49, %v2873_v4  ;;  %v2876_v6 = vadd.f32 %v2789_v12, %v2572_v40 }
 0x26b   : > { %v2916_v42 = vadd.f32 %v4089_v49, %v2874_v16 }
 0x26c   : > { %v2927_v20 = vmax.f32 %v2915_v9, 0.0  ;;  %v2918_v26 = vadd.f32 %v4089_v49, %v2876_v6 }
 0x26d   : > { %v2928_v55 = vmax.f32 %v2916_v42, 0.0 }
 0x26e   : > { %v2930_v59 = vmax.f32 %v2918_v26, 0.0 }
 0x26f   : > { %v2938_v56 = vpack.c.bf16 %v2928_v55, %v2927_v20  ;;  %v2752_v23 = vpop.f32.mrf.mxu2 }
 0x270   : > { %v2765_v29 = vpop.f32.mrf.mxu3 }
 0x271   : > { %2944 = vst [vmem:[%s4100_s24 + $0x8] sm:$0xff] %v2938_v56  ;;  %v2776_v62 = vpop.f32.mrf.mxu0  ;;  %v2791_v7 = vpop.f32.mrf.mxu1 }
 0x272   : > { %v2875_v27 = vadd.f32 %v2776_v62, %v2571_v52 }
 0x274   : > { %v2917_v21 = vadd.f32 %v4089_v49, %v2875_v27 }
 0x276   : > { %v2929_v1 = vmax.f32 %v2917_v21, 0.0 }
 0x277   : > { %v2802_v63 = vpop.f32.mrf.mxu2 }
 0x278   : > { %v2939_v30 = vpack.c.bf16 %v2930_v59, %v2929_v1  ;;  %v2877_v54 = vadd.f32 %v2802_v63, %v2573_v32  ;;  %v2815_v37 = vpop.f32.mrf.mxu3 }
 0x279   : > { %v2878_v58 = vadd.f32 %v2815_v37, %v2574_v14  ;;  %v2778_v11 = vpop.f32.mrf.mxu0  ;;  %v2841_v28 = vpop.f32.mrf.mxu1 }
 0x27a   : > { %2945 = vst [vmem:[%s4100_s24 + $0x10] sm:$0xff] %v2939_v30  ;;  %v2919_v61 = vadd.f32 %v4089_v49, %v2877_v54  ;;  %v2880_v15 = vadd.f32 %v2841_v28, %v2576_v53 }
 0x27b   : > { %v2920_v3 = vadd.f32 %v4089_v49, %v2878_v58 }
 0x27c   : > { %v2931_v2 = vmax.f32 %v2919_v61, 0.0  ;;  %v2922_v13 = vadd.f32 %v4089_v49, %v2880_v15 }
 0x27d   : > { %v2932_v60 = vmax.f32 %v2920_v3, 0.0 }
 0x27e   : > { %v2934_v5 = vmax.f32 %v2922_v13, 0.0 }
 0x27f   : > { %v2940_v19 = vpack.c.bf16 %v2932_v60, %v2931_v2  ;;  %v2804_v18 = vpop.f32.mrf.mxu2 }
 0x280   : > { %v2817_v36 = vpop.f32.mrf.mxu3 }
 0x281   : > { %2946 = vst [vmem:[%s4100_s24 + $0x18] sm:$0xff] %v2940_v19  ;;  %v2828_v47 = vpop.f32.mrf.mxu0  ;;  %v2843_v46 = vpop.f32.mrf.mxu1 }
 0x282   : > { %v2879_v38 = vadd.f32 %v2828_v47, %v2575_v50 }
 0x284   : > { %v2921_v22 = vadd.f32 %v4089_v49, %v2879_v38 }
 0x286   : > { %v2933_v24 = vmax.f32 %v2921_v22, 0.0 }
 0x287   : > { %v2854_v31 = vpop.f32.mrf.mxu2 }
 0x288   : > { %v2941_v33 = vpack.c.bf16 %v2934_v5, %v2933_v24  ;;  %v2881_v48 = vadd.f32 %v2854_v31, %v2577_v0  ;;  %v2867_v51 = vpop.f32.mrf.mxu3 }
 0x289   : > { %v2882_v35 = vadd.f32 %v2867_v51, %v2602_v25  ;;  %v2830_v57 = vpop.f32.mrf.mxu0 }
 0x28a   : > { %2947 = vst [vmem:[%s4100_s24 + $0x20] sm:$0xff] %v2941_v33  ;;  %v2923_v45 = vadd.f32 %v4089_v49, %v2881_v48 }
 0x28b   : > { %2894 = vst.msk [vmem:[#allocation2 + $0x58] sm:$0xff] %vm183_vm5, %v2882_v35 }
 0x28c   : > { %v2935_v34 = vmax.f32 %v2923_v45, 0.0 }
 0x28f   : > { %v2856_v39 = vpop.f32.mrf.mxu2 }
 0x290   : > { %v2869_v43 = vpop.f32.mrf.mxu3 }
 0x292   : > { %v2906_v17 = vld [vmem:[#allocation2 + $0x58] sm:$0xff] }
 0x293   : > { %v2924_v10 = vadd.f32 %v4089_v49, %v2906_v17 }
 0x295   : > { %v2936_v40 = vmax.f32 %v2924_v10, 0.0 }
 0x297   : > { %v2942_v44 = vpack.c.bf16 %v2936_v40, %v2935_v34 }
 0x299   : > { %2950 = vst.msk [vmem:[%s4100_s24 + $0x28] sm:$0xff] %vm2949_vm12, %v2942_v44 }
 0x29a PF: > { %s13_s12 = sadd.s32 1, %s3158_s12  }
 0x29b   : > { %p10_p4 = scmp.ge.s32.totalorder %s13_s12, 4  }
 0x29d   :  { %12 = sbr.rel (!%p10_p4) target bundleno = 1 (0x1), region = 70 }

// kernel: pixel_decoder_forward.7
= control target key start
LH: loop header
LB: loop body
LE: loop exit
PB: predicated region body
PF: predicated region fallthrough
CT: control target
= control target key end

     0   :  { %s3451_s12 = smov 0   ;;  %s4567_s0 = inlined_call_operand.vmem [shape: bf16[2,8,1722], index: 0, kind: input, shape index: {}]   ;;  %s4568_s1 = inlined_call_operand.vmem [shape: bf16[9,8,8], index: 1, kind: input, shape index: {}]   ;;  %s4569_s2 = inlined_call_operand.vmem [shape: f32[8,1], index: 2, kind: input, shape index: {}]   ;;  %s4570_s3 = inlined_call_operand.vmem [shape: bf16[2,1,8,1599], index: 3, kind: output, shape index: {}]  }
   0x1 LB: > { %s3257_s13 = sadd.s32 4294967295, %s3419_s12   ;;  %p3261_p0 = scmp.ge.s32.totalorder %s3419_s12, 1  ;;  %s3419_s12 = sphi %s3451_s12, %s13_s12  }
   0x2   : > { %p137_p1 = scmp.lt.s32.totalorder %s3419_s12, 3 }
   0x4   : > { %p138_p2 = pnand %p3261_p0, %p137_p1 }
   0x5   : > { %p161_p3 = scmp.lt.s32.totalorder (!%p138_p2), %s3257_s13, 1  ;;  %s3421_s18 = smov (!%p138_p2), 127  }
   0x6   : > { %141 = sbr.rel (%p138_p2) target bundleno = 690 (0x2b2), region = 32  ;;  %s3422_s21 = smov (!%p138_p2), 126  }
   0x7   : > { %s3423_s22 = smov (!%p138_p2), 87   ;;  %s3424_s23 = smov (!%p138_p2), 86  }
   0x8   : > { %s3425_s26 = smov (!%p138_p2), 85   ;;  %s3427_s4 = smov (!%p138_p2), 46  }
   0x9   : > { %s3428_s7 = smov (!%p138_p2), 45   ;;  %s3429_s8 = smov (!%p138_p2), 44  }
   0xb   : > { %s4572_s13 = smov (!%p161_p3, %s3257_s13), 1  ;;  %vm245_vm0 = vcmask 1043456   ;;  %v3501_v21 = vld [vmem:[%s4568_s1 + $0x20] sm:$0xf]  ;;  %vm241_vm1 = vcmask 64512   ;;  %vm561_vm2 = vcmask 1039360  }
   0xc   : > { %s3391_s14 = smul.u32 56, %s4572_s13  ;;  %v3643_v58 = vld [vmem:[%s4568_s1 + $0x1c] sm:$0xf]  ;;  %vm892_vm3 = vcmask 1031168   ;;  %vm1223_vm4 = vcmask 711680   ;;  %vm184_vm5 = vcmask 515072  }
   0xd   : > { %vm1554_vm6 = vcmask 703488   ;;  %vm1885_vm7 = vcmask 695296   ;;  %vm2220_vm8 = vcmask 375808   ;;  %vm2556_vm9 = vcmask 367616  }
   0xe   : > { %s3465_s17 = scalar_lea.vmem %s4567_s0, %s3391_s14  ;;  %vm2891_vm10 = vcmask 359424   ;;  %vm3200_vm11 = vcmask 510976  }
   0xf   : > { %v496_v0 = vld [vmem:[%s3465_s17 + $0x8] sm:$0xff]  ;;  %v495_v1 = vld [vmem:[%s3465_s17] sm:$0xff]  ;;  %v497_v4 = vld [vmem:[%s3465_s17 + $0x10] sm:$0xff] }
  0x10   : > { %v512_v2 = vunpack.c.h.b16 %v496_v0  ;;  %v510_v3 = vunpack.c.h.b16 %v495_v1  ;;  %v513_v5 = vunpack.c.l.b16 %v497_v4  ;;  %v511_v9 = vunpack.c.l.b16 %v496_v0  ;;  %v498_v14 = vld [vmem:[%s3465_s17 + $0x18] sm:$0xff]  ;;  %v499_v18 = vld [vmem:[%s3465_s17 + $0x20] sm:$0xff]  ;;  %v500_v24 = vld [vmem:[%s3465_s17 + $0x28] sm:$0xff] }
  0x11   : > { %v509_v10 = vunpack.c.l.b16 %v495_v1  ;;  %v514_v11 = vunpack.c.h.b16 %v497_v4  ;;  %v515_v16 = vunpack.c.l.b16 %v498_v14  ;;  %v516_v17 = vunpack.c.h.b16 %v498_v14  ;;  %v501_v32 = vld [vmem:[%s3465_s17 + $0x30] sm:$0xf] }
  0x12   : > { %v3470_v6 = vpack.c.b16 %v512_v2, %v512_v2  ;;  %v3472_v7 = vpack.c.b16 %v510_v3, %v510_v3  ;;  %v3474_v8 = vpack.c.b16 %v513_v5, %v513_v5  ;;  %v3482_v12 = vpack.c.b16 %v511_v9, %v511_v9  ;;  %v207_v43 = vld [vmem:[%s3465_s17 + $0x30] sm:$0xf] }
  0x13   : > { %v3484_v13 = vpack.c.b16 %v509_v10, %v509_v10  ;;  %v3487_v15 = vpack.c.b16 %v514_v11, %v514_v11  ;;  %v517_v19 = vunpack.c.l.b16 %v499_v18  ;;  %v3503_v22 = vpack.c.b16 %v515_v16, %v515_v16  ;;  %v832_v50 = vld [vmem:[%s3465_s17 + $0x30] sm:$0xf] }
  0x14   : > { %541 = vrot.lane.b32.xlu1 %v3470_v6, %s3421_s18  ;;  %537 = vrot.lane.b32.xlu0 %v3472_v7, %s3421_s18  ;;  %v3505_v23 = vpack.c.b16 %v516_v17, %v516_v17  ;;  %v518_v26 = vunpack.c.h.b16 %v499_v18  ;;  %v519_v27 = vunpack.c.l.b16 %v500_v24  ;;  %v259_v28 = vsel %vm245_vm0, %v3474_v8, 0  ;;  %v1163_v10 = vld [vmem:[%s3465_s17 + $0x30] sm:$0xf] }
  0x15   : > { %543 = vrot.lane.b32.xlu2 %v3474_v8, %s3421_s18  ;;  %v247_v20 = vsel %vm245_vm0, %v3484_v13, 0  ;;  %v3508_v25 = vpack.c.b16 %v517_v19, %v517_v19  ;;  %v520_v29 = vunpack.c.h.b16 %v500_v24  ;;  %v521_v34 = vunpack.c.l.b16 %v501_v32 }
  0x16   : > { %292 = vmatpush.bf16.msra.mxu0 %v247_v20  ;;  %v3520_v30 = vpack.c.b16 %v518_v26, %v518_v26  ;;  %v3522_v31 = vpack.c.b16 %v519_v27, %v519_v27  ;;  %v250_v35 = vsel %vm245_vm0, %v3472_v7, 0  ;;  %v253_v36 = vsel %vm245_vm0, %v3482_v12, 0 }
  0x17   : > { %v3525_v33 = vpack.c.b16 %v520_v29, %v520_v29  ;;  %v256_v37 = vsel %vm245_vm0, %v3470_v6, 0  ;;  %305 = vmatpush.bf16.msra.mxu1 %v250_v35  ;;  %318 = vmatpush.bf16.msra.mxu2 %v253_v36  ;;  %v534_v38 = vpack.c.b16 %v521_v34, %v521_v34  ;;  %v271_v39 = vsel %vm245_vm0, %v3508_v25, 0 }
  0x18   : > { %331 = vmatpush.bf16.msra.mxu3 %v256_v37  ;;  %v262_v40 = vsel %vm245_vm0, %v3487_v15, 0  ;;  %v265_v41 = vsel %vm245_vm0, %v3503_v22, 0  ;;  %v268_v42 = vsel %vm245_vm0, %v3505_v23, 0  ;;  %v274_v44 = vsel %vm245_vm0, %v3520_v30, 0 }
  0x19   : > { %3265 = vmatmul.msk.bf16.vlgmr.msra.gmra.mxu0 %vm241_vm1, %v3501_v21  ;;  %v277_v45 = vsel %vm245_vm0, %v3522_v31, 0  ;;  %v280_v46 = vsel %vm245_vm0, %v3525_v33, 0  ;;  %v227_v47 = vunpack.c.l.b16 %v207_v43  ;;  %v852_v51 = vunpack.c.l.b16 %v832_v50 }
  0x1a   : > { %344 = vmatpush.bf16.msrb.mxu0 %v259_v28  ;;  %3266 = vmatmul.msk.bf16.vlgmr.msra.gmra.mxu1 %vm241_vm1, %v3501_v21  ;;  %v1183_v16 = vunpack.c.l.b16 %v1163_v10 }
  0x1b   : > { %3267 = vmatmul.msk.bf16.vlgmr.msra.gmra.mxu2 %vm241_vm1, %v3501_v21  ;;  %3268 = vmatmul.msk.bf16.vlgmr.msra.gmra.mxu3 %vm241_vm1, %v3501_v21  ;;  %v240_v48 = vpack.c.b16 %v227_v47, %v227_v47  ;;  %v865_v52 = vpack.c.b16 %v852_v51, %v852_v51 }
  0x1c   : > { %539 = vrot.lane.b32.xlu0 %v3482_v12, %s3421_s18  ;;  %535 = vrot.lane.b32.xlu1 %v3484_v13, %s3421_s18  ;;  %v1196_v26 = vpack.c.b16 %v1183_v16, %v1183_v16 }
  0x1d   : > { %545 = vrot.lane.b32.xlu2 %v3487_v15, %s3421_s18  ;;  %357 = vmatpush.bf16.msrb.mxu1 %v262_v40  ;;  %v283_v49 = vsel %vm245_vm0, %v240_v48, 0 }
  0x1e   : > { %396 = vmatpush.bf16.msra.mxu0 %v271_v39  ;;  %370 = vmatpush.bf16.msrb.mxu2 %v265_v41 }
  0x1f   : > { %383 = vmatpush.bf16.msrb.mxu3 %v268_v42 }
  0x21   : > { %409 = vmatpush.bf16.msra.mxu1 %v274_v44 }
  0x22   : > { %422 = vmatpush.bf16.msra.mxu2 %v277_v45 }
  0x23   : > { %435 = vmatpush.bf16.msra.mxu3 %v280_v46 }
  0x24   : > { %547 = vrot.lane.b32.xlu0 %v3503_v22, %s3421_s18  ;;  %549 = vrot.lane.b32.xlu1 %v3505_v23, %s3421_s18 }
  0x25   : > { %551 = vrot.lane.b32.xlu2 %v3508_v25, %s3421_s18 }
  0x29   : > { %3269 = vmatmul.msk.bf16.vlgmr.msrb.gmra.mxu0 %vm241_vm1, %v3501_v21 }
  0x2a   : > { %3270 = vmatmul.msk.bf16.vlgmr.msrb.gmra.mxu1 %vm241_vm1, %v3501_v21  ;;  %448 = vmatpush.bf16.msrb.mxu0 %v283_v49 }
  0x2b   : > { %3271 = vmatmul.msk.bf16.vlgmr.msrb.gmra.mxu2 %vm241_vm1, %v3501_v21  ;;  %3272 = vmatmul.msk.bf16.vlgmr.msrb.gmra.mxu3 %vm241_vm1, %v3501_v21 }
  0x2c   : > { %553 = vrot.lane.b32.xlu0 %v3520_v30, %s3421_s18  ;;  %555 = vrot.lane.b32.xlu1 %v3522_v31, %s3421_s18 }
  0x2d   : > { %557 = vrot.lane.b32.xlu2 %v3525_v33, %s3421_s18 }
  0x34   : > { %559 = vrot.lane.b32.xlu0 %v534_v38, %s3421_s18  ;;  %866 = vrot.lane.b32.xlu1 %v3484_v13, %s3422_s21 }
  0x35   : > { %868 = vrot.lane.b32.xlu2 %v3472_v7, %s3422_s21 }
  0x39   : > { %3273 = vmatmul.msk.bf16.vlgmr.msra.gmra.mxu0 %vm241_vm1, %v3501_v21 }
  0x3a   : > { %3274 = vmatmul.msk.bf16.vlgmr.msra.gmra.mxu1 %vm241_vm1, %v3501_v21 }
  0x3b   : > { %3275 = vmatmul.msk.bf16.vlgmr.msra.gmra.mxu2 %vm241_vm1, %v3501_v21  ;;  %3276 = vmatmul.msk.bf16.vlgmr.msra.gmra.mxu3 %vm241_vm1, %v3501_v21 }
  0x3c   : > { %870 = vrot.lane.b32.xlu0 %v3482_v12, %s3422_s21  ;;  %872 = vrot.lane.b32.xlu1 %v3470_v6, %s3422_s21 }
  0x3d   : > { %874 = vrot.lane.b32.xlu2 %v3474_v8, %s3422_s21 }
  0x44   : > { %876 = vrot.lane.b32.xlu0 %v3487_v15, %s3422_s21  ;;  %878 = vrot.lane.b32.xlu1 %v3503_v22, %s3422_s21 }
  0x45   : > { %880 = vrot.lane.b32.xlu2 %v3505_v23, %s3422_s21 }
  0x49   : > { %3277 = vmatmul.msk.bf16.vlgmr.msrb.gmra.mxu0 %vm241_vm1, %v3501_v21 }
  0x4c   : > { %882 = vrot.lane.b32.xlu0 %v3508_v25, %s3422_s21  ;;  %884 = vrot.lane.b32.xlu1 %v3520_v30, %s3422_s21 }
  0x4d   : > { %886 = vrot.lane.b32.xlu2 %v3522_v31, %s3422_s21 }
  0x54   : > { %888 = vrot.lane.b32.xlu0 %v3525_v33, %s3422_s21  ;;  %1197 = vrot.lane.b32.xlu1 %v3484_v13, %s3423_s22 }
  0x55   : > { %1199 = vrot.lane.b32.xlu2 %v3472_v7, %s3423_s22 }
  0x5c   : > { %890 = vrot.lane.b32.xlu0 %v865_v52, %s3422_s21  ;;  %1201 = vrot.lane.b32.xlu1 %v3482_v12, %s3423_s22  ;;  %s3392_s21 = smul.u32 52, %s4572_s13 }
  0x5d   : > { %1203 = vrot.lane.b32.xlu2 %v3470_v6, %s3423_s22 }
  0x5e   : > { %s4534_s24 = scalar_lea.vmem %s4570_s3, %s3392_s21 }
  0x64   : > { %1205 = vrot.lane.b32.xlu0 %v3474_v8, %s3423_s22  ;;  %1207 = vrot.lane.b32.xlu1 %v3487_v15, %s3423_s22 }
  0x65   : > { %1209 = vrot.lane.b32.xlu2 %v3503_v22, %s3423_s22 }
  0x6c   : > { %1211 = vrot.lane.b32.xlu0 %v3505_v23, %s3423_s22  ;;  %1213 = vrot.lane.b32.xlu1 %v3508_v25, %s3423_s22 }
  0x6d   : > { %1215 = vrot.lane.b32.xlu2 %v3520_v30, %s3423_s22 }
  0x6f   : > { %v544_v53 = vpop.permute.xlu2 %543 }
  0x74   : > { %1217 = vrot.lane.b32.xlu0 %v3522_v31, %s3423_s22  ;;  %1219 = vrot.lane.b32.xlu1 %v3525_v33, %s3423_s22 }
  0x75   : > { %1221 = vrot.lane.b32.xlu2 %v1196_v26, %s3423_s22 }
  0x77   : > { %v546_v59 = vpop.permute.xlu2 %545 }
  0x78   : > { %v566_v60 = vsel %vm561_vm2, %v544_v53, %v546_v59 }
  0x79   : > { %v590_v5 = vsel %vm245_vm0, %v566_v60, 0 }
  0x7c   : > { %1528 = vrot.lane.b32.xlu0 %v3484_v13, %s3424_s23  ;;  %1530 = vrot.lane.b32.xlu1 %v3472_v7, %s3424_s23 }
  0x7d   : > { %1532 = vrot.lane.b32.xlu2 %v3482_v12, %s3424_s23 }
  0x7f   : > { %v552_v9 = vpop.permute.xlu2 %551 }
  0x84   : > { %1534 = vrot.lane.b32.xlu0 %v3470_v6, %s3424_s23  ;;  %1536 = vrot.lane.b32.xlu1 %v3474_v8, %s3424_s23 }
  0x85   : > { %1538 = vrot.lane.b32.xlu2 %v3487_v15, %s3424_s23 }
  0x86   : > { %v542_v54 = vpop.permute.xlu1 %541  ;;  %v538_v55 = vpop.permute.xlu0 %537 }
  0x87   : > { %v565_v56 = vsel %vm561_vm2, %v542_v54, %v544_v53  ;;  %v558_v27 = vpop.permute.xlu2 %557 }
  0x88   : > { %v587_v57 = vsel %vm245_vm0, %v565_v56, 0 }
  0x89   : > { %662 = vmatpush.bf16.msra.mxu0 %v587_v57 }
  0x8c   : > { %3282 = vmatmul.msk.bf16.vlgmr.msra.gmra.mxu0 %vm241_vm1, %v3643_v58  ;;  %1540 = vrot.lane.b32.xlu0 %v3503_v22, %s3424_s23 }
  0x8d   : > { %1542 = vrot.lane.b32.xlu1 %v3505_v23, %s3424_s23  ;;  %1544 = vrot.lane.b32.xlu2 %v3508_v25, %s3424_s23 }
  0x8e   : > { %v540_v61 = vpop.permute.xlu0 %539  ;;  %v536_v62 = vpop.permute.xlu1 %535 }
  0x8f   : > { %v563_v63 = vsel %vm561_vm2, %v538_v55, %v540_v61  ;;  %v564_v0 = vsel %vm561_vm2, %v540_v61, %v542_v54  ;;  %v562_v1 = vsel %vm561_vm2, %v536_v62, %v538_v55  ;;  %v869_v39 = vpop.permute.xlu2 %868  ;;  %v1494_v55 = vld [vmem:[%s3465_s17 + $0x30] sm:$0xf] }
  0x90   : > { %v581_v2 = vsel %vm245_vm0, %v563_v63, 0  ;;  %v584_v3 = vsel %vm245_vm0, %v564_v0, 0  ;;  %v578_v4 = vsel %vm245_vm0, %v562_v1, 0  ;;  %v1514_v57 = vunpack.c.l.b16 %v1494_v55 }
  0x91   : > { %623 = vmatpush.bf16.msrb.mxu1 %v578_v4  ;;  %636 = vmatpush.bf16.msrb.mxu2 %v581_v2 }
  0x92   : > { %649 = vmatpush.bf16.msrb.mxu3 %v584_v3 }
  0x94   : > { %3279 = vmatmul.msk.bf16.vlgmr.msrb.gmra.mxu1 %vm241_vm1, %v3643_v58  ;;  %3280 = vmatmul.msk.bf16.vlgmr.msrb.gmra.mxu2 %vm241_vm1, %v3643_v58 }
  0x95   : > { %675 = vmatpush.bf16.msra.mxu1 %v590_v5  ;;  %3281 = vmatmul.msk.bf16.vlgmr.msrb.gmra.mxu3 %vm241_vm1, %v3643_v58  ;;  %v3739_v5 = vld [vmem:[%s4568_s1 + $0x18] sm:$0xf] }
  0x96   : > { %1546 = vrot.lane.b32.xlu0 %v3520_v30, %s3424_s23  ;;  %v548_v11 = vpop.permute.xlu0 %547  ;;  %v550_v14 = vpop.permute.xlu1 %549  ;;  %1548 = vrot.lane.b32.xlu1 %v3522_v31, %s3424_s23 }
  0x97   : > { %v567_v17 = vsel %vm561_vm2, %v546_v59, %v548_v11  ;;  %v568_v18 = vsel %vm561_vm2, %v548_v11, %v550_v14  ;;  %v569_v19 = vsel %vm561_vm2, %v550_v14, %v552_v9  ;;  %v1527_v59 = vpack.c.b16 %v1514_v57, %v1514_v57  ;;  %1550 = vrot.lane.b32.xlu2 %v3525_v33, %s3424_s23  ;;  %v1825_v57 = vld [vmem:[%s3465_s17 + $0x30] sm:$0xf] }
  0x98   : > { %v593_v20 = vsel %vm245_vm0, %v567_v17, 0  ;;  %v596_v21 = vsel %vm245_vm0, %v568_v18, 0  ;;  %v599_v24 = vsel %vm245_vm0, %v569_v19, 0 }
  0x99   : > { %714 = vmatpush.bf16.msrb.mxu0 %v599_v24  ;;  %688 = vmatpush.bf16.msra.mxu2 %v593_v20 }
  0x9a   : > { %701 = vmatpush.bf16.msra.mxu3 %v596_v21 }
  0x9c   : > { %3286 = vmatmul.msk.bf16.vlgmr.msrb.gmra.mxu0 %vm241_vm1, %v3643_v58 }
  0x9e   : > { %v554_v28 = vpop.permute.xlu0 %553  ;;  %v556_v29 = vpop.permute.xlu1 %555  ;;  %1861 = vrot.lane.b32.xlu1 %v3472_v7, %s3425_s26  ;;  %1552 = vrot.lane.b32.xlu0 %v1527_v59, %s3424_s23 }
  0x9f   : > { %v570_v32 = vsel %vm561_vm2, %v552_v9, %v554_v28  ;;  %v571_v34 = vsel %vm561_vm2, %v554_v28, %v556_v29  ;;  %v572_v35 = vsel %vm561_vm2, %v556_v29, %v558_v27  ;;  %v3695_v7 = vpop.f32.mrf.mxu0  ;;  %v3752_v19 = vpop.f32.mrf.mxu2  ;;  %1863 = vrot.lane.b32.xlu2 %v3482_v12, %s3425_s26 }
  0xa0   : > { %v602_v36 = vsel %vm245_vm0, %v570_v32, 0  ;;  %v605_v37 = vsel %vm245_vm0, %v571_v34, 0  ;;  %v608_v38 = vsel %vm245_vm0, %v572_v35, 0  ;;  %v3754_v20 = vpop.f32.mrf.mxu3 }
  0xa1   : > { %727 = vmatpush.bf16.msrb.mxu1 %v602_v36  ;;  %740 = vmatpush.bf16.msrb.mxu2 %v605_v37 }
  0xa2   : > { %753 = vmatpush.bf16.msrb.mxu3 %v608_v38 }
  0xa4   : > { %3283 = vmatmul.msk.bf16.vlgmr.msra.gmra.mxu1 %vm241_vm1, %v3643_v58  ;;  %3284 = vmatmul.msk.bf16.vlgmr.msra.gmra.mxu2 %vm241_vm1, %v3643_v58 }
  0xa5   : > { %3285 = vmatmul.msk.bf16.vlgmr.msra.gmra.mxu3 %vm241_vm1, %v3643_v58 }
  0xa6   : > { %v560_v40 = vpop.permute.xlu0 %559  ;;  %v867_v41 = vpop.permute.xlu1 %866  ;;  %1859 = vrot.lane.b32.xlu1 %v3484_v13, %s3425_s26  ;;  %1865 = vrot.lane.b32.xlu0 %v3470_v6, %s3425_s26 }
  0xa7   : > { %v573_v42 = vsel %vm561_vm2, %v558_v27, %v560_v40  ;;  %v614_v43 = vsel %vm245_vm0, %v560_v40, 0  ;;  %v893_v44 = vsel %vm892_vm3, %v867_v41, %v869_v39  ;;  %v875_v13 = vpop.permute.xlu2 %874  ;;  %v296_v47 = vpop.f32.mrf.mxu0  ;;  %1867 = vrot.lane.b32.xlu2 %v3474_v8, %s3425_s26 }
  0xa8   : > { %v611_v45 = vsel %vm245_vm0, %v573_v42, 0  ;;  %v909_v46 = vsel %vm245_vm0, %v893_v44, 0  ;;  %779 = vmatpush.bf16.msra.mxu1 %v614_v43  ;;  %v322_v34 = vpop.f32.mrf.mxu2  ;;  %v335_v35 = vpop.f32.mrf.mxu3 }
  0xa9   : > { %766 = vmatpush.bf16.msra.mxu0 %v611_v45  ;;  %954 = vmatpush.bf16.msra.mxu2 %v909_v46 }
  0xac   : > { %3290 = vmatmul.msk.bf16.vlgmr.msra.gmra.mxu0 %vm241_vm1, %v3643_v58 }
  0xae   : > { %v871_v48 = vpop.permute.xlu0 %870  ;;  %v873_v49 = vpop.permute.xlu1 %872  ;;  %1871 = vrot.lane.b32.xlu1 %v3503_v22, %s3425_s26  ;;  %1869 = vrot.lane.b32.xlu0 %v3487_v15, %s3425_s26 }
  0xaf   : > { %v894_v50 = vsel %vm892_vm3, %v869_v39, %v871_v48  ;;  %v895_v51 = vsel %vm892_vm3, %v871_v48, %v873_v49  ;;  %v896_v52 = vsel %vm892_vm3, %v873_v49, %v875_v13  ;;  %v881_v22 = vpop.permute.xlu2 %880  ;;  %v3725_v60 = vpop.f32.mrf.mxu0  ;;  %1873 = vrot.lane.b32.xlu2 %v3505_v23, %s3425_s26 }
  0xb0   : > { %v912_v53 = vsel %vm245_vm0, %v894_v50, 0  ;;  %v915_v54 = vsel %vm245_vm0, %v895_v51, 0  ;;  %v918_v56 = vsel %vm245_vm0, %v896_v52, 0  ;;  %v3785_v43 = vpop.f32.mrf.mxu2  ;;  %v3787_v44 = vpop.f32.mrf.mxu3  ;;  %v3426_v51 = vmov 0.0  }
  0xb1   : > { %980 = vmatpush.bf16.msrb.mxu0 %v915_v54  ;;  %967 = vmatpush.bf16.msra.mxu3 %v912_v53  ;;  %185 = vst.msk [vmem:[#allocation2 + $0x60] sm:$0xff] %vm184_vm5, %v3426_v51 }
  0xb4   : > { %3287 = vmatmul.msk.bf16.vlgmr.msrb.gmra.mxu1 %vm241_vm1, %v3643_v58  ;;  %3288 = vmatmul.msk.bf16.vlgmr.msrb.gmra.mxu2 %vm241_vm1, %v3643_v58 }
  0xb5   : > { %3289 = vmatmul.msk.bf16.vlgmr.msrb.gmra.mxu3 %vm241_vm1, %v3643_v58  ;;  %993 = vmatpush.bf16.msrb.mxu1 %v918_v56 }
  0xb6   : > { %v877_v61 = vpop.permute.xlu0 %876  ;;  %v879_v62 = vpop.permute.xlu1 %878  ;;  %1877 = vrot.lane.b32.xlu1 %v3520_v30, %s3425_s26  ;;  %1875 = vrot.lane.b32.xlu0 %v3508_v25, %s3425_s26 }
  0xb7   : > { %v897_v63 = vsel %vm892_vm3, %v875_v13, %v877_v61  ;;  %v898_v0 = vsel %vm892_vm3, %v877_v61, %v879_v62  ;;  %v899_v1 = vsel %vm892_vm3, %v879_v62, %v881_v22  ;;  %v3745_v30 = vpop.f32.mrf.mxu1  ;;  %v887_v9 = vpop.permute.xlu2 %886  ;;  %v1845_v61 = vunpack.c.l.b16 %v1825_v57  ;;  %1879 = vrot.lane.b32.xlu2 %v3522_v31, %s3425_s26 }
  0xb8   : > { %v921_v2 = vsel %vm245_vm0, %v897_v63, 0  ;;  %v924_v3 = vsel %vm245_vm0, %v898_v0, 0  ;;  %v927_v4 = vsel %vm245_vm0, %v899_v1, 0  ;;  %v348_v10 = vpop.f32.mrf.mxu0  ;;  %v374_v53 = vpop.f32.mrf.mxu2 }
  0xb9   : > { %1032 = vmatpush.bf16.msra.mxu0 %v927_v4  ;;  %1006 = vmatpush.bf16.msrb.mxu2 %v921_v2  ;;  %v387_v54 = vpop.f32.mrf.mxu3  ;;  %v1858_v1 = vpack.c.b16 %v1845_v61, %v1845_v61 }
  0xba   : > { %1019 = vmatpush.bf16.msrb.mxu3 %v924_v3 }
  0xbc   : > { %3295 = vmatmul.msk.bf16.vlgmr.msrb.gmra.mxu0 %vm241_vm1, %v3739_v5 }
  0xbe   : > { %v883_v11 = vpop.permute.xlu0 %882  ;;  %v885_v14 = vpop.permute.xlu1 %884  ;;  %1881 = vrot.lane.b32.xlu0 %v3525_v33, %s3425_s26  ;;  %1883 = vrot.lane.b32.xlu1 %v1858_v1, %s3425_s26  ;;  %v3899_v1 = vld [vmem:[%s3465_s17 + $0x20] sm:$0xff] }
  0xbf   : > { %v900_v16 = vsel %vm892_vm3, %v881_v22, %v883_v11  ;;  %v901_v17 = vsel %vm892_vm3, %v883_v11, %v885_v14  ;;  %v902_v18 = vsel %vm892_vm3, %v885_v14, %v887_v9  ;;  %v309_v6 = vpop.f32.mrf.mxu1  ;;  %v1200_v27 = vpop.permute.xlu2 %1199  ;;  %v198_v22 = vld [vmem:[#allocation2 + $0x60] sm:$0xff] }
  0xc0   : > { %v930_v21 = vsel %vm245_vm0, %v900_v16, 0  ;;  %v933_v24 = vsel %vm245_vm0, %v901_v17, 0  ;;  %v936_v26 = vsel %vm245_vm0, %v902_v18, 0  ;;  %v3767_v28 = vpop.f32.mrf.mxu0  ;;  %v3812_v3 = vpop.f32.mrf.mxu2  ;;  %v3830_v6 = vld [vmem:[%s4568_s1 + $0x14] sm:$0xf] }
  0xc1   : > { %v3814_v4 = vpop.f32.mrf.mxu3 }
  0xc4   : > { %3291 = vmatmul.msk.bf16.vlgmr.msra.gmra.mxu1 %vm241_vm1, %v3643_v58  ;;  %3293 = vmatmul.msk.bf16.vlgmr.msra.gmra.mxu2 %vm241_vm1, %v3739_v5 }
  0xc5   : > { %3294 = vmatmul.msk.bf16.vlgmr.msra.gmra.mxu3 %vm241_vm1, %v3739_v5  ;;  %1045 = vmatpush.bf16.msra.mxu1 %v930_v21 }
  0xc6   : > { %v889_v29 = vpop.permute.xlu0 %888  ;;  %v1198_v12 = vpop.permute.xlu1 %1197  ;;  %1058 = vmatpush.bf16.msra.mxu2 %v933_v24  ;;  %1071 = vmatpush.bf16.msra.mxu3 %v936_v26 }
  0xc7   : > { %v903_v32 = vsel %vm892_vm3, %v887_v9, %v889_v29  ;;  %v3777_v36 = vpop.f32.mrf.mxu1  ;;  %v1204_v37 = vpop.permute.xlu2 %1203  ;;  %v1224_v42 = vsel %vm1223_vm4, %v1198_v12, %v1200_v27  ;;  %v2150_v12 = vld [vmem:[%s3465_s17] sm:$0xff] }
  0xc8   : > { %v939_v58 = vsel %vm245_vm0, %v903_v32, 0  ;;  %v400_v38 = vpop.f32.mrf.mxu0  ;;  %v1240_v13 = vsel %vm245_vm0, %v1224_v42, 0  ;;  %v426_v24 = vpop.f32.mrf.mxu2  ;;  %v2164_v53 = vunpack.c.l.b16 %v2150_v12 }
  0xc9   : > { %1084 = vmatpush.bf16.msrb.mxu0 %v939_v58  ;;  %v439_v26 = vpop.f32.mrf.mxu3  ;;  %v2165_v58 = vunpack.c.h.b16 %v2150_v12 }
  0xca   : > { %v2155_v26 = vld [vmem:[%s3465_s17 + $0x28] sm:$0xff] }
  0xcb   : > { %v3844_v38 = vpack.c.b16 %v2165_v58, %v2165_v58  ;;  %v2174_v12 = vunpack.c.l.b16 %v2155_v26 }
  0xcc   : > { %3299 = vmatmul.msk.bf16.vlgmr.msra.gmra.mxu0 %vm241_vm1, %v3739_v5 }
  0xcd   : > { %2194 = vrot.lane.b32.xlu0 %v3844_v38, %s3427_s4 }
  0xce   : > { %v891_v39 = vpop.permute.xlu0 %890  ;;  %v1202_v40 = vpop.permute.xlu1 %1201 }
  0xcf   : > { %v904_v15 = vsel %vm892_vm3, %v889_v29, %v891_v39  ;;  %v1225_v41 = vsel %vm1223_vm4, %v1200_v27, %v1202_v40  ;;  %v945_v46 = vsel %vm245_vm0, %v891_v39, 0  ;;  %v361_v25 = vpop.f32.mrf.mxu1  ;;  %v1210_v47 = vpop.permute.xlu2 %1209  ;;  %v1226_v0 = vsel %vm1223_vm4, %v1202_v40, %v1204_v37 }
  0xd0   : > { %v1243_v8 = vsel %vm245_vm0, %v1225_v41, 0  ;;  %v942_v45 = vsel %vm245_vm0, %v904_v15, 0  ;;  %v450_v48 = vpop.f32.mrf.mxu0  ;;  %v1246_v9 = vsel %vm245_vm0, %v1226_v0, 0 }
  0xd1   : > { %1298 = vmatpush.bf16.msra.mxu0 %v1243_v8  ;;  %v466_v62 = vadd.f32 %v450_v48, %v198_v22 }
  0xd3   : > { %479 = vst.msk [vmem:[#allocation2 + $0x60] sm:$0xff] %vm184_vm5, %v466_v62 }
  0xd4   : > { %3296 = vmatmul.msk.bf16.vlgmr.msrb.gmra.mxu1 %vm241_vm1, %v3739_v5  ;;  %3297 = vmatmul.msk.bf16.vlgmr.msrb.gmra.mxu2 %vm241_vm1, %v3739_v5 }
  0xd5   : > { %3298 = vmatmul.msk.bf16.vlgmr.msrb.gmra.mxu3 %vm241_vm1, %v3739_v5  ;;  %1097 = vmatpush.bf16.msrb.mxu1 %v942_v45 }
  0xd6   : > { %1285 = vmatpush.bf16.msrb.mxu3 %v1240_v13  ;;  %1110 = vmatpush.bf16.msrb.mxu2 %v945_v46  ;;  %v1206_v49 = vpop.permute.xlu0 %1205  ;;  %v1208_v50 = vpop.permute.xlu1 %1207  ;;  %v2152_v46 = vld [vmem:[%s3465_s17 + $0x10] sm:$0xff] }
  0xd7   : > { %v1229_v52 = vsel %vm1223_vm4, %v1208_v50, %v1210_v47  ;;  %v3805_v56 = vpop.f32.mrf.mxu1  ;;  %v1227_v33 = vsel %vm1223_vm4, %v1204_v37, %v1206_v49  ;;  %v1228_v2 = vsel %vm1223_vm4, %v1206_v49, %v1208_v50  ;;  %v1216_v16 = vpop.permute.xlu2 %1215  ;;  %v3842_v37 = vld [vmem:[%s3465_s17 + $0x8] sm:$0xff]  ;;  %v2168_v25 = vunpack.c.l.b16 %v2152_v46 }
  0xd8   : > { %v1255_v55 = vsel %vm245_vm0, %v1229_v52, 0  ;;  %v452_v59 = vpop.f32.mrf.mxu0  ;;  %v1249_v10 = vsel %vm245_vm0, %v1227_v33, 0  ;;  %v1252_v11 = vsel %vm245_vm0, %v1228_v2, 0  ;;  %v2166_v39 = vunpack.c.l.b16 %v3842_v37  ;;  %v3876_v52 = vld [vmem:[%s3465_s17 + $0x18] sm:$0xff] }
  0xd9   : > { %v2169_v50 = vunpack.c.h.b16 %v2152_v46  ;;  %v2171_v54 = vunpack.c.h.b16 %v3876_v52  ;;  %v3884_v59 = vpack.c.b16 %v2164_v53, %v2164_v53  ;;  %v2172_v2 = vunpack.c.l.b16 %v3899_v1  ;;  %v3955_v46 = vld [vmem:[%s3465_s17 + $0x30] sm:$0xff] }
  0xda   : > { %v3852_v41 = vpack.c.b16 %v2166_v39, %v2166_v39  ;;  %v3933_v39 = vpack.c.b16 %v2174_v12, %v2174_v12 }
  0xdb   : > { %v3886_v61 = vpack.c.b16 %v2171_v54, %v2171_v54  ;;  %2192 = vrot.lane.b32.xlu2 %v3884_v59, %s3427_s4 }
  0xdc   : > { %3303 = vmatmul.msk.bf16.vlgmr.msrb.gmra.mxu0 %vm241_vm1, %v3739_v5  ;;  %2196 = vrot.lane.b32.xlu1 %v3852_v41, %s3427_s4 }
  0xdd   : > { %1350 = vmatpush.bf16.msrb.mxu0 %v1255_v55  ;;  %v3879_v55 = vpack.c.b16 %v2169_v50, %v2169_v50  ;;  %v2177_v50 = vunpack.c.h.b16 %v3955_v46 }
  0xde   : > { %v1212_v63 = vpop.permute.xlu0 %1211  ;;  %v1214_v17 = vpop.permute.xlu1 %1213 }
  0xdf   : > { %v413_v14 = vpop.f32.mrf.mxu1  ;;  %v1230_v32 = vsel %vm1223_vm4, %v1210_v47, %v1212_v63  ;;  %v1231_v34 = vsel %vm1223_vm4, %v1212_v63, %v1214_v17  ;;  %v1232_v35 = vsel %vm1223_vm4, %v1214_v17, %v1216_v16  ;;  %v1222_v42 = vpop.permute.xlu2 %1221  ;;  %v3864_v47 = vpack.c.b16 %v2168_v25, %v2168_v25 }
  0xe0   : > { %v1258_v40 = vsel %vm245_vm0, %v1230_v32, 0  ;;  %v1261_v23 = vsel %vm245_vm0, %v1231_v34, 0  ;;  %v1264_v15 = vsel %vm245_vm0, %v1232_v35, 0  ;;  %v1276_v22 = vsel %vm245_vm0, %v1222_v42, 0 }
  0xe1   : > { %2200 = vrot.lane.b32.xlu0 %v3864_v47, %s3427_s4  ;;  %v2175_v32 = vunpack.c.h.b16 %v2155_v26 }
  0xe4   : > { %3300 = vmatmul.msk.bf16.vlgmr.msra.gmra.mxu1 %vm241_vm1, %v3739_v5  ;;  %3301 = vmatmul.msk.bf16.vlgmr.msra.gmra.mxu2 %vm241_vm1, %v3739_v5 }
  0xe5   : > { %3302 = vmatmul.msk.bf16.vlgmr.msra.gmra.mxu3 %vm241_vm1, %v3739_v5  ;;  %1311 = vmatpush.bf16.msra.mxu1 %v1246_v9 }
  0xe6   : > { %1324 = vmatpush.bf16.msra.mxu2 %v1249_v10  ;;  %1337 = vmatpush.bf16.msra.mxu3 %v1252_v11  ;;  %v1218_v18 = vpop.permute.xlu0 %1217  ;;  %v1220_v29 = vpop.permute.xlu1 %1219  ;;  %v2167_v10 = vunpack.c.h.b16 %v3842_v37  ;;  %v3909_v11 = vpack.c.b16 %v2172_v2, %v2172_v2 }
  0xe7   : > { %v1233_v21 = vsel %vm1223_vm4, %v1216_v16, %v1218_v18  ;;  %v1533_v48 = vpop.permute.xlu2 %1532  ;;  %v1234_v49 = vsel %vm1223_vm4, %v1218_v18, %v1220_v29  ;;  %v1235_v51 = vsel %vm1223_vm4, %v1220_v29, %v1222_v42  ;;  %2202 = vrot.lane.b32.xlu1 %v3879_v55, %s3427_s4 }
  0xe8   : > { %v1267_v27 = vsel %vm245_vm0, %v1233_v21, 0  ;;  %v1270_v31 = vsel %vm245_vm0, %v1234_v49, 0  ;;  %v1273_v57 = vsel %vm245_vm0, %v1235_v51, 0  ;;  %v3915_v17 = vpack.c.b16 %v2167_v10, %v2167_v10 }
  0xe9   : > { %2206 = vrot.lane.b32.xlu0 %v3886_v61, %s3427_s4  ;;  %v2170_v49 = vunpack.c.l.b16 %v3876_v52 }
  0xea   : > { %2198 = vrot.lane.b32.xlu2 %v3915_v17, %s3427_s4 }
  0xeb   : > { %v3971_v53 = vpack.c.b16 %v2170_v49, %v2170_v49 }
  0xec   : > { %3308 = vmatmul.msk.bf16.vlgmr.msra.gmra.mxu0 %vm241_vm1, %v3830_v6 }
  0xed   : > { %1402 = vmatpush.bf16.msra.mxu0 %v1267_v27 }
  0xee   : > { %v1529_v8 = vpop.permute.xlu0 %1528  ;;  %v1531_v45 = vpop.permute.xlu1 %1530 }
  0xef   : > { %v1555_v13 = vsel %vm1554_vm6, %v1529_v8, %v1531_v45  ;;  %v3896_v62 = vpop.permute.xlu2 %1538  ;;  %2208 = vrot.lane.b32.xlu1 %v3909_v11, %s3427_s4  ;;  %v1556_v21 = vsel %vm1554_vm6, %v1531_v45, %v1533_v48 }
  0xf0   : > { %v1574_v34 = vsel %vm245_vm0, %v1556_v21, 0 }
  0xf1   : > { %2212 = vrot.lane.b32.xlu0 %v3933_v39, %s3427_s4 }
  0xf2   : > { %2204 = vrot.lane.b32.xlu2 %v3971_v53, %s3427_s4 }
  0xf4   : > { %3304 = vmatmul.msk.bf16.vlgmr.msrb.gmra.mxu1 %vm241_vm1, %v3739_v5  ;;  %3305 = vmatmul.msk.bf16.vlgmr.msrb.gmra.mxu2 %vm241_vm1, %v3739_v5  ;;  %v1571_v5 = vsel %vm245_vm0, %v1555_v13, 0 }
  0xf5   : > { %3307 = vmatmul.msk.bf16.vlgmr.msrb.gmra.mxu3 %vm241_vm1, %v3830_v6  ;;  %1363 = vmatpush.bf16.msrb.mxu1 %v1258_v40  ;;  %v3935_v40 = vpack.c.b16 %v2175_v32, %v2175_v32 }
  0xf6   : > { %1376 = vmatpush.bf16.msrb.mxu2 %v1261_v23  ;;  %1389 = vmatpush.bf16.msrb.mxu3 %v1264_v15  ;;  %v1535_v63 = vpop.permute.xlu0 %1534  ;;  %v1537_v0 = vpop.permute.xlu1 %1536 }
  0xf7   : > { %v1559_v33 = vsel %vm1554_vm6, %v1537_v0, %v3896_v62  ;;  %v1558_v24 = vsel %vm1554_vm6, %v1535_v63, %v1537_v0  ;;  %2214 = vrot.lane.b32.xlu1 %v3935_v40, %s3427_s4 }
  0xf8   : > { %v1583_v16 = vsel %vm245_vm0, %v1559_v33, 0  ;;  %v1580_v37 = vsel %vm245_vm0, %v1558_v24, 0 }
  0xfc   : > { %3312 = vmatmul.msk.bf16.vlgmr.msrb.gmra.mxu0 %vm241_vm1, %v3830_v6 }
  0xfd   : > { %1616 = vmatpush.bf16.msrb.mxu0 %v1571_v5 }
  0xfe   : > { %v1541_v18 = vpop.permute.xlu0 %1540 }
  0xff   : > { %v1543_v54 = vpop.permute.xlu1 %1542  ;;  %2528 = vrot.lane.b32.xlu1 %v3884_v59, %s3428_s7 }
 0x104   : > { %3309 = vmatmul.msk.bf16.vlgmr.msra.gmra.mxu1 %vm241_vm1, %v3830_v6  ;;  %3310 = vmatmul.msk.bf16.vlgmr.msra.gmra.mxu2 %vm241_vm1, %v3830_v6 }
 0x105   : > { %3311 = vmatmul.msk.bf16.vlgmr.msra.gmra.mxu3 %vm241_vm1, %v3830_v6  ;;  %1415 = vmatpush.bf16.msra.mxu1 %v1270_v31  ;;  %v1560_v31 = vsel %vm1554_vm6, %v3896_v62, %v1541_v18 }
 0x106   : > { %1428 = vmatpush.bf16.msra.mxu2 %v1273_v57  ;;  %1441 = vmatpush.bf16.msra.mxu3 %v1276_v22  ;;  %v1561_v57 = vsel %vm1554_vm6, %v1541_v18, %v1543_v54  ;;  %v1586_v2 = vsel %vm245_vm0, %v1560_v31, 0 }
 0x107   : > { %v1589_v62 = vsel %vm245_vm0, %v1561_v57, 0  ;;  %2534 = vrot.lane.b32.xlu1 %v3915_v17, %s3428_s7 }
 0x108   : > { %v3943_v23 = vpop.permute.xlu0 %1546  ;;  %v1549_v12 = vpop.permute.xlu1 %1548 }
 0x109   : > { %v664_v9 = vpop.f32.mrf.mxu0  ;;  %v1564_v32 = vsel %vm1554_vm6, %v3943_v23, %v1549_v12 }
 0x10a   : > { %v3912_v14 = vadd.f32 %v664_v9, %v3754_v20  ;;  %v1557_v20 = vsel %vm1554_vm6, %v1533_v48, %v1535_v63  ;;  %v3963_v48 = vld [vmem:[%s4568_s1 + $0x10] sm:$0xf] }
 0x10b   : > { %v1577_v35 = vsel %vm245_vm0, %v1557_v20, 0 }
 0x10c   : > { %3316 = vmatmul.msk.bf16.vlgmr.msra.gmra.mxu0 %vm241_vm1, %v3830_v6 }
 0x10d   : > { %1668 = vmatpush.bf16.msra.mxu0 %v1583_v16  ;;  %v2173_v16 = vunpack.c.h.b16 %v3899_v1 }
 0x10f   : > { %2540 = vrot.lane.b32.xlu1 %v3971_v53, %s3428_s7 }
 0x110   : > { %v1553_v20 = vpop.permute.xlu0 %1552 }
 0x111   : > { %v625_v27 = vpop.f32.mrf.mxu1  ;;  %v666_v29 = vpop.f32.mrf.mxu0  ;;  %v1607_v1 = vsel %vm245_vm0, %v1553_v20, 0 }
 0x112   : > { %v3928_v58 = vadd.f32 %v625_v27, %v3695_v7  ;;  %v1545_v7 = vpop.permute.xlu2 %1544  ;;  %v4010_v27 = vpack.c.b16 %v2173_v16, %v2173_v16 }
 0x113   : > { %v1563_v42 = vsel %vm1554_vm6, %v1545_v7, %v3943_v23  ;;  %v1562_v22 = vsel %vm1554_vm6, %v1543_v54, %v1545_v7  ;;  %v1598_v23 = vsel %vm245_vm0, %v1564_v32, 0 }
 0x114   : > { %3313 = vmatmul.msk.bf16.vlgmr.msrb.gmra.mxu1 %vm241_vm1, %v3830_v6  ;;  %3314 = vmatmul.msk.bf16.vlgmr.msrb.gmra.mxu2 %vm241_vm1, %v3830_v6  ;;  %v1595_v51 = vsel %vm245_vm0, %v1563_v42, 0  ;;  %v1592_v9 = vsel %vm245_vm0, %v1562_v22, 0 }
 0x115   : > { %3315 = vmatmul.msk.bf16.vlgmr.msrb.gmra.mxu3 %vm241_vm1, %v3830_v6  ;;  %1629 = vmatpush.bf16.msrb.mxu1 %v1574_v34  ;;  %v2176_v34 = vunpack.c.l.b16 %v3955_v46  ;;  %v1862_v46 = vpop.permute.xlu1 %1861 }
 0x116   : > { %1642 = vmatpush.bf16.msrb.mxu2 %v1577_v35  ;;  %1655 = vmatpush.bf16.msrb.mxu3 %v1580_v37 }
 0x117   : > { %v638_v15 = vpop.f32.mrf.mxu2  ;;  %2210 = vrot.lane.b32.xlu2 %v4010_v27, %s3427_s4  ;;  %v4029_v42 = vpack.c.b16 %v2176_v34, %v2176_v34  ;;  %2546 = vrot.lane.b32.xlu1 %v4010_v27, %s3428_s7 }
 0x118   : > { %v3952_v8 = vadd.f32 %v638_v15, %v3745_v30  ;;  %v651_v45 = vpop.f32.mrf.mxu3  ;;  %v1866_v49 = vpop.permute.xlu0 %1865 }
 0x119   : > { %v3958_v13 = vadd.f32 %v651_v45, %v3752_v19  ;;  %v627_v25 = vpop.f32.mrf.mxu1  ;;  %v716_v5 = vpop.f32.mrf.mxu0  ;;  %v3973_v19 = vpack.c.b16 %v2177_v50, %v2177_v50 }
 0x11a   : > { %v3968_v30 = vadd.f32 %v716_v5, %v3787_v44  ;;  %v1551_v10 = vpop.permute.xlu2 %1550 }
 0x11b   : > { %2218 = vrot.lane.b32.xlu0 %v3973_v19, %s3427_s4  ;;  %v1565_v35 = vsel %vm1554_vm6, %v1549_v12, %v1551_v10  ;;  %v1566_v37 = vsel %vm1554_vm6, %v1551_v10, %v1553_v20  ;;  %v492_v10 = vld [vmem:[#allocation2 + $0x60] sm:$0xff] }
 0x11c   : > { %3321 = vmatmul.msk.bf16.vlgmr.msrb.gmra.mxu0 %vm241_vm1, %v3963_v48  ;;  %v1601_v25 = vsel %vm245_vm0, %v1565_v35, 0  ;;  %v1604_v5 = vsel %vm245_vm0, %v1566_v37, 0 }
 0x11d   : > { %1720 = vmatpush.bf16.msrb.mxu0 %v1595_v51 }
 0x11f   : > { %v640_v52 = vpop.f32.mrf.mxu2  ;;  %2216 = vrot.lane.b32.xlu2 %v4029_v42, %s3427_s4  ;;  %2552 = vrot.lane.b32.xlu1 %v4029_v42, %s3428_s7 }
 0x120   : > { %v653_v44 = vpop.f32.mrf.mxu3 }
 0x121   : > { %v677_v63 = vpop.f32.mrf.mxu1  ;;  %v718_v0 = vpop.f32.mrf.mxu0 }
 0x122   : > { %v3988_v33 = vadd.f32 %v677_v63, %v3725_v60  ;;  %v1860_v0 = vpop.permute.xlu1 %1859 }
 0x123   : > { %2532 = vrot.lane.b32.xlu0 %v3852_v41, %s3428_s7 }
 0x124   : > { %3317 = vmatmul.msk.bf16.vlgmr.msra.gmra.mxu1 %vm241_vm1, %v3830_v6  ;;  %3318 = vmatmul.msk.bf16.vlgmr.msra.gmra.mxu2 %vm241_vm1, %v3830_v6 }
 0x125   : > { %3319 = vmatmul.msk.bf16.vlgmr.msra.gmra.mxu3 %vm241_vm1, %v3830_v6  ;;  %1681 = vmatpush.bf16.msra.mxu1 %v1586_v2 }
 0x126   : > { %1694 = vmatpush.bf16.msra.mxu2 %v1589_v62  ;;  %1707 = vmatpush.bf16.msra.mxu3 %v1592_v9 }
 0x127   : > { %v690_v60 = vpop.f32.mrf.mxu2  ;;  %2530 = vrot.lane.b32.xlu2 %v3844_v38, %s3428_s7  ;;  %2865 = vrot.lane.b32.xlu1 %v3844_v38, %s3429_s8 }
 0x128   : > { %v4005_v18 = vadd.f32 %v690_v60, %v3777_v36  ;;  %v703_v21 = vpop.f32.mrf.mxu3  ;;  %v1864_v36 = vpop.permute.xlu2 %1863 }
 0x129   : > { %v4008_v6 = vadd.f32 %v703_v21, %v3785_v43  ;;  %v679_v24 = vpop.f32.mrf.mxu1  ;;  %v768_v26 = vpop.f32.mrf.mxu0  ;;  %v1887_v62 = vsel %vm1885_vm7, %v1862_v46, %v1864_v36  ;;  %v1888_v9 = vsel %vm1885_vm7, %v1864_v36, %v1866_v49 }
 0x12a   : > { %v4013_v29 = vadd.f32 %v768_v26, %v3814_v4  ;;  %v1905_v24 = vsel %vm245_vm0, %v1887_v62, 0  ;;  %v1908_v26 = vsel %vm245_vm0, %v1888_v9, 0 }
 0x12b   : > { %2538 = vrot.lane.b32.xlu0 %v3879_v55, %s3428_s7 }
 0x12c   : > { %3325 = vmatmul.msk.bf16.vlgmr.msra.gmra.mxu0 %vm241_vm1, %v3963_v48 }
 0x12d   : > { %1772 = vmatpush.bf16.msra.mxu0 %v1607_v1  ;;  %v1872_v1 = vpop.permute.xlu1 %1871 }
 0x12f   : > { %v692_v43 = vpop.f32.mrf.mxu2  ;;  %2536 = vrot.lane.b32.xlu2 %v3864_v47, %s3428_s7  ;;  %2871 = vrot.lane.b32.xlu1 %v3864_v47, %s3429_s8 }
 0x130   : > { %v705_v4 = vpop.f32.mrf.mxu3 }
 0x131   : > { %v729_v7 = vpop.f32.mrf.mxu1  ;;  %v770_v15 = vpop.f32.mrf.mxu0 }
 0x132   : > { %v4032_v45 = vadd.f32 %v729_v7, %v3767_v28  ;;  %v4045_v28 = vpop.permute.xlu2 %1867 }
 0x133   : > { %v1889_v51 = vsel %vm1885_vm7, %v1866_v49, %v4045_v28  ;;  %2544 = vrot.lane.b32.xlu0 %v3909_v11, %s3428_s7 }
 0x134   : > { %3322 = vmatmul.msk.bf16.vlgmr.msrb.gmra.mxu1 %vm241_vm1, %v3963_v48  ;;  %3323 = vmatmul.msk.bf16.vlgmr.msrb.gmra.mxu2 %vm241_vm1, %v3963_v48  ;;  %v1911_v63 = vsel %vm245_vm0, %v1889_v51, 0 }
 0x135   : > { %3324 = vmatmul.msk.bf16.vlgmr.msrb.gmra.mxu3 %vm241_vm1, %v3963_v48  ;;  %1733 = vmatpush.bf16.msrb.mxu1 %v1598_v23  ;;  %v1878_v38 = vpop.permute.xlu1 %1877 }
 0x136   : > { %1746 = vmatpush.bf16.msrb.mxu2 %v1601_v25  ;;  %1759 = vmatpush.bf16.msrb.mxu3 %v1604_v5 }
 0x137   : > { %v742_v50 = vpop.f32.mrf.mxu2  ;;  %2542 = vrot.lane.b32.xlu2 %v3886_v61, %s3428_s7  ;;  %2877 = vrot.lane.b32.xlu1 %v3886_v61, %s3429_s8 }
 0x138   : > { %v4054_v54 = vadd.f32 %v742_v50, %v3805_v56  ;;  %v755_v52 = vpop.f32.mrf.mxu3  ;;  %v1870_v56 = vpop.permute.xlu0 %1869 }
 0x139   : > { %v4057_v31 = vadd.f32 %v755_v52, %v3812_v3  ;;  %v731_v44 = vpop.f32.mrf.mxu1  ;;  %v982_v57 = vpop.f32.mrf.mxu0  ;;  %v1886_v3 = vsel %vm1885_vm7, %v1860_v0, %v1862_v46 }
 0x13a   : > { %v4060_v22 = vadd.f32 %v982_v57, %v3958_v13  ;;  %v1902_v20 = vsel %vm245_vm0, %v1886_v3, 0  ;;  %v1874_v43 = vpop.permute.xlu2 %1873 }
 0x13b   : > { %2550 = vrot.lane.b32.xlu0 %v3935_v40, %s3428_s7  ;;  %v1892_v46 = vsel %vm1885_vm7, %v1872_v1, %v1874_v43 }
 0x13c   : > { %3329 = vmatmul.msk.bf16.vlgmr.msrb.gmra.mxu0 %vm241_vm1, %v3963_v48  ;;  %v1920_v51 = vsel %vm245_vm0, %v1892_v46, 0 }
 0x13d   : > { %1986 = vmatpush.bf16.msrb.mxu0 %v1911_v63 }
 0x13f   : > { %v744_v2 = vpop.f32.mrf.mxu2  ;;  %2548 = vrot.lane.b32.xlu2 %v3933_v39, %s3428_s7  ;;  %2883 = vrot.lane.b32.xlu1 %v3933_v39, %s3429_s8 }
 0x140   : > { %v757_v13 = vpop.f32.mrf.mxu3  ;;  %v1876_v12 = vpop.permute.xlu0 %1875 }
 0x141   : > { %v781_v60 = vpop.f32.mrf.mxu1  ;;  %v984_v16 = vpop.f32.mrf.mxu0  ;;  %v1893_v4 = vsel %vm1885_vm7, %v1874_v43, %v1876_v12 }
 0x142   : > { %v797_v21 = vadd.f32 %v781_v60, %v492_v10  ;;  %v1923_v23 = vsel %vm245_vm0, %v1893_v4, 0 }
 0x143   : > { %2863 = vrot.lane.b32.xlu0 %v3884_v59, %s3429_s8 }
 0x144   : > { %810 = vst.msk [vmem:[#allocation2 + $0x60] sm:$0xff] %vm184_vm5, %v797_v21  ;;  %3326 = vmatmul.msk.bf16.vlgmr.msra.gmra.mxu1 %vm241_vm1, %v3963_v48  ;;  %3327 = vmatmul.msk.bf16.vlgmr.msra.gmra.mxu2 %vm241_vm1, %v3963_v48 }
 0x145   : > { %3328 = vmatmul.msk.bf16.vlgmr.msra.gmra.mxu3 %vm241_vm1, %v3963_v48  ;;  %1947 = vmatpush.bf16.msra.mxu1 %v1902_v20 }
 0x146   : > { %1960 = vmatpush.bf16.msra.mxu2 %v1905_v24  ;;  %1973 = vmatpush.bf16.msra.mxu3 %v1908_v26 }
 0x147   : > { %v956_v36 = vpop.f32.mrf.mxu2  ;;  %2554 = vrot.lane.b32.xlu2 %v3973_v19, %s3428_s7  ;;  %2889 = vrot.lane.b32.xlu1 %v3973_v19, %s3429_s8 }
 0x148   : > { %v4091_v32 = vadd.f32 %v956_v36, %v3928_v58  ;;  %v969_v34 = vpop.f32.mrf.mxu3  ;;  %v1890_v58 = vsel %vm1885_vm7, %v4045_v28, %v1870_v56  ;;  %v1882_v47 = vpop.permute.xlu0 %1881 }
 0x149   : > { %v4095_v35 = vadd.f32 %v969_v34, %v3952_v8  ;;  %v783_v37 = vpop.f32.mrf.mxu1  ;;  %v1034_v7 = vpop.f32.mrf.mxu0  ;;  %v1914_v50 = vsel %vm245_vm0, %v1890_v58, 0 }
 0x14a   : > { %v4098_v15 = vadd.f32 %v1034_v7, %v4008_v6  ;;  %v1891_v6 = vsel %vm1885_vm7, %v1870_v56, %v1872_v1  ;;  %v4144_v56 = vld [vmem:[%s4568_s1 + $0xc] sm:$0xf] }
 0x14b   : > { %2869 = vrot.lane.b32.xlu0 %v3915_v17, %s3429_s8  ;;  %v1917_v28 = vsel %vm245_vm0, %v1891_v6, 0 }
 0x14c   : > { %3333 = vmatmul.msk.bf16.vlgmr.msra.gmra.mxu0 %vm241_vm1, %v3963_v48 }
 0x14d   : > { %2038 = vmatpush.bf16.msra.mxu0 %v1923_v23 }
 0x14f   : > { %v958_v59 = vpop.f32.mrf.mxu2  ;;  %2867 = vrot.lane.b32.xlu2 %v3852_v41, %s3429_s8 }
 0x150   : > { %v971_v8 = vpop.f32.mrf.mxu3  ;;  %v2195_v20 = vpop.permute.xlu0 %2194 }
 0x151   : > { %v995_v25 = vpop.f32.mrf.mxu1  ;;  %v1036_v5 = vpop.f32.mrf.mxu0 }
 0x152   : > { %v4114_v49 = vadd.f32 %v995_v25, %v3912_v14  ;;  %v4127_v14 = vpop.permute.xlu1 %1883 }
 0x153   : > { %v1897_v52 = vsel %vm1885_vm7, %v1882_v47, %v4127_v14  ;;  %2875 = vrot.lane.b32.xlu0 %v3971_v53, %s3429_s8  ;;  %v1880_v53 = vpop.permute.xlu2 %1879 }
 0x154   : > { %3330 = vmatmul.msk.bf16.vlgmr.msrb.gmra.mxu1 %vm241_vm1, %v3963_v48  ;;  %3331 = vmatmul.msk.bf16.vlgmr.msrb.gmra.mxu2 %vm241_vm1, %v3963_v48  ;;  %v1935_v61 = vsel %vm245_vm0, %v1897_v52, 0  ;;  %v1895_v3 = vsel %vm1885_vm7, %v1878_v38, %v1880_v53  ;;  %v1896_v13 = vsel %vm1885_vm7, %v1880_v53, %v1882_v47 }
 0x155   : > { %3332 = vmatmul.msk.bf16.vlgmr.msrb.gmra.mxu3 %vm241_vm1, %v3963_v48  ;;  %1999 = vmatpush.bf16.msrb.mxu1 %v1914_v50  ;;  %v1929_v21 = vsel %vm245_vm0, %v1895_v3, 0 }
 0x156   : > { %2012 = vmatpush.bf16.msrb.mxu2 %v1917_v28  ;;  %2025 = vmatpush.bf16.msrb.mxu3 %v1920_v51 }
 0x157   : > { %v1008_v17 = vpop.f32.mrf.mxu2  ;;  %2873 = vrot.lane.b32.xlu2 %v3879_v55, %s3429_s8  ;;  %v1938_v55 = vsel %vm245_vm0, %v4127_v14, 0 }
 0x158   : > { %v4136_v44 = vadd.f32 %v1008_v17, %v3988_v33  ;;  %v1021_v48 = vpop.f32.mrf.mxu3  ;;  %v2201_v23 = vpop.permute.xlu0 %2200 }
 0x159   : > { %v4139_v57 = vadd.f32 %v1021_v48, %v4005_v18  ;;  %v997_v63 = vpop.f32.mrf.mxu1  ;;  %v1086_v0 = vpop.f32.mrf.mxu0  ;;  %v1894_v18 = vsel %vm1885_vm7, %v1876_v12, %v1878_v38 }
 0x15a   : > { %v4147_v2 = vadd.f32 %v1086_v0, %v4057_v31  ;;  %v1926_v60 = vsel %vm245_vm0, %v1894_v18, 0  ;;  %v2197_v43 = vpop.permute.xlu1 %2196 }
 0x15b   : > { %2881 = vrot.lane.b32.xlu0 %v4010_v27, %s3429_s8  ;;  %v2193_v16 = vpop.permute.xlu2 %2192  ;;  %v1932_v27 = vsel %vm245_vm0, %v1896_v13, 0  ;;  %v2222_v4 = vsel %vm2220_vm8, %v2195_v20, %v2197_v43 }
 0x15c   : > { %3338 = vmatmul.msk.bf16.vlgmr.msrb.gmra.mxu0 %vm241_vm1, %v4144_v56  ;;  %v2221_v34 = vsel %vm2220_vm8, %v2193_v16, %v2195_v20  ;;  %v2241_v59 = vsel %vm245_vm0, %v2222_v4, 0  ;;  %v4248_v16 = vld [vmem:[%s4568_s1 + $0x8] sm:$0xf] }
 0x15d   : > { %2090 = vmatpush.bf16.msrb.mxu0 %v1935_v61  ;;  %v2238_v38 = vsel %vm245_vm0, %v2221_v34, 0 }
 0x15f   : > { %v1010_v33 = vpop.f32.mrf.mxu2  ;;  %2879 = vrot.lane.b32.xlu2 %v3909_v11, %s3429_s8 }
 0x160   : > { %v1023_v31 = vpop.f32.mrf.mxu3  ;;  %v2207_v51 = vpop.permute.xlu0 %2206 }
 0x161   : > { %v1047_v62 = vpop.f32.mrf.mxu1  ;;  %v1088_v9 = vpop.f32.mrf.mxu0 }
 0x162   : > { %v4162_v10 = vadd.f32 %v1047_v62, %v3968_v30  ;;  %v2203_v8 = vpop.permute.xlu1 %2202 }
 0x163   : > { %2887 = vrot.lane.b32.xlu0 %v4029_v42, %s3429_s8  ;;  %v2199_v36 = vpop.permute.xlu2 %2198  ;;  %v2225_v48 = vsel %vm2220_vm8, %v2201_v23, %v2203_v8 }
 0x164   : > { %3335 = vmatmul.msk.bf16.vlgmr.msra.gmra.mxu1 %vm241_vm1, %v4144_v56  ;;  %3336 = vmatmul.msk.bf16.vlgmr.msra.gmra.mxu2 %vm241_vm1, %v4144_v56  ;;  %v2223_v42 = vsel %vm2220_vm8, %v2197_v43, %v2199_v36  ;;  %v2224_v17 = vsel %vm2220_vm8, %v2199_v36, %v2201_v23  ;;  %v2250_v33 = vsel %vm245_vm0, %v2225_v48, 0 }
 0x165   : > { %3337 = vmatmul.msk.bf16.vlgmr.msra.gmra.mxu3 %vm241_vm1, %v4144_v56  ;;  %2051 = vmatpush.bf16.msra.mxu1 %v1926_v60  ;;  %v2244_v19 = vsel %vm245_vm0, %v2223_v42, 0 }
 0x166   : > { %2064 = vmatpush.bf16.msra.mxu2 %v1929_v21  ;;  %2077 = vmatpush.bf16.msra.mxu3 %v1932_v27 }
 0x167   : > { %v1060_v39 = vpop.f32.mrf.mxu2  ;;  %2885 = vrot.lane.b32.xlu2 %v3935_v40, %s3429_s8  ;;  %v2247_v40 = vsel %vm245_vm0, %v2224_v17, 0 }
 0x168   : > { %v4180_v41 = vadd.f32 %v1060_v39, %v4032_v45  ;;  %v1073_v30 = vpop.f32.mrf.mxu3  ;;  %v2213_v27 = vpop.permute.xlu0 %2212 }
 0x169   : > { %v4183_v24 = vadd.f32 %v1073_v30, %v4054_v54  ;;  %v1049_v26 = vpop.f32.mrf.mxu1  ;;  %v1300_v12 = vpop.f32.mrf.mxu0 }
 0x16a   : > { %v4186_v1 = vadd.f32 %v1300_v12, %v4095_v35  ;;  %v2209_v61 = vpop.permute.xlu1 %2208 }
 0x16b   : > { %v2205_v25 = vpop.permute.xlu2 %2204  ;;  %v2228_v20 = vsel %vm2220_vm8, %v2207_v51, %v2209_v61 }
 0x16c   : > { %3342 = vmatmul.msk.bf16.vlgmr.msra.gmra.mxu0 %vm241_vm1, %v4144_v56  ;;  %v2227_v47 = vsel %vm2220_vm8, %v2205_v25, %v2207_v51 }
 0x16d   : > { %2309 = vmatpush.bf16.msra.mxu0 %v2244_v19  ;;  %v2256_v14 = vsel %vm245_vm0, %v2227_v47, 0 }
 0x16f   : > { %v1062_v45 = vpop.f32.mrf.mxu2 }
 0x170   : > { %v1075_v54 = vpop.f32.mrf.mxu3  ;;  %v2259_v45 = vsel %vm245_vm0, %v2228_v20, 0 }
 0x171   : > { %v1099_v35 = vpop.f32.mrf.mxu1  ;;  %v1302_v37 = vpop.f32.mrf.mxu0 }
 0x172   : > { %v4197_v7 = vadd.f32 %v1099_v35, %v4013_v29  ;;  %v823_v29 = vld [vmem:[#allocation2 + $0x60] sm:$0xff]  ;;  %v2215_v39 = vpop.permute.xlu1 %2214 }
 0x173   : > { %v2231_v30 = vsel %vm2220_vm8, %v2213_v27, %v2215_v39 }
 0x174   : > { %3339 = vmatmul.msk.bf16.vlgmr.msrb.gmra.mxu1 %vm241_vm1, %v4144_v56  ;;  %3340 = vmatmul.msk.bf16.vlgmr.msrb.gmra.mxu2 %vm241_vm1, %v4144_v56 }
 0x175   : > { %3341 = vmatmul.msk.bf16.vlgmr.msrb.gmra.mxu3 %vm241_vm1, %v4144_v56  ;;  %2103 = vmatpush.bf16.msrb.mxu1 %v1938_v55 }
 0x176   : > { %2283 = vmatpush.bf16.msrb.mxu2 %v2238_v38  ;;  %2296 = vmatpush.bf16.msrb.mxu3 %v2241_v59 }
 0x177   : > { %v1112_v58 = vpop.f32.mrf.mxu2 }
 0x178   : > { %v1128_v6 = vadd.f32 %v1112_v58, %v823_v29  ;;  %v1287_v46 = vpop.f32.mrf.mxu3 }
 0x179   : > { %v4212_v11 = vadd.f32 %v1287_v46, %v4091_v32  ;;  %v1101_v5 = vpop.f32.mrf.mxu1  ;;  %v1352_v50 = vpop.f32.mrf.mxu0 }
 0x17a   : > { %1141 = vst.msk [vmem:[#allocation2 + $0x60] sm:$0xff] %vm184_vm5, %v1128_v6  ;;  %v4216_v28 = vadd.f32 %v1352_v50, %v4139_v57  ;;  %v2226_v57 = vsel %vm2220_vm8, %v2203_v8, %v2205_v25  ;;  %v2529_v35 = vpop.permute.xlu1 %2528 }
 0x17b   : > { %v2253_v18 = vsel %vm245_vm0, %v2226_v57, 0 }
 0x17c   : > { %3346 = vmatmul.msk.bf16.vlgmr.msrb.gmra.mxu0 %vm241_vm1, %v4144_v56 }
 0x17d   : > { %2361 = vmatpush.bf16.msrb.mxu0 %v2256_v14 }
 0x17f   : > { %v1114_v32 = vpop.f32.mrf.mxu2 }
 0x180   : > { %v1289_v52 = vpop.f32.mrf.mxu3 }
 0x181   : > { %v1313_v63 = vpop.f32.mrf.mxu1  ;;  %v1354_v0 = vpop.f32.mrf.mxu0 }
 0x182   : > { %v4228_v53 = vadd.f32 %v1313_v63, %v4060_v22  ;;  %v2211_v22 = vpop.permute.xlu2 %2210  ;;  %v2535_v6 = vpop.permute.xlu1 %2534 }
 0x183   : > { %v2229_v12 = vsel %vm2220_vm8, %v2209_v61, %v2211_v22  ;;  %v2230_v36 = vsel %vm2220_vm8, %v2211_v22, %v2213_v27 }
 0x184   : > { %3343 = vmatmul.msk.bf16.vlgmr.msra.gmra.mxu1 %vm241_vm1, %v4144_v56  ;;  %3344 = vmatmul.msk.bf16.vlgmr.msra.gmra.mxu2 %vm241_vm1, %v4144_v56  ;;  %v2262_v34 = vsel %vm245_vm0, %v2229_v12, 0  ;;  %v2265_v4 = vsel %vm245_vm0, %v2230_v36, 0 }
 0x185   : > { %3345 = vmatmul.msk.bf16.vlgmr.msra.gmra.mxu3 %vm241_vm1, %v4144_v56  ;;  %2322 = vmatpush.bf16.msra.mxu1 %v2247_v40  ;;  %v1154_v40 = vld [vmem:[#allocation2 + $0x60] sm:$0xff] }
 0x186   : > { %2335 = vmatpush.bf16.msra.mxu2 %v2250_v33  ;;  %2348 = vmatpush.bf16.msra.mxu3 %v2253_v18 }
 0x187   : > { %v1326_v31 = vpop.f32.mrf.mxu2 }
 0x188   : > { %v4240_v3 = vadd.f32 %v1326_v31, %v4114_v49  ;;  %v1339_v13 = vpop.f32.mrf.mxu3  ;;  %v2268_v49 = vsel %vm245_vm0, %v2231_v30, 0 }
 0x189   : > { %v4243_v62 = vadd.f32 %v1339_v13, %v4136_v44  ;;  %v1315_v9 = vpop.f32.mrf.mxu1  ;;  %v1404_v60 = vpop.f32.mrf.mxu0 }
 0x18a   : > { %v4251_v21 = vadd.f32 %v1404_v60, %v4183_v24  ;;  %v2217_v24 = vpop.permute.xlu2 %2216 }
 0x18b   : > { %v2232_v25 = vsel %vm2220_vm8, %v2215_v39, %v2217_v24 }
 0x18c   : > { %3351 = vmatmul.msk.bf16.vlgmr.msra.gmra.mxu0 %vm241_vm1, %v4248_v16  ;;  %v2271_v14 = vsel %vm245_vm0, %v2232_v25, 0 }
 0x18d   : > { %2413 = vmatpush.bf16.msra.mxu0 %v2268_v49  ;;  %v2219_v54 = vpop.permute.xlu0 %2218 }
 0x18e   : > { %v2233_v5 = vsel %vm2220_vm8, %v2217_v24, %v2219_v54 }
 0x18f   : > { %v1328_v44 = vpop.f32.mrf.mxu2  ;;  %v2274_v32 = vsel %vm245_vm0, %v2233_v5, 0 }
 0x190   : > { %v1341_v26 = vpop.f32.mrf.mxu3 }
 0x191   : > { %v1365_v43 = vpop.f32.mrf.mxu1  ;;  %v1406_v42 = vpop.f32.mrf.mxu0 }
 0x192   : > { %v4261_v19 = vadd.f32 %v1365_v43, %v4098_v15  ;;  %v2531_v23 = vpop.permute.xlu2 %2530 }
 0x193   : > { %v2557_v50 = vsel %vm2556_vm9, %v2529_v35, %v2531_v23 }
 0x194   : > { %3347 = vmatmul.msk.bf16.vlgmr.msrb.gmra.mxu1 %vm241_vm1, %v4144_v56  ;;  %3349 = vmatmul.msk.bf16.vlgmr.msrb.gmra.mxu2 %vm241_vm1, %v4248_v16  ;;  %v2574_v17 = vsel %vm245_vm0, %v2557_v50, 0 }
 0x195   : > { %3350 = vmatmul.msk.bf16.vlgmr.msrb.gmra.mxu3 %vm241_vm1, %v4248_v16  ;;  %2374 = vmatpush.bf16.msrb.mxu1 %v2259_v45  ;;  %v2533_v58 = vpop.permute.xlu0 %2532 }
 0x196   : > { %2387 = vmatpush.bf16.msrb.mxu2 %v2262_v34  ;;  %2400 = vmatpush.bf16.msrb.mxu3 %v2265_v4  ;;  %v2558_v8 = vsel %vm2556_vm9, %v2531_v23, %v2533_v58 }
 0x197   : > { %v1378_v15 = vpop.f32.mrf.mxu2 }
 0x198   : > { %v4273_v37 = vadd.f32 %v1378_v15, %v4162_v10  ;;  %v1391_v55 = vpop.f32.mrf.mxu3  ;;  %v2577_v10 = vsel %vm245_vm0, %v2558_v8, 0  ;;  %v4336_v15 = vld [vmem:[%s4568_s1 + $0x4] sm:$0xf] }
 0x199   : > { %v4276_v38 = vadd.f32 %v1391_v55, %v4180_v41  ;;  %v1367_v56 = vpop.f32.mrf.mxu1  ;;  %v1618_v59 = vpop.f32.mrf.mxu0 }
 0x19a   : > { %v4279_v29 = vadd.f32 %v1618_v59, %v4212_v11  ;;  %v2537_v52 = vpop.permute.xlu2 %2536 }
 0x19b   : > { %v2560_v39 = vsel %vm2556_vm9, %v2535_v6, %v2537_v52 }
 0x19c   : > { %3355 = vmatmul.msk.bf16.vlgmr.msrb.gmra.mxu0 %vm241_vm1, %v4248_v16  ;;  %v2583_v26 = vsel %vm245_vm0, %v2560_v39, 0 }
 0x19d   : > { %2632 = vmatpush.bf16.msrb.mxu0 %v2577_v10  ;;  %v2539_v48 = vpop.permute.xlu0 %2538 }
 0x19e   : > { %v2561_v30 = vsel %vm2556_vm9, %v2537_v52, %v2539_v48 }
 0x19f   : > { %v1380_v46 = vpop.f32.mrf.mxu2  ;;  %v2586_v12 = vsel %vm245_vm0, %v2561_v30, 0 }
 0x1a0   : > { %v1393_v41 = vpop.f32.mrf.mxu3 }
 0x1a1   : > { %v1417_v11 = vpop.f32.mrf.mxu1  ;;  %v1620_v51 = vpop.f32.mrf.mxu0 }
 0x1a2   : > { %v4289_v47 = vadd.f32 %v1417_v11, %v4147_v2  ;;  %v2541_v2 = vpop.permute.xlu1 %2540  ;;  %v2543_v9 = vpop.permute.xlu2 %2542 }
 0x1a3   : > { %v2562_v63 = vsel %vm2556_vm9, %v2539_v48, %v2541_v2  ;;  %v2563_v59 = vsel %vm2556_vm9, %v2541_v2, %v2543_v9 }
 0x1a4   : > { %3352 = vmatmul.msk.bf16.vlgmr.msra.gmra.mxu1 %vm241_vm1, %v4248_v16  ;;  %3353 = vmatmul.msk.bf16.vlgmr.msra.gmra.mxu2 %vm241_vm1, %v4248_v16  ;;  %v2589_v13 = vsel %vm245_vm0, %v2562_v63, 0  ;;  %v2592_v25 = vsel %vm245_vm0, %v2563_v59, 0 }
 0x1a5   : > { %3354 = vmatmul.msk.bf16.vlgmr.msra.gmra.mxu3 %vm241_vm1, %v4248_v16  ;;  %2426 = vmatpush.bf16.msra.mxu1 %v2271_v14  ;;  %v2545_v24 = vpop.permute.xlu0 %2544 }
 0x1a6   : > { %2439 = vmatpush.bf16.msra.mxu2 %v2274_v32  ;;  %2619 = vmatpush.bf16.msra.mxu3 %v2574_v17  ;;  %v2564_v8 = vsel %vm2556_vm9, %v2543_v9, %v2545_v24 }
 0x1a7   : > { %v1430_v57 = vpop.f32.mrf.mxu2  ;;  %v2595_v41 = vsel %vm245_vm0, %v2564_v8, 0 }
 0x1a8   : > { %v4302_v0 = vadd.f32 %v1430_v57, %v4197_v7  ;;  %v1443_v61 = vpop.f32.mrf.mxu3  ;;  %v2559_v7 = vsel %vm2556_vm9, %v2533_v58, %v2535_v6 }
 0x1a9   : > { %v1459_v33 = vadd.f32 %v1443_v61, %v1154_v40  ;;  %v1419_v18 = vpop.f32.mrf.mxu1  ;;  %v1670_v22 = vpop.f32.mrf.mxu0  ;;  %v2580_v20 = vsel %vm245_vm0, %v2559_v7, 0 }
 0x1aa   : > { %v4305_v31 = vadd.f32 %v1670_v22, %v4243_v62  ;;  %v2549_v36 = vpop.permute.xlu2 %2548 }
 0x1ab   : > { %1472 = vst.msk [vmem:[#allocation2 + $0x60] sm:$0xff] %vm184_vm5, %v1459_v33 }
 0x1ac   : > { %3359 = vmatmul.msk.bf16.vlgmr.msra.gmra.mxu0 %vm241_vm1, %v4248_v16 }
 0x1ad   : > { %2684 = vmatpush.bf16.msra.mxu0 %v2589_v13 }
 0x1af   : > { %v1432_v60 = vpop.f32.mrf.mxu2 }
 0x1b0   : > { %v1445_v27 = vpop.f32.mrf.mxu3 }
 0x1b1   : > { %v1631_v49 = vpop.f32.mrf.mxu1  ;;  %v1672_v62 = vpop.f32.mrf.mxu0 }
 0x1b2   : > { %v4315_v44 = vadd.f32 %v1631_v49, %v4186_v1  ;;  %v2547_v1 = vpop.permute.xlu1 %2546  ;;  %v2555_v50 = vpop.permute.xlu2 %2554  ;;  %v1485_v48 = vld [vmem:[#allocation2 + $0x60] sm:$0xff] }
 0x1b3   : > { %v2566_v42 = vsel %vm2556_vm9, %v2547_v1, %v2549_v36  ;;  %v2565_v10 = vsel %vm2556_vm9, %v2545_v24, %v2547_v1 }
 0x1b4   : > { %3356 = vmatmul.msk.bf16.vlgmr.msrb.gmra.mxu1 %vm241_vm1, %v4248_v16  ;;  %3357 = vmatmul.msk.bf16.vlgmr.msrb.gmra.mxu2 %vm241_vm1, %v4248_v16  ;;  %v2601_v23 = vsel %vm245_vm0, %v2566_v42, 0  ;;  %v2598_v5 = vsel %vm245_vm0, %v2565_v10, 0 }
 0x1b5   : > { %3358 = vmatmul.msk.bf16.vlgmr.msrb.gmra.mxu3 %vm241_vm1, %v4248_v16  ;;  %2645 = vmatpush.bf16.msrb.mxu1 %v2580_v20 }
 0x1b6   : > { %2658 = vmatpush.bf16.msrb.mxu2 %v2583_v26  ;;  %2671 = vmatpush.bf16.msrb.mxu3 %v2586_v12 }
 0x1b7   : > { %v1644_v43 = vpop.f32.mrf.mxu2 }
 0x1b8   : > { %v4328_v45 = vadd.f32 %v1644_v43, %v4228_v53  ;;  %v1657_v54 = vpop.f32.mrf.mxu3  ;;  %v2551_v53 = vpop.permute.xlu0 %2550 }
 0x1b9   : > { %v4331_v34 = vadd.f32 %v1657_v54, %v4240_v3  ;;  %v1633_v4 = vpop.f32.mrf.mxu1  ;;  %v1722_v35 = vpop.f32.mrf.mxu0 }
 0x1ba   : > { %v4339_v55 = vadd.f32 %v1722_v35, %v4276_v38  ;;  %v2553_v56 = vpop.permute.xlu1 %2552  ;;  %v2868_v40 = vpop.permute.xlu2 %2867 }
 0x1bb   : > { %v2569_v18 = vsel %vm2556_vm9, %v2553_v56, %v2555_v50 }
 0x1bc   : > { %3364 = vmatmul.msk.bf16.vlgmr.msrb.gmra.mxu0 %vm241_vm1, %v4336_v15  ;;  %v2610_v27 = vsel %vm245_vm0, %v2569_v18, 0 }
 0x1bd   : > { %2736 = vmatpush.bf16.msrb.mxu0 %v2601_v23 }
 0x1bf   : > { %v1646_v3 = vpop.f32.mrf.mxu2 }
 0x1c0   : > { %v1659_v58 = vpop.f32.mrf.mxu3  ;;  %v2864_v11 = vpop.permute.xlu0 %2863 }
 0x1c1   : > { %v1683_v6 = vpop.f32.mrf.mxu1  ;;  %v1724_v46 = vpop.f32.mrf.mxu0 }
 0x1c2   : > { %v4348_v38 = vadd.f32 %v1683_v6, %v4216_v28  ;;  %v2866_v28 = vpop.permute.xlu1 %2865  ;;  %v2874_v39 = vpop.permute.xlu2 %2873 }
 0x1c3   : > { %v2892_v14 = vsel %vm2891_vm10, %v2864_v11, %v2866_v28  ;;  %v4423_v11 = vld [vmem:[%s4568_s1] sm:$0xf] }
 0x1c4   : > { %3360 = vmatmul.msk.bf16.vlgmr.msra.gmra.mxu1 %vm241_vm1, %v4248_v16  ;;  %3361 = vmatmul.msk.bf16.vlgmr.msra.gmra.mxu2 %vm241_vm1, %v4248_v16  ;;  %v2909_v63 = vsel %vm245_vm0, %v2892_v14, 0 }
 0x1c5   : > { %3363 = vmatmul.msk.bf16.vlgmr.msra.gmra.mxu3 %vm241_vm1, %v4336_v15  ;;  %2697 = vmatpush.bf16.msra.mxu1 %v2592_v25 }
 0x1c6   : > { %2710 = vmatpush.bf16.msra.mxu2 %v2595_v41  ;;  %2723 = vmatpush.bf16.msra.mxu3 %v2598_v5 }
 0x1c7   : > { %v1696_v51 = vpop.f32.mrf.mxu2 }
 0x1c8   : > { %v4361_v32 = vadd.f32 %v1696_v51, %v4261_v19  ;;  %v1709_v17 = vpop.f32.mrf.mxu3  ;;  %v2567_v19 = vsel %vm2556_vm9, %v2549_v36, %v2551_v53  ;;  %v2870_v30 = vpop.permute.xlu0 %2869 }
 0x1c9   : > { %v4364_v52 = vadd.f32 %v1709_v17, %v4273_v37  ;;  %v1685_v16 = vpop.f32.mrf.mxu1  ;;  %v1774_v2 = vpop.f32.mrf.mxu0  ;;  %v2568_v37 = vsel %vm2556_vm9, %v2551_v53, %v2553_v56  ;;  %v2604_v60 = vsel %vm245_vm0, %v2567_v19, 0  ;;  %v2894_v35 = vsel %vm2891_vm10, %v2868_v40, %v2870_v30 }
 0x1ca   : > { %v1790_v57 = vadd.f32 %v1774_v2, %v1485_v48  ;;  %v2607_v7 = vsel %vm245_vm0, %v2568_v37, 0  ;;  %v2915_v3 = vsel %vm245_vm0, %v2894_v35, 0  ;;  %v2880_v58 = vpop.permute.xlu2 %2879 }
 0x1cc   : > { %1803 = vst.msk [vmem:[#allocation2 + $0x60] sm:$0xff] %vm184_vm5, %v1790_v57  ;;  %3368 = vmatmul.msk.bf16.vlgmr.msra.gmra.mxu0 %vm241_vm1, %v4336_v15 }
 0x1cd   : > { %2954 = vmatpush.bf16.msra.mxu0 %v2909_v63  ;;  %v3430_v63 = vmov 0  }
 0x1ce   : > { %3411 = vset.pattern.permute.xlu2 %v3430_v63  ;;  %3412 = vset.pattern.permute.xlu0 %v3430_v63 }
 0x1cf   : > { %v1698_v61 = vpop.f32.mrf.mxu2 }
 0x1d0   : > { %v1711_v33 = vpop.f32.mrf.mxu3  ;;  %v2876_v42 = vpop.permute.xlu0 %2875 }
 0x1d1   : > { %v1735_v22 = vpop.f32.mrf.mxu1  ;;  %v1776_v13 = vpop.f32.mrf.mxu0 }
 0x1d2   : > { %v4374_v9 = vadd.f32 %v1735_v22, %v4251_v21  ;;  %v2872_v21 = vpop.permute.xlu1 %2871 }
 0x1d3   : > { %v2896_v62 = vsel %vm2891_vm10, %v2872_v21, %v2874_v39 }
 0x1d4   : > { %3365 = vmatmul.msk.bf16.vlgmr.msrb.gmra.mxu1 %vm241_vm1, %v4336_v15  ;;  %3366 = vmatmul.msk.bf16.vlgmr.msrb.gmra.mxu2 %vm241_vm1, %v4336_v15  ;;  %v2921_v43 = vsel %vm245_vm0, %v2896_v62, 0 }
 0x1d5   : > { %3367 = vmatmul.msk.bf16.vlgmr.msrb.gmra.mxu3 %vm241_vm1, %v4336_v15  ;;  %2749 = vmatpush.bf16.msrb.mxu1 %v2604_v60 }
 0x1d6   : > { %2762 = vmatpush.bf16.msrb.mxu2 %v2607_v7  ;;  %2775 = vmatpush.bf16.msrb.mxu3 %v2610_v27 }
 0x1d7   : > { %v1748_v49 = vpop.f32.mrf.mxu2 }
 0x1d8   : > { %v4387_v20 = vadd.f32 %v1748_v49, %v4289_v47  ;;  %v1761_v26 = vpop.f32.mrf.mxu3  ;;  %v2893_v47 = vsel %vm2891_vm10, %v2866_v28, %v2868_v40  ;;  %v2882_v8 = vpop.permute.xlu0 %2881 }
 0x1d9   : > { %v4390_v12 = vadd.f32 %v1761_v26, %v4302_v0  ;;  %v1737_v36 = vpop.f32.mrf.mxu1  ;;  %v1988_v24 = vpop.f32.mrf.mxu0  ;;  %v2895_v0 = vsel %vm2891_vm10, %v2870_v30, %v2872_v21  ;;  %v2912_v56 = vsel %vm245_vm0, %v2893_v47, 0  ;;  %v2900_v6 = vsel %vm2891_vm10, %v2880_v58, %v2882_v8 }
 0x1da   : > { %v4393_v1 = vadd.f32 %v1988_v24, %v4331_v34  ;;  %v2918_v59 = vsel %vm245_vm0, %v2895_v0, 0  ;;  %v2933_v51 = vsel %vm245_vm0, %v2900_v6, 0  ;;  %v2886_v21 = vpop.permute.xlu2 %2885 }
 0x1dc   : > { %3372 = vmatmul.msk.bf16.vlgmr.msrb.gmra.mxu0 %vm241_vm1, %v4336_v15 }
 0x1dd   : > { %3006 = vmatpush.bf16.msrb.mxu0 %v2921_v43 }
 0x1df   : > { %v1750_v54 = vpop.f32.mrf.mxu2 }
 0x1e0   : > { %v1763_v4 = vpop.f32.mrf.mxu3  ;;  %v2888_v37 = vpop.permute.xlu0 %2887 }
 0x1e1   : > { %v1949_v23 = vpop.f32.mrf.mxu1  ;;  %v1990_v53 = vpop.f32.mrf.mxu0 }
 0x1e2   : > { %v4402_v34 = vadd.f32 %v1949_v23, %v4279_v29  ;;  %v2878_v29 = vpop.permute.xlu1 %2877 }
 0x1e3   : > { %v2898_v16 = vsel %vm2891_vm10, %v2876_v42, %v2878_v29  ;;  %v2899_v48 = vsel %vm2891_vm10, %v2878_v29, %v2880_v58 }
 0x1e4   : > { %3369 = vmatmul.msk.bf16.vlgmr.msra.gmra.mxu1 %vm241_vm1, %v4336_v15  ;;  %3370 = vmatmul.msk.bf16.vlgmr.msra.gmra.mxu2 %vm241_vm1, %v4336_v15  ;;  %v2927_v19 = vsel %vm245_vm0, %v2898_v16, 0  ;;  %v2930_v33 = vsel %vm245_vm0, %v2899_v48, 0 }
 0x1e5   : > { %3371 = vmatmul.msk.bf16.vlgmr.msra.gmra.mxu3 %vm241_vm1, %v4336_v15  ;;  %2967 = vmatpush.bf16.msra.mxu1 %v2912_v56 }
 0x1e6   : > { %2980 = vmatpush.bf16.msra.mxu2 %v2915_v3  ;;  %2993 = vmatpush.bf16.msra.mxu3 %v2918_v59  ;;  %v1816_v59 = vld [vmem:[#allocation2 + $0x60] sm:$0xff] }
 0x1e7   : > { %v1962_v10 = vpop.f32.mrf.mxu2 }
 0x1e8   : > { %v4415_v46 = vadd.f32 %v1962_v10, %v4315_v44  ;;  %v1975_v25 = vpop.f32.mrf.mxu3 }
 0x1e9   : > { %v4418_v41 = vadd.f32 %v1975_v25, %v4328_v45  ;;  %v1951_v5 = vpop.f32.mrf.mxu1  ;;  %v2040_v50 = vpop.f32.mrf.mxu0  ;;  %v2897_v45 = vsel %vm2891_vm10, %v2874_v39, %v2876_v42 }
 0x1ea   : > { %v4426_v28 = vadd.f32 %v2040_v50, %v4364_v52  ;;  %v2884_v44 = vpop.permute.xlu1 %2883  ;;  %v3155_v52 = vld [vmem:[%s4569_s2] sm:$0xff]  ;;  %v2924_v61 = vsel %vm245_vm0, %v2897_v45, 0 }
 0x1eb   : > { %3158 = vperm.xlu2 %3411, %v3155_v52   ;;  %v2901_v62 = vsel %vm2891_vm10, %v2882_v8, %v2884_v44  ;;  %v2902_v26 = vsel %vm2891_vm10, %v2884_v44, %v2886_v21 }
 0x1ec   : > { %3376 = vmatmul.msk.bf16.vlgmr.msra.gmra.mxu0 %vm241_vm1, %v4423_v11  ;;  %v2936_v43 = vsel %vm245_vm0, %v2901_v62, 0  ;;  %v2939_v42 = vsel %vm245_vm0, %v2902_v26, 0 }
 0x1ed   : > { %3058 = vmatpush.bf16.msra.mxu0 %v2933_v51 }
 0x1ef   : > { %v1964_v14 = vpop.f32.mrf.mxu2 }
 0x1f0   : > { %v1977_v17 = vpop.f32.mrf.mxu3 }
 0x1f1   : > { %v2001_v2 = vpop.f32.mrf.mxu1  ;;  %v2042_v57 = vpop.f32.mrf.mxu0 }
 0x1f2   : > { %v4438_v40 = vadd.f32 %v2001_v2, %v4305_v31  ;;  %v2890_v31 = vpop.permute.xlu1 %2889 }
 0x1f3   : > { %v2904_v22 = vsel %vm2891_vm10, %v2888_v37, %v2890_v31 }
 0x1f4   : > { %3373 = vmatmul.msk.bf16.vlgmr.msrb.gmra.mxu1 %vm241_vm1, %v4336_v15  ;;  %3374 = vmatmul.msk.bf16.vlgmr.msrb.gmra.mxu2 %vm241_vm1, %v4336_v15 }
 0x1f5   : > { %3375 = vmatmul.msk.bf16.vlgmr.msrb.gmra.mxu3 %vm241_vm1, %v4336_v15  ;;  %3019 = vmatpush.bf16.msrb.mxu1 %v2924_v61  ;;  %v2945_v15 = vsel %vm245_vm0, %v2904_v22, 0 }
 0x1f6   : > { %3032 = vmatpush.bf16.msrb.mxu2 %v2927_v19  ;;  %3045 = vmatpush.bf16.msrb.mxu3 %v2930_v33 }
 0x1f7   : > { %v2014_v18 = vpop.f32.mrf.mxu2 }
 0x1f8   : > { %v4451_v13 = vadd.f32 %v2014_v18, %v4348_v38  ;;  %v2027_v60 = vpop.f32.mrf.mxu3 }
 0x1f9   : > { %v2115_v7 = vadd.f32 %v2027_v60, %v4361_v32  ;;  %v2003_v27 = vpop.f32.mrf.mxu1  ;;  %v2092_v39 = vpop.f32.mrf.mxu0  ;;  %v2903_v32 = vsel %vm2891_vm10, %v2886_v21, %v2888_v37 }
 0x1fa   : > { %v4455_v30 = vadd.f32 %v2092_v39, %v4390_v12  ;;  %v2942_v54 = vsel %vm245_vm0, %v2903_v32, 0 }
 0x1fc   : > { %3380 = vmatmul.msk.bf16.vlgmr.msrb.gmra.mxu0 %vm241_vm1, %v4423_v11 }
 0x1fd   : > { %3110 = vmatpush.bf16.msrb.mxu0 %v2945_v15 }
 0x1ff   : > { %v2016_v49 = vpop.f32.mrf.mxu2 }
 0x200   : > { %v2029_v38 = vpop.f32.mrf.mxu3 }
 0x201   : > { %v2053_v36 = vpop.f32.mrf.mxu1  ;;  %v2094_v24 = vpop.f32.mrf.mxu0 }
 0x202   : > { %v2117_v12 = vadd.f32 %v2053_v36, %v4339_v55 }
 0x204   : > { %3377 = vmatmul.msk.bf16.vlgmr.msra.gmra.mxu1 %vm241_vm1, %v4423_v11  ;;  %3378 = vmatmul.msk.bf16.vlgmr.msra.gmra.mxu2 %vm241_vm1, %v4423_v11 }
 0x205   : > { %3379 = vmatmul.msk.bf16.vlgmr.msra.gmra.mxu3 %vm241_vm1, %v4423_v11  ;;  %3071 = vmatpush.bf16.msra.mxu1 %v2936_v43 }
 0x206   : > { %3084 = vmatpush.bf16.msra.mxu2 %v2939_v42  ;;  %3097 = vmatpush.bf16.msra.mxu3 %v2942_v54 }
 0x207   : > { %v2066_v47 = vpop.f32.mrf.mxu2 }
 0x208   : > { %v2118_v55 = vadd.f32 %v2066_v47, %v4374_v9  ;;  %v2079_v4 = vpop.f32.mrf.mxu3 }
 0x209   : > { %v2119_v35 = vadd.f32 %v2079_v4, %v4387_v20  ;;  %v2055_v0 = vpop.f32.mrf.mxu1  ;;  %v2311_v23 = vpop.f32.mrf.mxu0 }
 0x20a   : > { %v4476_v53 = vadd.f32 %v2311_v23, %v4418_v41 }
 0x20c   : > { %3384 = vmatmul.msk.bf16.vlgmr.msra.gmra.mxu0 %vm241_vm1, %v4423_v11 }
 0x20f   : > { %v2068_v56 = vpop.f32.mrf.mxu2 }
 0x210   : > { %v2081_v3 = vpop.f32.mrf.mxu3 }
 0x211   : > { %v2105_v58 = vpop.f32.mrf.mxu1  ;;  %v2313_v8 = vpop.f32.mrf.mxu0 }
 0x212   : > { %v2121_v29 = vadd.f32 %v2105_v58, %v1816_v59 }
 0x214   : > { %2134 = vst.msk [vmem:[#allocation2 + $0x60] sm:$0xff] %vm184_vm5, %v2121_v29  ;;  %3381 = vmatmul.msk.bf16.vlgmr.msrb.gmra.mxu1 %vm241_vm1, %v4423_v11  ;;  %3382 = vmatmul.msk.bf16.vlgmr.msrb.gmra.mxu2 %vm241_vm1, %v4423_v11 }
 0x215   : > { %3383 = vmatmul.msk.bf16.vlgmr.msrb.gmra.mxu3 %vm241_vm1, %v4423_v11 }
 0x217   : > { %v2285_v9 = vpop.f32.mrf.mxu2 }
 0x218   : > { %v2445_v20 = vadd.f32 %v2285_v9, %v4402_v34  ;;  %v2298_v10 = vpop.f32.mrf.mxu3 }
 0x219   : > { %v2446_v6 = vadd.f32 %v2298_v10, %v4415_v46  ;;  %v2107_v25 = vpop.f32.mrf.mxu1  ;;  %v2363_v41 = vpop.f32.mrf.mxu0 }
 0x21a   : > { %v4489_v5 = vadd.f32 %v2363_v41, %v2115_v7 }
 0x21b   : > { %v2147_v15 = vld [vmem:[#allocation2 + $0x60] sm:$0xff] }
 0x21c   : > { %3388 = vmatmul.msk.bf16.vlgmr.msrb.gmra.mxu0 %vm241_vm1, %v4423_v11 }
 0x21f   : > { %v2287_v50 = vpop.f32.mrf.mxu2 }
 0x220   : > { %v2300_v51 = vpop.f32.mrf.mxu3 }
 0x221   : > { %v2324_v44 = vpop.f32.mrf.mxu1  ;;  %v2365_v14 = vpop.f32.mrf.mxu0 }
 0x222   : > { %v4494_v45 = vadd.f32 %v2324_v44, %v4393_v1 }
 0x224   : > { %3385 = vmatmul.msk.bf16.vlgmr.msra.gmra.mxu1 %vm241_vm1, %v4423_v11  ;;  %3386 = vmatmul.msk.bf16.vlgmr.msra.gmra.mxu2 %vm241_vm1, %v4423_v11 }
 0x225   : > { %3387 = vmatmul.msk.bf16.vlgmr.msra.gmra.mxu3 %vm241_vm1, %v4423_v11 }
 0x227   : > { %v2337_v34 = vpop.f32.mrf.mxu2 }
 0x228   : > { %v2449_v46 = vadd.f32 %v2337_v34, %v4438_v40  ;;  %v2350_v17 = vpop.f32.mrf.mxu3 }
 0x229   : > { %v2450_v16 = vadd.f32 %v2350_v17, %v4451_v13  ;;  %v2326_v48 = vpop.f32.mrf.mxu1  ;;  %v2415_v2 = vpop.f32.mrf.mxu0 }
 0x22a   : > { %v4504_v57 = vadd.f32 %v2415_v2, %v2119_v35 }
 0x22f   : > { %v2339_v1 = vpop.f32.mrf.mxu2 }
 0x230   : > { %v2352_v63 = vpop.f32.mrf.mxu3 }
 0x231   : > { %v2376_v52 = vpop.f32.mrf.mxu1  ;;  %v2417_v61 = vpop.f32.mrf.mxu0 }
 0x232   : > { %v4507_v19 = vadd.f32 %v2376_v52, %v4426_v28 }
 0x237   : > { %v2389_v33 = vpop.f32.mrf.mxu2 }
 0x238   : > { %v4509_v37 = vadd.f32 %v2389_v33, %v2117_v12  ;;  %v2402_v11 = vpop.f32.mrf.mxu3 }
 0x239   : > { %v2454_v31 = vadd.f32 %v2402_v11, %v2118_v55  ;;  %v2378_v40 = vpop.f32.mrf.mxu1  ;;  %v2634_v18 = vpop.f32.mrf.mxu0 }
 0x23a   : > { %v2782_v22 = vadd.f32 %v2634_v18, %v2446_v6 }
 0x23f   : > { %v2391_v13 = vpop.f32.mrf.mxu2 }
 0x240   : > { %v2404_v60 = vpop.f32.mrf.mxu3 }
 0x241   : > { %v2428_v7 = vpop.f32.mrf.mxu1  ;;  %v2636_v27 = vpop.f32.mrf.mxu0 }
 0x242   : > { %v4512_v39 = vadd.f32 %v2428_v7, %v4455_v30 }
 0x247   : > { %v2441_v21 = vpop.f32.mrf.mxu2 }
 0x248   : > { %v2457_v49 = vadd.f32 %v2441_v21, %v2147_v15  ;;  %v2621_v28 = vpop.f32.mrf.mxu3 }
 0x249   : > { %v2430_v62 = vpop.f32.mrf.mxu1  ;;  %v2686_v38 = vpop.f32.mrf.mxu0  ;;  %v2781_v56 = vadd.f32 %v2621_v28, %v2445_v20 }
 0x24a   : > { %2470 = vst.msk [vmem:[#allocation2 + $0x60] sm:$0xff] %vm184_vm5, %v2457_v49  ;;  %v4515_v26 = vadd.f32 %v2686_v38, %v2450_v16  ;;  %v4524_v20 = vpop.permute.xlu2 %3158 }
 0x24f   : > { %v2443_v32 = vpop.f32.mrf.mxu2 }
 0x250   : > { %v2623_v36 = vpop.f32.mrf.mxu3 }
 0x251   : > { %v2647_v24 = vpop.f32.mrf.mxu1  ;;  %v2688_v12 = vpop.f32.mrf.mxu0  ;;  %v2483_v50 = vld [vmem:[#allocation2 + $0x60] sm:$0xff] }
 0x252   : > { %v2783_v61 = vadd.f32 %v2647_v24, %v4476_v53 }
 0x257   : > { %v2660_v43 = vpop.f32.mrf.mxu2 }
 0x258   : > { %v2673_v42 = vpop.f32.mrf.mxu3 }
 0x259   : > { %v2649_v54 = vpop.f32.mrf.mxu1  ;;  %v2738_v47 = vpop.f32.mrf.mxu0  ;;  %v2785_v41 = vadd.f32 %v2673_v42, %v2449_v46 }
 0x25a   : > { %v4517_v30 = vadd.f32 %v2738_v47, %v2454_v31  ;;  %v2784_v31 = vadd.f32 %v2660_v43, %v4494_v45 }
 0x25f   : > { %v2662_v55 = vpop.f32.mrf.mxu2 }
 0x260   : > { %v2675_v4 = vpop.f32.mrf.mxu3 }
 0x261   : > { %v2699_v35 = vpop.f32.mrf.mxu1  ;;  %v2740_v0 = vpop.f32.mrf.mxu0 }
 0x262   : > { %v2787_v42 = vadd.f32 %v2699_v35, %v4489_v5 }
 0x267   : > { %v2712_v23 = vpop.f32.mrf.mxu2 }
 0x268   : > { %v2725_v3 = vpop.f32.mrf.mxu3  ;;  %v2788_v55 = vadd.f32 %v2712_v23, %v4507_v19 }
 0x269   : > { %v2701_v59 = vpop.f32.mrf.mxu1  ;;  %v2956_v58 = vpop.f32.mrf.mxu0  ;;  %v2789_v18 = vadd.f32 %v2725_v3, %v4509_v37 }
 0x26a   : > { %v3116_v8 = vadd.f32 %v2956_v58, %v2781_v56 }
 0x26c   : > { %v3161_v52 = vadd.f32 %v4524_v20, %v3116_v8 }
 0x26e   : > { %v3174_v33 = vmax.f32 %v3161_v52, 0.0 }
 0x26f   : > { %v2714_v29 = vpop.f32.mrf.mxu2 }
 0x270   : > { %v2727_v9 = vpop.f32.mrf.mxu3 }
 0x271   : > { %v4519_v10 = vpop.f32.mrf.mxu1  ;;  %v2958_v6 = vpop.f32.mrf.mxu0 }
 0x277   : > { %v4521_v25 = vpop.f32.mrf.mxu2 }
 0x278   : > { %v2777_v51 = vpop.f32.mrf.mxu3 }
 0x279   : > { %v2793_v44 = vadd.f32 %v2777_v51, %v2483_v50  ;;  %v2753_v14 = vpop.f32.mrf.mxu1  ;;  %v3008_v34 = vpop.f32.mrf.mxu0 }
 0x27a   : > { %v3120_v17 = vadd.f32 %v3008_v34, %v2785_v41 }
 0x27b   : > { %2806 = vst.msk [vmem:[#allocation2 + $0x60] sm:$0xff] %vm184_vm5, %v2793_v44 }
 0x27c   : > { %v3165_v24 = vadd.f32 %v4524_v20, %v3120_v17 }
 0x27e   : > { %v3178_v54 = vmax.f32 %v3165_v24, 0.0 }
 0x27f   : > { %v2766_v16 = vpop.f32.mrf.mxu2 }
 0x280   : > { %v2779_v48 = vpop.f32.mrf.mxu3 }
 0x281   : > { %v2969_v2 = vpop.f32.mrf.mxu1  ;;  %v3010_v1 = vpop.f32.mrf.mxu0  ;;  %v2791_v48 = vadd.f32 %v4519_v10, %v4504_v57 }
 0x282   : > { %v3117_v63 = vadd.f32 %v2969_v2, %v2782_v22  ;;  %v2819_v8 = vld [vmem:[#allocation2 + $0x60] sm:$0xff] }
 0x284   : > { %v3162_v46 = vadd.f32 %v4524_v20, %v3117_v63  ;;  %v2792_v63 = vadd.f32 %v4521_v25, %v4512_v39 }
 0x286   : > { %v3175_v11 = vmax.f32 %v3162_v46, 0.0 }
 0x287   : > { %v2982_v40 = vpop.f32.mrf.mxu2 }
 0x288   : > { %v3187_v22 = vpack.c.bf16 %v3175_v11, %v3174_v33  ;;  %v3118_v13 = vadd.f32 %v2982_v40, %v2783_v61  ;;  %v2995_v60 = vpop.f32.mrf.mxu3 }
 0x289   : > { %v3119_v7 = vadd.f32 %v2995_v60, %v2784_v31  ;;  %v2971_v27 = vpop.f32.mrf.mxu1  ;;  %v3060_v53 = vpop.f32.mrf.mxu0 }
 0x28a   : > { %3194 = vst [vmem:[%s4534_s24] sm:$0xff] %v3187_v22  ;;  %v3163_v15 = vadd.f32 %v4524_v20, %v3118_v13  ;;  %v3124_v45 = vadd.f32 %v3060_v53, %v2789_v18 }
 0x28b   : > { %v3164_v21 = vadd.f32 %v4524_v20, %v3119_v7 }
 0x28c   : > { %v3176_v49 = vmax.f32 %v3163_v15, 0.0  ;;  %v3169_v44 = vadd.f32 %v4524_v20, %v3124_v45 }
 0x28d   : > { %v3177_v28 = vmax.f32 %v3164_v21, 0.0 }
 0x28e   : > { %v3182_v2 = vmax.f32 %v3169_v44, 0.0 }
 0x28f   : > { %v3188_v62 = vpack.c.bf16 %v3177_v28, %v3176_v49  ;;  %v2984_v38 = vpop.f32.mrf.mxu2 }
 0x290   : > { %v2997_v32 = vpop.f32.mrf.mxu3 }
 0x291   : > { %3195 = vst [vmem:[%s4534_s24 + $0x8] sm:$0xff] %v3188_v62  ;;  %v3021_v37 = vpop.f32.mrf.mxu1  ;;  %v3062_v36 = vpop.f32.mrf.mxu0 }
 0x292   : > { %v3121_v12 = vadd.f32 %v3021_v37, %v4515_v26 }
 0x294   : > { %v3166_v43 = vadd.f32 %v4524_v20, %v3121_v12 }
 0x296   : > { %v3179_v47 = vmax.f32 %v3166_v43, 0.0 }
 0x297   : > { %v3034_v4 = vpop.f32.mrf.mxu2 }
 0x298   : > { %v3189_v0 = vpack.c.bf16 %v3179_v47, %v3178_v54  ;;  %v3122_v56 = vadd.f32 %v3034_v4, %v2787_v42  ;;  %v3047_v3 = vpop.f32.mrf.mxu3 }
 0x299   : > { %v3123_v59 = vadd.f32 %v3047_v3, %v2788_v55  ;;  %v3023_v58 = vpop.f32.mrf.mxu1  ;;  %v3112_v29 = vpop.f32.mrf.mxu0 }
 0x29a   : > { %3196 = vst [vmem:[%s4534_s24 + $0x10] sm:$0xff] %v3189_v0  ;;  %v3167_v26 = vadd.f32 %v4524_v20, %v3122_v56  ;;  %v3128_v9 = vadd.f32 %v3112_v29, %v2819_v8 }
 0x29b   : > { %v3168_v6 = vadd.f32 %v4524_v20, %v3123_v59 }
 0x29c   : > { %v3180_v5 = vmax.f32 %v3167_v26, 0.0  ;;  %3141 = vst.msk [vmem:[#allocation2 + $0x60] sm:$0xff] %vm184_vm5, %v3128_v9 }
 0x29d   : > { %v3181_v35 = vmax.f32 %v3168_v6, 0.0 }
 0x29f   : > { %v3190_v19 = vpack.c.bf16 %v3181_v35, %v3180_v5  ;;  %v3036_v23 = vpop.f32.mrf.mxu2 }
 0x2a0   : > { %v3049_v41 = vpop.f32.mrf.mxu3 }
 0x2a1   : > { %3197 = vst [vmem:[%s4534_s24 + $0x18] sm:$0xff] %v3190_v19  ;;  %v3073_v50 = vpop.f32.mrf.mxu1  ;;  %v3114_v51 = vpop.f32.mrf.mxu0 }
 0x2a2   : > { %v3125_v14 = vadd.f32 %v3073_v50, %v4517_v30 }
 0x2a3   : > { %v3154_v34 = vld [vmem:[#allocation2 + $0x60] sm:$0xff] }
 0x2a4   : > { %v3170_v17 = vadd.f32 %v4524_v20, %v3125_v14  ;;  %v3173_v16 = vadd.f32 %v4524_v20, %v3154_v34 }
 0x2a6   : > { %v3183_v1 = vmax.f32 %v3170_v17, 0.0  ;;  %v3186_v52 = vmax.f32 %v3173_v16, 0.0 }
 0x2a7   : > { %v3086_v46 = vpop.f32.mrf.mxu2 }
 0x2a8   : > { %v3191_v30 = vpack.c.bf16 %v3183_v1, %v3182_v2  ;;  %v3126_v61 = vadd.f32 %v3086_v46, %v2791_v48  ;;  %v3099_v33 = vpop.f32.mrf.mxu3  ;;  %v3193_v11 = vpack.c.bf16 %v3186_v52, %v3186_v52 }
 0x2a9   : > { %v3127_v31 = vadd.f32 %v3099_v33, %v2792_v63  ;;  %v3075_v40 = vpop.f32.mrf.mxu1 }
 0x2aa   : > { %3198 = vst [vmem:[%s4534_s24 + $0x20] sm:$0xff] %v3191_v30  ;;  %v3171_v18 = vadd.f32 %v4524_v20, %v3126_v61 }
 0x2ab   : > { %3201 = vst.msk [vmem:[%s4534_s24 + $0x30] sm:$0xf] %vm3200_vm11, %v3193_v11  ;;  %v3172_v57 = vadd.f32 %v4524_v20, %v3127_v31 }
 0x2ac   : > { %v3184_v10 = vmax.f32 %v3171_v18, 0.0 }
 0x2ad   : > { %v3185_v22 = vmax.f32 %v3172_v57, 0.0 }
 0x2af   : > { %v3192_v13 = vpack.c.bf16 %v3185_v22, %v3184_v10  ;;  %v3088_v39 = vpop.f32.mrf.mxu2 }
 0x2b0   : > { %v3101_v25 = vpop.f32.mrf.mxu3 }
 0x2b1   : > { %3199 = vst [vmem:[%s4534_s24 + $0x28] sm:$0xff] %v3192_v13 }
 0x2b2 PF: > { %s13_s12 = sadd.s32 1, %s3419_s12  }
 0x2b3   : > { %p10_p4 = scmp.ge.s32.totalorder %s13_s12, 4  }
 0x2b5   :  { %12 = sbr.rel (!%p10_p4) target bundleno = 1 (0x1), region = 70 }

// kernel: pixel_decoder_forward.8
= control target key start
LH: loop header
LB: loop body
LE: loop exit
PB: predicated region body
PF: predicated region fallthrough
CT: control target
= control target key end

     0   :  { %s3705_s12 = smov 0   ;;  %s4907_s0 = inlined_call_operand.vmem [shape: bf16[2,8,1892], index: 0, kind: input, shape index: {}]   ;;  %s4908_s1 = inlined_call_operand.vmem [shape: bf16[9,8,8], index: 1, kind: input, shape index: {}]   ;;  %s4909_s2 = inlined_call_operand.vmem [shape: f32[8,1], index: 2, kind: input, shape index: {}]   ;;  %s4910_s3 = inlined_call_operand.vmem [shape: bf16[2,1,8,1763], index: 3, kind: output, shape index: {}]  }
   0x1 LB: > { %s3502_s13 = sadd.s32 4294967295, %s3673_s12   ;;  %p3506_p0 = scmp.ge.s32.totalorder %s3673_s12, 1  ;;  %s3673_s12 = sphi %s3705_s12, %s13_s12  }
   0x2   : > { %p137_p1 = scmp.lt.s32.totalorder %s3673_s12, 3 }
   0x4   : > { %p138_p2 = pnand %p3506_p0, %p137_p1 }
   0x5   : > { %p161_p3 = scmp.lt.s32.totalorder (!%p138_p2), %s3502_s13, 1  ;;  %s3675_s18 = smov (!%p138_p2), 127  }
   0x6   : > { %141 = sbr.rel (%p138_p2) target bundleno = 725 (0x2d5), region = 32  ;;  %s3676_s21 = smov (!%p138_p2), 126  }
   0x7   : > { %s3677_s22 = smov (!%p138_p2), 85   ;;  %s3678_s23 = smov (!%p138_p2), 84  }
   0x8   : > { %s3679_s26 = smov (!%p138_p2), 83   ;;  %s3681_s4 = smov (!%p138_p2), 42  }
   0x9   : > { %s3682_s5 = smov (!%p138_p2), 41   ;;  %s3683_s8 = smov (!%p138_p2), 40  }
   0xb   : > { %s4912_s13 = smov (!%p161_p3, %s3502_s13), 1  ;;  %vm249_vm0 = vcmask 1043456   ;;  %v3757_v22 = vld [vmem:[%s4908_s1 + $0x20] sm:$0xf]  ;;  %vm245_vm1 = vcmask 64512   ;;  %vm588_vm2 = vcmask 1039360  }
   0xc   : > { %s3645_s14 = smul.u32 60, %s4912_s13  ;;  %vm943_vm3 = vcmask 1031168   ;;  %vm185_vm4 = vcmask 809984   ;;  %vm1304_vm5 = vcmask 695296   ;;  %vm1666_vm6 = vcmask 687104  }
   0xd   : > { %vm2028_vm7 = vcmask 678912   ;;  %vm2390_vm8 = vcmask 343040   ;;  %vm2752_vm9 = vcmask 334848   ;;  %vm3113_vm10 = vcmask 326656  }
   0xe   : > { %s3719_s17 = scalar_lea.vmem %s4907_s0, %s3645_s14  ;;  %vm3444_vm11 = vcmask 809988  }
   0xf   : > { %v519_v0 = vld [vmem:[%s3719_s17 + $0x8] sm:$0xff]  ;;  %v518_v1 = vld [vmem:[%s3719_s17] sm:$0xff]  ;;  %v520_v4 = vld [vmem:[%s3719_s17 + $0x10] sm:$0xff] }
  0x10   : > { %v534_v2 = vunpack.c.l.b16 %v519_v0  ;;  %v532_v3 = vunpack.c.l.b16 %v518_v1  ;;  %v536_v5 = vunpack.c.l.b16 %v520_v4  ;;  %v535_v9 = vunpack.c.h.b16 %v519_v0  ;;  %v521_v14 = vld [vmem:[%s3719_s17 + $0x18] sm:$0xff]  ;;  %v522_v18 = vld [vmem:[%s3719_s17 + $0x20] sm:$0xff]  ;;  %v523_v25 = vld [vmem:[%s3719_s17 + $0x28] sm:$0xff] }
  0x11   : > { %v533_v10 = vunpack.c.h.b16 %v518_v1  ;;  %v537_v11 = vunpack.c.h.b16 %v520_v4  ;;  %v538_v16 = vunpack.c.l.b16 %v521_v14  ;;  %v539_v17 = vunpack.c.h.b16 %v521_v14  ;;  %v524_v36 = vld [vmem:[%s3719_s17 + $0x30] sm:$0xff]  ;;  %v1235_v54 = vld [vmem:[%s3719_s17 + $0x38] sm:$0xf]  ;;  %vm3445_vm12 = vmor %vm3444_vm11, %vm249_vm0 }
  0x12   : > { %v3724_v6 = vpack.c.b16 %v534_v2, %v534_v2  ;;  %v3726_v7 = vpack.c.b16 %v532_v3, %v532_v3  ;;  %v3728_v8 = vpack.c.b16 %v536_v5, %v536_v5  ;;  %v3736_v12 = vpack.c.b16 %v535_v9, %v535_v9  ;;  %v3924_v9 = vld [vmem:[%s4908_s1 + $0x1c] sm:$0xf] }
  0x13   : > { %v3738_v13 = vpack.c.b16 %v533_v10, %v533_v10  ;;  %v3741_v15 = vpack.c.b16 %v537_v11, %v537_v11  ;;  %v540_v19 = vunpack.c.l.b16 %v522_v18  ;;  %v3759_v23 = vpack.c.b16 %v538_v16, %v538_v16 }
  0x14   : > { %564 = vrot.lane.b32.xlu1 %v3724_v6, %s3675_s18  ;;  %560 = vrot.lane.b32.xlu0 %v3726_v7, %s3675_s18  ;;  %v251_v20 = vsel %vm249_vm0, %v3726_v7, 0  ;;  %v3761_v24 = vpack.c.b16 %v539_v17, %v539_v17  ;;  %v541_v27 = vunpack.c.h.b16 %v522_v18  ;;  %v542_v28 = vunpack.c.l.b16 %v523_v25 }
  0x15   : > { %568 = vrot.lane.b32.xlu2 %v3728_v8, %s3675_s18  ;;  %v254_v21 = vsel %vm249_vm0, %v3738_v13, 0  ;;  %299 = vmatpush.bf16.msra.mxu0 %v251_v20  ;;  %v3764_v26 = vpack.c.b16 %v540_v19, %v540_v19  ;;  %v257_v29 = vsel %vm249_vm0, %v3724_v6, 0  ;;  %v260_v30 = vsel %vm249_vm0, %v3736_v12, 0 }
  0x16   : > { %312 = vmatpush.bf16.msra.mxu1 %v254_v21  ;;  %v263_v31 = vsel %vm249_vm0, %v3728_v8, 0  ;;  %v266_v32 = vsel %vm249_vm0, %v3741_v15, 0  ;;  %v543_v33 = vunpack.c.h.b16 %v523_v25  ;;  %325 = vmatpush.bf16.msra.mxu2 %v257_v29  ;;  %v3784_v34 = vpack.c.b16 %v541_v27, %v541_v27 }
  0x17   : > { %338 = vmatpush.bf16.msra.mxu3 %v260_v30  ;;  %v3786_v35 = vpack.c.b16 %v542_v28, %v542_v28  ;;  %v544_v38 = vunpack.c.l.b16 %v524_v36  ;;  %v545_v39 = vunpack.c.h.b16 %v524_v36  ;;  %v269_v42 = vsel %vm249_vm0, %v3759_v23, 0 }
  0x18   : > { %3510 = vmatmul.msk.bf16.vlgmr.msra.gmra.mxu0 %vm245_vm1, %v3757_v22  ;;  %v3791_v37 = vpack.c.b16 %v543_v33, %v543_v33  ;;  %v272_v43 = vsel %vm249_vm0, %v3761_v24, 0  ;;  %v275_v44 = vsel %vm249_vm0, %v3764_v26, 0  ;;  %v278_v45 = vsel %vm249_vm0, %v3784_v34, 0 }
  0x19   : > { %3511 = vmatmul.msk.bf16.vlgmr.msra.gmra.mxu1 %vm245_vm1, %v3757_v22  ;;  %351 = vmatpush.bf16.msrb.mxu0 %v263_v31  ;;  %v3801_v40 = vpack.c.b16 %v544_v38, %v544_v38  ;;  %v3803_v41 = vpack.c.b16 %v545_v39, %v545_v39  ;;  %v281_v46 = vsel %vm249_vm0, %v3786_v35, 0  ;;  %v1258_v55 = vunpack.c.l.b16 %v1235_v54 }
  0x1a   : > { %364 = vmatpush.bf16.msrb.mxu1 %v266_v32  ;;  %3512 = vmatmul.msk.bf16.vlgmr.msra.gmra.mxu2 %vm245_vm1, %v3757_v22  ;;  %v284_v47 = vsel %vm249_vm0, %v3791_v37, 0 }
  0x1b   : > { %3513 = vmatmul.msk.bf16.vlgmr.msra.gmra.mxu3 %vm245_vm1, %v3757_v22  ;;  %377 = vmatpush.bf16.msrb.mxu2 %v269_v42  ;;  %v287_v48 = vsel %vm249_vm0, %v3801_v40, 0  ;;  %v290_v49 = vsel %vm249_vm0, %v3803_v41, 0  ;;  %v1273_v57 = vpack.c.b16 %v1258_v55, %v1258_v55 }
  0x1c   : > { %566 = vrot.lane.b32.xlu1 %v3736_v12, %s3675_s18  ;;  %562 = vrot.lane.b32.xlu0 %v3738_v13, %s3675_s18 }
  0x1d   : > { %570 = vrot.lane.b32.xlu2 %v3741_v15, %s3675_s18  ;;  %390 = vmatpush.bf16.msrb.mxu3 %v272_v43 }
  0x1e   : > { %403 = vmatpush.bf16.msra.mxu0 %v275_v44  ;;  %416 = vmatpush.bf16.msra.mxu1 %v278_v45 }
  0x1f   : > { %429 = vmatpush.bf16.msra.mxu2 %v281_v46 }
  0x21   : > { %442 = vmatpush.bf16.msra.mxu3 %v284_v47 }
  0x24   : > { %572 = vrot.lane.b32.xlu0 %v3759_v23, %s3675_s18  ;;  %574 = vrot.lane.b32.xlu1 %v3761_v24, %s3675_s18 }
  0x25   : > { %576 = vrot.lane.b32.xlu2 %v3764_v26, %s3675_s18 }
  0x28   : > { %3514 = vmatmul.msk.bf16.vlgmr.msrb.gmra.mxu0 %vm245_vm1, %v3757_v22 }
  0x29   : > { %3515 = vmatmul.msk.bf16.vlgmr.msrb.gmra.mxu1 %vm245_vm1, %v3757_v22  ;;  %455 = vmatpush.bf16.msrb.mxu0 %v287_v48 }
  0x2a   : > { %3516 = vmatmul.msk.bf16.vlgmr.msrb.gmra.mxu2 %vm245_vm1, %v3757_v22  ;;  %468 = vmatpush.bf16.msrb.mxu1 %v290_v49 }
  0x2b   : > { %3517 = vmatmul.msk.bf16.vlgmr.msrb.gmra.mxu3 %vm245_vm1, %v3757_v22 }
  0x2c   : > { %578 = vrot.lane.b32.xlu0 %v3784_v34, %s3675_s18  ;;  %580 = vrot.lane.b32.xlu1 %v3786_v35, %s3675_s18 }
  0x2d   : > { %582 = vrot.lane.b32.xlu2 %v3791_v37, %s3675_s18 }
  0x34   : > { %584 = vrot.lane.b32.xlu0 %v3801_v40, %s3675_s18  ;;  %586 = vrot.lane.b32.xlu1 %v3803_v41, %s3675_s18 }
  0x35   : > { %915 = vrot.lane.b32.xlu2 %v3726_v7, %s3676_s21 }
  0x38   : > { %3518 = vmatmul.msk.bf16.vlgmr.msra.gmra.mxu0 %vm245_vm1, %v3757_v22 }
  0x39   : > { %3519 = vmatmul.msk.bf16.vlgmr.msra.gmra.mxu1 %vm245_vm1, %v3757_v22 }
  0x3a   : > { %3520 = vmatmul.msk.bf16.vlgmr.msra.gmra.mxu2 %vm245_vm1, %v3757_v22 }
  0x3b   : > { %3521 = vmatmul.msk.bf16.vlgmr.msra.gmra.mxu3 %vm245_vm1, %v3757_v22 }
  0x3c   : > { %919 = vrot.lane.b32.xlu1 %v3724_v6, %s3676_s21  ;;  %917 = vrot.lane.b32.xlu0 %v3738_v13, %s3676_s21 }
  0x3d   : > { %921 = vrot.lane.b32.xlu2 %v3736_v12, %s3676_s21 }
  0x44   : > { %923 = vrot.lane.b32.xlu0 %v3728_v8, %s3676_s21  ;;  %925 = vrot.lane.b32.xlu1 %v3741_v15, %s3676_s21 }
  0x45   : > { %927 = vrot.lane.b32.xlu2 %v3759_v23, %s3676_s21 }
  0x48   : > { %3522 = vmatmul.msk.bf16.vlgmr.msrb.gmra.mxu0 %vm245_vm1, %v3757_v22 }
  0x49   : > { %3523 = vmatmul.msk.bf16.vlgmr.msrb.gmra.mxu1 %vm245_vm1, %v3757_v22 }
  0x4c   : > { %929 = vrot.lane.b32.xlu0 %v3761_v24, %s3676_s21  ;;  %931 = vrot.lane.b32.xlu1 %v3764_v26, %s3676_s21 }
  0x4d   : > { %933 = vrot.lane.b32.xlu2 %v3784_v34, %s3676_s21 }
  0x54   : > { %935 = vrot.lane.b32.xlu0 %v3786_v35, %s3676_s21  ;;  %937 = vrot.lane.b32.xlu1 %v3791_v37, %s3676_s21 }
  0x55   : > { %939 = vrot.lane.b32.xlu2 %v3801_v40, %s3676_s21 }
  0x5c   : > { %941 = vrot.lane.b32.xlu0 %v3803_v41, %s3676_s21  ;;  %1274 = vrot.lane.b32.xlu1 %v3726_v7, %s3677_s22  ;;  %s3646_s21 = smul.u32 56, %s4912_s13 }
  0x5d   : > { %1276 = vrot.lane.b32.xlu2 %v3738_v13, %s3677_s22 }
  0x5e   : > { %s4868_s24 = scalar_lea.vmem %s4910_s3, %s3646_s21 }
  0x64   : > { %1278 = vrot.lane.b32.xlu0 %v3724_v6, %s3677_s22  ;;  %1280 = vrot.lane.b32.xlu1 %v3736_v12, %s3677_s22 }
  0x65   : > { %1282 = vrot.lane.b32.xlu2 %v3728_v8, %s3677_s22 }
  0x6c   : > { %1284 = vrot.lane.b32.xlu0 %v3741_v15, %s3677_s22  ;;  %1286 = vrot.lane.b32.xlu1 %v3759_v23, %s3677_s22 }
  0x6d   : > { %1288 = vrot.lane.b32.xlu2 %v3761_v24, %s3677_s22 }
  0x6f   : > { %v569_v50 = vpop.permute.xlu2 %568 }
  0x74   : > { %1290 = vrot.lane.b32.xlu0 %v3764_v26, %s3677_s22  ;;  %1292 = vrot.lane.b32.xlu1 %v3784_v34, %s3677_s22 }
  0x75   : > { %1294 = vrot.lane.b32.xlu2 %v3786_v35, %s3677_s22 }
  0x77   : > { %v571_v53 = vpop.permute.xlu2 %570 }
  0x78   : > { %v593_v56 = vsel %vm588_vm2, %v569_v50, %v571_v53 }
  0x79   : > { %v618_v60 = vsel %vm249_vm0, %v593_v56, 0 }
  0x7c   : > { %1298 = vrot.lane.b32.xlu1 %v3801_v40, %s3677_s22  ;;  %1296 = vrot.lane.b32.xlu0 %v3791_v37, %s3677_s22 }
  0x7d   : > { %1300 = vrot.lane.b32.xlu2 %v3803_v41, %s3677_s22 }
  0x7f   : > { %v577_v5 = vpop.permute.xlu2 %576 }
  0x84   : > { %1636 = vrot.lane.b32.xlu1 %v3726_v7, %s3678_s23  ;;  %1302 = vrot.lane.b32.xlu0 %v1273_v57, %s3677_s22 }
  0x85   : > { %1638 = vrot.lane.b32.xlu2 %v3738_v13, %s3678_s23 }
  0x86   : > { %v565_v51 = vpop.permute.xlu1 %564  ;;  %v561_v52 = vpop.permute.xlu0 %560 }
  0x87   : > { %v583_v21 = vpop.permute.xlu2 %582 }
  0x8c   : > { %1642 = vrot.lane.b32.xlu1 %v3736_v12, %s3678_s23  ;;  %1640 = vrot.lane.b32.xlu0 %v3724_v6, %s3678_s23 }
  0x8d   : > { %1644 = vrot.lane.b32.xlu2 %v3728_v8, %s3678_s23 }
  0x8e   : > { %v567_v58 = vpop.permute.xlu1 %566  ;;  %v563_v59 = vpop.permute.xlu0 %562 }
  0x8f   : > { %v591_v61 = vsel %vm588_vm2, %v565_v51, %v567_v58  ;;  %v592_v62 = vsel %vm588_vm2, %v567_v58, %v569_v50  ;;  %v589_v63 = vsel %vm588_vm2, %v561_v52, %v563_v59  ;;  %v590_v0 = vsel %vm588_vm2, %v563_v59, %v565_v51  ;;  %v916_v31 = vpop.permute.xlu2 %915 }
  0x90   : > { %v612_v1 = vsel %vm249_vm0, %v591_v61, 0  ;;  %v615_v2 = vsel %vm249_vm0, %v592_v62, 0  ;;  %v606_v3 = vsel %vm249_vm0, %v589_v63, 0  ;;  %v609_v4 = vsel %vm249_vm0, %v590_v0, 0 }
  0x91   : > { %654 = vmatpush.bf16.msrb.mxu2 %v606_v3  ;;  %667 = vmatpush.bf16.msrb.mxu3 %v609_v4  ;;  %v4017_v4 = vld [vmem:[%s4908_s1 + $0x18] sm:$0xf] }
  0x92   : > { %680 = vmatpush.bf16.msra.mxu0 %v612_v1  ;;  %693 = vmatpush.bf16.msra.mxu1 %v615_v2 }
  0x94   : > { %3525 = vmatmul.msk.bf16.vlgmr.msrb.gmra.mxu2 %vm245_vm1, %v3924_v9  ;;  %3526 = vmatmul.msk.bf16.vlgmr.msrb.gmra.mxu3 %vm245_vm1, %v3924_v9 }
  0x95   : > { %706 = vmatpush.bf16.msra.mxu2 %v618_v60  ;;  %3527 = vmatmul.msk.bf16.vlgmr.msra.gmra.mxu0 %vm245_vm1, %v3924_v9  ;;  %v3966_v32 = vpop.f32.mrf.mxu0 }
  0x96   : > { %3528 = vmatmul.msk.bf16.vlgmr.msra.gmra.mxu1 %vm245_vm1, %v3924_v9  ;;  %v573_v10 = vpop.permute.xlu0 %572  ;;  %v575_v11 = vpop.permute.xlu1 %574  ;;  %1648 = vrot.lane.b32.xlu1 %v3759_v23, %s3678_s23 }
  0x97   : > { %v594_v14 = vsel %vm588_vm2, %v571_v53, %v573_v10  ;;  %v595_v16 = vsel %vm588_vm2, %v573_v10, %v575_v11  ;;  %v596_v17 = vsel %vm588_vm2, %v575_v11, %v577_v5  ;;  %1650 = vrot.lane.b32.xlu2 %v3761_v24, %s3678_s23  ;;  %1646 = vrot.lane.b32.xlu0 %v3741_v15, %s3678_s23  ;;  %v3975_v39 = vpop.f32.mrf.mxu1 }
  0x98   : > { %v621_v18 = vsel %vm249_vm0, %v594_v14, 0  ;;  %v624_v19 = vsel %vm249_vm0, %v595_v16, 0  ;;  %v627_v20 = vsel %vm249_vm0, %v596_v17, 0  ;;  %v1597_v17 = vld [vmem:[%s3719_s17 + $0x38] sm:$0xf] }
  0x99   : > { %719 = vmatpush.bf16.msra.mxu3 %v621_v18  ;;  %732 = vmatpush.bf16.msrb.mxu0 %v624_v19 }
  0x9a   : > { %745 = vmatpush.bf16.msrb.mxu1 %v627_v20  ;;  %v1620_v20 = vunpack.c.l.b16 %v1597_v17 }
  0x9e   : > { %v579_v22 = vpop.permute.xlu0 %578  ;;  %v581_v23 = vpop.permute.xlu1 %580  ;;  %1654 = vrot.lane.b32.xlu1 %v3784_v34, %s3678_s23 }
  0x9f   : > { %v597_v24 = vsel %vm588_vm2, %v577_v5, %v579_v22  ;;  %v598_v25 = vsel %vm588_vm2, %v579_v22, %v581_v23  ;;  %v599_v27 = vsel %vm588_vm2, %v581_v23, %v583_v21  ;;  %1656 = vrot.lane.b32.xlu2 %v3786_v35, %s3678_s23  ;;  %1652 = vrot.lane.b32.xlu0 %v3764_v26, %s3678_s23  ;;  %v922_v26 = vpop.permute.xlu2 %921  ;;  %v316_v47 = vpop.f32.mrf.mxu1 }
  0xa0   : > { %v630_v28 = vsel %vm249_vm0, %v597_v24, 0  ;;  %v633_v29 = vsel %vm249_vm0, %v598_v25, 0  ;;  %v636_v30 = vsel %vm249_vm0, %v599_v27, 0  ;;  %v4019_v5 = vpop.f32.mrf.mxu2  ;;  %v4021_v10 = vpop.f32.mrf.mxu3  ;;  %v1635_v23 = vpack.c.b16 %v1620_v20, %v1620_v20 }
  0xa1   : > { %758 = vmatpush.bf16.msrb.mxu2 %v630_v28  ;;  %771 = vmatpush.bf16.msrb.mxu3 %v633_v29 }
  0xa2   : > { %784 = vmatpush.bf16.msra.mxu0 %v636_v30 }
  0xa4   : > { %3529 = vmatmul.msk.bf16.vlgmr.msra.gmra.mxu2 %vm245_vm1, %v3924_v9  ;;  %3530 = vmatmul.msk.bf16.vlgmr.msra.gmra.mxu3 %vm245_vm1, %v3924_v9 }
  0xa5   : > { %3531 = vmatmul.msk.bf16.vlgmr.msrb.gmra.mxu0 %vm245_vm1, %v3924_v9 }
  0xa6   : > { %3532 = vmatmul.msk.bf16.vlgmr.msrb.gmra.mxu1 %vm245_vm1, %v3924_v9  ;;  %v585_v33 = vpop.permute.xlu0 %584  ;;  %v587_v34 = vpop.permute.xlu1 %586  ;;  %1660 = vrot.lane.b32.xlu1 %v3801_v40, %s3678_s23 }
  0xa7   : > { %v600_v35 = vsel %vm588_vm2, %v583_v21, %v585_v33  ;;  %v601_v36 = vsel %vm588_vm2, %v585_v33, %v587_v34  ;;  %v645_v38 = vsel %vm249_vm0, %v587_v34, 0  ;;  %1662 = vrot.lane.b32.xlu2 %v3803_v41, %s3678_s23  ;;  %v303_v40 = vpop.f32.mrf.mxu0  ;;  %1658 = vrot.lane.b32.xlu0 %v3791_v37, %s3678_s23  ;;  %v4006_v57 = vpop.f32.mrf.mxu1 }
  0xa8   : > { %v639_v42 = vsel %vm249_vm0, %v600_v35, 0  ;;  %v642_v43 = vsel %vm249_vm0, %v601_v36, 0  ;;  %823 = vmatpush.bf16.msra.mxu3 %v645_v38  ;;  %v329_v24 = vpop.f32.mrf.mxu2  ;;  %v342_v25 = vpop.f32.mrf.mxu3 }
  0xa9   : > { %797 = vmatpush.bf16.msra.mxu1 %v639_v42  ;;  %810 = vmatpush.bf16.msra.mxu2 %v642_v43 }
  0xae   : > { %v920_v44 = vpop.permute.xlu1 %919  ;;  %v918_v45 = vpop.permute.xlu0 %917  ;;  %1998 = vrot.lane.b32.xlu1 %v3726_v7, %s3679_s26 }
  0xaf   : > { %v944_v41 = vsel %vm943_vm3, %v916_v31, %v918_v45  ;;  %v945_v46 = vsel %vm943_vm3, %v918_v45, %v920_v44  ;;  %v946_v50 = vsel %vm943_vm3, %v920_v44, %v922_v26  ;;  %v928_v7 = vpop.permute.xlu2 %927  ;;  %v3999_v37 = vpop.f32.mrf.mxu0  ;;  %1664 = vrot.lane.b32.xlu0 %v1635_v23, %s3678_s23  ;;  %2000 = vrot.lane.b32.xlu2 %v3738_v13, %s3679_s26 }
  0xb0   : > { %v961_v48 = vsel %vm249_vm0, %v944_v41, 0  ;;  %v964_v49 = vsel %vm249_vm0, %v945_v46, 0  ;;  %v967_v51 = vsel %vm249_vm0, %v946_v50, 0  ;;  %v368_v0 = vpop.f32.mrf.mxu1  ;;  %v4045_v36 = vpop.f32.mrf.mxu2  ;;  %v3680_v41 = vmov 0.0  }
  0xb1   : > { %1009 = vmatpush.bf16.msrb.mxu0 %v961_v48  ;;  %1022 = vmatpush.bf16.msrb.mxu1 %v964_v49  ;;  %v4047_v38 = vpop.f32.mrf.mxu3  ;;  %186 = vst.msk [vmem:[#allocation2 + $0x68] sm:$0xff] %vm185_vm4, %v3680_v41 }
  0xb4   : > { %3533 = vmatmul.msk.bf16.vlgmr.msrb.gmra.mxu2 %vm245_vm1, %v3924_v9  ;;  %3534 = vmatmul.msk.bf16.vlgmr.msrb.gmra.mxu3 %vm245_vm1, %v3924_v9 }
  0xb5   : > { %3535 = vmatmul.msk.bf16.vlgmr.msra.gmra.mxu0 %vm245_vm1, %v3924_v9  ;;  %1035 = vmatpush.bf16.msrb.mxu2 %v967_v51 }
  0xb6   : > { %3536 = vmatmul.msk.bf16.vlgmr.msra.gmra.mxu1 %vm245_vm1, %v3924_v9  ;;  %v924_v52 = vpop.permute.xlu0 %923  ;;  %v926_v53 = vpop.permute.xlu1 %925  ;;  %2004 = vrot.lane.b32.xlu1 %v3736_v12, %s3679_s26 }
  0xb7   : > { %v947_v54 = vsel %vm943_vm3, %v922_v26, %v924_v52  ;;  %v948_v55 = vsel %vm943_vm3, %v924_v52, %v926_v53  ;;  %v949_v56 = vsel %vm943_vm3, %v926_v53, %v928_v7  ;;  %v934_v61 = vpop.permute.xlu2 %933  ;;  %v355_v62 = vpop.f32.mrf.mxu0  ;;  %2002 = vrot.lane.b32.xlu0 %v3724_v6, %s3679_s26  ;;  %2006 = vrot.lane.b32.xlu2 %v3728_v8, %s3679_s26 }
  0xb8   : > { %v970_v58 = vsel %vm249_vm0, %v947_v54, 0  ;;  %v973_v59 = vsel %vm249_vm0, %v948_v55, 0  ;;  %v976_v60 = vsel %vm249_vm0, %v949_v56, 0  ;;  %v4038_v22 = vpop.f32.mrf.mxu1  ;;  %v381_v47 = vpop.f32.mrf.mxu2  ;;  %v200_v51 = vld [vmem:[#allocation2 + $0x68] sm:$0xff] }
  0xb9   : > { %1048 = vmatpush.bf16.msrb.mxu3 %v970_v58  ;;  %1061 = vmatpush.bf16.msra.mxu0 %v973_v59  ;;  %v394_v48 = vpop.f32.mrf.mxu3  ;;  %v4072_v58 = vld [vmem:[%s3719_s17 + $0x18] sm:$0xff] }
  0xba   : > { %1074 = vmatpush.bf16.msra.mxu1 %v976_v60  ;;  %v1974_v60 = vunpack.c.l.b16 %v4072_v58  ;;  %v1959_v48 = vld [vmem:[%s3719_s17 + $0x38] sm:$0xf] }
  0xbe   : > { %v930_v12 = vpop.permute.xlu0 %929  ;;  %v932_v63 = vpop.permute.xlu1 %931 }
  0xbf   : > { %v950_v1 = vsel %vm943_vm3, %v928_v7, %v930_v12  ;;  %v951_v2 = vsel %vm943_vm3, %v930_v12, %v932_v63  ;;  %v952_v3 = vsel %vm943_vm3, %v932_v63, %v934_v61  ;;  %v4035_v18 = vpop.f32.mrf.mxu0  ;;  %v940_v27 = vpop.permute.xlu2 %939  ;;  %2008 = vrot.lane.b32.xlu0 %v3741_v15, %s3679_s26 }
  0xc0   : > { %v979_v11 = vsel %vm249_vm0, %v950_v1, 0  ;;  %v982_v14 = vsel %vm249_vm0, %v951_v2, 0  ;;  %v985_v16 = vsel %vm249_vm0, %v952_v3, 0  ;;  %v420_v31 = vpop.f32.mrf.mxu1  ;;  %v4089_v2 = vpack.c.b16 %v1974_v60, %v1974_v60  ;;  %v1956_v3 = vld [vmem:[%s3719_s17 + $0x20] sm:$0xff] }
  0xc1   : > { %v4079_v62 = vpop.f32.mrf.mxu3  ;;  %v1977_v17 = vunpack.c.h.b16 %v1956_v3 }
  0xc2   : > { %2010 = vrot.lane.b32.xlu1 %v4089_v2, %s3679_s26 }
  0xc4   : > { %3537 = vmatmul.msk.bf16.vlgmr.msra.gmra.mxu2 %vm245_vm1, %v3924_v9  ;;  %3538 = vmatmul.msk.bf16.vlgmr.msra.gmra.mxu3 %vm245_vm1, %v3924_v9 }
  0xc5   : > { %3540 = vmatmul.msk.bf16.vlgmr.msrb.gmra.mxu0 %vm245_vm1, %v4017_v4  ;;  %1087 = vmatpush.bf16.msra.mxu2 %v979_v11 }
  0xc6   : > { %3541 = vmatmul.msk.bf16.vlgmr.msrb.gmra.mxu1 %vm245_vm1, %v4017_v4  ;;  %v936_v19 = vpop.permute.xlu0 %935  ;;  %1100 = vmatpush.bf16.msra.mxu3 %v982_v14  ;;  %v938_v28 = vpop.permute.xlu1 %937  ;;  %v1976_v14 = vunpack.c.l.b16 %v1956_v3 }
  0xc7   : > { %v953_v21 = vsel %vm943_vm3, %v934_v61, %v936_v19  ;;  %1113 = vmatpush.bf16.msrb.mxu0 %v985_v16  ;;  %v407_v29 = vpop.f32.mrf.mxu0  ;;  %v954_v33 = vsel %vm943_vm3, %v936_v19, %v938_v28  ;;  %v955_v34 = vsel %vm943_vm3, %v938_v28, %v940_v27  ;;  %v1277_v6 = vpop.permute.xlu2 %1276 }
  0xc8   : > { %v988_v9 = vsel %vm249_vm0, %v953_v21, 0  ;;  %v991_v42 = vsel %vm249_vm0, %v954_v33, 0  ;;  %v994_v43 = vsel %vm249_vm0, %v955_v34, 0  ;;  %v470_v46 = vpop.f32.mrf.mxu1  ;;  %v4077_v61 = vpop.f32.mrf.mxu2  ;;  %v4098_v16 = vpack.c.b16 %v1976_v14, %v1976_v14 }
  0xc9   : > { %1126 = vmatpush.bf16.msrb.mxu1 %v988_v9  ;;  %v487_v52 = vadd.f32 %v470_v46, %v200_v51  ;;  %v446_v20 = vpop.f32.mrf.mxu3  ;;  %v4104_v9 = vpack.c.b16 %v1977_v17, %v1977_v17 }
  0xca   : > { %2014 = vrot.lane.b32.xlu0 %v4098_v16, %s3679_s26 }
  0xcb   : > { %501 = vst.msk [vmem:[#allocation2 + $0x68] sm:$0xff] %vm185_vm4, %v487_v52  ;;  %2016 = vrot.lane.b32.xlu1 %v4104_v9, %s3679_s26  ;;  %v1982_v52 = vunpack.c.l.b16 %v1959_v48 }
  0xce   : > { %v942_v30 = vpop.permute.xlu0 %941  ;;  %v1275_v44 = vpop.permute.xlu1 %1274 }
  0xcf   : > { %v956_v35 = vsel %vm943_vm3, %v940_v27, %v942_v30  ;;  %v1000_v40 = vsel %vm249_vm0, %v942_v30, 0  ;;  %v4063_v45 = vpop.f32.mrf.mxu0  ;;  %v1283_v50 = vpop.permute.xlu2 %1282  ;;  %v1305_v55 = vsel %vm1304_vm5, %v1275_v44, %v1277_v6 }
  0xd0   : > { %v997_v26 = vsel %vm249_vm0, %v956_v35, 0  ;;  %v472_v54 = vpop.f32.mrf.mxu1  ;;  %v1323_v12 = vsel %vm249_vm0, %v1305_v55, 0  ;;  %v433_v19 = vpop.f32.mrf.mxu2  ;;  %v4127_v35 = vld [vmem:[%s3719_s17 + $0x30] sm:$0xff] }
  0xd4   : > { %3542 = vmatmul.msk.bf16.vlgmr.msrb.gmra.mxu2 %vm245_vm1, %v4017_v4  ;;  %3543 = vmatmul.msk.bf16.vlgmr.msrb.gmra.mxu3 %vm245_vm1, %v4017_v4 }
  0xd5   : > { %3544 = vmatmul.msk.bf16.vlgmr.msra.gmra.mxu0 %vm245_vm1, %v4017_v4  ;;  %1139 = vmatpush.bf16.msrb.mxu2 %v991_v42  ;;  %v1957_v42 = vld [vmem:[%s3719_s17 + $0x28] sm:$0xff] }
  0xd6   : > { %3545 = vmatmul.msk.bf16.vlgmr.msra.gmra.mxu1 %vm245_vm1, %v4017_v4  ;;  %1152 = vmatpush.bf16.msrb.mxu3 %v994_v43  ;;  %v1279_v49 = vpop.permute.xlu0 %1278  ;;  %v1281_v7 = vpop.permute.xlu1 %1280  ;;  %v1980_v43 = vunpack.c.l.b16 %v4127_v35  ;;  %v1978_v3 = vunpack.c.l.b16 %v1957_v42 }
  0xd7   : > { %1165 = vmatpush.bf16.msra.mxu0 %v997_v26  ;;  %1178 = vmatpush.bf16.msra.mxu1 %v1000_v40  ;;  %v459_v53 = vpop.f32.mrf.mxu0  ;;  %v1306_v56 = vsel %vm1304_vm5, %v1277_v6, %v1279_v49  ;;  %v1307_v59 = vsel %vm1304_vm5, %v1279_v49, %v1281_v7  ;;  %v1308_v15 = vsel %vm1304_vm5, %v1281_v7, %v1283_v50  ;;  %v1289_v23 = vpop.permute.xlu2 %1288  ;;  %v1979_v26 = vunpack.c.h.b16 %v1957_v42  ;;  %v4144_v49 = vld [vmem:[%s3719_s17] sm:$0xff] }
  0xd8   : > { %v1326_v63 = vsel %vm249_vm0, %v1306_v56, 0  ;;  %v1329_v0 = vsel %vm249_vm0, %v1307_v59, 0  ;;  %v1332_v1 = vsel %vm249_vm0, %v1308_v15, 0  ;;  %v4131_v40 = vpack.c.b16 %v1980_v43, %v1980_v43 }
  0xd9   : > { %v4133_v6 = vpack.c.b16 %v1979_v26, %v1979_v26  ;;  %v1975_v7 = vunpack.c.h.b16 %v4072_v58  ;;  %v2330_v53 = vunpack.c.l.b16 %v4144_v49  ;;  %v1997_v58 = vpack.c.b16 %v1982_v52, %v1982_v52 }
  0xda   : > { %2022 = vrot.lane.b32.xlu1 %v4131_v40, %s3679_s26  ;;  %v4178_v19 = vpack.c.b16 %v1978_v3, %v1978_v3 }
  0xdb   : > { %2020 = vrot.lane.b32.xlu0 %v4133_v6, %s3679_s26  ;;  %v4162_v15 = vpack.c.b16 %v1975_v7, %v1975_v7 }
  0xdd   : > { %2012 = vrot.lane.b32.xlu2 %v4162_v15, %s3679_s26 }
  0xde   : > { %v1285_v11 = vpop.permute.xlu0 %1284  ;;  %v1287_v21 = vpop.permute.xlu1 %1286 }
  0xdf   : > { %v1309_v25 = vsel %vm1304_vm5, %v1283_v50, %v1285_v11  ;;  %v1310_v27 = vsel %vm1304_vm5, %v1285_v11, %v1287_v21  ;;  %v1311_v13 = vsel %vm1304_vm5, %v1287_v21, %v1289_v23  ;;  %v1295_v44 = vpop.permute.xlu2 %1294  ;;  %v4149_v50 = vld [vmem:[%s4908_s1 + $0x14] sm:$0xf] }
  0xe0   : > { %v1335_v29 = vsel %vm249_vm0, %v1309_v25, 0  ;;  %v1338_v30 = vsel %vm249_vm0, %v1310_v27, 0  ;;  %v1341_v31 = vsel %vm249_vm0, %v1311_v13, 0 }
  0xe3   : > { %2026 = vrot.lane.b32.xlu0 %v1997_v58, %s3679_s26  ;;  %v2331_v58 = vunpack.c.h.b16 %v4144_v49 }
  0xe4   : > { %3546 = vmatmul.msk.bf16.vlgmr.msra.gmra.mxu2 %vm245_vm1, %v4017_v4  ;;  %3547 = vmatmul.msk.bf16.vlgmr.msra.gmra.mxu3 %vm245_vm1, %v4017_v4 }
  0xe5   : > { %3548 = vmatmul.msk.bf16.vlgmr.msrb.gmra.mxu0 %vm245_vm1, %v4017_v4  ;;  %1371 = vmatpush.bf16.msra.mxu2 %v1323_v12  ;;  %v4168_v12 = vpack.c.b16 %v2330_v53, %v2330_v53 }
  0xe6   : > { %3549 = vmatmul.msk.bf16.vlgmr.msrb.gmra.mxu1 %vm245_vm1, %v4017_v4  ;;  %1384 = vmatpush.bf16.msra.mxu3 %v1326_v63  ;;  %v1291_v24 = vpop.permute.xlu0 %1290  ;;  %v1293_v34 = vpop.permute.xlu1 %1292 }
  0xe7   : > { %1397 = vmatpush.bf16.msrb.mxu0 %v1329_v0  ;;  %1410 = vmatpush.bf16.msrb.mxu1 %v1332_v1  ;;  %v1312_v28 = vsel %vm1304_vm5, %v1289_v23, %v1291_v24  ;;  %v1313_v41 = vsel %vm1304_vm5, %v1291_v24, %v1293_v34  ;;  %v1314_v46 = vsel %vm1304_vm5, %v1293_v34, %v1295_v44  ;;  %v1301_v63 = vpop.permute.xlu2 %1300  ;;  %v2315_v0 = vld [vmem:[%s3719_s17 + $0x8] sm:$0xff] }
  0xe8   : > { %v1344_v33 = vsel %vm249_vm0, %v1312_v28, 0  ;;  %v1347_v54 = vsel %vm249_vm0, %v1313_v41, 0  ;;  %v1350_v55 = vsel %vm249_vm0, %v1314_v46, 0  ;;  %2360 = vrot.lane.b32.xlu1 %v4168_v12, %s3681_s4  ;;  %v2332_v1 = vunpack.c.l.b16 %v2315_v0  ;;  %2018 = vrot.lane.b32.xlu2 %v4178_v19, %s3679_s26  ;;  %v2316_v41 = vld [vmem:[%s3719_s17 + $0x10] sm:$0xff] }
  0xe9   : > { %v2333_v11 = vunpack.c.h.b16 %v2315_v0  ;;  %v1981_v28 = vunpack.c.h.b16 %v4127_v35  ;;  %v2335_v46 = vunpack.c.h.b16 %v2316_v41 }
  0xea   : > { %v4176_v17 = vpack.c.b16 %v2332_v1, %v2332_v1 }
  0xeb   : > { %v4180_v20 = vpack.c.b16 %v2333_v11, %v2333_v11 }
  0xec   : > { %2364 = vrot.lane.b32.xlu0 %v4176_v17, %s3681_s4 }
  0xee   : > { %v1299_v8 = vpop.permute.xlu1 %1298 }
  0xef   : > { %v1639_v21 = vpop.permute.xlu2 %1638  ;;  %v1317_v24 = vsel %vm1304_vm5, %v1299_v8, %v1301_v63 }
  0xf0   : > { %2366 = vrot.lane.b32.xlu1 %v4180_v20, %s3681_s4  ;;  %v1359_v34 = vsel %vm249_vm0, %v1317_v24, 0 }
  0xf4   : > { %3550 = vmatmul.msk.bf16.vlgmr.msrb.gmra.mxu2 %vm245_vm1, %v4017_v4  ;;  %3551 = vmatmul.msk.bf16.vlgmr.msrb.gmra.mxu3 %vm245_vm1, %v4017_v4 }
  0xf5   : > { %3552 = vmatmul.msk.bf16.vlgmr.msra.gmra.mxu0 %vm245_vm1, %v4017_v4  ;;  %1423 = vmatpush.bf16.msrb.mxu2 %v1335_v29 }
  0xf6   : > { %3553 = vmatmul.msk.bf16.vlgmr.msra.gmra.mxu1 %vm245_vm1, %v4017_v4  ;;  %1436 = vmatpush.bf16.msrb.mxu3 %v1338_v30  ;;  %v1297_v4 = vpop.permute.xlu0 %1296  ;;  %v1637_v14 = vpop.permute.xlu1 %1636 }
  0xf7   : > { %1449 = vmatpush.bf16.msra.mxu0 %v1341_v31  ;;  %1462 = vmatpush.bf16.msra.mxu1 %v1344_v33  ;;  %v1315_v47 = vsel %vm1304_vm5, %v1295_v44, %v1297_v4  ;;  %v1316_v51 = vsel %vm1304_vm5, %v1297_v4, %v1299_v8  ;;  %v1667_v27 = vsel %vm1666_vm6, %v1637_v14, %v1639_v21  ;;  %v1645_v7 = vpop.permute.xlu2 %1644 }
  0xf8   : > { %v1353_v56 = vsel %vm249_vm0, %v1315_v47, 0  ;;  %v1356_v59 = vsel %vm249_vm0, %v1316_v51, 0  ;;  %v1685_v35 = vsel %vm249_vm0, %v1667_v27, 0  ;;  %2372 = vrot.lane.b32.xlu1 %v4089_v2, %s3681_s4  ;;  %v4224_v51 = vpack.c.b16 %v2335_v46, %v2335_v46  ;;  %v4282_v46 = vld [vmem:[%s4908_s1 + $0x10] sm:$0xf] }
  0xf9   : > { %v2334_v27 = vunpack.c.l.b16 %v2316_v41 }
  0xfa   : > { %2370 = vrot.lane.b32.xlu0 %v4224_v51, %s3681_s4 }
  0xfe   : > { %v1303_v60 = vpop.permute.xlu0 %1302 }
  0xff   : > { %v1318_v25 = vsel %vm1304_vm5, %v1301_v63, %v1303_v60 }
 0x100   : > { %v1362_v42 = vsel %vm249_vm0, %v1318_v25, 0  ;;  %2378 = vrot.lane.b32.xlu1 %v4104_v9, %s3681_s4 }
 0x102   : > { %2376 = vrot.lane.b32.xlu0 %v4098_v16, %s3681_s4 }
 0x104   : > { %3555 = vmatmul.msk.bf16.vlgmr.msra.gmra.mxu2 %vm245_vm1, %v4149_v50  ;;  %3556 = vmatmul.msk.bf16.vlgmr.msra.gmra.mxu3 %vm245_vm1, %v4149_v50 }
 0x105   : > { %3557 = vmatmul.msk.bf16.vlgmr.msrb.gmra.mxu0 %vm245_vm1, %v4149_v50  ;;  %1475 = vmatpush.bf16.msra.mxu2 %v1347_v54 }
 0x106   : > { %3558 = vmatmul.msk.bf16.vlgmr.msrb.gmra.mxu1 %vm245_vm1, %v4149_v50  ;;  %1488 = vmatpush.bf16.msra.mxu3 %v1350_v55  ;;  %v1641_v23 = vpop.permute.xlu0 %1640 }
 0x107   : > { %1501 = vmatpush.bf16.msrb.mxu0 %v1353_v56  ;;  %1514 = vmatpush.bf16.msrb.mxu1 %v1356_v59  ;;  %v1668_v13 = vsel %vm1666_vm6, %v1639_v21, %v1641_v23  ;;  %v4249_v21 = vpack.c.b16 %v2331_v58, %v2331_v58 }
 0x108   : > { %v1688_v43 = vsel %vm249_vm0, %v1668_v13, 0  ;;  %2384 = vrot.lane.b32.xlu1 %v4131_v40, %s3681_s4 }
 0x10a   : > { %2382 = vrot.lane.b32.xlu0 %v4133_v6, %s3681_s4 }
 0x10e   : > { %v1647_v52 = vpop.permute.xlu0 %1646 }
 0x10f   : > { %v1671_v56 = vsel %vm1666_vm6, %v1645_v7, %v1647_v52 }
 0x110   : > { %v1697_v49 = vsel %vm249_vm0, %v1671_v56, 0  ;;  %2722 = vrot.lane.b32.xlu1 %v4168_v12, %s3682_s5 }
 0x112   : > { %v682_v29 = vpop.f32.mrf.mxu0 }
 0x113   : > { %v695_v30 = vpop.f32.mrf.mxu1  ;;  %v4194_v31 = vadd.f32 %v682_v29, %v4019_v5  ;;  %v4207_v5 = vpack.c.b16 %v1981_v28, %v1981_v28 }
 0x114   : > { %v4197_v33 = vadd.f32 %v695_v30, %v4021_v10  ;;  %3559 = vmatmul.msk.bf16.vlgmr.msrb.gmra.mxu2 %vm245_vm1, %v4149_v50  ;;  %3560 = vmatmul.msk.bf16.vlgmr.msrb.gmra.mxu3 %vm245_vm1, %v4149_v50  ;;  %v1643_v10 = vpop.permute.xlu1 %1642  ;;  %v4267_v30 = vpack.c.b16 %v2334_v27, %v2334_v27 }
 0x115   : > { %3561 = vmatmul.msk.bf16.vlgmr.msra.gmra.mxu0 %vm245_vm1, %v4149_v50  ;;  %1527 = vmatpush.bf16.msrb.mxu2 %v1359_v34  ;;  %v1669_v54 = vsel %vm1666_vm6, %v1641_v23, %v1643_v10  ;;  %v1670_v55 = vsel %vm1666_vm6, %v1643_v10, %v1645_v7 }
 0x116   : > { %3562 = vmatmul.msk.bf16.vlgmr.msra.gmra.mxu1 %vm245_vm1, %v4149_v50  ;;  %1540 = vmatpush.bf16.msrb.mxu3 %v1362_v42  ;;  %v1691_v3 = vsel %vm249_vm0, %v1669_v54, 0  ;;  %v1694_v11 = vsel %vm249_vm0, %v1670_v55, 0  ;;  %v1653_v29 = vpop.permute.xlu0 %1652  ;;  %v2321_v55 = vld [vmem:[%s3719_s17 + $0x38] sm:$0xf] }
 0x117   : > { %v656_v26 = vpop.f32.mrf.mxu2  ;;  %v669_v4 = vpop.f32.mrf.mxu3  ;;  %1733 = vmatpush.bf16.msra.mxu0 %v1685_v35  ;;  %1746 = vmatpush.bf16.msra.mxu1 %v1688_v43  ;;  %v2344_v56 = vunpack.c.l.b16 %v2321_v55 }
 0x118   : > { %v4214_v44 = vadd.f32 %v656_v26, %v3966_v32  ;;  %v4217_v8 = vadd.f32 %v669_v4, %v3975_v39  ;;  %2024 = vrot.lane.b32.xlu2 %v4207_v5, %s3679_s26  ;;  %2728 = vrot.lane.b32.xlu1 %v4180_v20, %s3682_s5 }
 0x11a   : > { %v684_v47 = vpop.f32.mrf.mxu0 }
 0x11b   : > { %v697_v48 = vpop.f32.mrf.mxu1 }
 0x11c   : > { %v1649_v32 = vpop.permute.xlu1 %1648 }
 0x11d   : > { %v1672_v59 = vsel %vm1666_vm6, %v1647_v52, %v1649_v32 }
 0x11e   : > { %v1700_v14 = vsel %vm249_vm0, %v1672_v59, 0 }
 0x11f   : > { %v658_v39 = vpop.f32.mrf.mxu2  ;;  %v671_v53 = vpop.f32.mrf.mxu3 }
 0x120   : > { %2362 = vrot.lane.b32.xlu2 %v4249_v21, %s3681_s4  ;;  %2734 = vrot.lane.b32.xlu1 %v4089_v2, %s3682_s5 }
 0x122   : > { %v734_v60 = vpop.f32.mrf.mxu0 }
 0x123   : > { %v747_v63 = vpop.f32.mrf.mxu1  ;;  %v4236_v0 = vadd.f32 %v734_v60, %v4045_v36  ;;  %v1651_v36 = vpop.permute.xlu2 %1650  ;;  %v2359_v60 = vpack.c.b16 %v2344_v56, %v2344_v56 }
 0x124   : > { %v4239_v1 = vadd.f32 %v747_v63, %v4047_v38  ;;  %3563 = vmatmul.msk.bf16.vlgmr.msra.gmra.mxu2 %vm245_vm1, %v4149_v50  ;;  %3564 = vmatmul.msk.bf16.vlgmr.msra.gmra.mxu3 %vm245_vm1, %v4149_v50  ;;  %v1655_v34 = vpop.permute.xlu1 %1654  ;;  %v1673_v35 = vsel %vm1666_vm6, %v1649_v32, %v1651_v36  ;;  %v1674_v43 = vsel %vm1666_vm6, %v1651_v36, %v1653_v29 }
 0x125   : > { %3565 = vmatmul.msk.bf16.vlgmr.msrb.gmra.mxu0 %vm245_vm1, %v4149_v50  ;;  %1759 = vmatpush.bf16.msra.mxu2 %v1691_v3  ;;  %v1675_v10 = vsel %vm1666_vm6, %v1653_v29, %v1655_v34  ;;  %v1703_v7 = vsel %vm249_vm0, %v1673_v35, 0  ;;  %v1706_v32 = vsel %vm249_vm0, %v1674_v43, 0 }
 0x126   : > { %3566 = vmatmul.msk.bf16.vlgmr.msrb.gmra.mxu1 %vm245_vm1, %v4149_v50  ;;  %1772 = vmatpush.bf16.msra.mxu3 %v1694_v11  ;;  %v1709_v52 = vsel %vm249_vm0, %v1675_v10, 0 }
 0x127   : > { %v708_v38 = vpop.f32.mrf.mxu2  ;;  %v721_v23 = vpop.f32.mrf.mxu3  ;;  %1785 = vmatpush.bf16.msrb.mxu0 %v1697_v49  ;;  %1798 = vmatpush.bf16.msrb.mxu1 %v1700_v14 }
 0x128   : > { %v4256_v24 = vadd.f32 %v708_v38, %v3999_v37  ;;  %v4259_v25 = vadd.f32 %v721_v23, %v4006_v57  ;;  %2368 = vrot.lane.b32.xlu2 %v4267_v30, %s3681_s4  ;;  %2388 = vrot.lane.b32.xlu0 %v2359_v60, %s3681_s4 }
 0x129   : > { %2740 = vrot.lane.b32.xlu1 %v4104_v9, %s3682_s5 }
 0x12a   : > { %v736_v13 = vpop.f32.mrf.mxu0 }
 0x12b   : > { %v749_v28 = vpop.f32.mrf.mxu1  ;;  %v1657_v37 = vpop.permute.xlu2 %1656 }
 0x12c   : > { %v1676_v26 = vsel %vm1666_vm6, %v1655_v34, %v1657_v37  ;;  %v1661_v63 = vpop.permute.xlu1 %1660 }
 0x12d   : > { %v1712_v39 = vsel %vm249_vm0, %v1676_v26, 0 }
 0x12f   : > { %v710_v42 = vpop.f32.mrf.mxu2  ;;  %v723_v57 = vpop.f32.mrf.mxu3 }
 0x130   : > { %2374 = vrot.lane.b32.xlu2 %v4162_v15, %s3681_s4  ;;  %v515_v42 = vld [vmem:[#allocation2 + $0x68] sm:$0xff]  ;;  %2726 = vrot.lane.b32.xlu0 %v4176_v17, %s3682_s5 }
 0x131   : > { %2746 = vrot.lane.b32.xlu1 %v4131_v40, %s3682_s5 }
 0x132   : > { %v786_v4 = vpop.f32.mrf.mxu0 }
 0x133   : > { %v799_v41 = vpop.f32.mrf.mxu1  ;;  %v4285_v47 = vadd.f32 %v786_v4, %v4077_v61  ;;  %v1659_v61 = vpop.permute.xlu0 %1658 }
 0x134   : > { %v4288_v48 = vadd.f32 %v799_v41, %v4079_v62  ;;  %3567 = vmatmul.msk.bf16.vlgmr.msrb.gmra.mxu2 %vm245_vm1, %v4149_v50  ;;  %3568 = vmatmul.msk.bf16.vlgmr.msrb.gmra.mxu3 %vm245_vm1, %v4149_v50  ;;  %v1663_v3 = vpop.permute.xlu2 %1662  ;;  %v1678_v14 = vsel %vm1666_vm6, %v1659_v61, %v1661_v63 }
 0x135   : > { %3570 = vmatmul.msk.bf16.vlgmr.msra.gmra.mxu0 %vm245_vm1, %v4282_v46  ;;  %1811 = vmatpush.bf16.msrb.mxu2 %v1703_v7  ;;  %v1679_v36 = vsel %vm1666_vm6, %v1661_v63, %v1663_v3 }
 0x136   : > { %3571 = vmatmul.msk.bf16.vlgmr.msra.gmra.mxu1 %vm245_vm1, %v4282_v46  ;;  %1824 = vmatpush.bf16.msrb.mxu3 %v1706_v32  ;;  %v1721_v2 = vsel %vm249_vm0, %v1679_v36, 0 }
 0x137   : > { %v760_v62 = vpop.f32.mrf.mxu2  ;;  %v773_v53 = vpop.f32.mrf.mxu3  ;;  %1837 = vmatpush.bf16.msra.mxu0 %v1709_v52  ;;  %1850 = vmatpush.bf16.msra.mxu1 %v1712_v39 }
 0x138   : > { %v4303_v54 = vadd.f32 %v760_v62, %v4035_v18  ;;  %v4306_v50 = vadd.f32 %v773_v53, %v4038_v22  ;;  %v1677_v22 = vsel %vm1666_vm6, %v1657_v37, %v1659_v61  ;;  %2380 = vrot.lane.b32.xlu2 %v4178_v19, %s3681_s4  ;;  %v1718_v37 = vsel %vm249_vm0, %v1678_v14, 0  ;;  %2732 = vrot.lane.b32.xlu0 %v4224_v51, %s3682_s5 }
 0x139   : > { %v1715_v29 = vsel %vm249_vm0, %v1677_v22, 0  ;;  %3083 = vrot.lane.b32.xlu1 %v4168_v12, %s3683_s8 }
 0x13a   : > { %v788_v59 = vpop.f32.mrf.mxu0 }
 0x13b   : > { %v801_v58 = vpop.f32.mrf.mxu1  ;;  %v1665_v18 = vpop.permute.xlu0 %1664 }
 0x13c   : > { %v1680_v38 = vsel %vm1666_vm6, %v1663_v3, %v1665_v18  ;;  %v2001_v10 = vpop.permute.xlu2 %2000 }
 0x13d   : > { %v1724_v34 = vsel %vm249_vm0, %v1680_v38, 0 }
 0x13f   : > { %v762_v11 = vpop.f32.mrf.mxu2  ;;  %v775_v49 = vpop.f32.mrf.mxu3 }
 0x140   : > { %2386 = vrot.lane.b32.xlu2 %v4207_v5, %s3681_s4  ;;  %2738 = vrot.lane.b32.xlu0 %v4098_v16, %s3682_s5 }
 0x141   : > { %3089 = vrot.lane.b32.xlu1 %v4180_v20, %s3683_s8 }
 0x142   : > { %v1011_v23 = vpop.f32.mrf.mxu0 }
 0x143   : > { %v1024_v27 = vpop.f32.mrf.mxu1  ;;  %v4323_v13 = vadd.f32 %v1011_v23, %v4214_v44  ;;  %v1999_v44 = vpop.permute.xlu1 %1998 }
 0x144   : > { %v4326_v28 = vadd.f32 %v1024_v27, %v4217_v8  ;;  %3572 = vmatmul.msk.bf16.vlgmr.msra.gmra.mxu2 %vm245_vm1, %v4282_v46  ;;  %3573 = vmatmul.msk.bf16.vlgmr.msra.gmra.mxu3 %vm245_vm1, %v4282_v46  ;;  %v2003_v41 = vpop.permute.xlu0 %2002  ;;  %v2029_v52 = vsel %vm2028_vm7, %v1999_v44, %v2001_v10  ;;  %v2007_v58 = vpop.permute.xlu2 %2006 }
 0x145   : > { %3574 = vmatmul.msk.bf16.vlgmr.msrb.gmra.mxu0 %vm245_vm1, %v4282_v46  ;;  %1863 = vmatpush.bf16.msra.mxu2 %v1715_v29  ;;  %v2030_v39 = vsel %vm2028_vm7, %v2001_v10, %v2003_v41  ;;  %v2047_v56 = vsel %vm249_vm0, %v2029_v52, 0 }
 0x146   : > { %3575 = vmatmul.msk.bf16.vlgmr.msrb.gmra.mxu1 %vm245_vm1, %v4282_v46  ;;  %1876 = vmatpush.bf16.msra.mxu3 %v1718_v37  ;;  %v2050_v59 = vsel %vm249_vm0, %v2030_v39, 0 }
 0x147   : > { %v812_v8 = vpop.f32.mrf.mxu2  ;;  %v825_v57 = vpop.f32.mrf.mxu3  ;;  %1889 = vmatpush.bf16.msrb.mxu0 %v1721_v2  ;;  %1902 = vmatpush.bf16.msrb.mxu1 %v1724_v34 }
 0x148   : > { %v4341_v35 = vadd.f32 %v812_v8, %v4063_v45  ;;  %v842_v43 = vadd.f32 %v825_v57, %v515_v42  ;;  %2724 = vrot.lane.b32.xlu2 %v4249_v21, %s3682_s5  ;;  %2744 = vrot.lane.b32.xlu0 %v4133_v6, %s3682_s5 }
 0x14a   : > { %856 = vst.msk [vmem:[#allocation2 + $0x68] sm:$0xff] %vm185_vm4, %v842_v43  ;;  %v1013_v26 = vpop.f32.mrf.mxu0 }
 0x14b   : > { %v1026_v4 = vpop.f32.mrf.mxu1  ;;  %v2005_v7 = vpop.permute.xlu1 %2004 }
 0x14c   : > { %v2031_v9 = vsel %vm2028_vm7, %v2003_v41, %v2005_v7  ;;  %v2032_v40 = vsel %vm2028_vm7, %v2005_v7, %v2007_v58  ;;  %v2009_v11 = vpop.permute.xlu0 %2008  ;;  %v2013_v6 = vpop.permute.xlu2 %2012 }
 0x14d   : > { %v2053_v60 = vsel %vm249_vm0, %v2031_v9, 0  ;;  %v2033_v38 = vsel %vm2028_vm7, %v2007_v58, %v2009_v11 }
 0x14e   : > { %v2059_v37 = vsel %vm249_vm0, %v2033_v38, 0 }
 0x14f   : > { %v814_v45 = vpop.f32.mrf.mxu2  ;;  %v827_v32 = vpop.f32.mrf.mxu3 }
 0x150   : > { %2730 = vrot.lane.b32.xlu2 %v4267_v30, %s3682_s5 }
 0x152   : > { %v1063_v61 = vpop.f32.mrf.mxu0 }
 0x153   : > { %v1076_v62 = vpop.f32.mrf.mxu1  ;;  %v4360_v53 = vadd.f32 %v1063_v61, %v4256_v24  ;;  %v2056_v24 = vsel %vm249_vm0, %v2032_v40, 0  ;;  %v2011_v14 = vpop.permute.xlu1 %2010  ;;  %v870_v61 = vld [vmem:[#allocation2 + $0x68] sm:$0xff] }
 0x154   : > { %v4363_v55 = vadd.f32 %v1076_v62, %v4259_v25  ;;  %3576 = vmatmul.msk.bf16.vlgmr.msrb.gmra.mxu2 %vm245_vm1, %v4282_v46  ;;  %3577 = vmatmul.msk.bf16.vlgmr.msrb.gmra.mxu3 %vm245_vm1, %v4282_v46  ;;  %v2015_v16 = vpop.permute.xlu0 %2014  ;;  %v2019_v10 = vpop.permute.xlu2 %2018 }
 0x155   : > { %3578 = vmatmul.msk.bf16.vlgmr.msra.gmra.mxu0 %vm245_vm1, %v4282_v46  ;;  %2095 = vmatpush.bf16.msrb.mxu2 %v2047_v56  ;;  %v2036_v20 = vsel %vm2028_vm7, %v2013_v6, %v2015_v16 }
 0x156   : > { %3579 = vmatmul.msk.bf16.vlgmr.msra.gmra.mxu1 %vm245_vm1, %v4282_v46  ;;  %2108 = vmatpush.bf16.msrb.mxu3 %v2050_v59 }
 0x157   : > { %v1037_v25 = vpop.f32.mrf.mxu2  ;;  %v1050_v63 = vpop.f32.mrf.mxu3  ;;  %2121 = vmatpush.bf16.msra.mxu0 %v2053_v60  ;;  %2134 = vmatpush.bf16.msra.mxu1 %v2056_v24 }
 0x158   : > { %v4379_v3 = vadd.f32 %v1037_v25, %v4194_v31  ;;  %v4382_v18 = vadd.f32 %v1050_v63, %v4197_v33  ;;  %v2034_v33 = vsel %vm2028_vm7, %v2009_v11, %v2011_v14  ;;  %2736 = vrot.lane.b32.xlu2 %v4162_v15, %s3682_s5  ;;  %v2035_v15 = vsel %vm2028_vm7, %v2011_v14, %v2013_v6 }
 0x159   : > { %v2062_v2 = vsel %vm249_vm0, %v2034_v33, 0 }
 0x15a   : > { %v1065_v49 = vpop.f32.mrf.mxu0 }
 0x15b   : > { %v1078_v22 = vpop.f32.mrf.mxu1  ;;  %v2017_v57 = vpop.permute.xlu1 %2016 }
 0x15c   : > { %v2037_v41 = vsel %vm2028_vm7, %v2015_v16, %v2017_v57  ;;  %v2038_v7 = vsel %vm2028_vm7, %v2017_v57, %v2019_v10  ;;  %v2021_v32 = vpop.permute.xlu0 %2020  ;;  %v4496_v57 = vld [vmem:[%s3719_s17 + $0x18] sm:$0xff] }
 0x15d   : > { %v2071_v58 = vsel %vm249_vm0, %v2037_v41, 0 }
 0x15f   : > { %v1039_v36 = vpop.f32.mrf.mxu2  ;;  %v1052_v31 = vpop.f32.mrf.mxu3 }
 0x160   : > { %2742 = vrot.lane.b32.xlu2 %v4178_v19, %s3682_s5  ;;  %v2039_v19 = vsel %vm2028_vm7, %v2019_v10, %v2021_v32 }
 0x161   : > { %v2077_v40 = vsel %vm249_vm0, %v2039_v19, 0 }
 0x162   : > { %v1115_v12 = vpop.f32.mrf.mxu0 }
 0x163   : > { %v1128_v23 = vpop.f32.mrf.mxu1  ;;  %v4399_v27 = vadd.f32 %v1115_v12, %v4303_v54  ;;  %v2065_v54 = vsel %vm249_vm0, %v2035_v15, 0  ;;  %v2023_v45 = vpop.permute.xlu1 %2022 }
 0x164   : > { %v4402_v29 = vadd.f32 %v1128_v23, %v4306_v50  ;;  %3580 = vmatmul.msk.bf16.vlgmr.msra.gmra.mxu2 %vm245_vm1, %v4282_v46  ;;  %3581 = vmatmul.msk.bf16.vlgmr.msra.gmra.mxu3 %vm245_vm1, %v4282_v46  ;;  %v2068_v50 = vsel %vm249_vm0, %v2036_v20, 0  ;;  %v2040_v52 = vsel %vm2028_vm7, %v2021_v32, %v2023_v45  ;;  %v2027_v36 = vpop.permute.xlu0 %2026 }
 0x165   : > { %3582 = vmatmul.msk.bf16.vlgmr.msrb.gmra.mxu0 %vm245_vm1, %v4282_v46  ;;  %2147 = vmatpush.bf16.msra.mxu2 %v2059_v37  ;;  %v2080_v60 = vsel %vm249_vm0, %v2040_v52, 0 }
 0x166   : > { %3583 = vmatmul.msk.bf16.vlgmr.msrb.gmra.mxu1 %vm245_vm1, %v4282_v46  ;;  %2160 = vmatpush.bf16.msra.mxu3 %v2062_v2 }
 0x167   : > { %v1089_v34 = vpop.f32.mrf.mxu2  ;;  %v1102_v44 = vpop.f32.mrf.mxu3  ;;  %2173 = vmatpush.bf16.msrb.mxu0 %v2065_v54  ;;  %2186 = vmatpush.bf16.msrb.mxu1 %v2068_v50 }
 0x168   : > { %v4419_v8 = vadd.f32 %v1089_v34, %v4236_v0  ;;  %v4422_v42 = vadd.f32 %v1102_v44, %v4239_v1  ;;  %v2683_v0 = vld [vmem:[%s3719_s17 + $0x38] sm:$0xf]  ;;  %2748 = vrot.lane.b32.xlu2 %v4207_v5, %s3682_s5  ;;  %v4434_v1 = vld [vmem:[%s4908_s1 + $0xc] sm:$0xf]  ;;  %v2074_v5 = vsel %vm249_vm0, %v2038_v7, 0 }
 0x169   : > { %v2706_v39 = vunpack.c.l.b16 %v2683_v0  ;;  %v3041_v0 = vld [vmem:[%s3719_s17 + $0x20] sm:$0xff] }
 0x16a   : > { %v1117_v46 = vpop.f32.mrf.mxu0  ;;  %v3061_v52 = vunpack.c.l.b16 %v3041_v0 }
 0x16b   : > { %v1130_v43 = vpop.f32.mrf.mxu1  ;;  %v2721_v24 = vpack.c.b16 %v2706_v39, %v2706_v39  ;;  %v2361_v31 = vpop.permute.xlu1 %2360  ;;  %v3059_v46 = vunpack.c.l.b16 %v4496_v57 }
 0x16c   : > { %v2365_v15 = vpop.permute.xlu0 %2364 }
 0x16d   : > { %2750 = vrot.lane.b32.xlu0 %v2721_v24, %s3682_s5 }
 0x16f   : > { %v1091_v26 = vpop.f32.mrf.mxu2  ;;  %v1104_v4 = vpop.f32.mrf.mxu3 }
 0x170   : > { %3085 = vrot.lane.b32.xlu2 %v4249_v21, %s3683_s8  ;;  %v3074_v26 = vpack.c.b16 %v3059_v46, %v3059_v46 }
 0x172   : > { %v1167_v9 = vpop.f32.mrf.mxu0  ;;  %v2025_v14 = vpop.permute.xlu2 %2024  ;;  %3095 = vrot.lane.b32.xlu1 %v3074_v26, %s3683_s8 }
 0x173   : > { %v1180_v62 = vpop.f32.mrf.mxu1  ;;  %v4439_v56 = vadd.f32 %v1167_v9, %v4341_v35  ;;  %v2041_v16 = vsel %vm2028_vm7, %v2023_v45, %v2025_v14  ;;  %v2367_v20 = vpop.permute.xlu1 %2366 }
 0x174   : > { %v1197_v59 = vadd.f32 %v1180_v62, %v870_v61  ;;  %3585 = vmatmul.msk.bf16.vlgmr.msrb.gmra.mxu2 %vm245_vm1, %v4434_v1  ;;  %3586 = vmatmul.msk.bf16.vlgmr.msrb.gmra.mxu3 %vm245_vm1, %v4434_v1  ;;  %v2083_v37 = vsel %vm249_vm0, %v2041_v16, 0  ;;  %v2393_v45 = vsel %vm2390_vm8, %v2365_v15, %v2367_v20  ;;  %v2371_v32 = vpop.permute.xlu0 %2370 }
 0x175   : > { %3587 = vmatmul.msk.bf16.vlgmr.msra.gmra.mxu0 %vm245_vm1, %v4434_v1  ;;  %2199 = vmatpush.bf16.msrb.mxu2 %v2071_v58 }
 0x176   : > { %1211 = vst.msk [vmem:[#allocation2 + $0x68] sm:$0xff] %vm185_vm4, %v1197_v59  ;;  %3588 = vmatmul.msk.bf16.vlgmr.msra.gmra.mxu1 %vm245_vm1, %v4434_v1  ;;  %2212 = vmatpush.bf16.msrb.mxu3 %v2074_v5  ;;  %v2415_v59 = vsel %vm249_vm0, %v2393_v45, 0 }
 0x177   : > { %v1141_v35 = vpop.f32.mrf.mxu2  ;;  %v1154_v25 = vpop.f32.mrf.mxu3  ;;  %2225 = vmatpush.bf16.msra.mxu0 %v2077_v40  ;;  %2238 = vmatpush.bf16.msra.mxu1 %v2080_v60 }
 0x178   : > { %v4455_v63 = vadd.f32 %v1141_v35, %v4285_v47  ;;  %v4458_v11 = vadd.f32 %v1154_v25, %v4288_v48  ;;  %v2042_v47 = vsel %vm2028_vm7, %v2025_v14, %v2027_v36  ;;  %3087 = vrot.lane.b32.xlu0 %v4176_v17, %s3683_s8  ;;  %3091 = vrot.lane.b32.xlu2 %v4267_v30, %s3683_s8 }
 0x179   : > { %v2086_v2 = vsel %vm249_vm0, %v2042_v47, 0 }
 0x17a   : > { %v1169_v49 = vpop.f32.mrf.mxu0  ;;  %v2363_v6 = vpop.permute.xlu2 %2362 }
 0x17b   : > { %v1182_v22 = vpop.f32.mrf.mxu1  ;;  %v2391_v17 = vsel %vm2390_vm8, %v2361_v31, %v2363_v6  ;;  %v2392_v30 = vsel %vm2390_vm8, %v2363_v6, %v2365_v15  ;;  %v2373_v41 = vpop.permute.xlu1 %2372  ;;  %v4533_v49 = vld [vmem:[%s3719_s17 + $0x28] sm:$0xff] }
 0x17c   : > { %v3062_v22 = vunpack.c.h.b16 %v3041_v0  ;;  %v3064_v14 = vunpack.c.h.b16 %v4533_v49  ;;  %v2377_v16 = vpop.permute.xlu0 %2376 }
 0x17f   : > { %v1143_v38 = vpop.f32.mrf.mxu2  ;;  %v1156_v33 = vpop.f32.mrf.mxu3 }
 0x180   : > { %3093 = vrot.lane.b32.xlu0 %v4224_v51, %s3683_s8  ;;  %v2396_v51 = vsel %vm2390_vm8, %v2371_v32, %v2373_v41  ;;  %v3077_v38 = vpack.c.b16 %v3062_v22, %v3062_v22  ;;  %v3079_v33 = vpack.c.b16 %v3064_v14, %v3064_v14 }
 0x181   : > { %v2424_v40 = vsel %vm249_vm0, %v2396_v51, 0 }
 0x182   : > { %v1399_v48 = vpop.f32.mrf.mxu0  ;;  %v2369_v4 = vpop.permute.xlu2 %2368  ;;  %3101 = vrot.lane.b32.xlu1 %v3077_v38, %s3683_s8  ;;  %v1225_v38 = vld [vmem:[#allocation2 + $0x68] sm:$0xff] }
 0x183   : > { %v1412_v21 = vpop.f32.mrf.mxu1  ;;  %v4470_v12 = vadd.f32 %v1399_v48, %v4379_v3  ;;  %v2409_v3 = vsel %vm249_vm0, %v2391_v17, 0  ;;  %v2395_v19 = vsel %vm2390_vm8, %v2369_v4, %v2371_v32  ;;  %v2379_v47 = vpop.permute.xlu1 %2378  ;;  %v3060_v17 = vunpack.c.h.b16 %v4496_v57 }
 0x184   : > { %v4473_v23 = vadd.f32 %v1412_v21, %v4382_v18  ;;  %3589 = vmatmul.msk.bf16.vlgmr.msra.gmra.mxu2 %vm245_vm1, %v4434_v1  ;;  %3590 = vmatmul.msk.bf16.vlgmr.msra.gmra.mxu3 %vm245_vm1, %v4434_v1  ;;  %v2412_v18 = vsel %vm249_vm0, %v2392_v30, 0  ;;  %v2421_v5 = vsel %vm249_vm0, %v2395_v19, 0  ;;  %v2399_v6 = vsel %vm2390_vm8, %v2377_v16, %v2379_v47 }
 0x185   : > { %3591 = vmatmul.msk.bf16.vlgmr.msrb.gmra.mxu0 %vm245_vm1, %v4434_v1  ;;  %2251 = vmatpush.bf16.msra.mxu2 %v2083_v37  ;;  %v2433_v57 = vsel %vm249_vm0, %v2399_v6, 0 }
 0x186   : > { %3592 = vmatmul.msk.bf16.vlgmr.msrb.gmra.mxu1 %vm245_vm1, %v4434_v1  ;;  %2264 = vmatpush.bf16.msra.mxu3 %v2086_v2  ;;  %v4541_v2 = vld [vmem:[%s3719_s17 + $0x30] sm:$0xff] }
 0x187   : > { %v1373_v54 = vpop.f32.mrf.mxu2  ;;  %v1386_v50 = vpop.f32.mrf.mxu3  ;;  %2457 = vmatpush.bf16.msrb.mxu0 %v2409_v3  ;;  %2470 = vmatpush.bf16.msrb.mxu1 %v2412_v18  ;;  %v3065_v30 = vunpack.c.l.b16 %v4541_v2 }
 0x188   : > { %v4490_v34 = vadd.f32 %v1373_v54, %v4323_v13  ;;  %v4493_v44 = vadd.f32 %v1386_v50, %v4326_v28  ;;  %v2394_v28 = vsel %vm2390_vm8, %v2367_v20, %v2369_v4  ;;  %v4550_v20 = vld [vmem:[%s4908_s1 + $0x8] sm:$0xf] }
 0x189   : > { %v2418_v58 = vsel %vm249_vm0, %v2394_v28, 0  ;;  %v3080_v26 = vpack.c.b16 %v3065_v30, %v3065_v30 }
 0x18a   : > { %v1401_v43 = vpop.f32.mrf.mxu0 }
 0x18b   : > { %v1414_v10 = vpop.f32.mrf.mxu1  ;;  %3107 = vrot.lane.b32.xlu1 %v3080_v26, %s3683_s8  ;;  %v2385_v51 = vpop.permute.xlu1 %2384 }
 0x18f   : > { %v1375_v13 = vpop.f32.mrf.mxu2  ;;  %v1388_v7 = vpop.f32.mrf.mxu3 }
 0x190   : > { %v2383_v13 = vpop.permute.xlu0 %2382  ;;  %v3044_v7 = vld [vmem:[%s3719_s17 + $0x38] sm:$0xf] }
 0x191   : > { %v3067_v45 = vunpack.c.l.b16 %v3044_v7 }
 0x192   : > { %v1451_v39 = vpop.f32.mrf.mxu0 }
 0x193   : > { %v1464_v9 = vpop.f32.mrf.mxu1  ;;  %v4508_v61 = vadd.f32 %v1451_v39, %v4419_v8  ;;  %v3076_v8 = vpack.c.b16 %v3061_v52, %v3061_v52  ;;  %v3082_v0 = vpack.c.b16 %v3067_v45, %v3067_v45 }
 0x194   : > { %v4511_v62 = vadd.f32 %v1464_v9, %v4422_v42  ;;  %3593 = vmatmul.msk.bf16.vlgmr.msrb.gmra.mxu2 %vm245_vm1, %v4434_v1  ;;  %3594 = vmatmul.msk.bf16.vlgmr.msrb.gmra.mxu3 %vm245_vm1, %v4434_v1  ;;  %v2375_v42 = vpop.permute.xlu2 %2374 }
 0x195   : > { %3595 = vmatmul.msk.bf16.vlgmr.msra.gmra.mxu0 %vm245_vm1, %v4434_v1  ;;  %2483 = vmatpush.bf16.msrb.mxu2 %v2415_v59  ;;  %v2397_v21 = vsel %vm2390_vm8, %v2373_v41, %v2375_v42  ;;  %v2398_v37 = vsel %vm2390_vm8, %v2375_v42, %v2377_v16 }
 0x196   : > { %3596 = vmatmul.msk.bf16.vlgmr.msra.gmra.mxu1 %vm245_vm1, %v4434_v1  ;;  %2496 = vmatpush.bf16.msrb.mxu3 %v2418_v58  ;;  %v2427_v46 = vsel %vm249_vm0, %v2397_v21, 0  ;;  %v2430_v43 = vsel %vm249_vm0, %v2398_v37, 0 }
 0x197   : > { %v1425_v60 = vpop.f32.mrf.mxu2  ;;  %v1438_v24 = vpop.f32.mrf.mxu3  ;;  %2509 = vmatpush.bf16.msra.mxu0 %v2421_v5  ;;  %2522 = vmatpush.bf16.msra.mxu1 %v2424_v40  ;;  %v3063_v5 = vunpack.c.l.b16 %v4533_v49 }
 0x198   : > { %v4526_v35 = vadd.f32 %v1425_v60, %v4360_v53  ;;  %v4529_v25 = vadd.f32 %v1438_v24, %v4363_v55  ;;  %3099 = vrot.lane.b32.xlu0 %v3076_v8, %s3683_s8 }
 0x19a   : > { %v1453_v36 = vpop.f32.mrf.mxu0  ;;  %v2389_v9 = vpop.permute.xlu0 %2388 }
 0x19b   : > { %v1466_v31 = vpop.f32.mrf.mxu1  ;;  %v3078_v36 = vpack.c.b16 %v3063_v5, %v3063_v5 }
 0x19c   : > { %v2381_v53 = vpop.permute.xlu2 %2380 }
 0x19d   : > { %v2400_v15 = vsel %vm2390_vm8, %v2379_v47, %v2381_v53  ;;  %v2401_v39 = vsel %vm2390_vm8, %v2381_v53, %v2383_v13 }
 0x19e   : > { %v2436_v10 = vsel %vm249_vm0, %v2400_v15, 0  ;;  %v2439_v24 = vsel %vm249_vm0, %v2401_v39, 0 }
 0x19f   : > { %v1427_v48 = vpop.f32.mrf.mxu2  ;;  %v1440_v55 = vpop.f32.mrf.mxu3 }
 0x1a0   : > { %3105 = vrot.lane.b32.xlu0 %v3079_v33, %s3683_s8 }
 0x1a2   : > { %v1503_v3 = vpop.f32.mrf.mxu0  ;;  %v2727_v55 = vpop.permute.xlu0 %2726 }
 0x1a3   : > { %v1516_v18 = vpop.f32.mrf.mxu1  ;;  %v4553_v54 = vadd.f32 %v1503_v3, %v4455_v63  ;;  %v3075_v63 = vpack.c.b16 %v3060_v17, %v3060_v17 }
 0x1a4   : > { %v4556_v50 = vadd.f32 %v1516_v18, %v4458_v11  ;;  %3597 = vmatmul.msk.bf16.vlgmr.msra.gmra.mxu2 %vm245_vm1, %v4434_v1  ;;  %3598 = vmatmul.msk.bf16.vlgmr.msra.gmra.mxu3 %vm245_vm1, %v4434_v1  ;;  %v2387_v19 = vpop.permute.xlu2 %2386  ;;  %v3066_v18 = vunpack.c.h.b16 %v4541_v2 }
 0x1a5   : > { %3600 = vmatmul.msk.bf16.vlgmr.msrb.gmra.mxu0 %vm245_vm1, %v4550_v20  ;;  %2535 = vmatpush.bf16.msra.mxu2 %v2427_v46  ;;  %v2403_v59 = vsel %vm2390_vm8, %v2385_v51, %v2387_v19  ;;  %v2404_v58 = vsel %vm2390_vm8, %v2387_v19, %v2389_v9 }
 0x1a6   : > { %3601 = vmatmul.msk.bf16.vlgmr.msrb.gmra.mxu1 %vm245_vm1, %v4550_v20  ;;  %2548 = vmatpush.bf16.msra.mxu3 %v2430_v43  ;;  %v2445_v49 = vsel %vm249_vm0, %v2403_v59, 0  ;;  %v2448_v14 = vsel %vm249_vm0, %v2404_v58, 0 }
 0x1a7   : > { %v1477_v11 = vpop.f32.mrf.mxu2  ;;  %v1490_v4 = vpop.f32.mrf.mxu3  ;;  %2561 = vmatpush.bf16.msrb.mxu0 %v2433_v57  ;;  %2574 = vmatpush.bf16.msrb.mxu1 %v2436_v10 }
 0x1a8   : > { %v4571_v1 = vadd.f32 %v1477_v11, %v4399_v27  ;;  %v4574_v41 = vadd.f32 %v1490_v4, %v4402_v29  ;;  %3097 = vrot.lane.b32.xlu2 %v3075_v63, %s3683_s8  ;;  %3111 = vrot.lane.b32.xlu0 %v3082_v0, %s3683_s8  ;;  %v2402_v29 = vsel %vm2390_vm8, %v2383_v13, %v2385_v51 }
 0x1a9   : > { %v2442_v22 = vsel %vm249_vm0, %v2402_v29, 0  ;;  %v3081_v4 = vpack.c.b16 %v3066_v18, %v3066_v18 }
 0x1aa   : > { %v1505_v28 = vpop.f32.mrf.mxu0 }
 0x1ab   : > { %v1518_v32 = vpop.f32.mrf.mxu1 }
 0x1af   : > { %v1479_v52 = vpop.f32.mrf.mxu2  ;;  %v1492_v27 = vpop.f32.mrf.mxu3 }
 0x1b0   : > { %3103 = vrot.lane.b32.xlu2 %v3078_v36, %s3683_s8 }
 0x1b2   : > { %v1735_v40 = vpop.f32.mrf.mxu0 }
 0x1b3   : > { %v1748_v8 = vpop.f32.mrf.mxu1  ;;  %v4586_v42 = vadd.f32 %v1735_v40, %v4490_v34  ;;  %v2725_v34 = vpop.permute.xlu2 %2724 }
 0x1b4   : > { %v4589_v60 = vadd.f32 %v1748_v8, %v4493_v44  ;;  %3602 = vmatmul.msk.bf16.vlgmr.msrb.gmra.mxu2 %vm245_vm1, %v4550_v20  ;;  %3603 = vmatmul.msk.bf16.vlgmr.msrb.gmra.mxu3 %vm245_vm1, %v4550_v20  ;;  %v2723_v44 = vpop.permute.xlu1 %2722  ;;  %v2754_v30 = vsel %vm2752_vm9, %v2725_v34, %v2727_v55 }
 0x1b5   : > { %3604 = vmatmul.msk.bf16.vlgmr.msra.gmra.mxu0 %vm245_vm1, %v4550_v20  ;;  %2587 = vmatpush.bf16.msrb.mxu2 %v2439_v24  ;;  %v2753_v17 = vsel %vm2752_vm9, %v2723_v44, %v2725_v34  ;;  %v2774_v26 = vsel %vm249_vm0, %v2754_v30, 0 }
 0x1b6   : > { %3605 = vmatmul.msk.bf16.vlgmr.msra.gmra.mxu1 %vm245_vm1, %v4550_v20  ;;  %2600 = vmatpush.bf16.msrb.mxu3 %v2442_v22  ;;  %v2771_v63 = vsel %vm249_vm0, %v2753_v17, 0 }
 0x1b7   : > { %v1529_v31 = vpop.f32.mrf.mxu2  ;;  %v1542_v33 = vpop.f32.mrf.mxu3  ;;  %2613 = vmatpush.bf16.msra.mxu0 %v2445_v49  ;;  %2626 = vmatpush.bf16.msra.mxu1 %v2448_v14 }
 0x1b8   : > { %v4604_v16 = vadd.f32 %v1529_v31, %v4439_v56  ;;  %v1559_v53 = vadd.f32 %v1542_v33, %v1225_v38  ;;  %3109 = vrot.lane.b32.xlu2 %v3081_v4, %s3683_s8 }
 0x1ba   : > { %1573 = vst.msk [vmem:[#allocation2 + $0x68] sm:$0xff] %vm185_vm4, %v1559_v53  ;;  %v1737_v47 = vpop.f32.mrf.mxu0 }
 0x1bb   : > { %v1750_v48 = vpop.f32.mrf.mxu1  ;;  %v2731_v21 = vpop.permute.xlu2 %2730 }
 0x1bc   : > { %v2729_v37 = vpop.permute.xlu1 %2728 }
 0x1bd   : > { %v2755_v56 = vsel %vm2752_vm9, %v2727_v55, %v2729_v37  ;;  %v2756_v3 = vsel %vm2752_vm9, %v2729_v37, %v2731_v21  ;;  %v4671_v55 = vld [vmem:[%s4908_s1 + $0x4] sm:$0xf] }
 0x1be   : > { %v2777_v2 = vsel %vm249_vm0, %v2755_v56, 0  ;;  %v2780_v11 = vsel %vm249_vm0, %v2756_v3, 0 }
 0x1bf   : > { %v1531_v6 = vpop.f32.mrf.mxu2  ;;  %v1544_v15 = vpop.f32.mrf.mxu3 }
 0x1c1   : > { %v1587_v37 = vld [vmem:[#allocation2 + $0x68] sm:$0xff] }
 0x1c2   : > { %v1787_v46 = vpop.f32.mrf.mxu0 }
 0x1c3   : > { %v1800_v43 = vpop.f32.mrf.mxu1  ;;  %v4614_v57 = vadd.f32 %v1787_v46, %v4526_v35  ;;  %v2733_v35 = vpop.permute.xlu0 %2732 }
 0x1c4   : > { %v4617_v10 = vadd.f32 %v1800_v43, %v4529_v25  ;;  %3606 = vmatmul.msk.bf16.vlgmr.msra.gmra.mxu2 %vm245_vm1, %v4550_v20  ;;  %3607 = vmatmul.msk.bf16.vlgmr.msra.gmra.mxu3 %vm245_vm1, %v4550_v20  ;;  %v2735_v0 = vpop.permute.xlu1 %2734  ;;  %v2737_v19 = vpop.permute.xlu2 %2736  ;;  %v2757_v39 = vsel %vm2752_vm9, %v2731_v21, %v2733_v35 }
 0x1c5   : > { %3608 = vmatmul.msk.bf16.vlgmr.msrb.gmra.mxu0 %vm245_vm1, %v4550_v20  ;;  %2819 = vmatpush.bf16.msra.mxu2 %v2771_v63  ;;  %v2758_v29 = vsel %vm2752_vm9, %v2733_v35, %v2735_v0  ;;  %v2759_v9 = vsel %vm2752_vm9, %v2735_v0, %v2737_v19  ;;  %v2783_v40 = vsel %vm249_vm0, %v2757_v39, 0 }
 0x1c6   : > { %3609 = vmatmul.msk.bf16.vlgmr.msrb.gmra.mxu1 %vm245_vm1, %v4550_v20  ;;  %2832 = vmatpush.bf16.msra.mxu3 %v2774_v26  ;;  %v2786_v8 = vsel %vm249_vm0, %v2758_v29, 0  ;;  %v2789_v24 = vsel %vm249_vm0, %v2759_v9, 0 }
 0x1c7   : > { %v1761_v25 = vpop.f32.mrf.mxu2  ;;  %v1774_v13 = vpop.f32.mrf.mxu3  ;;  %2845 = vmatpush.bf16.msrb.mxu0 %v2777_v2  ;;  %2858 = vmatpush.bf16.msrb.mxu1 %v2780_v11 }
 0x1c8   : > { %v4632_v7 = vadd.f32 %v1761_v25, %v4470_v12  ;;  %v4635_v45 = vadd.f32 %v1774_v13, %v4473_v23 }
 0x1ca   : > { %v1789_v28 = vpop.f32.mrf.mxu0 }
 0x1cb   : > { %v1802_v32 = vpop.f32.mrf.mxu1  ;;  %v2739_v51 = vpop.permute.xlu0 %2738 }
 0x1cc   : > { %v2760_v12 = vsel %vm2752_vm9, %v2737_v19, %v2739_v51  ;;  %v2743_v31 = vpop.permute.xlu2 %2742 }
 0x1cd   : > { %v2792_v22 = vsel %vm249_vm0, %v2760_v12, 0 }
 0x1cf   : > { %v1763_v52 = vpop.f32.mrf.mxu2  ;;  %v1776_v27 = vpop.f32.mrf.mxu3 }
 0x1d2   : > { %v1839_v59 = vpop.f32.mrf.mxu0 }
 0x1d3   : > { %v1852_v23 = vpop.f32.mrf.mxu1  ;;  %v4643_v58 = vadd.f32 %v1839_v59, %v4571_v1  ;;  %v2741_v1 = vpop.permute.xlu1 %2740 }
 0x1d4   : > { %v4646_v5 = vadd.f32 %v1852_v23, %v4574_v41  ;;  %3610 = vmatmul.msk.bf16.vlgmr.msrb.gmra.mxu2 %vm245_vm1, %v4550_v20  ;;  %3611 = vmatmul.msk.bf16.vlgmr.msrb.gmra.mxu3 %vm245_vm1, %v4550_v20  ;;  %v2745_v33 = vpop.permute.xlu0 %2744  ;;  %v2761_v47 = vsel %vm2752_vm9, %v2739_v51, %v2741_v1  ;;  %v2762_v48 = vsel %vm2752_vm9, %v2741_v1, %v2743_v31 }
 0x1d5   : > { %3612 = vmatmul.msk.bf16.vlgmr.msra.gmra.mxu0 %vm245_vm1, %v4550_v20  ;;  %2871 = vmatpush.bf16.msrb.mxu2 %v2783_v40  ;;  %v2795_v30 = vsel %vm249_vm0, %v2761_v47, 0  ;;  %v2798_v56 = vsel %vm249_vm0, %v2762_v48, 0 }
 0x1d6   : > { %3613 = vmatmul.msk.bf16.vlgmr.msra.gmra.mxu1 %vm245_vm1, %v4550_v20  ;;  %2884 = vmatpush.bf16.msrb.mxu3 %v2786_v8 }
 0x1d7   : > { %v1813_v41 = vpop.f32.mrf.mxu2  ;;  %v1826_v49 = vpop.f32.mrf.mxu3  ;;  %2897 = vmatpush.bf16.msra.mxu0 %v2789_v24  ;;  %2910 = vmatpush.bf16.msra.mxu1 %v2792_v22 }
 0x1d8   : > { %v4661_v14 = vadd.f32 %v1813_v41, %v4508_v61  ;;  %v4664_v36 = vadd.f32 %v1826_v49, %v4511_v62  ;;  %v2763_v61 = vsel %vm2752_vm9, %v2743_v31, %v2745_v33 }
 0x1d9   : > { %v2801_v3 = vsel %vm249_vm0, %v2763_v61, 0 }
 0x1da   : > { %v1841_v34 = vpop.f32.mrf.mxu0 }
 0x1db   : > { %v1854_v44 = vpop.f32.mrf.mxu1  ;;  %v2747_v38 = vpop.permute.xlu1 %2746 }
 0x1dc   : > { %v2764_v62 = vsel %vm2752_vm9, %v2745_v33, %v2747_v38 }
 0x1dd   : > { %v2804_v18 = vsel %vm249_vm0, %v2764_v62, 0 }
 0x1df   : > { %v1815_v53 = vpop.f32.mrf.mxu2  ;;  %v1828_v20 = vpop.f32.mrf.mxu3 }
 0x1e0   : > { %v2751_v4 = vpop.permute.xlu0 %2750  ;;  %v3684_v53 = vmov 0  }
 0x1e1   : > { %3665 = vset.pattern.permute.xlu1 %v3684_v53  ;;  %3666 = vset.pattern.permute.xlu0 %v3684_v53 }
 0x1e2   : > { %v1891_v21 = vpop.f32.mrf.mxu0 }
 0x1e3   : > { %v1904_v6 = vpop.f32.mrf.mxu1  ;;  %v4676_v15 = vadd.f32 %v1891_v21, %v4604_v16  ;;  %v2749_v16 = vpop.permute.xlu2 %2748 }
 0x1e4   : > { %v1921_v17 = vadd.f32 %v1904_v6, %v1587_v37  ;;  %3615 = vmatmul.msk.bf16.vlgmr.msra.gmra.mxu2 %vm245_vm1, %v4671_v55  ;;  %3616 = vmatmul.msk.bf16.vlgmr.msra.gmra.mxu3 %vm245_vm1, %v4671_v55  ;;  %v3084_v35 = vpop.permute.xlu1 %3083  ;;  %v2765_v32 = vsel %vm2752_vm9, %v2747_v38, %v2749_v16  ;;  %v2766_v0 = vsel %vm2752_vm9, %v2749_v16, %v2751_v4 }
 0x1e5   : > { %3617 = vmatmul.msk.bf16.vlgmr.msrb.gmra.mxu0 %vm245_vm1, %v4671_v55  ;;  %2923 = vmatpush.bf16.msra.mxu2 %v2795_v30  ;;  %v2807_v27 = vsel %vm249_vm0, %v2765_v32, 0  ;;  %v2810_v39 = vsel %vm249_vm0, %v2766_v0, 0 }
 0x1e6   : > { %1935 = vst.msk [vmem:[#allocation2 + $0x68] sm:$0xff] %vm185_vm4, %v1921_v17  ;;  %3618 = vmatmul.msk.bf16.vlgmr.msrb.gmra.mxu1 %vm245_vm1, %v4671_v55  ;;  %2936 = vmatpush.bf16.msra.mxu3 %v2798_v56 }
 0x1e7   : > { %v1865_v46 = vpop.f32.mrf.mxu2  ;;  %v1878_v43 = vpop.f32.mrf.mxu3  ;;  %2949 = vmatpush.bf16.msrb.mxu0 %v2801_v3  ;;  %2962 = vmatpush.bf16.msrb.mxu1 %v2804_v18 }
 0x1e8   : > { %v4692_v63 = vadd.f32 %v1865_v46, %v4553_v54  ;;  %v4695_v26 = vadd.f32 %v1878_v43, %v4556_v50 }
 0x1ea   : > { %v1893_v2 = vpop.f32.mrf.mxu0  ;;  %v3088_v29 = vpop.permute.xlu0 %3087 }
 0x1eb   : > { %v1906_v11 = vpop.f32.mrf.mxu1  ;;  %v3086_v25 = vpop.permute.xlu2 %3085 }
 0x1ec   : > { %v3114_v19 = vsel %vm3113_vm10, %v3084_v35, %v3086_v25  ;;  %v3115_v12 = vsel %vm3113_vm10, %v3086_v25, %v3088_v29  ;;  %v3090_v8 = vpop.permute.xlu1 %3089 }
 0x1ed   : > { %v3132_v9 = vsel %vm249_vm0, %v3114_v19, 0  ;;  %v3116_v44 = vsel %vm3113_vm10, %v3088_v29, %v3090_v8 }
 0x1ee   : > { %v3138_v62 = vsel %vm249_vm0, %v3116_v44, 0 }
 0x1ef   : > { %v1867_v13 = vpop.f32.mrf.mxu2  ;;  %v1880_v28 = vpop.f32.mrf.mxu3 }
 0x1f2   : > { %v2123_v51 = vpop.f32.mrf.mxu0  ;;  %v3094_v41 = vpop.permute.xlu0 %3093 }
 0x1f3   : > { %v2136_v54 = vpop.f32.mrf.mxu1  ;;  %v4701_v52 = vadd.f32 %v2123_v51, %v4632_v7  ;;  %v3135_v7 = vsel %vm249_vm0, %v3115_v12, 0  ;;  %v3092_v1 = vpop.permute.xlu2 %3091 }
 0x1f4   : > { %v4704_v50 = vadd.f32 %v2136_v54, %v4635_v45  ;;  %3619 = vmatmul.msk.bf16.vlgmr.msrb.gmra.mxu2 %vm245_vm1, %v4671_v55  ;;  %3620 = vmatmul.msk.bf16.vlgmr.msrb.gmra.mxu3 %vm245_vm1, %v4671_v55  ;;  %v3117_v31 = vsel %vm3113_vm10, %v3090_v8, %v3092_v1  ;;  %v3096_v38 = vpop.permute.xlu1 %3095  ;;  %v3118_v33 = vsel %vm3113_vm10, %v3092_v1, %v3094_v41 }
 0x1f5   : > { %3621 = vmatmul.msk.bf16.vlgmr.msra.gmra.mxu0 %vm245_vm1, %v4671_v55  ;;  %2975 = vmatpush.bf16.msrb.mxu2 %v2807_v27  ;;  %v3141_v21 = vsel %vm249_vm0, %v3117_v31, 0  ;;  %v3144_v37 = vsel %vm249_vm0, %v3118_v33, 0 }
 0x1f6   : > { %3622 = vmatmul.msk.bf16.vlgmr.msra.gmra.mxu1 %vm245_vm1, %v4671_v55  ;;  %2988 = vmatpush.bf16.msrb.mxu3 %v2810_v39 }
 0x1f7   : > { %v2097_v45 = vpop.f32.mrf.mxu2  ;;  %v2110_v59 = vpop.f32.mrf.mxu3  ;;  %3180 = vmatpush.bf16.msra.mxu0 %v3132_v9  ;;  %3193 = vmatpush.bf16.msra.mxu1 %v3135_v7 }
 0x1f8   : > { %v4720_v23 = vadd.f32 %v2097_v45, %v4586_v42  ;;  %v4723_v40 = vadd.f32 %v2110_v59, %v4589_v60  ;;  %v3119_v42 = vsel %vm3113_vm10, %v3094_v41, %v3096_v38  ;;  %v3397_v60 = vld [vmem:[%s4909_s2] sm:$0xff] }
 0x1f9   : > { %3400 = vperm.xlu1 %3665, %v3397_v60   ;;  %v3147_v6 = vsel %vm249_vm0, %v3119_v42, 0  ;;  %v1949_v42 = vld [vmem:[#allocation2 + $0x68] sm:$0xff] }
 0x1fa   : > { %v2125_v24 = vpop.f32.mrf.mxu0 }
 0x1fb   : > { %v2138_v22 = vpop.f32.mrf.mxu1 }
 0x1fc   : > { %v3102_v4 = vpop.permute.xlu1 %3101 }
 0x1ff   : > { %v2099_v49 = vpop.f32.mrf.mxu2  ;;  %v2112_v34 = vpop.f32.mrf.mxu3 }
 0x202   : > { %v2175_v20 = vpop.f32.mrf.mxu0  ;;  %v3098_v18 = vpop.permute.xlu2 %3097 }
 0x203   : > { %v2188_v47 = vpop.f32.mrf.mxu1  ;;  %v4733_v48 = vadd.f32 %v2175_v20, %v4661_v14  ;;  %v3120_v2 = vsel %vm3113_vm10, %v3096_v38, %v3098_v18 }
 0x204   : > { %v4736_v61 = vadd.f32 %v2188_v47, %v4664_v36  ;;  %3623 = vmatmul.msk.bf16.vlgmr.msra.gmra.mxu2 %vm245_vm1, %v4671_v55  ;;  %3624 = vmatmul.msk.bf16.vlgmr.msra.gmra.mxu3 %vm245_vm1, %v4671_v55  ;;  %v3150_v32 = vsel %vm249_vm0, %v3120_v2, 0  ;;  %v3108_v7 = vpop.permute.xlu1 %3107 }
 0x205   : > { %3625 = vmatmul.msk.bf16.vlgmr.msrb.gmra.mxu0 %vm245_vm1, %v4671_v55  ;;  %3206 = vmatpush.bf16.msra.mxu2 %v3138_v62 }
 0x206   : > { %3626 = vmatmul.msk.bf16.vlgmr.msrb.gmra.mxu1 %vm245_vm1, %v4671_v55  ;;  %3219 = vmatpush.bf16.msra.mxu3 %v3141_v21 }
 0x207   : > { %v2149_v14 = vpop.f32.mrf.mxu2  ;;  %v2162_v36 = vpop.f32.mrf.mxu3  ;;  %3232 = vmatpush.bf16.msrb.mxu0 %v3144_v37  ;;  %3245 = vmatpush.bf16.msrb.mxu1 %v3147_v6 }
 0x208   : > { %v4751_v17 = vadd.f32 %v2149_v14, %v4614_v57  ;;  %v4754_v30 = vadd.f32 %v2162_v36, %v4617_v10  ;;  %v4762_v57 = vld [vmem:[%s4908_s1] sm:$0xf] }
 0x20a   : > { %v2177_v56 = vpop.f32.mrf.mxu0  ;;  %v3100_v16 = vpop.permute.xlu0 %3099 }
 0x20b   : > { %v2190_v3 = vpop.f32.mrf.mxu1  ;;  %v3121_v11 = vsel %vm3113_vm10, %v3098_v18, %v3100_v16  ;;  %v3122_v35 = vsel %vm3113_vm10, %v3100_v16, %v3102_v4  ;;  %v3104_v19 = vpop.permute.xlu2 %3103 }
 0x20c   : > { %v3153_v0 = vsel %vm249_vm0, %v3121_v11, 0  ;;  %v3123_v51 = vsel %vm3113_vm10, %v3102_v4, %v3104_v19  ;;  %v3156_v54 = vsel %vm249_vm0, %v3122_v35, 0 }
 0x20f   : > { %v2151_v46 = vpop.f32.mrf.mxu2  ;;  %v2164_v43 = vpop.f32.mrf.mxu3 }
 0x212   : > { %v2227_v25 = vpop.f32.mrf.mxu0  ;;  %v3106_v29 = vpop.permute.xlu0 %3105 }
 0x213   : > { %v2240_v13 = vpop.f32.mrf.mxu1  ;;  %v4765_v10 = vadd.f32 %v2227_v25, %v4692_v63  ;;  %v3159_v63 = vsel %vm249_vm0, %v3123_v51, 0  ;;  %v3124_v8 = vsel %vm3113_vm10, %v3104_v19, %v3106_v29  ;;  %v3125_v24 = vsel %vm3113_vm10, %v3106_v29, %v3108_v7  ;;  %v3110_v44 = vpop.permute.xlu2 %3109 }
 0x214   : > { %v4768_v28 = vadd.f32 %v2240_v13, %v4695_v26  ;;  %3627 = vmatmul.msk.bf16.vlgmr.msrb.gmra.mxu2 %vm245_vm1, %v4671_v55  ;;  %3628 = vmatmul.msk.bf16.vlgmr.msrb.gmra.mxu3 %vm245_vm1, %v4671_v55  ;;  %v3165_v34 = vsel %vm249_vm0, %v3125_v24, 0  ;;  %v3126_v31 = vsel %vm3113_vm10, %v3108_v7, %v3110_v44 }
 0x215   : > { %3629 = vmatmul.msk.bf16.vlgmr.msra.gmra.mxu0 %vm245_vm1, %v4762_v57  ;;  %3258 = vmatpush.bf16.msrb.mxu2 %v3150_v32 }
 0x216   : > { %3630 = vmatmul.msk.bf16.vlgmr.msra.gmra.mxu1 %vm245_vm1, %v4762_v57  ;;  %3271 = vmatpush.bf16.msrb.mxu3 %v3153_v0 }
 0x217   : > { %v2201_v26 = vpop.f32.mrf.mxu2  ;;  %v2214_v27 = vpop.f32.mrf.mxu3  ;;  %3284 = vmatpush.bf16.msra.mxu0 %v3156_v54  ;;  %3297 = vmatpush.bf16.msra.mxu1 %v3159_v63 }
 0x218   : > { %v2278_v55 = vadd.f32 %v2201_v26, %v4643_v58  ;;  %v2279_v39 = vadd.f32 %v2214_v27, %v4646_v5  ;;  %v3162_v5 = vsel %vm249_vm0, %v3124_v8, 0 }
 0x21a   : > { %v2229_v9 = vpop.f32.mrf.mxu0  ;;  %v3112_v22 = vpop.permute.xlu0 %3111 }
 0x21b   : > { %v2242_v12 = vpop.f32.mrf.mxu1  ;;  %v3127_v38 = vsel %vm3113_vm10, %v3110_v44, %v3112_v22 }
 0x21f   : > { %v2203_v45 = vpop.f32.mrf.mxu2  ;;  %v2216_v59 = vpop.f32.mrf.mxu3 }
 0x222   : > { %v2459_v1 = vpop.f32.mrf.mxu0 }
 0x223   : > { %v2472_v41 = vpop.f32.mrf.mxu1  ;;  %v4788_v49 = vadd.f32 %v2459_v1, %v4720_v23  ;;  %v3168_v23 = vsel %vm249_vm0, %v3126_v31, 0 }
 0x224   : > { %v4791_v58 = vadd.f32 %v2472_v41, %v4723_v40  ;;  %3631 = vmatmul.msk.bf16.vlgmr.msra.gmra.mxu2 %vm245_vm1, %v4762_v57  ;;  %3632 = vmatmul.msk.bf16.vlgmr.msra.gmra.mxu3 %vm245_vm1, %v4762_v57  ;;  %v3171_v40 = vsel %vm249_vm0, %v3127_v38, 0 }
 0x225   : > { %3633 = vmatmul.msk.bf16.vlgmr.msrb.gmra.mxu0 %vm245_vm1, %v4762_v57  ;;  %3310 = vmatpush.bf16.msra.mxu2 %v3162_v5 }
 0x226   : > { %3634 = vmatmul.msk.bf16.vlgmr.msrb.gmra.mxu1 %vm245_vm1, %v4762_v57  ;;  %3323 = vmatpush.bf16.msra.mxu3 %v3165_v34 }
 0x227   : > { %v2253_v33 = vpop.f32.mrf.mxu2  ;;  %v2266_v53 = vpop.f32.mrf.mxu3  ;;  %3336 = vmatpush.bf16.msrb.mxu0 %v3168_v23  ;;  %3349 = vmatpush.bf16.msrb.mxu1 %v3171_v40 }
 0x228   : > { %v2282_v60 = vadd.f32 %v2253_v33, %v4676_v15  ;;  %v2283_v20 = vadd.f32 %v2266_v53, %v1949_v42 }
 0x22a   : > { %2297 = vst.msk [vmem:[#allocation2 + $0x68] sm:$0xff] %vm185_vm4, %v2283_v20  ;;  %v2461_v47 = vpop.f32.mrf.mxu0 }
 0x22b   : > { %v2474_v62 = vpop.f32.mrf.mxu1 }
 0x22f   : > { %v2255_v21 = vpop.f32.mrf.mxu2  ;;  %v2268_v37 = vpop.f32.mrf.mxu3 }
 0x231   : > { %v2311_v63 = vld [vmem:[#allocation2 + $0x68] sm:$0xff] }
 0x232   : > { %v2511_v6 = vpop.f32.mrf.mxu0 }
 0x233   : > { %v2524_v14 = vpop.f32.mrf.mxu1  ;;  %v4810_v36 = vadd.f32 %v2511_v6, %v4751_v17 }
 0x234   : > { %v4813_v56 = vadd.f32 %v2524_v14, %v4754_v30  ;;  %3635 = vmatmul.msk.bf16.vlgmr.msrb.gmra.mxu2 %vm245_vm1, %v4762_v57  ;;  %3636 = vmatmul.msk.bf16.vlgmr.msrb.gmra.mxu3 %vm245_vm1, %v4762_v57 }
 0x235   : > { %3637 = vmatmul.msk.bf16.vlgmr.msra.gmra.mxu0 %vm245_vm1, %v4762_v57 }
 0x236   : > { %3638 = vmatmul.msk.bf16.vlgmr.msra.gmra.mxu1 %vm245_vm1, %v4762_v57 }
 0x237   : > { %v2485_v15 = vpop.f32.mrf.mxu2  ;;  %v2498_v3 = vpop.f32.mrf.mxu3 }
 0x238   : > { %v2634_v17 = vadd.f32 %v2485_v15, %v4701_v52  ;;  %v2635_v18 = vadd.f32 %v2498_v3, %v4704_v50 }
 0x23a   : > { %v2513_v30 = vpop.f32.mrf.mxu0 }
 0x23b   : > { %v2526_v16 = vpop.f32.mrf.mxu1 }
 0x23f   : > { %v2487_v46 = vpop.f32.mrf.mxu2  ;;  %v2500_v43 = vpop.f32.mrf.mxu3 }
 0x242   : > { %v2563_v2 = vpop.f32.mrf.mxu0 }
 0x243   : > { %v2576_v11 = vpop.f32.mrf.mxu1  ;;  %v4825_v4 = vadd.f32 %v2563_v2, %v2278_v55 }
 0x244   : > { %v4827_v35 = vadd.f32 %v2576_v11, %v2279_v39  ;;  %3639 = vmatmul.msk.bf16.vlgmr.msra.gmra.mxu2 %vm245_vm1, %v4762_v57  ;;  %3640 = vmatmul.msk.bf16.vlgmr.msra.gmra.mxu3 %vm245_vm1, %v4762_v57 }
 0x245   : > { %3641 = vmatmul.msk.bf16.vlgmr.msrb.gmra.mxu0 %vm245_vm1, %v4762_v57 }
 0x246   : > { %3642 = vmatmul.msk.bf16.vlgmr.msrb.gmra.mxu1 %vm245_vm1, %v4762_v57 }
 0x247   : > { %v2537_v52 = vpop.f32.mrf.mxu2  ;;  %v2550_v50 = vpop.f32.mrf.mxu3 }
 0x248   : > { %v2638_v25 = vadd.f32 %v2537_v52, %v4733_v48  ;;  %v2639_v13 = vadd.f32 %v2550_v50, %v4736_v61 }
 0x24a   : > { %v2565_v32 = vpop.f32.mrf.mxu0 }
 0x24b   : > { %v2578_v0 = vpop.f32.mrf.mxu1 }
 0x24f   : > { %v2539_v19 = vpop.f32.mrf.mxu2  ;;  %v2552_v51 = vpop.f32.mrf.mxu3 }
 0x252   : > { %v2615_v54 = vpop.f32.mrf.mxu0 }
 0x253   : > { %v2628_v26 = vpop.f32.mrf.mxu1  ;;  %v4839_v27 = vadd.f32 %v2615_v54, %v2282_v60 }
 0x254   : > { %v2645_v55 = vadd.f32 %v2628_v26, %v2311_v63 }
 0x256   : > { %2659 = vst.msk [vmem:[#allocation2 + $0x68] sm:$0xff] %vm185_vm4, %v2645_v55 }
 0x257   : > { %v2589_v39 = vpop.f32.mrf.mxu2  ;;  %v2602_v57 = vpop.f32.mrf.mxu3 }
 0x258   : > { %v2642_v29 = vadd.f32 %v2589_v39, %v4765_v10  ;;  %v2643_v48 = vadd.f32 %v2602_v57, %v4768_v28 }
 0x25a   : > { %v2617_v9 = vpop.f32.mrf.mxu0 }
 0x25b   : > { %v2630_v61 = vpop.f32.mrf.mxu1 }
 0x25f   : > { %v2591_v12 = vpop.f32.mrf.mxu2  ;;  %v2604_v7 = vpop.f32.mrf.mxu3 }
 0x262   : > { %v2847_v45 = vpop.f32.mrf.mxu0 }
 0x263   : > { %v2860_v59 = vpop.f32.mrf.mxu1  ;;  %v4844_v8 = vadd.f32 %v2847_v45, %v2634_v17 }
 0x264   : > { %v4846_v24 = vadd.f32 %v2860_v59, %v2635_v18 }
 0x267   : > { %v2821_v22 = vpop.f32.mrf.mxu2  ;;  %v2834_v1 = vpop.f32.mrf.mxu3 }
 0x268   : > { %v2994_v18 = vadd.f32 %v2821_v22, %v4788_v49  ;;  %v2995_v30 = vadd.f32 %v2834_v1, %v4791_v58 }
 0x26a   : > { %v2849_v41 = vpop.f32.mrf.mxu0 }
 0x26b   : > { %v2862_v5 = vpop.f32.mrf.mxu1  ;;  %v4858_v16 = vpop.permute.xlu1 %3400 }
 0x26f   : > { %v2823_v34 = vpop.f32.mrf.mxu2  ;;  %v2836_v44 = vpop.f32.mrf.mxu3 }
 0x272   : > { %v2899_v31 = vpop.f32.mrf.mxu0 }
 0x273   : > { %v2912_v10 = vpop.f32.mrf.mxu1  ;;  %v4848_v38 = vadd.f32 %v2899_v31, %v2638_v25 }
 0x274   : > { %v4850_v28 = vadd.f32 %v2912_v10, %v2639_v13  ;;  %v2673_v13 = vld [vmem:[#allocation2 + $0x68] sm:$0xff] }
 0x277   : > { %v2873_v23 = vpop.f32.mrf.mxu2  ;;  %v2886_v40 = vpop.f32.mrf.mxu3 }
 0x278   : > { %v2998_v55 = vadd.f32 %v2873_v23, %v4810_v36  ;;  %v2999_v39 = vadd.f32 %v2886_v40, %v4813_v56 }
 0x27a   : > { %v2901_v33 = vpop.f32.mrf.mxu0 }
 0x27b   : > { %v2914_v42 = vpop.f32.mrf.mxu1 }
 0x27f   : > { %v2875_v53 = vpop.f32.mrf.mxu2  ;;  %v2888_v60 = vpop.f32.mrf.mxu3 }
 0x282   : > { %v2951_v20 = vpop.f32.mrf.mxu0 }
 0x283   : > { %v2964_v47 = vpop.f32.mrf.mxu1  ;;  %v4852_v62 = vadd.f32 %v2951_v20, %v2642_v29 }
 0x284   : > { %v4854_v21 = vadd.f32 %v2964_v47, %v2643_v48 }
 0x287   : > { %v2925_v37 = vpop.f32.mrf.mxu2  ;;  %v2938_v6 = vpop.f32.mrf.mxu3 }
 0x288   : > { %v3002_v42 = vadd.f32 %v2925_v37, %v4825_v4 }
 0x28a   : > { %v2953_v14 = vpop.f32.mrf.mxu0 }
 0x28b   : > { %v2966_v15 = vpop.f32.mrf.mxu1 }
 0x28f   : > { %v2927_v3 = vpop.f32.mrf.mxu2  ;;  %v2940_v17 = vpop.f32.mrf.mxu3 }
 0x292   : > { %v3182_v46 = vpop.f32.mrf.mxu0 }
 0x293   : > { %v3195_v43 = vpop.f32.mrf.mxu1  ;;  %v3355_v2 = vadd.f32 %v3182_v46, %v2994_v18 }
 0x294   : > { %v3356_v11 = vadd.f32 %v3195_v43, %v2995_v30 }
 0x295   : > { %v3403_v52 = vadd.f32 %v4858_v16, %v3355_v2 }
 0x296   : > { %v3404_v50 = vadd.f32 %v4858_v16, %v3356_v11 }
 0x297   : > { %v4863_v25 = vpop.f32.mrf.mxu2  ;;  %v2990_v32 = vpop.f32.mrf.mxu3  ;;  %v3417_v0 = vmax.f32 %v3403_v52, 0.0 }
 0x298   : > { %v3418_v19 = vmax.f32 %v3404_v50, 0.0  ;;  %v3007_v49 = vadd.f32 %v2990_v32, %v2673_v13  ;;  %v3006_v32 = vadd.f32 %v4863_v25, %v4839_v27 }
 0x29a   : > { %v3431_v58 = vpack.c.bf16 %v3418_v19, %v3417_v0  ;;  %3021 = vst.msk [vmem:[#allocation2 + $0x68] sm:$0xff] %vm185_vm4, %v3007_v49  ;;  %v3184_v51 = vpop.f32.mrf.mxu0 }
 0x29b   : > { %v3197_v54 = vpop.f32.mrf.mxu1 }
 0x29c   : > { %3438 = vst [vmem:[%s4868_s24] sm:$0xff] %v3431_v58 }
 0x29f   : > { %v2979_v63 = vpop.f32.mrf.mxu2  ;;  %v2992_v26 = vpop.f32.mrf.mxu3 }
 0x2a1   : > { %v3035_v0 = vld [vmem:[#allocation2 + $0x68] sm:$0xff] }
 0x2a2   : > { %v3234_v57 = vpop.f32.mrf.mxu0 }
 0x2a3   : > { %v3247_v29 = vpop.f32.mrf.mxu1  ;;  %v3359_v48 = vadd.f32 %v3234_v57, %v2998_v55 }
 0x2a4   : > { %v3360_v9 = vadd.f32 %v3247_v29, %v2999_v39 }
 0x2a5   : > { %v3407_v61 = vadd.f32 %v4858_v16, %v3359_v48 }
 0x2a6   : > { %v3408_v12 = vadd.f32 %v4858_v16, %v3360_v9 }
 0x2a7   : > { %v3421_v7 = vmax.f32 %v3407_v61, 0.0  ;;  %v3208_v59 = vpop.f32.mrf.mxu2  ;;  %v3221_v22 = vpop.f32.mrf.mxu3 }
 0x2a8   : > { %v3422_v45 = vmax.f32 %v3408_v12, 0.0  ;;  %v3357_v1 = vadd.f32 %v3208_v59, %v4844_v8  ;;  %v3358_v36 = vadd.f32 %v3221_v22, %v4846_v24  ;;  %v3003_v8 = vadd.f32 %v2938_v6, %v4827_v35 }
 0x2aa   : > { %v3433_v41 = vpack.c.bf16 %v3422_v45, %v3421_v7  ;;  %v3405_v56 = vadd.f32 %v4858_v16, %v3357_v1  ;;  %v3406_v5 = vadd.f32 %v4858_v16, %v3358_v36  ;;  %v3236_v34 = vpop.f32.mrf.mxu0 }
 0x2ab   : > { %v3249_v44 = vpop.f32.mrf.mxu1 }
 0x2ac   : > { %3440 = vst [vmem:[%s4868_s24 + $0x10] sm:$0xff] %v3433_v41  ;;  %v3419_v31 = vmax.f32 %v3405_v56, 0.0  ;;  %v3420_v10 = vmax.f32 %v3406_v5, 0.0 }
 0x2ae   : > { %v3432_v23 = vpack.c.bf16 %v3420_v10, %v3419_v31 }
 0x2af   : > { %v3210_v40 = vpop.f32.mrf.mxu2  ;;  %v3223_v33 = vpop.f32.mrf.mxu3 }
 0x2b0   : > { %3439 = vst [vmem:[%s4868_s24 + $0x8] sm:$0xff] %v3432_v23 }
 0x2b2   : > { %v3286_v53 = vpop.f32.mrf.mxu0 }
 0x2b3   : > { %v3299_v24 = vpop.f32.mrf.mxu1  ;;  %v3363_v60 = vadd.f32 %v3286_v53, %v3002_v42 }
 0x2b4   : > { %v3364_v20 = vadd.f32 %v3299_v24, %v3003_v8 }
 0x2b5   : > { %v3411_v47 = vadd.f32 %v4858_v16, %v3363_v60 }
 0x2b6   : > { %v3412_v14 = vadd.f32 %v4858_v16, %v3364_v20 }
 0x2b7   : > { %v3425_v15 = vmax.f32 %v3411_v47, 0.0  ;;  %v3260_v17 = vpop.f32.mrf.mxu2  ;;  %v3273_v18 = vpop.f32.mrf.mxu3 }
 0x2b8   : > { %v3426_v3 = vmax.f32 %v3412_v14, 0.0  ;;  %v3361_v30 = vadd.f32 %v3260_v17, %v4848_v38  ;;  %v3362_v4 = vadd.f32 %v3273_v18, %v4850_v28 }
 0x2ba   : > { %v3435_v37 = vpack.c.bf16 %v3426_v3, %v3425_v15  ;;  %v3409_v35 = vadd.f32 %v4858_v16, %v3361_v30  ;;  %v3410_v6 = vadd.f32 %v4858_v16, %v3362_v4  ;;  %v3288_v46 = vpop.f32.mrf.mxu0 }
 0x2bb   : > { %v3301_v43 = vpop.f32.mrf.mxu1 }
 0x2bc   : > { %3442 = vst [vmem:[%s4868_s24 + $0x20] sm:$0xff] %v3435_v37  ;;  %v3423_v2 = vmax.f32 %v3409_v35, 0.0  ;;  %v3424_v11 = vmax.f32 %v3410_v6, 0.0 }
 0x2be   : > { %v3434_v52 = vpack.c.bf16 %v3424_v11, %v3423_v2 }
 0x2bf   : > { %v3262_v50 = vpop.f32.mrf.mxu2  ;;  %v3275_v13 = vpop.f32.mrf.mxu3 }
 0x2c0   : > { %3441 = vst [vmem:[%s4868_s24 + $0x18] sm:$0xff] %v3434_v52 }
 0x2c2   : > { %v3338_v38 = vpop.f32.mrf.mxu0 }
 0x2c3   : > { %v3351_v28 = vpop.f32.mrf.mxu1  ;;  %v3367_v19 = vadd.f32 %v3338_v38, %v3006_v32 }
 0x2c4   : > { %v3368_v49 = vadd.f32 %v3351_v28, %v3035_v0 }
 0x2c5   : > { %v3415_v25 = vadd.f32 %v4858_v16, %v3367_v19 }
 0x2c6   : > { %3382 = vst.msk [vmem:[#allocation2 + $0x68] sm:$0xff] %vm185_vm4, %v3368_v49 }
 0x2c7   : > { %v3312_v58 = vpop.f32.mrf.mxu2  ;;  %v3325_v51 = vpop.f32.mrf.mxu3 }
 0x2c8   : > { %v3365_v54 = vadd.f32 %v3312_v58, %v4852_v62  ;;  %v3366_v63 = vadd.f32 %v3325_v51, %v4854_v21  ;;  %v3429_v21 = vmax.f32 %v3415_v25, 0.0 }
 0x2ca   : > { %v3413_v26 = vadd.f32 %v4858_v16, %v3365_v54  ;;  %v3414_v55 = vadd.f32 %v4858_v16, %v3366_v63  ;;  %v3340_v39 = vpop.f32.mrf.mxu0 }
 0x2cb   : > { %v3353_v27 = vpop.f32.mrf.mxu1 }
 0x2cc   : > { %v3427_v57 = vmax.f32 %v3413_v26, 0.0  ;;  %v3428_v29 = vmax.f32 %v3414_v55, 0.0 }
 0x2cd   : > { %v3396_v48 = vld [vmem:[#allocation2 + $0x68] sm:$0xff] }
 0x2ce   : > { %v3416_v9 = vadd.f32 %v4858_v16, %v3396_v48  ;;  %v3436_v61 = vpack.c.bf16 %v3428_v29, %v3427_v57 }
 0x2cf   : > { %v3314_v62 = vpop.f32.mrf.mxu2  ;;  %v3327_v12 = vpop.f32.mrf.mxu3 }
 0x2d0   : > { %v3430_v7 = vmax.f32 %v3416_v9, 0.0  ;;  %3443 = vst [vmem:[%s4868_s24 + $0x28] sm:$0xff] %v3436_v61 }
 0x2d2   : > { %v3437_v45 = vpack.c.bf16 %v3430_v7, %v3429_v21 }
 0x2d4   : > { %3446 = vst.msk [vmem:[%s4868_s24 + $0x30] sm:$0xff] %vm3445_vm12, %v3437_v45 }
 0x2d5 PF: > { %s13_s12 = sadd.s32 1, %s3673_s12  }
 0x2d6   : > { %p10_p4 = scmp.ge.s32.totalorder %s13_s12, 4  }
 0x2d8   :  { %12 = sbr.rel (!%p10_p4) target bundleno = 1 (0x1), region = 70 }

// kernel: pixel_decoder_forward.9
= control target key start
LH: loop header
LB: loop body
LE: loop exit
PB: predicated region body
PF: predicated region fallthrough
CT: control target
= control target key end

     0   :  { %s4137_s12 = smov 0   ;;  %s5557_s0 = inlined_call_operand.vmem [shape: bf16[2,8,1892], index: 0, kind: input, shape index: {}]   ;;  %s5558_s1 = inlined_call_operand.vmem [shape: bf16[9,4,8], index: 1, kind: input, shape index: {}]   ;;  %s5559_s2 = inlined_call_operand.vmem [shape: f32[4,1], index: 2, kind: input, shape index: {}]   ;;  %s5560_s3 = inlined_call_operand.vmem [shape: f32[2,4,4,1806], index: 3, kind: output, shape index: {}]  }
   0x1 LB: > { %s3905_s13 = sadd.s32 4294967295, %s4109_s12   ;;  %p3909_p0 = scmp.ge.s32.totalorder %s4109_s12, 1  ;;  %s4109_s12 = sphi %s4137_s12, %s13_s12  }
   0x2   : > { %p137_p1 = scmp.lt.s32.totalorder %s4109_s12, 3 }
   0x4   : > { %p138_p2 = pnand %p3909_p0, %p137_p1 }
   0x5   : > { %p161_p3 = scmp.lt.s32.totalorder (!%p138_p2), %s3905_s13, 1  ;;  %s4111_s18 = smov (!%p138_p2), 127  }
   0x6   : > { %141 = sbr.rel (%p138_p2) target bundleno = 759 (0x2f7), region = 32  ;;  %s4112_s21 = smov (!%p138_p2), 85  }
   0x7   : > { %s4113_s22 = smov (!%p138_p2), 84  }
   0xb   : > { %s5562_s13 = smov (!%p161_p3, %s3905_s13), 1  ;;  %vm241_vm0 = vcmask 1043456   ;;  %v4207_v31 = vld [vmem:[%s5558_s1 + $0x10] sm:$0x3]  ;;  %vm237_vm1 = vcmask 64512   ;;  %vm619_vm2 = vcmask 1039360  }
   0xc   : > { %s4081_s14 = smul.u32 60, %s5562_s13  ;;  %vm1014_vm3 = vcmask 695296   ;;  %vm1408_vm4 = vcmask 687104   ;;  %vm179_vm5 = vcmask 109568  }
   0xe   : > { %s4151_s17 = scalar_lea.vmem %s5557_s0, %s4081_s14  ;;  %s4082_s14 = smul.u32 240, %s5562_s13 }
   0xf   : > { %v544_v0 = vld [vmem:[%s4151_s17 + $0x8] sm:$0xff]  ;;  %v543_v1 = vld [vmem:[%s4151_s17] sm:$0xff]  ;;  %v545_v4 = vld [vmem:[%s4151_s17 + $0x10] sm:$0xff] }
  0x10   : > { %v562_v2 = vunpack.c.h.b16 %v544_v0  ;;  %v559_v3 = vunpack.c.l.b16 %v543_v1  ;;  %v561_v5 = vunpack.c.l.b16 %v544_v0  ;;  %v560_v9 = vunpack.c.h.b16 %v543_v1  ;;  %v546_v14 = vld [vmem:[%s4151_s17 + $0x18] sm:$0xff]  ;;  %v547_v15 = vld [vmem:[%s4151_s17 + $0x20] sm:$0xff]  ;;  %v548_v22 = vld [vmem:[%s4151_s17 + $0x28] sm:$0xff]  ;;  %s5177_s16 = scalar_lea.vmem %s5560_s3, %s4082_s14 }
  0x11   : > { %v563_v10 = vunpack.c.l.b16 %v545_v4  ;;  %v564_v11 = vunpack.c.h.b16 %v545_v4  ;;  %v566_v17 = vunpack.c.h.b16 %v546_v14  ;;  %v567_v18 = vunpack.c.l.b16 %v547_v15  ;;  %v549_v30 = vld [vmem:[%s4151_s17 + $0x30] sm:$0xff]  ;;  %v550_v40 = vld [vmem:[%s4151_s17 + $0x38] sm:$0xf] }
  0x12   : > { %v4156_v6 = vpack.c.b16 %v562_v2, %v562_v2  ;;  %v4158_v7 = vpack.c.b16 %v559_v3, %v559_v3  ;;  %v4160_v8 = vpack.c.b16 %v561_v5, %v561_v5  ;;  %v4170_v13 = vpack.c.b16 %v560_v9, %v560_v9  ;;  %v198_v51 = vld [vmem:[%s4151_s17 + $0x38] sm:$0xf]  ;;  %v4340_v3 = vld [vmem:[%s5558_s1 + $0xc] sm:$0x3] }
  0x13   : > { %v4168_v12 = vpack.c.b16 %v563_v10, %v563_v10  ;;  %v4174_v16 = vpack.c.b16 %v564_v11, %v564_v11  ;;  %v565_v19 = vunpack.c.l.b16 %v546_v14  ;;  %v4182_v20 = vpack.c.b16 %v566_v17, %v566_v17  ;;  %v945_v57 = vld [vmem:[%s4151_s17 + $0x38] sm:$0xf] }
  0x14   : > { %595 = vrot.lane.b32.xlu1 %v4156_v6, %s4111_s18  ;;  %589 = vrot.lane.b32.xlu0 %v4158_v7, %s4111_s18  ;;  %v4184_v21 = vpack.c.b16 %v567_v18, %v567_v18  ;;  %v568_v24 = vunpack.c.h.b16 %v547_v15  ;;  %v570_v25 = vunpack.c.h.b16 %v548_v22  ;;  %v246_v26 = vsel %vm241_vm0, %v4170_v13, 0 }
  0x15   : > { %593 = vrot.lane.b32.xlu2 %v4160_v8, %s4111_s18  ;;  %v4187_v23 = vpack.c.b16 %v565_v19, %v565_v19  ;;  %307 = vmatpush.bf16.msra.mxu1 %v246_v26  ;;  %v249_v29 = vsel %vm241_vm0, %v4160_v8, 0  ;;  %v569_v32 = vunpack.c.l.b16 %v548_v22  ;;  %v572_v33 = vunpack.c.h.b16 %v549_v30 }
  0x16   : > { %v4197_v27 = vpack.c.b16 %v568_v24, %v568_v24  ;;  %v4199_v28 = vpack.c.b16 %v570_v25, %v570_v25  ;;  %320 = vmatpush.bf16.msra.mxu2 %v249_v29  ;;  %v243_v34 = vsel %vm241_vm0, %v4158_v7, 0  ;;  %v571_v35 = vunpack.c.l.b16 %v549_v30  ;;  %v1339_v29 = vld [vmem:[%s4151_s17 + $0x38] sm:$0xf] }
  0x17   : > { %294 = vmatpush.bf16.msra.mxu0 %v243_v34  ;;  %v252_v37 = vsel %vm241_vm0, %v4156_v6, 0  ;;  %v4223_v38 = vpack.c.b16 %v569_v32, %v569_v32  ;;  %v4225_v39 = vpack.c.b16 %v572_v33, %v572_v33  ;;  %v573_v41 = vunpack.c.l.b16 %v550_v40 }
  0x18   : > { %3914 = vmatmul.msk.bf16.vlgmr.msra.gmra.mxu1 %vm237_vm1, %v4207_v31  ;;  %v4217_v36 = vpack.c.b16 %v571_v35, %v571_v35  ;;  %333 = vmatpush.bf16.msra.mxu3 %v252_v37  ;;  %v258_v42 = vsel %vm241_vm0, %v4174_v16, 0  ;;  %v261_v44 = vsel %vm241_vm0, %v4187_v23, 0  ;;  %v255_v45 = vsel %vm241_vm0, %v4168_v12, 0 }
  0x19   : > { %3915 = vmatmul.msk.bf16.vlgmr.msra.gmra.mxu2 %vm237_vm1, %v4207_v31  ;;  %359 = vmatpush.bf16.msrb.mxu1 %v258_v42  ;;  %v588_v43 = vpack.c.b16 %v573_v41, %v573_v41  ;;  %v264_v46 = vsel %vm241_vm0, %v4182_v20, 0  ;;  %v270_v47 = vsel %vm241_vm0, %v4197_v27, 0  ;;  %v273_v48 = vsel %vm241_vm0, %v4223_v38, 0 }
  0x1a   : > { %3913 = vmatmul.msk.bf16.vlgmr.msra.gmra.mxu0 %vm237_vm1, %v4207_v31  ;;  %372 = vmatpush.bf16.msrb.mxu2 %v261_v44  ;;  %v267_v49 = vsel %vm241_vm0, %v4184_v21, 0  ;;  %v276_v50 = vsel %vm241_vm0, %v4199_v28, 0  ;;  %v282_v52 = vsel %vm241_vm0, %v4225_v39, 0  ;;  %v221_v53 = vunpack.c.l.b16 %v198_v51 }
  0x1b   : > { %3916 = vmatmul.msk.bf16.vlgmr.msra.gmra.mxu3 %vm237_vm1, %v4207_v31  ;;  %346 = vmatpush.bf16.msrb.mxu0 %v255_v45  ;;  %v279_v56 = vsel %vm241_vm0, %v4217_v36, 0  ;;  %v968_v58 = vunpack.c.l.b16 %v945_v57  ;;  %v1362_v32 = vunpack.c.l.b16 %v1339_v29 }
  0x1c   : > { %597 = vrot.lane.b32.xlu1 %v4168_v12, %s4111_s18  ;;  %591 = vrot.lane.b32.xlu0 %v4170_v13, %s4111_s18  ;;  %v236_v54 = vpack.c.b16 %v221_v53, %v221_v53 }
  0x1d   : > { %599 = vrot.lane.b32.xlu2 %v4174_v16, %s4111_s18  ;;  %385 = vmatpush.bf16.msrb.mxu3 %v264_v46  ;;  %v983_v60 = vpack.c.b16 %v968_v58, %v968_v58  ;;  %v1377_v37 = vpack.c.b16 %v1362_v32, %v1362_v32 }
  0x1e   : > { %411 = vmatpush.bf16.msra.mxu1 %v270_v47  ;;  %424 = vmatpush.bf16.msra.mxu2 %v273_v48  ;;  %v285_v55 = vsel %vm241_vm0, %v236_v54, 0 }
  0x1f   : > { %398 = vmatpush.bf16.msra.mxu0 %v267_v49 }
  0x21   : > { %437 = vmatpush.bf16.msra.mxu3 %v276_v50 }
  0x24   : > { %603 = vrot.lane.b32.xlu0 %v4182_v20, %s4111_s18  ;;  %605 = vrot.lane.b32.xlu1 %v4184_v21, %s4111_s18 }
  0x25   : > { %601 = vrot.lane.b32.xlu2 %v4187_v23, %s4111_s18 }
  0x28   : > { %3918 = vmatmul.msk.bf16.vlgmr.msrb.gmra.mxu1 %vm237_vm1, %v4207_v31 }
  0x29   : > { %3919 = vmatmul.msk.bf16.vlgmr.msrb.gmra.mxu2 %vm237_vm1, %v4207_v31  ;;  %463 = vmatpush.bf16.msrb.mxu1 %v282_v52 }
  0x2a   : > { %3917 = vmatmul.msk.bf16.vlgmr.msrb.gmra.mxu0 %vm237_vm1, %v4207_v31  ;;  %476 = vmatpush.bf16.msrb.mxu2 %v285_v55 }
  0x2b   : > { %3920 = vmatmul.msk.bf16.vlgmr.msrb.gmra.mxu3 %vm237_vm1, %v4207_v31  ;;  %450 = vmatpush.bf16.msrb.mxu0 %v279_v56 }
  0x2c   : > { %607 = vrot.lane.b32.xlu0 %v4197_v27, %s4111_s18  ;;  %611 = vrot.lane.b32.xlu1 %v4199_v28, %s4111_s18 }
  0x2d   : > { %613 = vrot.lane.b32.xlu2 %v4217_v36, %s4111_s18 }
  0x34   : > { %609 = vrot.lane.b32.xlu0 %v4223_v38, %s4111_s18  ;;  %615 = vrot.lane.b32.xlu1 %v4225_v39, %s4111_s18 }
  0x35   : > { %984 = vrot.lane.b32.xlu2 %v4158_v7, %s4112_s21 }
  0x38   : > { %3922 = vmatmul.msk.bf16.vlgmr.msra.gmra.mxu1 %vm237_vm1, %v4207_v31 }
  0x39   : > { %3923 = vmatmul.msk.bf16.vlgmr.msra.gmra.mxu2 %vm237_vm1, %v4207_v31 }
  0x3a   : > { %3921 = vmatmul.msk.bf16.vlgmr.msra.gmra.mxu0 %vm237_vm1, %v4207_v31 }
  0x3b   : > { %3924 = vmatmul.msk.bf16.vlgmr.msra.gmra.mxu3 %vm237_vm1, %v4207_v31 }
  0x3c   : > { %986 = vrot.lane.b32.xlu0 %v4170_v13, %s4112_s21  ;;  %617 = vrot.lane.b32.xlu1 %v588_v43, %s4111_s18 }
  0x3d   : > { %988 = vrot.lane.b32.xlu2 %v4160_v8, %s4112_s21 }
  0x44   : > { %992 = vrot.lane.b32.xlu0 %v4168_v12, %s4112_s21  ;;  %994 = vrot.lane.b32.xlu1 %v4174_v16, %s4112_s21 }
  0x45   : > { %990 = vrot.lane.b32.xlu2 %v4156_v6, %s4112_s21 }
  0x48   : > { %3926 = vmatmul.msk.bf16.vlgmr.msrb.gmra.mxu1 %vm237_vm1, %v4207_v31 }
  0x49   : > { %3927 = vmatmul.msk.bf16.vlgmr.msrb.gmra.mxu2 %vm237_vm1, %v4207_v31 }
  0x4a   : > { %3925 = vmatmul.msk.bf16.vlgmr.msrb.gmra.mxu0 %vm237_vm1, %v4207_v31 }
  0x4c   : > { %996 = vrot.lane.b32.xlu0 %v4187_v23, %s4112_s21  ;;  %1000 = vrot.lane.b32.xlu1 %v4184_v21, %s4112_s21 }
  0x4d   : > { %1002 = vrot.lane.b32.xlu2 %v4197_v27, %s4112_s21 }
  0x54   : > { %998 = vrot.lane.b32.xlu0 %v4182_v20, %s4112_s21  ;;  %1004 = vrot.lane.b32.xlu1 %v4223_v38, %s4112_s21 }
  0x55   : > { %1008 = vrot.lane.b32.xlu2 %v4217_v36, %s4112_s21 }
  0x5c   : > { %1010 = vrot.lane.b32.xlu0 %v4225_v39, %s4112_s21  ;;  %1006 = vrot.lane.b32.xlu1 %v4199_v28, %s4112_s21 }
  0x5d   : > { %1012 = vrot.lane.b32.xlu2 %v983_v60, %s4112_s21 }
  0x64   : > { %1380 = vrot.lane.b32.xlu0 %v4170_v13, %s4113_s22  ;;  %1382 = vrot.lane.b32.xlu1 %v4160_v8, %s4113_s22 }
  0x65   : > { %1378 = vrot.lane.b32.xlu2 %v4158_v7, %s4113_s22 }
  0x6c   : > { %1384 = vrot.lane.b32.xlu0 %v4156_v6, %s4113_s22  ;;  %1388 = vrot.lane.b32.xlu1 %v4174_v16, %s4113_s22 }
  0x6d   : > { %1390 = vrot.lane.b32.xlu2 %v4187_v23, %s4113_s22 }
  0x6f   : > { %v594_v59 = vpop.permute.xlu2 %593 }
  0x74   : > { %1386 = vrot.lane.b32.xlu0 %v4168_v12, %s4113_s22  ;;  %1392 = vrot.lane.b32.xlu1 %v4182_v20, %s4113_s22 }
  0x75   : > { %1396 = vrot.lane.b32.xlu2 %v4197_v27, %s4113_s22 }
  0x77   : > { %v600_v61 = vpop.permute.xlu2 %599 }
  0x7c   : > { %1398 = vrot.lane.b32.xlu0 %v4223_v38, %s4113_s22  ;;  %1394 = vrot.lane.b32.xlu1 %v4184_v21, %s4113_s22 }
  0x7d   : > { %1400 = vrot.lane.b32.xlu2 %v4199_v28, %s4113_s22 }
  0x7f   : > { %v602_v1 = vpop.permute.xlu2 %601 }
  0x80   : > { %v625_v4 = vsel %vm619_vm2, %v600_v61, %v602_v1 }
  0x81   : > { %v653_v10 = vsel %vm241_vm0, %v625_v4, 0 }
  0x84   : > { %1404 = vrot.lane.b32.xlu0 %v4225_v39, %s4113_s22  ;;  %1406 = vrot.lane.b32.xlu1 %v1377_v37, %s4113_s22 }
  0x85   : > { %1402 = vrot.lane.b32.xlu2 %v4217_v36, %s4113_s22 }
  0x86   : > { %v596_v62 = vpop.permute.xlu1 %595  ;;  %v590_v63 = vpop.permute.xlu0 %589 }
  0x87   : > { %v622_v0 = vsel %vm619_vm2, %v594_v59, %v596_v62  ;;  %v614_v18 = vpop.permute.xlu2 %613 }
  0x88   : > { %v644_v2 = vsel %vm241_vm0, %v622_v0, 0 }
  0x89   : > { %715 = vmatpush.bf16.msra.mxu1 %v644_v2 }
  0x8c   : > { %1819 = vrot.lane.b32.xlu0 %v4160_v8, %s4111_s18  ;;  %3931 = vmatmul.msk.bf16.vlgmr.msra.gmra.mxu1 %vm237_vm1, %v4340_v3 }
  0x8d   : > { %1821 = vrot.lane.b32.xlu1 %v4156_v6, %s4111_s18  ;;  %1817 = vrot.lane.b32.xlu2 %v4170_v13, %s4111_s18 }
  0x8e   : > { %v598_v5 = vpop.permute.xlu1 %597  ;;  %v592_v9 = vpop.permute.xlu0 %591 }
  0x8f   : > { %v623_v11 = vsel %vm619_vm2, %v596_v62, %v598_v5  ;;  %v624_v14 = vsel %vm619_vm2, %v598_v5, %v600_v61  ;;  %v620_v15 = vsel %vm619_vm2, %v590_v63, %v592_v9  ;;  %v621_v17 = vsel %vm619_vm2, %v592_v9, %v594_v59  ;;  %v985_v35 = vpop.permute.xlu2 %984 }
  0x90   : > { %v647_v8 = vsel %vm241_vm0, %v623_v11, 0  ;;  %v650_v19 = vsel %vm241_vm0, %v624_v14, 0  ;;  %v638_v22 = vsel %vm241_vm0, %v620_v15, 0  ;;  %v641_v24 = vsel %vm241_vm0, %v621_v17, 0 }
  0x91   : > { %689 = vmatpush.bf16.msrb.mxu3 %v638_v22  ;;  %702 = vmatpush.bf16.msra.mxu0 %v641_v24 }
  0x92   : > { %728 = vmatpush.bf16.msra.mxu2 %v647_v8 }
  0x94   : > { %1815 = vrot.lane.b32.xlu0 %v4158_v7, %s4111_s18  ;;  %3929 = vmatmul.msk.bf16.vlgmr.msrb.gmra.mxu3 %vm237_vm1, %v4340_v3 }
  0x95   : > { %741 = vmatpush.bf16.msra.mxu3 %v650_v19  ;;  %754 = vmatpush.bf16.msrb.mxu0 %v653_v10  ;;  %v309_v54 = vpop.f32.mrf.mxu1 }
  0x96   : > { %3930 = vmatmul.msk.bf16.vlgmr.msra.gmra.mxu0 %vm237_vm1, %v4340_v3  ;;  %3932 = vmatmul.msk.bf16.vlgmr.msra.gmra.mxu2 %vm237_vm1, %v4340_v3  ;;  %v604_v25 = vpop.permute.xlu0 %603  ;;  %v606_v26 = vpop.permute.xlu1 %605  ;;  %v496_v55 = vrot.slane %v309_v54, 4 }
  0x97   : > { %v626_v30 = vsel %vm619_vm2, %v602_v1, %v604_v25  ;;  %v627_v31 = vsel %vm619_vm2, %v604_v25, %v606_v26  ;;  %v989_v46 = vpop.permute.xlu2 %988  ;;  %1823 = vrot.lane.b32.xlu1 %v4168_v12, %s4111_s18  ;;  %1827 = vrot.lane.b32.xlu2 %v4187_v23, %s4111_s18 }
  0x98   : > { %v656_v33 = vsel %vm241_vm0, %v626_v30, 0  ;;  %v659_v34 = vsel %vm241_vm0, %v627_v31, 0 }
  0x99   : > { %767 = vmatpush.bf16.msrb.mxu1 %v656_v33  ;;  %780 = vmatpush.bf16.msrb.mxu2 %v659_v34 }
  0x9c   : > { %1829 = vrot.lane.b32.xlu0 %v4182_v20, %s4111_s18  ;;  %3935 = vmatmul.msk.bf16.vlgmr.msrb.gmra.mxu1 %vm237_vm1, %v4340_v3  ;;  %v322_v4 = vpop.f32.mrf.mxu2 }
  0x9d   : > { %v311_v5 = vpop.f32.mrf.mxu1 }
  0x9e   : > { %v608_v40 = vpop.permute.xlu0 %607  ;;  %v612_v41 = vpop.permute.xlu1 %611 }
  0x9f   : > { %v628_v42 = vsel %vm619_vm2, %v606_v26, %v608_v40  ;;  %v631_v43 = vsel %vm619_vm2, %v612_v41, %v614_v18  ;;  %v991_v56 = vpop.permute.xlu2 %990  ;;  %1825 = vrot.lane.b32.xlu1 %v4174_v16, %s4111_s18  ;;  %v335_v8 = vpop.f32.mrf.mxu3  ;;  %1831 = vrot.lane.b32.xlu2 %v4184_v21, %s4111_s18 }
  0xa0   : > { %v662_v44 = vsel %vm241_vm0, %v628_v42, 0  ;;  %v671_v45 = vsel %vm241_vm0, %v631_v43, 0  ;;  %v1017_v62 = vsel %vm1014_vm3, %v989_v46, %v991_v56  ;;  %v497_v22 = vrot.slane %v335_v8, 4  ;;  %v4455_v42 = vld [vmem:[%s5558_s1 + $0x4] sm:$0x3] }
  0xa1   : > { %793 = vmatpush.bf16.msrb.mxu3 %v662_v44  ;;  %832 = vmatpush.bf16.msra.mxu2 %v671_v45  ;;  %v1039_v10 = vsel %vm241_vm0, %v1017_v62, 0 }
  0xa2   : > { %v4439_v26 = vsel %vm241_vm0, %v322_v4, %v497_v22 }
  0xa4   : > { %1835 = vrot.lane.b32.xlu0 %v4223_v38, %s4111_s18  ;;  %3933 = vmatmul.msk.bf16.vlgmr.msra.gmra.mxu3 %vm237_vm1, %v4340_v3  ;;  %v324_v24 = vpop.f32.mrf.mxu2 }
  0xa5   : > { %v361_v25 = vpop.f32.mrf.mxu1 }
  0xa6   : > { %3934 = vmatmul.msk.bf16.vlgmr.msrb.gmra.mxu0 %vm237_vm1, %v4340_v3  ;;  %3936 = vmatmul.msk.bf16.vlgmr.msrb.gmra.mxu2 %vm237_vm1, %v4340_v3  ;;  %v610_v47 = vpop.permute.xlu0 %609  ;;  %v616_v48 = vpop.permute.xlu1 %615  ;;  %v498_v29 = vrot.slane %v361_v25, 4 }
  0xa7   : > { %v629_v49 = vsel %vm619_vm2, %v608_v40, %v610_v47  ;;  %v630_v6 = vsel %vm619_vm2, %v610_v47, %v612_v41  ;;  %v632_v50 = vsel %vm619_vm2, %v614_v18, %v616_v48  ;;  %1837 = vrot.lane.b32.xlu1 %v4199_v28, %s4111_s18  ;;  %v1003_v30 = vpop.permute.xlu2 %1002  ;;  %v337_v34 = vpop.f32.mrf.mxu3  ;;  %1833 = vrot.lane.b32.xlu2 %v4197_v27, %s4111_s18 }
  0xa8   : > { %v665_v51 = vsel %vm241_vm0, %v629_v49, 0  ;;  %v668_v52 = vsel %vm241_vm0, %v630_v6, 0  ;;  %v674_v53 = vsel %vm241_vm0, %v632_v50, 0 }
  0xa9   : > { %819 = vmatpush.bf16.msra.mxu1 %v668_v52  ;;  %806 = vmatpush.bf16.msra.mxu0 %v665_v51 }
  0xaa   : > { %845 = vmatpush.bf16.msra.mxu3 %v674_v53 }
  0xac   : > { %1839 = vrot.lane.b32.xlu0 %v4217_v36, %s4111_s18  ;;  %3939 = vmatmul.msk.bf16.vlgmr.msra.gmra.mxu1 %vm237_vm1, %v4340_v3  ;;  %v296_v36 = vpop.f32.mrf.mxu0  ;;  %v374_v41 = vpop.f32.mrf.mxu2 }
  0xad   : > { %v4418_v2 = vsel %vm241_vm0, %v296_v36, %v496_v55  ;;  %v363_v43 = vpop.f32.mrf.mxu1 }
  0xae   : > { %v987_v57 = vpop.permute.xlu0 %986  ;;  %v618_v58 = vpop.permute.xlu1 %617 }
  0xaf   : > { %v1015_v59 = vsel %vm1014_vm3, %v985_v35, %v987_v57  ;;  %v633_v60 = vsel %vm619_vm2, %v616_v48, %v618_v58  ;;  %v680_v61 = vsel %vm241_vm0, %v618_v58, 0  ;;  %v1016_v1 = vsel %vm1014_vm3, %v987_v57, %v989_v46  ;;  %v1009_v46 = vpop.permute.xlu2 %1008  ;;  %v387_v51 = vpop.f32.mrf.mxu3  ;;  %1841 = vrot.lane.b32.xlu2 %v4225_v39, %s4111_s18 }
  0xb0   : > { %v1033_v63 = vsel %vm241_vm0, %v1015_v59, 0  ;;  %v677_v0 = vsel %vm241_vm0, %v633_v60, 0  ;;  %871 = vmatpush.bf16.msrb.mxu1 %v680_v61  ;;  %v1036_v9 = vsel %vm241_vm0, %v1016_v1, 0 }
  0xb1   : > { %858 = vmatpush.bf16.msrb.mxu0 %v677_v0  ;;  %1084 = vmatpush.bf16.msrb.mxu2 %v1033_v63 }
  0xb4   : > { %2209 = vrot.lane.b32.xlu0 %v4158_v7, %s4113_s22  ;;  %3937 = vmatmul.msk.bf16.vlgmr.msrb.gmra.mxu3 %vm237_vm1, %v4340_v3  ;;  %v298_v18 = vpop.f32.mrf.mxu0  ;;  %v376_v54 = vpop.f32.mrf.mxu2 }
  0xb5   : > { %1097 = vmatpush.bf16.msrb.mxu3 %v1036_v9  ;;  %v413_v55 = vpop.f32.mrf.mxu1 }
  0xb6   : > { %3938 = vmatmul.msk.bf16.vlgmr.msra.gmra.mxu0 %vm237_vm1, %v4340_v3  ;;  %3940 = vmatmul.msk.bf16.vlgmr.msra.gmra.mxu2 %vm237_vm1, %v4340_v3  ;;  %v993_v11 = vpop.permute.xlu0 %992  ;;  %v995_v14 = vpop.permute.xlu1 %994  ;;  %v500_v59 = vrot.slane %v413_v55, 4 }
  0xb7   : > { %1110 = vmatpush.bf16.msra.mxu0 %v1039_v10  ;;  %v1018_v15 = vsel %vm1014_vm3, %v991_v56, %v993_v11  ;;  %v1019_v17 = vsel %vm1014_vm3, %v993_v11, %v995_v14  ;;  %v1776_v56 = vld [vmem:[%s4151_s17 + $0x38] sm:$0xf]  ;;  %v1013_v63 = vpop.permute.xlu2 %1012  ;;  %v389_v9 = vpop.f32.mrf.mxu3 }
  0xb8   : > { %v1042_v7 = vsel %vm241_vm0, %v1018_v15, 0  ;;  %v1045_v19 = vsel %vm241_vm0, %v1019_v17, 0  ;;  %v1799_v58 = vunpack.c.l.b16 %v1776_v56 }
  0xb9   : > { %1123 = vmatpush.bf16.msra.mxu1 %v1042_v7  ;;  %1136 = vmatpush.bf16.msra.mxu2 %v1045_v19 }
  0xba   : > { %v1814_v60 = vpack.c.b16 %v1799_v58, %v1799_v58 }
  0xbc   : > { %2217 = vrot.lane.b32.xlu0 %v4168_v12, %s4113_s22  ;;  %3943 = vmatmul.msk.bf16.vlgmr.msrb.gmra.mxu1 %vm237_vm1, %v4340_v3  ;;  %v348_v33 = vpop.f32.mrf.mxu0 }
  0xbd   : > { %v4450_v40 = vsel %vm241_vm0, %v348_v33, %v498_v29  ;;  %1843 = vrot.lane.b32.xlu1 %v1814_v60, %s4111_s18  ;;  %v415_v15 = vpop.f32.mrf.mxu1 }
  0xbe   : > { %v997_v31 = vpop.permute.xlu0 %996  ;;  %v1001_v32 = vpop.permute.xlu1 %1000 }
  0xbf   : > { %v1020_v35 = vsel %vm1014_vm3, %v995_v14, %v997_v31  ;;  %v1023_v37 = vsel %vm1014_vm3, %v1001_v32, %v1003_v30  ;;  %v426_v14 = vpop.f32.mrf.mxu2  ;;  %v1379_v19 = vpop.permute.xlu2 %1378 }
  0xc0   : > { %v1048_v44 = vsel %vm241_vm0, %v1020_v35, 0  ;;  %v1057_v45 = vsel %vm241_vm0, %v1023_v37, 0  ;;  %v439_v24 = vpop.f32.mrf.mxu3 }
  0xc1   : > { %v501_v29 = vrot.slane %v439_v24, 4 }
  0xc3   : > { %v4510_v34 = vsel %vm241_vm0, %v426_v14, %v501_v29 }
  0xc4   : > { %2223 = vrot.lane.b32.xlu0 %v4182_v20, %s4113_s22  ;;  %3941 = vmatmul.msk.bf16.vlgmr.msra.gmra.mxu3 %vm237_vm1, %v4340_v3  ;;  %v350_v50 = vpop.f32.mrf.mxu0 }
  0xc5   : > { %1149 = vmatpush.bf16.msra.mxu3 %v1048_v44  ;;  %2211 = vrot.lane.b32.xlu1 %v4170_v13, %s4113_s22  ;;  %v1075_v50 = vsel %vm241_vm0, %v1013_v63, 0 }
  0xc6   : > { %3942 = vmatmul.msk.bf16.vlgmr.msrb.gmra.mxu0 %vm237_vm1, %v4340_v3  ;;  %3945 = vmatmul.msk.bf16.vlgmr.msrb.gmra.mxu2 %vm237_vm1, %v4455_v42  ;;  %v999_v47 = vpop.permute.xlu0 %998  ;;  %v1005_v48 = vpop.permute.xlu1 %1004  ;;  %v499_v3 = vrot.slane %v387_v51, 4 }
  0xc7   : > { %1188 = vmatpush.bf16.msrb.mxu2 %v1057_v45  ;;  %v1021_v49 = vsel %vm1014_vm3, %v997_v31, %v999_v47  ;;  %v1022_v6 = vsel %vm1014_vm3, %v999_v47, %v1001_v32  ;;  %v1024_v1 = vsel %vm1014_vm3, %v1003_v30, %v1005_v48  ;;  %v428_v25 = vpop.f32.mrf.mxu2  ;;  %v465_v31 = vpop.f32.mrf.mxu1  ;;  %v4506_v32 = vld [vmem:[%s4151_s17 + $0x8] sm:$0xff]  ;;  %v4114_v47 = vmov 0.0  }
  0xc8   : > { %v1051_v52 = vsel %vm241_vm0, %v1021_v49, 0  ;;  %v1054_v53 = vsel %vm241_vm0, %v1022_v6, 0  ;;  %v4473_v57 = vsel %vm241_vm0, %v374_v41, %v499_v3  ;;  %v1060_v17 = vsel %vm241_vm0, %v1024_v1, 0  ;;  %180 = vst.msk [vmem:[#allocation2 + $0x38] sm:$0xf] %vm179_vm5, %v4114_v47 }
  0xc9   : > { %1175 = vmatpush.bf16.msrb.mxu1 %v1054_v53  ;;  %1162 = vmatpush.bf16.msrb.mxu0 %v1051_v52  ;;  %v2181_v33 = vunpack.c.l.b16 %v4506_v32  ;;  %v502_v35 = vrot.slane %v465_v31, 4 }
  0xcb   : > { %v4516_v41 = vpack.c.b16 %v2181_v33, %v2181_v33 }
  0xcc   : > { %2227 = vrot.lane.b32.xlu0 %v4197_v27, %s4113_s22  ;;  %3948 = vmatmul.msk.bf16.vlgmr.msra.gmra.mxu1 %vm237_vm1, %v4455_v42  ;;  %v400_v0 = vpop.f32.mrf.mxu0 }
  0xcd   : > { %v4486_v11 = vsel %vm241_vm0, %v400_v0, %v500_v59  ;;  %2213 = vrot.lane.b32.xlu1 %v4516_v41, %s4113_s22  ;;  %v1391_v59 = vpop.permute.xlu2 %1390  ;;  %v4558_v0 = vld [vmem:[%s4151_s17 + $0x30] sm:$0xff] }
  0xce   : > { %v1011_v61 = vpop.permute.xlu0 %1010  ;;  %v1007_v62 = vpop.permute.xlu1 %1006 }
  0xcf   : > { %v1026_v36 = vsel %vm1014_vm3, %v1007_v62, %v1009_v46  ;;  %v1025_v4 = vsel %vm1014_vm3, %v1005_v48, %v1007_v62  ;;  %v1027_v10 = vsel %vm1014_vm3, %v1009_v46, %v1011_v61  ;;  %v1028_v44 = vsel %vm1014_vm3, %v1011_v61, %v1013_v63  ;;  %v478_v48 = vpop.f32.mrf.mxu2  ;;  %v467_v49 = vpop.f32.mrf.mxu1 }
  0xd0   : > { %v1066_v5 = vsel %vm241_vm0, %v1026_v36, 0  ;;  %v1063_v18 = vsel %vm241_vm0, %v1025_v4, 0  ;;  %v1069_v8 = vsel %vm241_vm0, %v1027_v10, 0  ;;  %v1072_v6 = vsel %vm241_vm0, %v1028_v44, 0 }
  0xd1   : > { %1227 = vmatpush.bf16.msra.mxu1 %v1066_v5  ;;  %v3013_v36 = vunpack.c.h.b16 %v4506_v32  ;;  %v2192_v5 = vunpack.c.h.b16 %v4558_v0 }
  0xd3   : > { %v4572_v9 = vpack.c.b16 %v3013_v36, %v3013_v36  ;;  %v4574_v15 = vpack.c.b16 %v2192_v5, %v2192_v5 }
  0xd4   : > { %2229 = vrot.lane.b32.xlu0 %v4223_v38, %s4113_s22  ;;  %3946 = vmatmul.msk.bf16.vlgmr.msrb.gmra.mxu3 %vm237_vm1, %v4455_v42  ;;  %v402_v22 = vpop.f32.mrf.mxu0 }
  0xd5   : > { %1201 = vmatpush.bf16.msrb.mxu3 %v1060_v17  ;;  %2225 = vrot.lane.b32.xlu1 %v4184_v21, %s4113_s22  ;;  %v1397_v14 = vpop.permute.xlu2 %1396 }
  0xd6   : > { %3947 = vmatmul.msk.bf16.vlgmr.msra.gmra.mxu0 %vm237_vm1, %v4455_v42  ;;  %3949 = vmatmul.msk.bf16.vlgmr.msra.gmra.mxu2 %vm237_vm1, %v4455_v42  ;;  %v1381_v7 = vpop.permute.xlu0 %1380  ;;  %v1383_v37 = vpop.permute.xlu1 %1382 }
  0xd7   : > { %1214 = vmatpush.bf16.msra.mxu0 %v1063_v18  ;;  %1240 = vmatpush.bf16.msra.mxu2 %v1069_v8  ;;  %v1409_v38 = vsel %vm1408_vm4, %v1379_v19, %v1381_v7  ;;  %v1410_v46 = vsel %vm1408_vm4, %v1381_v7, %v1383_v37  ;;  %v480_v56 = vpop.f32.mrf.mxu2  ;;  %v4584_v18 = vld [vmem:[%s5558_s1] sm:$0x3]  ;;  %v2170_v19 = vld [vmem:[%s4151_s17 + $0x38] sm:$0xf] }
  0xd8   : > { %v1427_v30 = vsel %vm241_vm0, %v1409_v38, 0  ;;  %v1430_v51 = vsel %vm241_vm0, %v1410_v46, 0  ;;  %2215 = vrot.lane.b32.xlu2 %v4572_v9, %s4113_s22  ;;  %v4587_v8 = vld [vmem:[%s4151_s17] sm:$0xff]  ;;  %v2193_v22 = vunpack.c.l.b16 %v2170_v19 }
  0xd9   : > { %v3011_v38 = vunpack.c.h.b16 %v4587_v8 }
  0xda   : > { %v2208_v25 = vpack.c.b16 %v2193_v22, %v2193_v22 }
  0xdc   : > { %2648 = vrot.lane.b32.xlu0 %v4170_v13, %s4112_s21  ;;  %3952 = vmatmul.msk.bf16.vlgmr.msrb.gmra.mxu1 %vm237_vm1, %v4455_v42  ;;  %v452_v27 = vpop.f32.mrf.mxu0  ;;  %v441_v13 = vpop.f32.mrf.mxu3 }
  0xdd   : > { %1478 = vmatpush.bf16.msrb.mxu1 %v1427_v30  ;;  %v4522_v45 = vsel %vm241_vm0, %v452_v27, %v502_v35  ;;  %2231 = vrot.lane.b32.xlu1 %v4199_v28, %s4113_s22  ;;  %v1401_v24 = vpop.permute.xlu2 %1400  ;;  %v4598_v30 = vpack.c.b16 %v3011_v38, %v3011_v38 }
  0xde   : > { %v1385_v43 = vpop.permute.xlu0 %1384  ;;  %v1389_v52 = vpop.permute.xlu1 %1388 }
  0xdf   : > { %v1411_v62 = vsel %vm1408_vm4, %v1383_v37, %v1385_v43  ;;  %v1414_v63 = vsel %vm1408_vm4, %v1389_v52, %v1391_v59 }
  0xe0   : > { %v1433_v4 = vsel %vm241_vm0, %v1411_v62, 0  ;;  %v1442_v28 = vsel %vm241_vm0, %v1414_v63, 0  ;;  %2219 = vrot.lane.b32.xlu2 %v4174_v16, %s4113_s22 }
  0xe4   : > { %2654 = vrot.lane.b32.xlu0 %v4168_v12, %s4112_s21  ;;  %3950 = vmatmul.msk.bf16.vlgmr.msra.gmra.mxu3 %vm237_vm1, %v4455_v42  ;;  %v454_v54 = vpop.f32.mrf.mxu0  ;;  %v188_v12 = vld [vmem:[#allocation2 + $0x38] sm:$0xf] }
  0xe5   : > { %1253 = vmatpush.bf16.msra.mxu3 %v1072_v6  ;;  %v524_v55 = vadd.f32 %v478_v48, %v188_v12  ;;  %2235 = vrot.lane.b32.xlu1 %v4574_v15, %s4113_s22  ;;  %v4628_v48 = vld [vmem:[%s4151_s17 + $0x20] sm:$0xff] }
  0xe6   : > { %3951 = vmatmul.msk.bf16.vlgmr.msrb.gmra.mxu0 %vm237_vm1, %v4455_v42  ;;  %3953 = vmatmul.msk.bf16.vlgmr.msrb.gmra.mxu2 %vm237_vm1, %v4455_v42  ;;  %v1387_v53 = vpop.permute.xlu0 %1386  ;;  %v1393_v21 = vpop.permute.xlu1 %1392  ;;  %v2624_v49 = vunpack.c.l.b16 %v4628_v48 }
  0xe7   : > { %1266 = vmatpush.bf16.msrb.mxu0 %v1075_v50  ;;  %1491 = vmatpush.bf16.msrb.mxu2 %v1430_v51  ;;  %v1413_v3 = vsel %vm1408_vm4, %v1387_v53, %v1389_v52  ;;  %532 = vst.msk [vmem:[#allocation2 + $0x38] sm:$0xf] %vm179_vm5, %v524_v55  ;;  %v1412_v61 = vsel %vm1408_vm4, %v1385_v43, %v1387_v53  ;;  %v1403_v43 = vpop.permute.xlu2 %1402  ;;  %v2999_v52 = vld [vmem:[%s4151_s17 + $0x28] sm:$0xff] }
  0xe8   : > { %v1439_v58 = vsel %vm241_vm0, %v1413_v3, 0  ;;  %v1436_v1 = vsel %vm241_vm0, %v1412_v61, 0  ;;  %v1415_v31 = vsel %vm1408_vm4, %v1391_v59, %v1393_v21  ;;  %2221 = vrot.lane.b32.xlu2 %v4187_v23, %s4113_s22  ;;  %v1420_v54 = vsel %vm1408_vm4, %v1401_v24, %v1403_v43 }
  0xe9   : > { %v1445_v33 = vsel %vm241_vm0, %v1415_v31, 0  ;;  %v2627_v22 = vunpack.c.h.b16 %v2999_v52 }
  0xec   : > { %2658 = vrot.lane.b32.xlu0 %v4187_v23, %s4112_s21  ;;  %3956 = vmatmul.msk.bf16.vlgmr.msra.gmra.mxu1 %vm237_vm1, %v4455_v42 }
  0xed   : > { %1530 = vmatpush.bf16.msra.mxu1 %v1439_v58  ;;  %2237 = vrot.lane.b32.xlu1 %v2208_v25, %s4113_s22  ;;  %v3020_v58 = vunpack.c.l.b16 %v2999_v52 }
  0xee   : > { %v4549_v60 = vpop.permute.xlu0 %1398  ;;  %v1395_v10 = vpop.permute.xlu1 %1394 }
  0xef   : > { %v1417_v17 = vsel %vm1408_vm4, %v1395_v10, %v1397_v14  ;;  %v1416_v32 = vsel %vm1408_vm4, %v1393_v21, %v1395_v10  ;;  %v1419_v3 = vsel %vm1408_vm4, %v4549_v60, %v1401_v24  ;;  %v1460_v21 = vsel %vm241_vm0, %v1420_v54, 0  ;;  %v1818_v62 = vpop.permute.xlu2 %1817 }
  0xf0   : > { %v1451_v7 = vsel %vm241_vm0, %v1417_v17, 0  ;;  %v1448_v35 = vsel %vm241_vm0, %v1416_v32, 0  ;;  %v1457_v59 = vsel %vm241_vm0, %v1419_v3, 0  ;;  %v4666_v63 = vpack.c.b16 %v3020_v58, %v3020_v58 }
  0xf1   : > { %v4685_v24 = vpack.c.b16 %v2627_v22, %v2627_v22 }
  0xf4   : > { %2660 = vrot.lane.b32.xlu0 %v4182_v20, %s4112_s21  ;;  %3954 = vmatmul.msk.bf16.vlgmr.msrb.gmra.mxu3 %vm237_vm1, %v4455_v42 }
  0xf5   : > { %1504 = vmatpush.bf16.msrb.mxu3 %v1433_v4  ;;  %2656 = vrot.lane.b32.xlu1 %v4174_v16, %s4112_s21  ;;  %v4636_v16 = vpack.c.b16 %v2624_v49, %v2624_v49 }
  0xf6   : > { %3955 = vmatmul.msk.bf16.vlgmr.msra.gmra.mxu0 %vm237_vm1, %v4455_v42  ;;  %3957 = vmatmul.msk.bf16.vlgmr.msra.gmra.mxu2 %vm237_vm1, %v4455_v42  ;;  %v1405_v20 = vpop.permute.xlu0 %1404  ;;  %v1407_v50 = vpop.permute.xlu1 %1406 }
  0xf7   : > { %1517 = vmatpush.bf16.msra.mxu0 %v1436_v1  ;;  %1543 = vmatpush.bf16.msra.mxu2 %v1442_v28  ;;  %v1421_v44 = vsel %vm1408_vm4, %v1403_v43, %v1405_v20  ;;  %v1422_v55 = vsel %vm1408_vm4, %v1405_v20, %v1407_v50  ;;  %v1469_v43 = vsel %vm241_vm0, %v1407_v50, 0 }
  0xf8   : > { %v1463_v46 = vsel %vm241_vm0, %v1421_v44, 0 }
  0xfc   : > { %2672 = vrot.lane.b32.xlu0 %v4225_v39, %s4112_s21  ;;  %3960 = vmatmul.msk.bf16.vlgmr.msrb.gmra.mxu1 %vm237_vm1, %v4584_v18  ;;  %v1418_v39 = vsel %vm1408_vm4, %v1397_v14, %v4549_v60  ;;  %v1466_v60 = vsel %vm241_vm0, %v1422_v55, 0  ;;  %v4100_v55 = vld [vmem:[%s4151_s17] sm:$0xff] }
  0xfd   : > { %1582 = vmatpush.bf16.msrb.mxu1 %v1451_v7  ;;  %v1454_v37 = vsel %vm241_vm0, %v1418_v39, 0  ;;  %2662 = vrot.lane.b32.xlu1 %v4636_v16, %s4112_s21 }
  0xfe   : > { %v4596_v29 = vpop.permute.xlu0 %1819 }
  0xff   : > { %v4662_v61 = vpop.permute.xlu1 %1821  ;;  %v1846_v4 = vsel %vm619_vm2, %v1818_v62, %v4596_v29 }
 0x100   : > { %v1866_v7 = vsel %vm241_vm0, %v1846_v4, 0  ;;  %v1847_v39 = vsel %vm619_vm2, %v4596_v29, %v4662_v61 }
 0x101   : > { %v1869_v44 = vsel %vm241_vm0, %v1847_v39, 0 }
 0x104   : > { %3042 = vrot.lane.b32.xlu0 %v4598_v30, %s4113_s22  ;;  %3958 = vmatmul.msk.bf16.vlgmr.msra.gmra.mxu3 %vm237_vm1, %v4455_v42 }
 0x105   : > { %1556 = vmatpush.bf16.msra.mxu3 %v1445_v33  ;;  %2666 = vrot.lane.b32.xlu1 %v4666_v63, %s4112_s21 }
 0x106   : > { %3959 = vmatmul.msk.bf16.vlgmr.msrb.gmra.mxu0 %vm237_vm1, %v4455_v42  ;;  %3961 = vmatmul.msk.bf16.vlgmr.msrb.gmra.mxu2 %vm237_vm1, %v4584_v18  ;;  %v4616_v27 = vpop.permute.xlu0 %1815  ;;  %v4624_v42 = vld [vmem:[%s4151_s17 + $0x10] sm:$0xff] }
 0x107   : > { %1569 = vmatpush.bf16.msrb.mxu0 %v1448_v35  ;;  %1595 = vmatpush.bf16.msrb.mxu2 %v1454_v37  ;;  %v3014_v6 = vunpack.c.l.b16 %v4624_v42  ;;  %v1845_v33 = vsel %vm619_vm2, %v4616_v27, %v1818_v62  ;;  %v2191_v35 = vunpack.c.l.b16 %v4558_v0  ;;  %v1828_v27 = vpop.permute.xlu2 %1827 }
 0x108   : > { %v1863_v29 = vsel %vm241_vm0, %v1845_v33, 0 }
 0x109   : > { %v717_v13 = vpop.f32.mrf.mxu1  ;;  %v4643_v53 = vpack.c.b16 %v3014_v6, %v3014_v6 }
 0x10c   : > { %3046 = vrot.lane.b32.xlu0 %v4572_v9, %s4113_s22  ;;  %3964 = vmatmul.msk.bf16.vlgmr.msra.gmra.mxu1 %vm237_vm1, %v4584_v18 }
 0x10d   : > { %1634 = vmatpush.bf16.msra.mxu1 %v1463_v46  ;;  %2668 = vrot.lane.b32.xlu1 %v4685_v24, %s4112_s21 }
 0x10e   : > { %v4638_v51 = vpop.permute.xlu0 %1829 }
 0x111   : > { %v719_v12 = vpop.f32.mrf.mxu1 }
 0x113   : > { %v704_v56 = vpop.f32.mrf.mxu0 }
 0x114   : > { %v891_v23 = vrot.slane %v704_v56, 4  ;;  %3048 = vrot.lane.b32.xlu0 %v4643_v53, %s4113_s22  ;;  %3962 = vmatmul.msk.bf16.vlgmr.msrb.gmra.mxu3 %vm237_vm1, %v4584_v18  ;;  %v2616_v56 = vunpack.c.l.b16 %v4100_v55 }
 0x115   : > { %1608 = vmatpush.bf16.msrb.mxu3 %v1457_v59  ;;  %3044 = vrot.lane.b32.xlu1 %v4516_v41, %s4113_s22 }
 0x116   : > { %3965 = vmatmul.msk.bf16.vlgmr.msra.gmra.mxu2 %vm237_vm1, %v4584_v18  ;;  %3963 = vmatmul.msk.bf16.vlgmr.msra.gmra.mxu0 %vm237_vm1, %v4584_v18  ;;  %v4664_v36 = vpop.permute.xlu0 %1835 }
 0x117   : > { %1621 = vmatpush.bf16.msra.mxu0 %v1460_v21  ;;  %v691_v1 = vpop.f32.mrf.mxu3  ;;  %1647 = vmatpush.bf16.msra.mxu2 %v1466_v60  ;;  %v3015_v60 = vunpack.c.h.b16 %v4624_v42 }
 0x118   : > { %v898_v5 = vsel %vm241_vm0, %v691_v1, %v891_v23  ;;  %v2631_v23 = vpack.c.b16 %v2616_v56, %v2616_v56  ;;  %v1832_v1 = vpop.permute.xlu2 %1831 }
 0x119   : > { %v730_v28 = vpop.f32.mrf.mxu2  ;;  %v4674_v10 = vadd.f32 %v898_v5, %v4418_v2  ;;  %v769_v20 = vpop.f32.mrf.mxu1  ;;  %v4733_v4 = vpack.c.b16 %v3015_v60, %v3015_v60 }
 0x11a   : > { %v892_v14 = vrot.slane %v730_v28, 4  ;;  %v1824_v2 = vpop.permute.xlu1 %1823 }
 0x11b   : > { %v706_v17 = vpop.f32.mrf.mxu0 }
 0x11c   : > { %v899_v19 = vsel %vm241_vm0, %v717_v13, %v892_v14  ;;  %3060 = vrot.lane.b32.xlu0 %v4666_v63, %s4113_s22  ;;  %3968 = vmatmul.msk.bf16.vlgmr.msrb.gmra.mxu1 %vm237_vm1, %v4584_v18  ;;  %v4699_v13 = vpack.c.b16 %v2191_v35, %v2191_v35  ;;  %v4738_v14 = vld [vmem:[%s4151_s17 + $0x18] sm:$0xff] }
 0x11d   : > { %v4679_v38 = vadd.f32 %v899_v19, %v4439_v26  ;;  %1927 = vmatpush.bf16.msrb.mxu1 %v1866_v7  ;;  %3050 = vrot.lane.b32.xlu1 %v4733_v4, %s4113_s22  ;;  %v1851_v7 = vsel %vm619_vm2, %v1828_v27, %v4638_v51  ;;  %v3454_v22 = vunpack.c.h.b16 %v4738_v14 }
 0x11e   : > { %v4687_v25 = vpop.permute.xlu0 %1839  ;;  %2233 = vrot.lane.b32.xlu2 %v4699_v13, %s4113_s22 }
 0x11f   : > { %v693_v31 = vpop.f32.mrf.mxu3  ;;  %v3469_v33 = vpack.c.b16 %v3454_v22, %v3454_v22 }
 0x121   : > { %v732_v32 = vpop.f32.mrf.mxu2  ;;  %v771_v26 = vpop.f32.mrf.mxu1 }
 0x122   : > { %v1826_v0 = vpop.permute.xlu1 %1825 }
 0x123   : > { %v756_v37 = vpop.f32.mrf.mxu0  ;;  %v1849_v17 = vsel %vm619_vm2, %v1824_v2, %v1826_v0 }
 0x124   : > { %v893_v46 = vrot.slane %v756_v37, 4  ;;  %3066 = vrot.lane.b32.xlu0 %v4574_v15, %s4113_s22  ;;  %3966 = vmatmul.msk.bf16.vlgmr.msra.gmra.mxu3 %vm237_vm1, %v4584_v18  ;;  %v1850_v15 = vsel %vm619_vm2, %v1826_v0, %v1828_v27  ;;  %v1875_v32 = vsel %vm241_vm0, %v1849_v17, 0  ;;  %v4115_v37 = vmov 0   ;;  %v540_v27 = vld [vmem:[#allocation2 + $0x38] sm:$0xf] }
 0x125   : > { %1660 = vmatpush.bf16.msra.mxu3 %v1469_v43  ;;  %v1878_v59 = vsel %vm241_vm0, %v1850_v15, 0  ;;  %4097 = vset.pattern.permute.xlu0 %v4115_v37  ;;  %v4776_v15 = vld [vmem:[%s5558_s1 + $0xe] sm:$0x3] }
 0x126   : > { %3969 = vmatmul.msk.bf16.vlgmr.msrb.gmra.mxu2 %vm237_vm1, %v4584_v18  ;;  %3967 = vmatmul.msk.bf16.vlgmr.msrb.gmra.mxu0 %vm237_vm1, %v4584_v18  ;;  %v4710_v49 = vpop.permute.xlu0 %2209 }
 0x127   : > { %1940 = vmatpush.bf16.msrb.mxu2 %v1869_v44  ;;  %v743_v6 = vpop.f32.mrf.mxu3  ;;  %1914 = vmatpush.bf16.msrb.mxu0 %v1863_v29 }
 0x128   : > { %v900_v50 = vsel %vm241_vm0, %v743_v6, %v893_v46  ;;  %2646 = vrot.lane.b32.xlu2 %v2631_v23, %s4112_s21  ;;  %3054 = vrot.lane.b32.xlu1 %v3469_v33, %s4113_s22 }
 0x129   : > { %v782_v52 = vpop.f32.mrf.mxu2  ;;  %v4719_v3 = vadd.f32 %v900_v50, %v4450_v40  ;;  %v821_v12 = vpop.f32.mrf.mxu1  ;;  %v3447_v40 = vunpack.c.l.b16 %v4587_v8  ;;  %4098 = vset.pattern.permute.xlu1 %v4115_v37  ;;  %4099 = vset.pattern.permute.xlu2 %v4115_v37 }
 0x12a   : > { %v894_v54 = vrot.slane %v782_v52, 4  ;;  %v1838_v50 = vpop.permute.xlu1 %1837 }
 0x12b   : > { %v758_v58 = vpop.f32.mrf.mxu0  ;;  %v4741_v42 = vpack.c.b16 %v3447_v40, %v3447_v40  ;;  %v1855_v23 = vsel %vm619_vm2, %v4664_v36, %v1838_v50 }
 0x12c   : > { %v901_v21 = vsel %vm241_vm0, %v769_v20, %v894_v54  ;;  %3481 = vrot.lane.b32.xlu0 %v4516_v41, %s4113_s22  ;;  %3972 = vmatmul.msk.bf16.vlgmr.msra.gmra.mxu1 %vm237_vm1, %v4584_v18  ;;  %v1848_v20 = vsel %vm619_vm2, %v4662_v61, %v1824_v2  ;;  %v1881_v61 = vsel %vm241_vm0, %v1851_v7, 0  ;;  %v1834_v2 = vpop.permute.xlu2 %1833 }
 0x12d   : > { %v4726_v62 = vadd.f32 %v901_v21, %v4473_v57  ;;  %1979 = vmatpush.bf16.msra.mxu1 %v1878_v59  ;;  %v1872_v31 = vsel %vm241_vm0, %v1848_v20, 0  ;;  %v1854_v43 = vsel %vm619_vm2, %v1834_v2, %v4664_v36  ;;  %v1852_v21 = vsel %vm619_vm2, %v4638_v51, %v1832_v1 }
 0x12e   : > { %v4735_v5 = vpop.permute.xlu0 %2217 }
 0x12f   : > { %v745_v28 = vpop.f32.mrf.mxu3 }
 0x130   : > { %2650 = vrot.lane.b32.xlu2 %v4516_v41, %s4112_s21  ;;  %v1890_v41 = vsel %vm241_vm0, %v1854_v43, 0  ;;  %3056 = vrot.lane.b32.xlu1 %v4636_v16, %s4113_s22  ;;  %v3001_v28 = vld [vmem:[%s4151_s17 + $0x38] sm:$0xf]  ;;  %v1893_v16 = vsel %vm241_vm0, %v1855_v23, 0 }
 0x131   : > { %v784_v57 = vpop.f32.mrf.mxu2  ;;  %v823_v8 = vpop.f32.mrf.mxu1  ;;  %v3024_v51 = vunpack.c.l.b16 %v3001_v28 }
 0x132   : > { %v1844_v60 = vpop.permute.xlu1 %1843  ;;  %v1884_v57 = vsel %vm241_vm0, %v1852_v21, 0 }
 0x133   : > { %v808_v19 = vpop.f32.mrf.mxu0  ;;  %v3039_v36 = vpack.c.b16 %v3024_v51, %v3024_v51 }
 0x134   : > { %v895_v39 = vrot.slane %v808_v19, 4  ;;  %3477 = vrot.lane.b32.xlu0 %v4741_v42, %s4113_s22  ;;  %3970 = vmatmul.msk.bf16.vlgmr.msrb.gmra.mxu3 %vm237_vm1, %v4584_v18  ;;  %v1842_v7 = vpop.permute.xlu2 %1841 }
 0x135   : > { %1953 = vmatpush.bf16.msrb.mxu3 %v1872_v31  ;;  %v1857_v43 = vsel %vm619_vm2, %v4687_v25, %v1842_v7 }
 0x136   : > { %3973 = vmatmul.msk.bf16.vlgmr.msra.gmra.mxu2 %vm237_vm1, %v4584_v18  ;;  %3971 = vmatmul.msk.bf16.vlgmr.msra.gmra.mxu0 %vm237_vm1, %v4584_v18  ;;  %v4762_v26 = vpop.permute.xlu0 %2223 }
 0x137   : > { %1966 = vmatpush.bf16.msra.mxu0 %v1875_v32  ;;  %v795_v35 = vpop.f32.mrf.mxu3  ;;  %1992 = vmatpush.bf16.msra.mxu2 %v1881_v61 }
 0x138   : > { %v902_v44 = vsel %vm241_vm0, %v795_v35, %v895_v39  ;;  %2652 = vrot.lane.b32.xlu2 %v4572_v9, %s4112_s21  ;;  %3068 = vrot.lane.b32.xlu1 %v3039_v36, %s4113_s22 }
 0x139   : > { %v834_v46 = vpop.f32.mrf.mxu2  ;;  %v4771_v29 = vadd.f32 %v902_v44, %v4486_v11  ;;  %v873_v6 = vpop.f32.mrf.mxu1 }
 0x13a   : > { %v896_v0 = vrot.slane %v834_v46, 4  ;;  %v919_v54 = vadd.f32 %v873_v6, %v540_v27  ;;  %v2212_v32 = vpop.permute.xlu1 %2211  ;;  %v1725_v46 = vld [vmem:[%s5559_s2] sm:$0xf] }
 0x13b   : > { %v810_v52 = vpop.f32.mrf.mxu0 }
 0x13c   : > { %v903_v55 = vsel %vm241_vm0, %v821_v12, %v896_v0  ;;  %927 = vst.msk [vmem:[#allocation2 + $0x38] sm:$0xf] %vm179_vm5, %v919_v54  ;;  %3491 = vrot.lane.b32.xlu0 %v3469_v33, %s4113_s22  ;;  %3977 = vmatmul.msk.bf16.vlgmr.msrb.gmra.mxu1 %vm237_vm1, %v4776_v15  ;;  %v1853_v12 = vsel %vm619_vm2, %v1832_v1, %v1834_v2  ;;  %v2625_v0 = vunpack.c.h.b16 %v4628_v48  ;;  %v2216_v48 = vpop.permute.xlu2 %2215 }
 0x13d   : > { %v4781_v11 = vadd.f32 %v903_v55, %v4510_v34  ;;  %2031 = vmatpush.bf16.msrb.mxu1 %v1890_v41  ;;  %v1887_v20 = vsel %vm241_vm0, %v1853_v12, 0 }
 0x13e   : > { %v4787_v56 = vpop.permute.xlu0 %2227  ;;  %v4838_v41 = vpack.c.b16 %v2625_v0, %v2625_v0 }
 0x13f   : > { %v797_v58 = vpop.f32.mrf.mxu3 }
 0x140   : > { %3483 = vrot.lane.b32.xlu1 %v4572_v9, %s4113_s22  ;;  %v1905_v9 = vsel %vm241_vm0, %v1844_v60, 0  ;;  %2664 = vrot.lane.b32.xlu2 %v4838_v41, %s4112_s21 }
 0x141   : > { %v836_v59 = vpop.f32.mrf.mxu2  ;;  %v875_v34 = vpop.f32.mrf.mxu1 }
 0x142   : > { %v2214_v27 = vpop.permute.xlu1 %2213  ;;  %v4101_v34 = vld [vmem:[%s4151_s17 + $0x30] sm:$0xff] }
 0x143   : > { %v860_v40 = vpop.f32.mrf.mxu0  ;;  %v2241_v58 = vsel %vm1408_vm4, %v2214_v27, %v2216_v48  ;;  %v2628_v23 = vunpack.c.l.b16 %v4101_v34 }
 0x144   : > { %v897_v17 = vrot.slane %v860_v40, 4  ;;  %3497 = vrot.lane.b32.xlu0 %v4666_v63, %s4113_s22  ;;  %3974 = vmatmul.msk.bf16.vlgmr.msra.gmra.mxu3 %vm237_vm1, %v4584_v18  ;;  %v1858_v18 = vsel %vm619_vm2, %v1842_v7, %v1844_v60  ;;  %v2240_v7 = vsel %vm1408_vm4, %v2212_v32, %v2214_v27 }
 0x145   : > { %2005 = vmatpush.bf16.msra.mxu3 %v1884_v57  ;;  %v1902_v61 = vsel %vm241_vm0, %v1858_v18, 0  ;;  %v2263_v57 = vsel %vm241_vm0, %v2241_v58, 0  ;;  %v2643_v51 = vpack.c.b16 %v2628_v23, %v2628_v23  ;;  %v2220_v18 = vpop.permute.xlu2 %2219 }
 0x146   : > { %3978 = vmatmul.msk.bf16.vlgmr.msrb.gmra.mxu2 %vm237_vm1, %v4776_v15  ;;  %3976 = vmatmul.msk.bf16.vlgmr.msrb.gmra.mxu0 %vm237_vm1, %v4776_v15  ;;  %v4810_v1 = vpop.permute.xlu0 %2229 }
 0x147   : > { %2018 = vmatpush.bf16.msrb.mxu0 %v1887_v20  ;;  %v847_v8 = vpop.f32.mrf.mxu3  ;;  %2044 = vmatpush.bf16.msrb.mxu2 %v1893_v16 }
 0x148   : > { %v904_v63 = vsel %vm241_vm0, %v847_v8, %v897_v17  ;;  %3485 = vrot.lane.b32.xlu1 %v4643_v53, %s4113_s22  ;;  %2670 = vrot.lane.b32.xlu2 %v2643_v51, %s4112_s21  ;;  %v2239_v8 = vsel %vm1408_vm4, %v4710_v49, %v2212_v32  ;;  %v2260_v49 = vsel %vm241_vm0, %v2240_v7, 0 }
 0x149   : > { %v1086_v19 = vpop.f32.mrf.mxu2  ;;  %v4816_v22 = vadd.f32 %v904_v63, %v4522_v45  ;;  %v1125_v31 = vpop.f32.mrf.mxu1  ;;  %v1856_v45 = vsel %vm619_vm2, %v1838_v50, %v4687_v25  ;;  %v1899_v50 = vsel %vm241_vm0, %v1857_v43, 0 }
 0x14a   : > { %v1287_v33 = vrot.slane %v1125_v31, 4  ;;  %v1896_v54 = vsel %vm241_vm0, %v1856_v45, 0  ;;  %v4858_v60 = vpop.permute.xlu1 %2225 }
 0x14b   : > { %v862_v39 = vpop.f32.mrf.mxu0 }
 0x14c   : > { %3501 = vrot.lane.b32.xlu0 %v4699_v13, %s4113_s22  ;;  %3981 = vmatmul.msk.bf16.vlgmr.msra.gmra.mxu1 %vm237_vm1, %v4776_v15 }
 0x14d   : > { %2083 = vmatpush.bf16.msra.mxu1 %v1902_v61  ;;  %v2222_v27 = vpop.permute.xlu2 %2221 }
 0x14e   : > { %v4823_v2 = vpop.permute.xlu0 %2648 }
 0x14f   : > { %v849_v35 = vpop.f32.mrf.mxu3 }
 0x150   : > { %3487 = vrot.lane.b32.xlu1 %v4733_v4, %s4113_s22  ;;  %v2257_v35 = vsel %vm241_vm0, %v2239_v8, 0 }
 0x151   : > { %v1088_v37 = vpop.f32.mrf.mxu2  ;;  %v1127_v44 = vpop.f32.mrf.mxu1 }
 0x152   : > { %v4878_v61 = vpop.permute.xlu1 %2231 }
 0x153   : > { %v1112_v6 = vpop.f32.mrf.mxu0 }
 0x154   : > { %v1294_v52 = vsel %vm241_vm0, %v1112_v6, %v1287_v33  ;;  %1728 = vperm.xlu0 %4097, %v1725_v46   ;;  %3979 = vmatmul.msk.bf16.vlgmr.msrb.gmra.mxu3 %vm237_vm1, %v4776_v15 }
 0x155   : > { %v4841_v25 = vadd.f32 %v1294_v52, %v4679_v38  ;;  %2057 = vmatpush.bf16.msrb.mxu3 %v1896_v54  ;;  %v2245_v54 = vsel %vm1408_vm4, %v2222_v27, %v4762_v26 }
 0x156   : > { %3982 = vmatmul.msk.bf16.vlgmr.msra.gmra.mxu2 %vm237_vm1, %v4776_v15  ;;  %3980 = vmatmul.msk.bf16.vlgmr.msra.gmra.mxu0 %vm237_vm1, %v4776_v15  ;;  %v4850_v55 = vpop.permute.xlu0 %2654 }
 0x157   : > { %2070 = vmatpush.bf16.msra.mxu0 %v1899_v50  ;;  %v1099_v38 = vpop.f32.mrf.mxu3  ;;  %2096 = vmatpush.bf16.msra.mxu2 %v1905_v9  ;;  %v3438_v9 = vld [vmem:[%s4151_s17 + $0x38] sm:$0xf] }
 0x158   : > { %v1286_v59 = vrot.slane %v1099_v38, 4  ;;  %3499 = vrot.lane.b32.xlu1 %v4685_v24, %s4113_s22  ;;  %v2275_v38 = vsel %vm241_vm0, %v2245_v54, 0  ;;  %v3461_v58 = vunpack.c.l.b16 %v3438_v9 }
 0x159   : > { %v1138_v21 = vpop.f32.mrf.mxu2  ;;  %v1177_v12 = vpop.f32.mrf.mxu1 }
 0x15a   : > { %v1293_v40 = vsel %vm241_vm0, %v1086_v19, %v1286_v59  ;;  %v1289_v17 = vrot.slane %v1177_v12, 4  ;;  %v2242_v19 = vsel %vm1408_vm4, %v2216_v48, %v4735_v5  ;;  %v4906_v50 = vpop.permute.xlu1 %2235  ;;  %v3476_v59 = vpack.c.b16 %v3461_v58, %v3461_v58 }
 0x15b   : > { %v1114_v28 = vpop.f32.mrf.mxu0  ;;  %v4863_v20 = vadd.f32 %v1293_v40, %v4674_v10  ;;  %v2607_v10 = vld [vmem:[%s4151_s17 + $0x38] sm:$0xf]  ;;  %v2266_v4 = vsel %vm241_vm0, %v2242_v19, 0  ;;  %v2244_v40 = vsel %vm1408_vm4, %v2220_v18, %v2222_v27 }
 0x15c   : > { %3985 = vmatmul.msk.bf16.vlgmr.msrb.gmra.mxu1 %vm237_vm1, %v4776_v15  ;;  %v2630_v31 = vunpack.c.l.b16 %v2607_v10  ;;  %v2249_v10 = vsel %vm1408_vm4, %v4810_v1, %v4878_v61 }
 0x15d   : > { %2334 = vmatpush.bf16.msrb.mxu1 %v2263_v57  ;;  %v2246_v57 = vsel %vm1408_vm4, %v4762_v26, %v4858_v60 }
 0x15e   : > { %v4867_v53 = vpop.permute.xlu0 %2658  ;;  %v2645_v32 = vpack.c.b16 %v2630_v31, %v2630_v31  ;;  %v2278_v8 = vsel %vm241_vm0, %v2246_v57, 0 }
 0x15f   : > { %v1101_v16 = vpop.f32.mrf.mxu3 }
 0x160   : > { %2674 = vrot.lane.b32.xlu2 %v2645_v32, %s4112_s21  ;;  %3505 = vrot.lane.b32.xlu1 %v3476_v59, %s4113_s22 }
 0x161   : > { %v1140_v36 = vpop.f32.mrf.mxu2  ;;  %v1179_v63 = vpop.f32.mrf.mxu1 }
 0x162   : > { %v2272_v36 = vsel %vm241_vm0, %v2244_v40, 0 }
 0x163   : > { %v1164_v39 = vpop.f32.mrf.mxu0 }
 0x164   : > { %v1296_v33 = vsel %vm241_vm0, %v1164_v39, %v1289_v17  ;;  %3983 = vmatmul.msk.bf16.vlgmr.msra.gmra.mxu3 %vm237_vm1, %v4776_v15  ;;  %v4926_v17 = vpop.permute.xlu1 %2237 }
 0x165   : > { %v4884_v37 = vadd.f32 %v1296_v33, %v4726_v62  ;;  %2308 = vmatpush.bf16.msra.mxu3 %v2257_v35  ;;  %v2287_v33 = vsel %vm241_vm0, %v2249_v10, 0  ;;  %v2299_v57 = vsel %vm241_vm0, %v4926_v17, 0 }
 0x166   : > { %3986 = vmatmul.msk.bf16.vlgmr.msrb.gmra.mxu2 %vm237_vm1, %v4776_v15  ;;  %3984 = vmatmul.msk.bf16.vlgmr.msrb.gmra.mxu0 %vm237_vm1, %v4776_v15  ;;  %v4893_v45 = vpop.permute.xlu0 %2660 }
 0x167   : > { %2321 = vmatpush.bf16.msrb.mxu0 %v2260_v49  ;;  %v4898_v62 = vsel %vm1014_vm3, %v4867_v53, %v4893_v45  ;;  %v1151_v43 = vpop.f32.mrf.mxu3  ;;  %2347 = vmatpush.bf16.msrb.mxu2 %v2266_v4 }
 0x168   : > { %v1288_v44 = vrot.slane %v1151_v43, 4  ;;  %3040 = vrot.lane.b32.xlu2 %v4741_v42, %s4113_s22  ;;  %v2248_v43 = vsel %vm1408_vm4, %v4787_v56, %v4810_v1 }
 0x169   : > { %v1190_v46 = vpop.f32.mrf.mxu2  ;;  %v1229_v0 = vpop.f32.mrf.mxu1 }
 0x16a   : > { %v1295_v6 = vsel %vm241_vm0, %v1138_v21, %v1288_v44  ;;  %v1291_v21 = vrot.slane %v1229_v0, 4 }
 0x16b   : > { %v1166_v52 = vpop.f32.mrf.mxu0  ;;  %v4910_v48 = vadd.f32 %v1295_v6, %v4719_v3  ;;  %v2243_v3 = vsel %vm1408_vm4, %v4735_v5, %v2220_v18  ;;  %v935_v6 = vld [vmem:[#allocation2 + $0x38] sm:$0xf] }
 0x16c   : > { %3989 = vmatmul.msk.bf16.vlgmr.msra.gmra.mxu1 %vm237_vm1, %v4776_v15  ;;  %v2269_v42 = vsel %vm241_vm0, %v2243_v3, 0  ;;  %v4956_v35 = vpop.permute.xlu1 %2656 }
 0x16d   : > { %2386 = vmatpush.bf16.msra.mxu1 %v2275_v38  ;;  %v2284_v38 = vsel %vm241_vm0, %v2248_v43, 0 }
 0x16e   : > { %v4915_v12 = vpop.permute.xlu0 %2672 }
 0x16f   : > { %v1153_v34 = vpop.f32.mrf.mxu3 }
 0x171   : > { %v1192_v23 = vpop.f32.mrf.mxu2  ;;  %v1231_v28 = vpop.f32.mrf.mxu1 }
 0x173   : > { %v1216_v51 = vpop.f32.mrf.mxu0 }
 0x174   : > { %v1298_v16 = vsel %vm241_vm0, %v1216_v51, %v1291_v21  ;;  %3987 = vmatmul.msk.bf16.vlgmr.msrb.gmra.mxu3 %vm237_vm1, %v4776_v15  ;;  %v4974_v9 = vpop.permute.xlu1 %2662 }
 0x175   : > { %v4932_v5 = vadd.f32 %v1298_v16, %v4781_v11  ;;  %2360 = vmatpush.bf16.msrb.mxu3 %v2269_v42  ;;  %v2555_v11 = vld [vmem:[%s5559_s2] sm:$0xf] }
 0x176   : > { %3990 = vmatmul.msk.bf16.vlgmr.msra.gmra.mxu2 %vm237_vm1, %v4776_v15  ;;  %3988 = vmatmul.msk.bf16.vlgmr.msra.gmra.mxu0 %vm237_vm1, %v4776_v15  ;;  %v4941_v26 = vpop.permute.xlu0 %3042  ;;  %v4952_v15 = vld [vmem:[%s5558_s1 + $0x2] sm:$0x3] }
 0x177   : > { %2373 = vmatpush.bf16.msra.mxu0 %v2272_v36  ;;  %v1203_v7 = vpop.f32.mrf.mxu3  ;;  %2399 = vmatpush.bf16.msra.mxu2 %v2278_v8 }
 0x178   : > { %v1290_v63 = vrot.slane %v1203_v7, 4  ;;  %2558 = vperm.xlu1 %4098, %v2555_v11   ;;  %v2234_v27 = vpop.permute.xlu2 %2233 }
 0x179   : > { %v1242_v19 = vpop.f32.mrf.mxu2  ;;  %v1480_v18 = vpop.f32.mrf.mxu1  ;;  %v2250_v54 = vsel %vm1408_vm4, %v4878_v61, %v2234_v27 }
 0x17a   : > { %v1297_v31 = vsel %vm241_vm0, %v1190_v46, %v1290_v63  ;;  %v2247_v46 = vsel %vm1408_vm4, %v4858_v60, %v4787_v56  ;;  %v2290_v56 = vsel %vm241_vm0, %v2250_v54, 0  ;;  %v2251_v63 = vsel %vm1408_vm4, %v2234_v27, %v4906_v50 }
 0x17b   : > { %v1218_v39 = vpop.f32.mrf.mxu0  ;;  %v4959_v49 = vadd.f32 %v1297_v31, %v4771_v29  ;;  %v3016_v29 = vunpack.c.l.b16 %v4738_v14  ;;  %v2281_v1 = vsel %vm241_vm0, %v2247_v46, 0 }
 0x17c   : > { %3994 = vmatmul.msk.bf16.vlgmr.msrb.gmra.mxu1 %vm237_vm1, %v4952_v15  ;;  %v5004_v36 = vpop.permute.xlu1 %2666  ;;  %v2293_v39 = vsel %vm241_vm0, %v2251_v63, 0 }
 0x17d   : > { %2438 = vmatpush.bf16.msrb.mxu1 %v2287_v33  ;;  %v4978_v59 = vpack.c.b16 %v3016_v29, %v3016_v29 }
 0x17e   : > { %v4963_v32 = vpop.permute.xlu0 %3046 }
 0x17f   : > { %v1205_v4 = vpop.f32.mrf.mxu3  ;;  %3052 = vrot.lane.b32.xlu2 %v4978_v59, %s4113_s22 }
 0x181   : > { %v1244_v44 = vpop.f32.mrf.mxu2  ;;  %v1482_v0 = vpop.f32.mrf.mxu1 }
 0x182   : > { %v2647_v51 = vpop.permute.xlu2 %2646 }
 0x183   : > { %v1268_v52 = vpop.f32.mrf.mxu0 }
 0x184   : > { %v1314_v58 = vadd.f32 %v1268_v52, %v935_v6  ;;  %3992 = vmatmul.msk.bf16.vlgmr.msra.gmra.mxu3 %vm237_vm1, %v4952_v15 }
 0x185   : > { %2412 = vmatpush.bf16.msra.mxu3 %v2281_v1 }
 0x186   : > { %1322 = vst.msk [vmem:[#allocation2 + $0x38] sm:$0xf] %vm179_vm5, %v1314_v58  ;;  %3995 = vmatmul.msk.bf16.vlgmr.msrb.gmra.mxu2 %vm237_vm1, %v4952_v15  ;;  %3993 = vmatmul.msk.bf16.vlgmr.msrb.gmra.mxu0 %vm237_vm1, %v4952_v15  ;;  %v4988_v14 = vpop.permute.xlu0 %3048 }
 0x187   : > { %2425 = vmatpush.bf16.msrb.mxu0 %v2284_v38  ;;  %v4993_v60 = vsel %vm1408_vm4, %v4963_v32, %v4988_v14  ;;  %v1255_v61 = vpop.f32.mrf.mxu3  ;;  %2451 = vmatpush.bf16.msrb.mxu2 %v2290_v56 }
 0x188   : > { %v1292_v21 = vrot.slane %v1255_v61, 4  ;;  %3058 = vrot.lane.b32.xlu2 %v4838_v41, %s4113_s22  ;;  %v2680_v61 = vsel %vm1014_vm3, %v4850_v55, %v4956_v35 }
 0x189   : > { %v1493_v34 = vpop.f32.mrf.mxu2  ;;  %v1532_v3 = vpop.f32.mrf.mxu1 }
 0x18a   : > { %v1680_v23 = vrot.slane %v1493_v34, 4  ;;  %v1299_v40 = vsel %vm241_vm0, %v1242_v19, %v1292_v21  ;;  %v2676_v19 = vsel %vm1014_vm3, %v2647_v51, %v4823_v2  ;;  %v2651_v33 = vpop.permute.xlu2 %2650 }
 0x18b   : > { %v1270_v28 = vpop.f32.mrf.mxu0  ;;  %v5001_v16 = vadd.f32 %v1299_v40, %v4816_v22  ;;  %v2252_v22 = vsel %vm1408_vm4, %v4906_v50, %v4926_v17  ;;  %v2694_v41 = vsel %vm241_vm0, %v2676_v19, 0  ;;  %v5033_v50 = vpop.permute.xlu1 %2668  ;;  %v2677_v58 = vsel %vm1014_vm3, %v4823_v2, %v2651_v33 }
 0x18c   : > { %v1687_v42 = vsel %vm241_vm0, %v1480_v18, %v1680_v23  ;;  %3998 = vmatmul.msk.bf16.vlgmr.msra.gmra.mxu1 %vm237_vm1, %v4952_v15  ;;  %v2296_v31 = vsel %vm241_vm0, %v2252_v22, 0  ;;  %v2697_v23 = vsel %vm241_vm0, %v2677_v58, 0  ;;  %v2683_v40 = vsel %vm1014_vm3, %v4893_v45, %v4974_v9 }
 0x18d   : > { %v5007_v8 = vadd.f32 %v1687_v42, %v4863_v20  ;;  %2490 = vmatpush.bf16.msra.mxu1 %v2299_v57  ;;  %v2715_v42 = vsel %vm241_vm0, %v2683_v40, 0  ;;  %v2681_v45 = vsel %vm1014_vm3, %v4956_v35, %v4867_v53 }
 0x18e   : > { %v5011_v11 = vpop.permute.xlu0 %3060 }
 0x18f   : > { %v1257_v7 = vpop.f32.mrf.mxu3 }
 0x190   : > { %3062 = vrot.lane.b32.xlu2 %v4685_v24, %s4113_s22 }
 0x191   : > { %v1495_v10 = vpop.f32.mrf.mxu2  ;;  %v1534_v20 = vpop.f32.mrf.mxu1 }
 0x192   : > { %v2653_v6 = vpop.permute.xlu2 %2652 }
 0x193   : > { %v5022_v18 = vpop.f32.mrf.mxu0  ;;  %v2679_v52 = vsel %vm1014_vm3, %v2653_v6, %v4850_v55  ;;  %v5054_v1 = vpop.permute.xlu1 %3044  ;;  %v2678_v56 = vsel %vm1014_vm3, %v2651_v33, %v2653_v6  ;;  %v2712_v33 = vsel %vm241_vm0, %v4898_v62, 0 }
 0x194   : > { %3996 = vmatmul.msk.bf16.vlgmr.msrb.gmra.mxu3 %vm237_vm1, %v4952_v15  ;;  %v2703_v24 = vsel %vm241_vm0, %v2679_v52, 0 }
 0x195   : > { %2464 = vmatpush.bf16.msrb.mxu3 %v2293_v39 }
 0x196   : > { %3999 = vmatmul.msk.bf16.vlgmr.msra.gmra.mxu2 %vm237_vm1, %v4952_v15  ;;  %3997 = vmatmul.msk.bf16.vlgmr.msra.gmra.mxu0 %vm237_vm1, %v4952_v15  ;;  %v5035_v17 = vpop.permute.xlu0 %3066 }
 0x197   : > { %2477 = vmatpush.bf16.msra.mxu0 %v2296_v31  ;;  %v5037_v4 = vpop.f32.mrf.mxu3  ;;  %2745 = vmatpush.bf16.msra.mxu2 %v2694_v41  ;;  %v5099_v31 = vld [vmem:[%s5558_s1 + $0xa] sm:$0x3] }
 0x198   : > { %3064 = vrot.lane.b32.xlu2 %v4699_v13, %s4113_s22  ;;  %v2706_v13 = vsel %vm241_vm0, %v2680_v61, 0  ;;  %v4116_v61 = vmov 839922192  }
 0x199   : > { %v1545_v43 = vpop.f32.mrf.mxu2  ;;  %v5041_v46 = vpop.f32.mrf.mxu1 }
 0x19a   : > { %v1682_v44 = vrot.slane %v1545_v43, 4  ;;  %v2665_v19 = vpop.permute.xlu2 %2664  ;;  %v2709_v43 = vsel %vm241_vm0, %v2681_v45, 0 }
 0x19b   : > { %v1521_v0 = vpop.f32.mrf.mxu0  ;;  %v5086_v51 = vpop.permute.xlu1 %3050  ;;  %v2684_v41 = vsel %vm1014_vm3, %v4974_v9, %v2665_v19 }
 0x19c   : > { %v1689_v27 = vsel %vm241_vm0, %v1532_v3, %v1682_v44  ;;  %4002 = vmatmul.msk.bf16.vlgmr.msrb.gmra.mxu1 %vm237_vm1, %v4952_v15  ;;  %v2700_v3 = vsel %vm241_vm0, %v2678_v56, 0  ;;  %v2718_v53 = vsel %vm241_vm0, %v2684_v41, 0 }
 0x19d   : > { %v5045_v29 = vadd.f32 %v1689_v27, %v4910_v48  ;;  %2784 = vmatpush.bf16.msrb.mxu1 %v2703_v24 }
 0x19e   : > { %v5051_v54 = vpop.permute.xlu0 %3481 }
 0x19f   : > { %v1508_v38 = vpop.f32.mrf.mxu3 }
 0x1a0   : > { %3479 = vrot.lane.b32.xlu2 %v4598_v30, %s4113_s22  ;;  %v1681_v38 = vrot.slane %v5022_v18, 4  ;;  %v2686_v30 = vsel %vm1014_vm3, %v5004_v36, %v5033_v50  ;;  %v2685_v18 = vsel %vm1014_vm3, %v2665_v19, %v5004_v36  ;;  %v5156_v19 = vld [vmem:[%s4151_s17 + $0x20] sm:$0xff] }
 0x1a1   : > { %v1547_v48 = vpop.f32.mrf.mxu2  ;;  %v1586_v21 = vpop.f32.mrf.mxu1  ;;  %v2721_v36 = vsel %vm241_vm0, %v2685_v18, 0 }
 0x1a2   : > { %v2671_v6 = vpop.permute.xlu2 %2670  ;;  %v1731_v21 = vunpack.c.l.s4 %v4116_v61 }
 0x1a3   : > { %v5064_v34 = vpop.f32.mrf.mxu0  ;;  %v5106_v44 = vpop.permute.xlu1 %3054  ;;  %v2687_v52 = vsel %vm1014_vm3, %v5033_v50, %v2671_v6  ;;  %v2688_v50 = vsel %vm1014_vm3, %v2671_v6, %v4915_v12 }
 0x1a4   : > { %4000 = vmatmul.msk.bf16.vlgmr.msra.gmra.mxu3 %vm237_vm1, %v4952_v15  ;;  %v5146_v45 = vunpack.c.0.s8 %v1731_v21 }
 0x1a5   : > { %2758 = vmatpush.bf16.msra.mxu3 %v2697_v23  ;;  %v1683_v23 = vrot.slane %v5064_v34, 4 }
 0x1a6   : > { %4003 = vmatmul.msk.bf16.vlgmr.msrb.gmra.mxu2 %vm237_vm1, %v4952_v15  ;;  %4001 = vmatmul.msk.bf16.vlgmr.msrb.gmra.mxu0 %vm237_vm1, %v4952_v15  ;;  %v5075_v2 = vpop.permute.xlu0 %3477 }
 0x1a7   : > { %2771 = vmatpush.bf16.msrb.mxu0 %v2700_v3  ;;  %v5077_v55 = vpop.f32.mrf.mxu3  ;;  %2797 = vmatpush.bf16.msrb.mxu2 %v2706_v13 }
 0x1a8   : > { %3489 = vrot.lane.b32.xlu2 %v4978_v59, %s4113_s22 }
 0x1a9   : > { %v5082_v28 = vpop.f32.mrf.mxu2  ;;  %v5084_v57 = vpop.f32.mrf.mxu1 }
 0x1aa   : > { %v1684_v59 = vrot.slane %v5082_v28, 4 }
 0x1ab   : > { %v1573_v7 = vpop.f32.mrf.mxu0  ;;  %v5124_v24 = vpop.permute.xlu1 %3056 }
 0x1ac   : > { %4006 = vmatmul.msk.bf16.vlgmr.msra.gmra.mxu1 %vm237_vm1, %v4952_v15  ;;  %v2724_v7 = vsel %vm241_vm0, %v2686_v30, 0 }
 0x1ad   : > { %2836 = vmatpush.bf16.msra.mxu1 %v2715_v42  ;;  %v1688_v42 = vsel %vm241_vm0, %v5037_v4, %v1681_v38  ;;  %v2730_v4 = vsel %vm241_vm0, %v2688_v50, 0 }
 0x1ae   : > { %v5091_v10 = vpop.permute.xlu0 %3491 }
 0x1af   : > { %v1560_v22 = vpop.f32.mrf.mxu3 }
 0x1b1   : > { %v1599_v63 = vpop.f32.mrf.mxu2  ;;  %v1638_v20 = vpop.f32.mrf.mxu1 }
 0x1b2   : > { %v1690_v63 = vsel %vm241_vm0, %v5077_v55, %v1683_v23  ;;  %v1702_v55 = vadd.f32 %v1688_v42, %v4841_v25 }
 0x1b3   : > { %v1623_v39 = vpop.f32.mrf.mxu0 }
 0x1b4   : > { %4004 = vmatmul.msk.bf16.vlgmr.msrb.gmra.mxu3 %vm237_vm1, %v4952_v15  ;;  %v1685_v13 = vrot.slane %v1623_v39, 4  ;;  %v3455_v39 = vunpack.c.l.b16 %v5156_v19 }
 0x1b5   : > { %2810 = vmatpush.bf16.msrb.mxu3 %v2709_v43  ;;  %v1691_v43 = vsel %vm241_vm0, %v5041_v46, %v1684_v59 }
 0x1b6   : > { %4016 = vmatmul.msk.bf16.vlgmr.msra.gmra.mxu2 %vm237_vm1, %v5099_v31  ;;  %4005 = vmatmul.msk.bf16.vlgmr.msra.gmra.mxu0 %vm237_vm1, %v4952_v15  ;;  %v5115_v35 = vpop.permute.xlu0 %3497  ;;  %v2727_v15 = vsel %vm241_vm0, %v2687_v52, 0 }
 0x1b7   : > { %2823 = vmatpush.bf16.msra.mxu0 %v2712_v33  ;;  %v1610_v62 = vpop.f32.mrf.mxu3  ;;  %2849 = vmatpush.bf16.msra.mxu2 %v2718_v53  ;;  %v1704_v33 = vadd.f32 %v1690_v63, %v4884_v37 }
 0x1b8   : > { %v1692_v28 = vsel %vm241_vm0, %v1610_v62, %v1685_v13  ;;  %v1330_v62 = vld [vmem:[#allocation2 + $0x38] sm:$0xf] }
 0x1b9   : > { %v1649_v9 = vpop.f32.mrf.mxu2  ;;  %v1929_v0 = vpop.f32.mrf.mxu1  ;;  %v1706_v6 = vadd.f32 %v1692_v28, %v4932_v5  ;;  %v3074_v28 = vsel %vm1408_vm4, %v4988_v14, %v5086_v51 }
 0x1ba   : > { %v2116_v58 = vrot.slane %v1929_v0, 4  ;;  %v1686_v20 = vrot.slane %v1649_v9, 4  ;;  %v5169_v0 = vpop.permute.xlu1 %3068  ;;  %v2675_v52 = vpop.permute.xlu2 %2674 }
 0x1bb   : > { %v1625_v27 = vpop.f32.mrf.mxu0  ;;  %v2689_v13 = vsel %vm1014_vm3, %v4915_v12, %v2675_v52 }
 0x1bc   : > { %4019 = vmatmul.msk.bf16.vlgmr.msrb.gmra.mxu1 %vm237_vm1, %v5099_v31  ;;  %v3470_v27 = vpack.c.b16 %v3455_v39, %v3455_v39  ;;  %v1693_v25 = vsel %vm241_vm0, %v5084_v57, %v1686_v20  ;;  %v1705_v57 = vadd.f32 %v1691_v43, %v4959_v49  ;;  %v2733_v20 = vsel %vm241_vm0, %v2689_v13, 0 }
 0x1bd   : > { %2888 = vmatpush.bf16.msrb.mxu1 %v2727_v15  ;;  %v1707_v61 = vadd.f32 %v1693_v25, %v5001_v16  ;;  %v3077_v13 = vsel %vm1408_vm4, %v5106_v44, %v5124_v24 }
 0x1be   : > { %v5127_v48 = vpop.permute.xlu0 %3501  ;;  %3493 = vrot.lane.b32.xlu2 %v3470_v27, %s4113_s22 }
 0x1bf   : > { %v1612_v56 = vpop.f32.mrf.mxu3 }
 0x1c1   : > { %v1651_v3 = vpop.f32.mrf.mxu2  ;;  %v1931_v40 = vpop.f32.mrf.mxu1 }
 0x1c2   : > { %v3041_v16 = vpop.permute.xlu2 %3040  ;;  %v5206_v59 = vpop.permute.xlu1 %3483 }
 0x1c3   : > { %v1916_v22 = vpop.f32.mrf.mxu0  ;;  %v3070_v42 = vsel %vm1408_vm4, %v3041_v16, %v4941_v26 }
 0x1c4   : > { %v5144_v34 = vsel %vm241_vm0, %v1916_v22, %v2116_v58  ;;  %4017 = vmatmul.msk.bf16.vlgmr.msra.gmra.mxu3 %vm237_vm1, %v5099_v31 }
 0x1c5   : > { %2862 = vmatpush.bf16.msra.mxu3 %v2721_v36  ;;  %v3088_v36 = vsel %vm241_vm0, %v3070_v42, 0 }
 0x1c6   : > { %4020 = vmatmul.msk.bf16.vlgmr.msrb.gmra.mxu2 %vm237_vm1, %v5099_v31  ;;  %4018 = vmatmul.msk.bf16.vlgmr.msrb.gmra.mxu0 %vm237_vm1, %v5099_v31  ;;  %v1729_v41 = vpop.permute.xlu0 %1728 }
 0x1c7   : > { %2875 = vmatpush.bf16.msrb.mxu0 %v2724_v7  ;;  %v1733_v53 = vperm.slane %v1729_v41, %v5146_v45  ;;  %v1662_v9 = vpop.f32.mrf.mxu3  ;;  %2901 = vmatpush.bf16.msrb.mxu2 %v2730_v4  ;;  %v3456_v7 = vunpack.c.h.b16 %v5156_v19  ;;  %v2736_v4 = vsel %vm241_vm0, %v2675_v52, 0 }
 0x1c8   : > { %v1708_v37 = vadd.f32 %v1662_v9, %v1330_v62  ;;  %v3072_v9 = vsel %vm1408_vm4, %v5054_v1, %v4963_v32 }
 0x1c9   : > { %v5179_v46 = vpop.f32.mrf.mxu2  ;;  %v1735_v15 = vadd.f32 %v1733_v53, %v5007_v8  ;;  %v1736_v38 = vadd.f32 %v1733_v53, %v1702_v55  ;;  %v1738_v5 = vadd.f32 %v1733_v53, %v1704_v33  ;;  %v1981_v30 = vpop.f32.mrf.mxu1  ;;  %v1740_v58 = vadd.f32 %v1733_v53, %v1706_v6 }
 0x1ca   : > { %1716 = vst.msk [vmem:[#allocation2 + $0x38] sm:$0xf] %vm179_vm5, %v1708_v37  ;;  %v1737_v21 = vadd.f32 %v1733_v53, %v5045_v29  ;;  %v1739_v8 = vadd.f32 %v1733_v53, %v1705_v57  ;;  %v1741_v23 = vadd.f32 %v1733_v53, %v1707_v61  ;;  %v2118_v49 = vrot.slane %v1981_v30, 4  ;;  %v4102_v37 = vld [vmem:[%s4151_s17 + $0x30] sm:$0xff] }
 0x1cb   : > { %v1918_v56 = vpop.f32.mrf.mxu0  ;;  %1743 = vst [vmem:[%s5177_s16] sm:$0xff] %v1735_v15  ;;  %v3071_v29 = vsel %vm1408_vm4, %v4941_v26, %v5054_v1  ;;  %v3471_v26 = vpack.c.b16 %v3456_v7, %v3456_v7  ;;  %v3100_v33 = vsel %vm241_vm0, %v3074_v28, 0  ;;  %v3460_v52 = vunpack.c.h.b16 %v4102_v37 }
 0x1cc   : > { %1744 = vst [vmem:[%s5177_s16 + $0x8] sm:$0xff] %v1736_v38  ;;  %4023 = vmatmul.msk.bf16.vlgmr.msra.gmra.mxu1 %vm237_vm1, %v5099_v31  ;;  %v3091_v19 = vsel %vm241_vm0, %v3071_v29, 0  ;;  %v3094_v30 = vsel %vm241_vm0, %v3072_v9, 0  ;;  %v3083_v9 = vsel %vm1408_vm4, %v5035_v17, %v5169_v0 }
 0x1cd   : > { %1746 = vst [vmem:[%s5177_s16 + $0x18] sm:$0xff] %v1738_v5  ;;  %3139 = vmatpush.bf16.msra.mxu1 %v3088_v36  ;;  %3495 = vrot.lane.b32.xlu2 %v3471_v26, %s4113_s22  ;;  %v3097_v5 = vsel %vm241_vm0, %v4993_v60, 0 }
 0x1ce   : > { %1748 = vst [vmem:[%s5177_s16 + $0x28] sm:$0xff] %v1740_v58  ;;  %v3475_v58 = vpack.c.b16 %v3460_v52, %v3460_v52 }
 0x1cf   : > { %v1664_v3 = vpop.f32.mrf.mxu3  ;;  %1745 = vst [vmem:[%s5177_s16 + $0x10] sm:$0xff] %v1737_v21  ;;  %v5265_v21 = vld [vmem:[%s5558_s1 + $0x6] sm:$0x3] }
 0x1d0   : > { %1747 = vst [vmem:[%s5177_s16 + $0x20] sm:$0xff] %v1739_v8 }
 0x1d1   : > { %v1944_v18 = vpop.f32.mrf.mxu2  ;;  %v1724_v40 = vld [vmem:[#allocation2 + $0x38] sm:$0xf]  ;;  %v1983_v50 = vpop.f32.mrf.mxu1  ;;  %1749 = vst [vmem:[%s5177_s16 + $0x30] sm:$0xff] %v1741_v23 }
 0x1d2   : > { %v1742_v22 = vadd.f32 %v1733_v53, %v1724_v40  ;;  %1758 = vst.msk [vmem:[#allocation2 + $0x38] sm:$0xf] %vm179_vm5, %v4114_v47  ;;  %v5234_v53 = vpop.permute.xlu1 %3485 }
 0x1d3   : > { %v1968_v12 = vpop.f32.mrf.mxu0 }
 0x1d4   : > { %v5210_v63 = vsel %vm241_vm0, %v1968_v12, %v2118_v49  ;;  %1750 = vst.msk [vmem:[%s5177_s16 + $0x38] sm:$0xf] %vm179_vm5, %v1742_v22  ;;  %4021 = vmatmul.msk.bf16.vlgmr.msrb.gmra.mxu3 %vm237_vm1, %v5099_v31  ;;  %v3109_v22 = vsel %vm241_vm0, %v3077_v13, 0 }
 0x1d5   : > { %2914 = vmatpush.bf16.msrb.mxu3 %v2733_v20  ;;  %3503 = vrot.lane.b32.xlu2 %v3475_v58, %s4113_s22 }
 0x1d6   : > { %4024 = vmatmul.msk.bf16.vlgmr.msra.gmra.mxu2 %vm237_vm1, %v5099_v31  ;;  %4022 = vmatmul.msk.bf16.vlgmr.msra.gmra.mxu0 %vm237_vm1, %v5099_v31 }
 0x1d7   : > { %2927 = vmatpush.bf16.msra.mxu0 %v2736_v4  ;;  %v5226_v39 = vpop.f32.mrf.mxu3  ;;  %3152 = vmatpush.bf16.msra.mxu2 %v3091_v19 }
 0x1d9   : > { %v5229_v55 = vpop.f32.mrf.mxu2  ;;  %v2033_v41 = vpop.f32.mrf.mxu1 }
 0x1da   : > { %v2120_v62 = vrot.slane %v2033_v41, 4  ;;  %v3053_v25 = vpop.permute.xlu2 %3052  ;;  %v5255_v1 = vpop.permute.xlu1 %3487 }
 0x1db   : > { %v1970_v43 = vpop.f32.mrf.mxu0  ;;  %v3075_v38 = vsel %vm1408_vm4, %v5086_v51, %v3053_v25  ;;  %v3076_v29 = vsel %vm1408_vm4, %v3053_v25, %v5106_v44  ;;  %v1766_v44 = vld [vmem:[#allocation2 + $0x38] sm:$0xf] }
 0x1dc   : > { %4027 = vmatmul.msk.bf16.vlgmr.msrb.gmra.mxu1 %vm237_vm1, %v5099_v31  ;;  %v3103_v32 = vsel %vm241_vm0, %v3075_v38, 0  ;;  %v3106_v36 = vsel %vm241_vm0, %v3076_v29, 0 }
 0x1dd   : > { %3191 = vmatpush.bf16.msrb.mxu1 %v3100_v33 }
 0x1df   : > { %v1957_v14 = vpop.f32.mrf.mxu3 }
 0x1e1   : > { %v1996_v27 = vpop.f32.mrf.mxu2  ;;  %v2035_v6 = vpop.f32.mrf.mxu1 }
 0x1e2   : > { %v3059_v8 = vpop.permute.xlu2 %3058  ;;  %v5277_v40 = vpop.permute.xlu1 %3499 }
 0x1e3   : > { %v2020_v15 = vpop.f32.mrf.mxu0  ;;  %v3078_v23 = vsel %vm1408_vm4, %v5124_v24, %v3059_v8  ;;  %v3079_v42 = vsel %vm1408_vm4, %v3059_v8, %v5011_v11 }
 0x1e4   : > { %v5246_v57 = vsel %vm241_vm0, %v2020_v15, %v2120_v62  ;;  %4025 = vmatmul.msk.bf16.vlgmr.msra.gmra.mxu3 %vm237_vm1, %v5099_v31  ;;  %v3112_v49 = vsel %vm241_vm0, %v3078_v23, 0  ;;  %v3115_v24 = vsel %vm241_vm0, %v3079_v42, 0  ;;  %v2117_v15 = vrot.slane %v5226_v39, 4 }
 0x1e5   : > { %3165 = vmatpush.bf16.msra.mxu3 %v3094_v30  ;;  %v3509_v42 = vsel %vm1408_vm4, %v5051_v54, %v5206_v59 }
 0x1e6   : > { %4028 = vmatmul.msk.bf16.vlgmr.msrb.gmra.mxu2 %vm237_vm1, %v5099_v31  ;;  %4026 = vmatmul.msk.bf16.vlgmr.msrb.gmra.mxu0 %vm237_vm1, %v5099_v31  ;;  %v2124_v39 = vsel %vm241_vm0, %v5179_v46, %v2117_v15 }
 0x1e7   : > { %3178 = vmatpush.bf16.msrb.mxu0 %v3097_v5  ;;  %v5257_v60 = vpop.f32.mrf.mxu3  ;;  %3204 = vmatpush.bf16.msrb.mxu2 %v3103_v32  ;;  %v3127_v5 = vsel %vm241_vm0, %v3083_v9, 0 }
 0x1e9   : > { %v5260_v51 = vpop.f32.mrf.mxu2  ;;  %v2085_v56 = vpop.f32.mrf.mxu1 }
 0x1ea   : > { %v2122_v3 = vrot.slane %v2085_v56, 4  ;;  %v3063_v26 = vpop.permute.xlu2 %3062  ;;  %v5295_v33 = vpop.permute.xlu1 %3505 }
 0x1eb   : > { %v2022_v61 = vpop.f32.mrf.mxu0  ;;  %v3080_v62 = vsel %vm1408_vm4, %v5011_v11, %v3063_v26 }
 0x1ec   : > { %4032 = vmatmul.msk.bf16.vlgmr.msra.gmra.mxu1 %vm237_vm1, %v5265_v21  ;;  %v3118_v38 = vsel %vm241_vm0, %v3080_v62, 0 }
 0x1ed   : > { %3243 = vmatpush.bf16.msra.mxu1 %v3112_v49 }
 0x1ef   : > { %v2009_v18 = vpop.f32.mrf.mxu3 }
 0x1f1   : > { %v2048_v16 = vpop.f32.mrf.mxu2  ;;  %v2087_v50 = vpop.f32.mrf.mxu1 }
 0x1f2   : > { %v3065_v14 = vpop.permute.xlu2 %3064  ;;  %v2559_v58 = vpop.permute.xlu1 %2558 }
 0x1f3   : > { %v2072_v7 = vpop.f32.mrf.mxu0  ;;  %v3081_v6 = vsel %vm1408_vm4, %v3063_v26, %v3065_v14  ;;  %v3082_v25 = vsel %vm1408_vm4, %v3065_v14, %v5035_v17  ;;  %v3386_v17 = vld [vmem:[%s5559_s2] sm:$0xf]  ;;  %v5325_v56 = vperm.slane %v2559_v58, %v5146_v45  ;;  %v2119_v26 = vrot.slane %v5257_v60, 4 }
 0x1f4   : > { %v5283_v12 = vsel %vm241_vm0, %v2072_v7, %v2122_v3  ;;  %4029 = vmatmul.msk.bf16.vlgmr.msrb.gmra.mxu3 %vm237_vm1, %v5099_v31  ;;  %v3124_v52 = vsel %vm241_vm0, %v3082_v25, 0  ;;  %v3121_v11 = vsel %vm241_vm0, %v3081_v6, 0  ;;  %3389 = vperm.xlu2 %4099, %v3386_v17  }
 0x1f5   : > { %3217 = vmatpush.bf16.msrb.mxu3 %v3106_v36 }
 0x1f6   : > { %4033 = vmatmul.msk.bf16.vlgmr.msra.gmra.mxu2 %vm237_vm1, %v5265_v21  ;;  %4030 = vmatmul.msk.bf16.vlgmr.msra.gmra.mxu0 %vm237_vm1, %v5099_v31 }
 0x1f7   : > { %3230 = vmatpush.bf16.msra.mxu0 %v3109_v22  ;;  %v5293_v20 = vpop.f32.mrf.mxu3  ;;  %3256 = vmatpush.bf16.msra.mxu2 %v3115_v24 }
 0x1f9   : > { %v2098_v4 = vpop.f32.mrf.mxu2  ;;  %v2336_v28 = vpop.f32.mrf.mxu1 }
 0x1fa   : > { %v2144_v19 = vadd.f32 %v2098_v4, %v1766_v44  ;;  %v3480_v22 = vpop.permute.xlu2 %3479  ;;  %v3130_v4 = vsel %vm241_vm0, %v5169_v0, 0 }
 0x1fb   : > { %v2074_v41 = vpop.f32.mrf.mxu0  ;;  %v3507_v24 = vsel %vm1408_vm4, %v5075_v2, %v3480_v22  ;;  %v3508_v44 = vsel %vm1408_vm4, %v3480_v22, %v5051_v54  ;;  %v2126_v54 = vsel %vm241_vm0, %v5229_v55, %v2119_v26 }
 0x1fc   : > { %2152 = vst.msk [vmem:[#allocation2 + $0x38] sm:$0xf] %vm179_vm5, %v2144_v19  ;;  %4036 = vmatmul.msk.bf16.vlgmr.msrb.gmra.mxu1 %vm237_vm1, %v5265_v21  ;;  %v3531_v19 = vsel %vm241_vm0, %v3509_v42, 0 }
 0x1fd   : > { %3295 = vmatpush.bf16.msrb.mxu1 %v3124_v52 }
 0x1ff   : > { %v2061_v43 = vpop.f32.mrf.mxu3 }
 0x200   : > { %v3525_v43 = vsel %vm241_vm0, %v3507_v24, 0  ;;  %v3823_v24 = vld [vmem:[%s5559_s2] sm:$0xf] }
 0x201   : > { %v2100_v31 = vpop.f32.mrf.mxu2  ;;  %v2338_v27 = vpop.f32.mrf.mxu1  ;;  %3826 = vperm.xlu1 %4098, %v3823_v24  }
 0x202   : > { %v3490_v55 = vpop.permute.xlu2 %3489 }
 0x203   : > { %v2323_v37 = vpop.f32.mrf.mxu0  ;;  %v3513_v58 = vsel %vm1408_vm4, %v3490_v55, %v5091_v10 }
 0x204   : > { %4034 = vmatmul.msk.bf16.vlgmr.msra.gmra.mxu3 %vm237_vm1, %v5265_v21  ;;  %v2510_v30 = vrot.slane %v2323_v37, 4  ;;  %v3512_v37 = vsel %vm1408_vm4, %v5255_v1, %v3490_v55 }
 0x205   : > { %3269 = vmatpush.bf16.msra.mxu3 %v3118_v38  ;;  %v3510_v38 = vsel %vm1408_vm4, %v5206_v59, %v5234_v53 }
 0x206   : > { %4037 = vmatmul.msk.bf16.vlgmr.msrb.gmra.mxu2 %vm237_vm1, %v5265_v21  ;;  %4035 = vmatmul.msk.bf16.vlgmr.msrb.gmra.mxu0 %vm237_vm1, %v5265_v21 }
 0x207   : > { %3282 = vmatpush.bf16.msrb.mxu0 %v3121_v11  ;;  %v2310_v32 = vpop.f32.mrf.mxu3  ;;  %3308 = vmatpush.bf16.msrb.mxu2 %v3127_v5  ;;  %v3511_v11 = vsel %vm1408_vm4, %v5234_v53, %v5255_v1 }
 0x208   : > { %v2517_v61 = vsel %vm241_vm0, %v2310_v32, %v2510_v30  ;;  %v2121_v32 = vrot.slane %v5293_v20, 4 }
 0x209   : > { %v2349_v8 = vpop.f32.mrf.mxu2  ;;  %v2531_v23 = vadd.f32 %v2517_v61, %v5144_v34  ;;  %v2388_v3 = vpop.f32.mrf.mxu1  ;;  %v3537_v61 = vsel %vm241_vm0, %v3511_v11, 0 }
 0x20a   : > { %v2511_v49 = vrot.slane %v2349_v8, 4  ;;  %v3543_v8 = vsel %vm241_vm0, %v3513_v58, 0  ;;  %v2128_v53 = vsel %vm241_vm0, %v5260_v51, %v2121_v32  ;;  %v5396_v51 = vld [vmem:[%s5558_s1 + $0x8] sm:$0x3] }
 0x20b   : > { %v2325_v18 = vpop.f32.mrf.mxu0  ;;  %v2565_v16 = vadd.f32 %v5325_v56, %v2531_v23 }
 0x20c   : > { %v2518_v13 = vsel %vm241_vm0, %v2336_v28, %v2511_v49  ;;  %4040 = vmatmul.msk.bf16.vlgmr.msra.gmra.mxu1 %vm237_vm1, %v5265_v21  ;;  %v3528_v28 = vsel %vm241_vm0, %v3508_v44, 0  ;;  %v2160_v18 = vld [vmem:[#allocation2 + $0x38] sm:$0xf]  ;;  %v3517_v44 = vsel %vm1408_vm4, %v5115_v35, %v5277_v40 }
 0x20d   : > { %v2532_v46 = vadd.f32 %v2518_v13, %v2124_v39  ;;  %4007 = vst [vmem:[%s5177_s16 + $0x3c] sm:$0xff] %v2565_v16  ;;  %3589 = vmatpush.bf16.msra.mxu1 %v3528_v28  ;;  %v3534_v39 = vsel %vm241_vm0, %v3510_v38, 0 }
 0x20f   : > { %v2566_v29 = vadd.f32 %v5325_v56, %v2532_v46  ;;  %v2312_v50 = vpop.f32.mrf.mxu3 }
 0x211   : > { %v2351_v34 = vpop.f32.mrf.mxu2  ;;  %4008 = vst [vmem:[%s5177_s16 + $0x44] sm:$0xff] %v2566_v29  ;;  %v2390_v7 = vpop.f32.mrf.mxu1 }
 0x213   : > { %v2375_v36 = vpop.f32.mrf.mxu0 }
 0x214   : > { %4038 = vmatmul.msk.bf16.vlgmr.msrb.gmra.mxu3 %vm237_vm1, %v5265_v21  ;;  %v2512_v41 = vrot.slane %v2375_v36, 4 }
 0x215   : > { %3321 = vmatpush.bf16.msrb.mxu3 %v3130_v4 }
 0x216   : > { %4041 = vmatmul.msk.bf16.vlgmr.msra.gmra.mxu2 %vm237_vm1, %v5265_v21  ;;  %4039 = vmatmul.msk.bf16.vlgmr.msra.gmra.mxu0 %vm237_vm1, %v5265_v21 }
 0x217   : > { %3602 = vmatpush.bf16.msra.mxu2 %v3531_v19  ;;  %v2362_v2 = vpop.f32.mrf.mxu3  ;;  %3576 = vmatpush.bf16.msra.mxu0 %v3525_v43 }
 0x218   : > { %v2519_v0 = vsel %vm241_vm0, %v2362_v2, %v2512_v41  ;;  %v3494_v16 = vpop.permute.xlu2 %3493 }
 0x219   : > { %v2401_v60 = vpop.f32.mrf.mxu2  ;;  %v2533_v31 = vadd.f32 %v2519_v0, %v5210_v63  ;;  %v2440_v14 = vpop.f32.mrf.mxu1  ;;  %v3540_v63 = vsel %vm241_vm0, %v3512_v37, 0  ;;  %v3514_v36 = vsel %vm1408_vm4, %v5091_v10, %v3494_v16  ;;  %v3555_v0 = vsel %vm241_vm0, %v3517_v44, 0 }
 0x21a   : > { %v2513_v62 = vrot.slane %v2401_v60, 4  ;;  %v3546_v10 = vsel %vm241_vm0, %v3514_v36, 0  ;;  %v3518_v37 = vsel %vm1408_vm4, %v5277_v40, %v5127_v48  ;;  %v3567_v40 = vsel %vm241_vm0, %v5295_v33, 0 }
 0x21b   : > { %v2377_v9 = vpop.f32.mrf.mxu0  ;;  %v2567_v27 = vadd.f32 %v5325_v56, %v2533_v31  ;;  %v3558_v11 = vsel %vm241_vm0, %v3518_v37, 0 }
 0x21c   : > { %v2520_v6 = vsel %vm241_vm0, %v2388_v3, %v2513_v62  ;;  %4044 = vmatmul.msk.bf16.vlgmr.msrb.gmra.mxu1 %vm237_vm1, %v5265_v21 }
 0x21d   : > { %v2534_v25 = vadd.f32 %v2520_v6, %v2126_v54  ;;  %4009 = vst [vmem:[%s5177_s16 + $0x4c] sm:$0xff] %v2567_v27  ;;  %3641 = vmatpush.bf16.msrb.mxu1 %v3540_v63 }
 0x21f   : > { %v2568_v52 = vadd.f32 %v5325_v56, %v2534_v25  ;;  %v2364_v15 = vpop.f32.mrf.mxu3 }
 0x221   : > { %4010 = vst [vmem:[%s5177_s16 + $0x54] sm:$0xff] %v2568_v52  ;;  %v2403_v5 = vpop.f32.mrf.mxu2  ;;  %v2442_v30 = vpop.f32.mrf.mxu1 }
 0x223   : > { %v2427_v17 = vpop.f32.mrf.mxu0 }
 0x224   : > { %4042 = vmatmul.msk.bf16.vlgmr.msra.gmra.mxu3 %vm237_vm1, %v5265_v21  ;;  %v2514_v59 = vrot.slane %v2427_v17, 4 }
 0x225   : > { %3615 = vmatpush.bf16.msra.mxu3 %v3534_v39 }
 0x226   : > { %4045 = vmatmul.msk.bf16.vlgmr.msrb.gmra.mxu2 %vm237_vm1, %v5265_v21  ;;  %4043 = vmatmul.msk.bf16.vlgmr.msrb.gmra.mxu0 %vm237_vm1, %v5265_v21 }
 0x227   : > { %3628 = vmatpush.bf16.msrb.mxu0 %v3537_v61  ;;  %v2414_v1 = vpop.f32.mrf.mxu3  ;;  %3654 = vmatpush.bf16.msrb.mxu2 %v3543_v8  ;;  %v3496_v26 = vpop.permute.xlu2 %3495 }
 0x228   : > { %v2521_v20 = vsel %vm241_vm0, %v2414_v1, %v2514_v59  ;;  %v3515_v28 = vsel %vm1408_vm4, %v3494_v16, %v3496_v26  ;;  %v3516_v41 = vsel %vm1408_vm4, %v3496_v26, %v5115_v35 }
 0x229   : > { %v2453_v23 = vpop.f32.mrf.mxu2  ;;  %v2535_v49 = vadd.f32 %v2521_v20, %v5246_v57  ;;  %v2492_v13 = vpop.f32.mrf.mxu1  ;;  %v3549_v43 = vsel %vm241_vm0, %v3515_v28, 0  ;;  %v3552_v54 = vsel %vm241_vm0, %v3516_v41, 0 }
 0x22a   : > { %v2515_v3 = vrot.slane %v2453_v23, 4  ;;  %v2538_v46 = vadd.f32 %v2492_v13, %v2160_v18 }
 0x22b   : > { %v2429_v29 = vpop.f32.mrf.mxu0  ;;  %v2569_v50 = vadd.f32 %v5325_v56, %v2535_v49 }
 0x22c   : > { %v2522_v42 = vsel %vm241_vm0, %v2440_v14, %v2515_v3  ;;  %2546 = vst.msk [vmem:[#allocation2 + $0x38] sm:$0xf] %vm179_vm5, %v2538_v46  ;;  %4057 = vmatmul.msk.bf16.vlgmr.msra.gmra.mxu1 %vm237_vm1, %v5396_v51 }
 0x22d   : > { %v2536_v34 = vadd.f32 %v2522_v42, %v2128_v53  ;;  %4011 = vst [vmem:[%s5177_s16 + $0x5c] sm:$0xff] %v2569_v50  ;;  %3693 = vmatpush.bf16.msra.mxu1 %v3552_v54 }
 0x22f   : > { %v2570_v57 = vadd.f32 %v5325_v56, %v2536_v34  ;;  %v2416_v7 = vpop.f32.mrf.mxu3  ;;  %v3504_v15 = vpop.permute.xlu2 %3503 }
 0x231   : > { %4012 = vst [vmem:[%s5177_s16 + $0x64] sm:$0xff] %v2570_v57  ;;  %v2455_v22 = vpop.f32.mrf.mxu2  ;;  %v2494_v4 = vpop.f32.mrf.mxu1 }
 0x233   : > { %v2479_v19 = vpop.f32.mrf.mxu0  ;;  %v2554_v2 = vld [vmem:[#allocation2 + $0x38] sm:$0xf] }
 0x234   : > { %4046 = vmatmul.msk.bf16.vlgmr.msrb.gmra.mxu3 %vm237_vm1, %v5265_v21  ;;  %v2516_v60 = vrot.slane %v2479_v19, 4  ;;  %v2572_v31 = vadd.f32 %v5325_v56, %v2554_v2  ;;  %2589 = vst.msk [vmem:[#allocation2 + $0x38] sm:$0xf] %vm179_vm5, %v4114_v47 }
 0x235   : > { %3667 = vmatpush.bf16.msrb.mxu3 %v3546_v10 }
 0x236   : > { %4058 = vmatmul.msk.bf16.vlgmr.msra.gmra.mxu2 %vm237_vm1, %v5396_v51  ;;  %4056 = vmatmul.msk.bf16.vlgmr.msra.gmra.mxu0 %vm237_vm1, %v5396_v51  ;;  %4014 = vst.msk [vmem:[%s5177_s16 + $0x74] sm:$0xf] %vm179_vm5, %v2572_v31 }
 0x237   : > { %3680 = vmatpush.bf16.msra.mxu0 %v3549_v43  ;;  %v2466_v35 = vpop.f32.mrf.mxu3  ;;  %3706 = vmatpush.bf16.msra.mxu2 %v3555_v0 }
 0x238   : > { %v2523_v21 = vsel %vm241_vm0, %v2466_v35, %v2516_v60 }
 0x239   : > { %v5431_v62 = vpop.f32.mrf.mxu2  ;;  %v2537_v14 = vadd.f32 %v2523_v21, %v5283_v12  ;;  %v2786_v9 = vpop.f32.mrf.mxu1  ;;  %v3519_v12 = vsel %vm1408_vm4, %v5127_v48, %v3504_v15 }
 0x23a   : > { %v2948_v55 = vrot.slane %v2786_v9, 4  ;;  %v3561_v30 = vsel %vm241_vm0, %v3519_v12, 0 }
 0x23b   : > { %v2481_v27 = vpop.f32.mrf.mxu0  ;;  %v2571_v6 = vadd.f32 %v5325_v56, %v2537_v14  ;;  %v3520_v56 = vsel %vm1408_vm4, %v3504_v15, %v5295_v33  ;;  %v2597_v24 = vld [vmem:[#allocation2 + $0x38] sm:$0xf] }
 0x23c   : > { %4061 = vmatmul.msk.bf16.vlgmr.msrb.gmra.mxu1 %vm237_vm1, %v5396_v51  ;;  %v3564_v58 = vsel %vm241_vm0, %v3520_v56, 0 }
 0x23d   : > { %4013 = vst [vmem:[%s5177_s16 + $0x6c] sm:$0xff] %v2571_v6  ;;  %3745 = vmatpush.bf16.msrb.mxu1 %v3564_v58 }
 0x23f   : > { %v2468_v25 = vpop.f32.mrf.mxu3 }
 0x241   : > { %v2749_v52 = vpop.f32.mrf.mxu2  ;;  %v2788_v63 = vpop.f32.mrf.mxu1 }
 0x243   : > { %v2773_v38 = vpop.f32.mrf.mxu0 }
 0x244   : > { %v5447_v5 = vsel %vm241_vm0, %v2773_v38, %v2948_v55  ;;  %4059 = vmatmul.msk.bf16.vlgmr.msra.gmra.mxu3 %vm237_vm1, %v5396_v51 }
 0x245   : > { %3719 = vmatpush.bf16.msra.mxu3 %v3558_v11 }
 0x246   : > { %4062 = vmatmul.msk.bf16.vlgmr.msrb.gmra.mxu2 %vm237_vm1, %v5396_v51  ;;  %4060 = vmatmul.msk.bf16.vlgmr.msrb.gmra.mxu0 %vm237_vm1, %v5396_v51 }
 0x247   : > { %3732 = vmatpush.bf16.msrb.mxu0 %v3561_v30  ;;  %v2760_v48 = vpop.f32.mrf.mxu3  ;;  %3758 = vmatpush.bf16.msrb.mxu2 %v3567_v40 }
 0x248   : > { %v2947_v26 = vrot.slane %v2760_v48, 4 }
 0x249   : > { %v2799_v17 = vpop.f32.mrf.mxu2  ;;  %v2838_v39 = vpop.f32.mrf.mxu1 }
 0x24a   : > { %v2950_v61 = vrot.slane %v2838_v39, 4  ;;  %v2954_v28 = vsel %vm241_vm0, %v5431_v62, %v2947_v26 }
 0x24b   : > { %v2775_v32 = vpop.f32.mrf.mxu0 }
 0x24c   : > { %4065 = vmatmul.msk.bf16.vlgmr.msra.gmra.mxu1 %vm237_vm1, %v5396_v51 }
 0x24f   : > { %v2762_v33 = vpop.f32.mrf.mxu3 }
 0x251   : > { %v2801_v59 = vpop.f32.mrf.mxu2  ;;  %v2840_v8 = vpop.f32.mrf.mxu1 }
 0x253   : > { %v2825_v53 = vpop.f32.mrf.mxu0 }
 0x254   : > { %v5462_v1 = vsel %vm241_vm0, %v2825_v53, %v2950_v61  ;;  %4063 = vmatmul.msk.bf16.vlgmr.msrb.gmra.mxu3 %vm237_vm1, %v5396_v51 }
 0x256   : > { %4066 = vmatmul.msk.bf16.vlgmr.msra.gmra.mxu2 %vm237_vm1, %v5396_v51  ;;  %4064 = vmatmul.msk.bf16.vlgmr.msra.gmra.mxu0 %vm237_vm1, %v5396_v51 }
 0x257   : > { %v2812_v20 = vpop.f32.mrf.mxu3 }
 0x258   : > { %v2949_v27 = vrot.slane %v2812_v20, 4 }
 0x259   : > { %v5470_v23 = vpop.f32.mrf.mxu2  ;;  %v2890_v49 = vpop.f32.mrf.mxu1 }
 0x25a   : > { %v2952_v13 = vrot.slane %v2890_v49, 4  ;;  %v2956_v25 = vsel %vm241_vm0, %v2799_v17, %v2949_v27 }
 0x25b   : > { %v2827_v3 = vpop.f32.mrf.mxu0 }
 0x25c   : > { %4069 = vmatmul.msk.bf16.vlgmr.msrb.gmra.mxu1 %vm237_vm1, %v5396_v51 }
 0x25f   : > { %v2814_v18 = vpop.f32.mrf.mxu3 }
 0x261   : > { %v2853_v16 = vpop.f32.mrf.mxu2  ;;  %v2892_v46 = vpop.f32.mrf.mxu1 }
 0x263   : > { %v2877_v29 = vpop.f32.mrf.mxu0 }
 0x264   : > { %v5475_v50 = vsel %vm241_vm0, %v2877_v29, %v2952_v13  ;;  %4067 = vmatmul.msk.bf16.vlgmr.msra.gmra.mxu3 %vm237_vm1, %v5396_v51 }
 0x266   : > { %4070 = vmatmul.msk.bf16.vlgmr.msrb.gmra.mxu2 %vm237_vm1, %v5396_v51  ;;  %4068 = vmatmul.msk.bf16.vlgmr.msrb.gmra.mxu0 %vm237_vm1, %v5396_v51  ;;  %v3390_v51 = vpop.permute.xlu2 %3389 }
 0x267   : > { %v2864_v42 = vpop.f32.mrf.mxu3  ;;  %v5489_v0 = vperm.slane %v3390_v51, %v5146_v45 }
 0x268   : > { %v2951_v32 = vrot.slane %v2864_v42, 4 }
 0x269   : > { %v5483_v34 = vpop.f32.mrf.mxu2  ;;  %v3141_v57 = vpop.f32.mrf.mxu1 }
 0x26b   : > { %v2879_v7 = vpop.f32.mrf.mxu0 }
 0x26f   : > { %v2866_v22 = vpop.f32.mrf.mxu3 }
 0x271   : > { %v2905_v36 = vpop.f32.mrf.mxu2  ;;  %v3143_v44 = vpop.f32.mrf.mxu1 }
 0x273   : > { %v2929_v4 = vpop.f32.mrf.mxu0 }
 0x274   : > { %v2975_v19 = vadd.f32 %v2929_v4, %v2597_v24 }
 0x276   : > { %2983 = vst.msk [vmem:[#allocation2 + $0x38] sm:$0xf] %vm179_vm5, %v2975_v19 }
 0x277   : > { %v2916_v41 = vpop.f32.mrf.mxu3 }
 0x278   : > { %v2953_v7 = vrot.slane %v2916_v41, 4 }
 0x279   : > { %v3154_v10 = vpop.f32.mrf.mxu2  ;;  %v3193_v54 = vpop.f32.mrf.mxu1 }
 0x27a   : > { %v3341_v43 = vrot.slane %v3154_v10, 4 }
 0x27b   : > { %v2931_v2 = vpop.f32.mrf.mxu0 }
 0x27c   : > { %v3348_v60 = vsel %vm241_vm0, %v3141_v57, %v3341_v43  ;;  %v3827_v2 = vpop.permute.xlu1 %3826 }
 0x27d   : > { %v3362_v31 = vadd.f32 %v3348_v60, %v2954_v28 }
 0x27f   : > { %v3396_v35 = vadd.f32 %v5489_v0, %v3362_v31  ;;  %v2918_v21 = vpop.f32.mrf.mxu3 }
 0x281   : > { %v3156_v14 = vpop.f32.mrf.mxu2  ;;  %4047 = vst [vmem:[%s5177_s16 + $0x78] sm:$0xff] %v3396_v35  ;;  %v3195_v9 = vpop.f32.mrf.mxu1 }
 0x282   : > { %v2991_v9 = vld [vmem:[#allocation2 + $0x38] sm:$0xf] }
 0x283   : > { %v3180_v62 = vpop.f32.mrf.mxu0 }
 0x284   : > { %v3342_v6 = vrot.slane %v3180_v62, 4 }
 0x287   : > { %v3167_v55 = vpop.f32.mrf.mxu3 }
 0x288   : > { %v3349_v37 = vsel %vm241_vm0, %v3167_v55, %v3342_v6 }
 0x289   : > { %v3206_v52 = vpop.f32.mrf.mxu2  ;;  %v3363_v63 = vadd.f32 %v3349_v37, %v5447_v5  ;;  %v3245_v38 = vpop.f32.mrf.mxu1  ;;  %v2958_v5 = vsel %vm241_vm0, %v5470_v23, %v2951_v32 }
 0x28a   : > { %v3343_v15 = vrot.slane %v3206_v52, 4 }
 0x28b   : > { %v3182_v12 = vpop.f32.mrf.mxu0  ;;  %v3397_v56 = vadd.f32 %v5489_v0, %v3363_v63 }
 0x28c   : > { %v3350_v11 = vsel %vm241_vm0, %v3193_v54, %v3343_v15 }
 0x28d   : > { %v3364_v30 = vadd.f32 %v3350_v11, %v2956_v25  ;;  %4048 = vst [vmem:[%s5177_s16 + $0x80] sm:$0xff] %v3397_v56 }
 0x28f   : > { %v3398_v58 = vadd.f32 %v5489_v0, %v3364_v30  ;;  %v3169_v40 = vpop.f32.mrf.mxu3 }
 0x291   : > { %v3208_v48 = vpop.f32.mrf.mxu2  ;;  %4049 = vst [vmem:[%s5177_s16 + $0x88] sm:$0xff] %v3398_v58  ;;  %v3247_v17 = vpop.f32.mrf.mxu1 }
 0x293   : > { %v3232_v39 = vpop.f32.mrf.mxu0 }
 0x294   : > { %v3344_v33 = vrot.slane %v3232_v39, 4 }
 0x297   : > { %v3219_v61 = vpop.f32.mrf.mxu3 }
 0x298   : > { %v3351_v59 = vsel %vm241_vm0, %v3219_v61, %v3344_v33 }
 0x299   : > { %v3258_v8 = vpop.f32.mrf.mxu2  ;;  %v3365_v53 = vadd.f32 %v3351_v59, %v5462_v1  ;;  %v3297_v49 = vpop.f32.mrf.mxu1  ;;  %v2960_v1 = vsel %vm241_vm0, %v5483_v34, %v2953_v7 }
 0x29a   : > { %v3345_v20 = vrot.slane %v3258_v8, 4 }
 0x29b   : > { %v3234_v3 = vpop.f32.mrf.mxu0  ;;  %v3399_v18 = vadd.f32 %v5489_v0, %v3365_v53 }
 0x29c   : > { %v3352_v13 = vsel %vm241_vm0, %v3245_v38, %v3345_v20 }
 0x29d   : > { %v3366_v16 = vadd.f32 %v3352_v13, %v2958_v5  ;;  %4050 = vst [vmem:[%s5177_s16 + $0x90] sm:$0xff] %v3399_v18 }
 0x29f   : > { %v3400_v46 = vadd.f32 %v5489_v0, %v3366_v16  ;;  %v3221_v29 = vpop.f32.mrf.mxu3 }
 0x2a1   : > { %v3260_v42 = vpop.f32.mrf.mxu2  ;;  %4051 = vst [vmem:[%s5177_s16 + $0x98] sm:$0xff] %v3400_v46  ;;  %v3299_v23 = vpop.f32.mrf.mxu1 }
 0x2a3   : > { %v3284_v57 = vpop.f32.mrf.mxu0 }
 0x2a4   : > { %v3346_v22 = vrot.slane %v3284_v57, 4 }
 0x2a7   : > { %v3271_v36 = vpop.f32.mrf.mxu3 }
 0x2a8   : > { %v3353_v24 = vsel %vm241_vm0, %v3271_v36, %v3346_v22 }
 0x2a9   : > { %v3310_v44 = vpop.f32.mrf.mxu2  ;;  %v3367_v4 = vadd.f32 %v3353_v24, %v5475_v50  ;;  %v3591_v19 = vpop.f32.mrf.mxu1  ;;  %v5521_v50 = vperm.slane %v3827_v2, %v5146_v45 }
 0x2aa   : > { %v3347_v26 = vrot.slane %v3310_v44, 4  ;;  %v3778_v54 = vrot.slane %v3591_v19, 4 }
 0x2ab   : > { %v3286_v28 = vpop.f32.mrf.mxu0  ;;  %v3401_v51 = vadd.f32 %v5489_v0, %v3367_v4 }
 0x2ac   : > { %v3354_v10 = vsel %vm241_vm0, %v3297_v49, %v3347_v26 }
 0x2ad   : > { %v3368_v43 = vadd.f32 %v3354_v10, %v2960_v1  ;;  %4052 = vst [vmem:[%s5177_s16 + $0xa0] sm:$0xff] %v3401_v51 }
 0x2af   : > { %v3402_v41 = vadd.f32 %v5489_v0, %v3368_v43  ;;  %v3273_v34 = vpop.f32.mrf.mxu3 }
 0x2b1   : > { %v3312_v60 = vpop.f32.mrf.mxu2  ;;  %4053 = vst [vmem:[%s5177_s16 + $0xa8] sm:$0xff] %v3402_v41  ;;  %v3593_v31 = vpop.f32.mrf.mxu1 }
 0x2b3   : > { %v3578_v35 = vpop.f32.mrf.mxu0 }
 0x2b4   : > { %v3785_v21 = vsel %vm241_vm0, %v3578_v35, %v3778_v54 }
 0x2b5   : > { %v3833_v14 = vadd.f32 %v5521_v50, %v3785_v21 }
 0x2b7   : > { %v3323_v62 = vpop.f32.mrf.mxu3  ;;  %4071 = vst [vmem:[%s5177_s16 + $0xb4] sm:$0xff] %v3833_v14 }
 0x2b8   : > { %v3369_v27 = vadd.f32 %v3323_v62, %v2991_v9 }
 0x2b9   : > { %v3604_v6 = vpop.f32.mrf.mxu2  ;;  %v3643_v25 = vpop.f32.mrf.mxu1 }
 0x2ba   : > { %3377 = vst.msk [vmem:[#allocation2 + $0x38] sm:$0xf] %vm179_vm5, %v3369_v27  ;;  %v3780_v52 = vrot.slane %v3643_v25, 4 }
 0x2bb   : > { %v3580_v55 = vpop.f32.mrf.mxu0 }
 0x2bf   : > { %v3325_v37 = vpop.f32.mrf.mxu3 }
 0x2c1   : > { %v3606_v63 = vpop.f32.mrf.mxu2  ;;  %v3385_v45 = vld [vmem:[#allocation2 + $0x38] sm:$0xf]  ;;  %v3645_v15 = vpop.f32.mrf.mxu1 }
 0x2c2   : > { %v3403_v38 = vadd.f32 %v5489_v0, %v3385_v45  ;;  %3420 = vst.msk [vmem:[#allocation2 + $0x38] sm:$0xf] %vm179_vm5, %v4114_v47 }
 0x2c3   : > { %v3630_v12 = vpop.f32.mrf.mxu0 }
 0x2c4   : > { %v3787_v56 = vsel %vm241_vm0, %v3630_v12, %v3780_v52  ;;  %4054 = vst.msk [vmem:[%s5177_s16 + $0xb0] sm:$0xf] %vm179_vm5, %v3403_v38 }
 0x2c5   : > { %v3835_v11 = vadd.f32 %v5521_v50, %v3787_v56 }
 0x2c7   : > { %v3617_v30 = vpop.f32.mrf.mxu3  ;;  %4073 = vst [vmem:[%s5177_s16 + $0xc4] sm:$0xff] %v3835_v11 }
 0x2c8   : > { %v3779_v58 = vrot.slane %v3617_v30, 4 }
 0x2c9   : > { %v3656_v40 = vpop.f32.mrf.mxu2  ;;  %v3695_v48 = vpop.f32.mrf.mxu1  ;;  %v3428_v1 = vld [vmem:[#allocation2 + $0x38] sm:$0xf] }
 0x2ca   : > { %v3786_v17 = vsel %vm241_vm0, %v3604_v6, %v3779_v58  ;;  %v3782_v32 = vrot.slane %v3695_v48, 4 }
 0x2cb   : > { %v3632_v39 = vpop.f32.mrf.mxu0  ;;  %v3834_v0 = vadd.f32 %v5521_v50, %v3786_v17 }
 0x2cd   : > { %4072 = vst [vmem:[%s5177_s16 + $0xbc] sm:$0xff] %v3834_v0 }
 0x2cf   : > { %v3619_v47 = vpop.f32.mrf.mxu3 }
 0x2d1   : > { %v3658_v33 = vpop.f32.mrf.mxu2  ;;  %v3697_v5 = vpop.f32.mrf.mxu1 }
 0x2d3   : > { %v3682_v61 = vpop.f32.mrf.mxu0 }
 0x2d4   : > { %v3789_v59 = vsel %vm241_vm0, %v3682_v61, %v3782_v32 }
 0x2d5   : > { %v3837_v8 = vadd.f32 %v5521_v50, %v3789_v59 }
 0x2d7   : > { %v3669_v53 = vpop.f32.mrf.mxu3  ;;  %4075 = vst [vmem:[%s5177_s16 + $0xd4] sm:$0xff] %v3837_v8 }
 0x2d8   : > { %v3781_v20 = vrot.slane %v3669_v53, 4 }
 0x2d9   : > { %v3708_v49 = vpop.f32.mrf.mxu2  ;;  %v3747_v3 = vpop.f32.mrf.mxu1 }
 0x2da   : > { %v3788_v18 = vsel %vm241_vm0, %v3656_v40, %v3781_v20  ;;  %v3784_v29 = vrot.slane %v3747_v3, 4 }
 0x2db   : > { %v3684_v13 = vpop.f32.mrf.mxu0  ;;  %v3836_v16 = vadd.f32 %v5521_v50, %v3788_v18 }
 0x2dd   : > { %4074 = vst [vmem:[%s5177_s16 + $0xcc] sm:$0xff] %v3836_v16 }
 0x2df   : > { %v3671_v46 = vpop.f32.mrf.mxu3 }
 0x2e1   : > { %v3710_v42 = vpop.f32.mrf.mxu2  ;;  %v3749_v23 = vpop.f32.mrf.mxu1 }
 0x2e3   : > { %v3734_v57 = vpop.f32.mrf.mxu0 }
 0x2e4   : > { %v3791_v7 = vsel %vm241_vm0, %v3734_v57, %v3784_v29 }
 0x2e5   : > { %v3839_v22 = vadd.f32 %v5521_v50, %v3791_v7 }
 0x2e7   : > { %v3721_v36 = vpop.f32.mrf.mxu3  ;;  %4077 = vst [vmem:[%s5177_s16 + $0xe4] sm:$0xff] %v3839_v22 }
 0x2e8   : > { %v3783_v24 = vrot.slane %v3721_v36, 4 }
 0x2e9   : > { %v3760_v44 = vpop.f32.mrf.mxu2 }
 0x2ea   : > { %v3806_v4 = vadd.f32 %v3760_v44, %v3428_v1  ;;  %v3790_v26 = vsel %vm241_vm0, %v3708_v49, %v3783_v24 }
 0x2eb   : > { %v3736_v19 = vpop.f32.mrf.mxu0  ;;  %v3838_v28 = vadd.f32 %v5521_v50, %v3790_v26 }
 0x2ec   : > { %3814 = vst.msk [vmem:[#allocation2 + $0x38] sm:$0xf] %vm179_vm5, %v3806_v4 }
 0x2ed   : > { %4076 = vst [vmem:[%s5177_s16 + $0xdc] sm:$0xff] %v3838_v28 }
 0x2ef   : > { %v3723_v51 = vpop.f32.mrf.mxu3 }
 0x2f1   : > { %v3762_v10 = vpop.f32.mrf.mxu2 }
 0x2f3   : > { %v3822_v43 = vld [vmem:[#allocation2 + $0x38] sm:$0xf] }
 0x2f4   : > { %v3840_v41 = vadd.f32 %v5521_v50, %v3822_v43 }
 0x2f6   : > { %4078 = vst.msk [vmem:[%s5177_s16 + $0xec] sm:$0xf] %vm179_vm5, %v3840_v41 }
 0x2f7 PF: > { %s13_s12 = sadd.s32 1, %s4109_s12  }
 0x2f8   : > { %p10_p4 = scmp.ge.s32.totalorder %s13_s12, 4  }
 0x2fa   :  { %12 = sbr.rel (!%p10_p4) target bundleno = 1 (0x1), region = 73 }

</bundles_post_ra>
